<compile_context>
chip_gen: v7x
topology: tpu7x:2x2x1
jax: 0.10.0
libtpu: 0.0.40
codegen_flags: <defaults>
</compile_context>

<pallas_src>
import functools
import math

import jax
import jax.numpy as jnp
from jax.experimental import pallas as pl
from jax.experimental.pallas import tpu as pltpu


# ----------------------------- configuration --------------------------------
B = 2            # batch
C_IN = 4         # input channels (EEG/MEG "image" channels)
H_IN = 16        # spatial height
W_IN = 16        # spatial width
PATCH = 4        # patch size  -> N_TOK = (16/4)*(16/4) = 16 tokens
N_TOK = (H_IN // PATCH) * (W_IN // PATCH)
CPP = C_IN * PATCH * PATCH   # channels * patch * patch = 64
D = 32           # hidden dim
N_HEADS = 4
D_HEAD = D // N_HEADS
D_MLP = 64
VOCAB = 128      # decoder LM-head vocabulary (lane-dense output)
ENC_LAYERS = 1
DEC_LAYERS = 1
EPS = 1e-5


# --------------------------- in-kernel helpers -------------------------------
def _mm(a, b):
    """f32 matmul with explicit f32 accumulation."""
    return jnp.dot(a, b, preferred_element_type=jnp.float32)


def _layernorm(x, g, b):
    """LayerNorm in f32. x:(T,D), g/b:(1,D)."""
    mu = jnp.mean(x, axis=-1, keepdims=True)
    var = jnp.mean((x - mu) ** 2, axis=-1, keepdims=True)
    return (x - mu) * jax.lax.rsqrt(var + EPS) * g + b


def _get(w_ref, layout, name):
    """Static-offset slice of the packed (rows,128) weight slab."""
    off, r, c = layout[name]
    return w_ref[off:off + r, 0:c]


def _attend(x_q, x_kv, w_q, b_q, w_kv, b_kv, w_o, b_o, causal):
    """Multi-head attention on batch-flattened activations.

    x_q : (B*Tq, D), x_kv : (B*Tk, D)
    w_q : (D, D),  b_q : (1, D)
    w_kv: (D, 2D), b_kv: (1, 2D)   (fused key/value projection)
    w_o : (D, D),  b_o : (1, D)
    Per-batch / per-head work is a short static Python loop; everything stays
    in f32 (safe on v5e's VPU).
    """
    tq = x_q.shape[0] // B
    tk = x_kv.shape[0] // B
    scale = 1.0 / math.sqrt(D_HEAD)

    q_all = _mm(x_q, w_q) + b_q          # (B*Tq, D)
    kv_all = _mm(x_kv, w_kv) + b_kv      # (B*Tk, 2D)

    if causal:
        qi = jax.lax.broadcasted_iota(jnp.int32, (tq, tk), 0)
        ki = jax.lax.broadcasted_iota(jnp.int32, (tq, tk), 1)
        neg = jnp.float32(-1e30)

    batch_outs = []
    for bb in range(B):
        qb = q_all[bb * tq:(bb + 1) * tq, :]     # (Tq, D)
        kvb = kv_all[bb * tk:(bb + 1) * tk, :]   # (Tk, 2D)
        head_outs = []
        for hh in range(N_HEADS):
            q = qb[:, hh * D_HEAD:(hh + 1) * D_HEAD]                  # (Tq, dh)
            k = kvb[:, hh * D_HEAD:(hh + 1) * D_HEAD]                 # (Tk, dh)
            v = kvb[:, D + hh * D_HEAD: D + (hh + 1) * D_HEAD]        # (Tk, dh)
            # Contract on the head dim directly -> no explicit k.T relayout.
            s = jax.lax.dot_general(
                q, k, (((1,), (1,)), ((), ())),
                preferred_element_type=jnp.float32) * scale           # (Tq, Tk)
            if causal:
                s = jnp.where(ki <= qi, s, neg)
            m = jnp.max(s, axis=-1, keepdims=True)
            p = jnp.exp(s - m)
            denom = jnp.sum(p, axis=-1, keepdims=True)
            o = _mm(p, v) * pl.reciprocal(denom, approx=True)         # (Tq, dh)
            head_outs.append(o)
        batch_outs.append(jnp.concatenate(head_outs, axis=-1))        # (Tq, D)
    merged = jnp.concatenate(batch_outs, axis=0)                      # (B*Tq, D)
    return _mm(merged, w_o) + b_o                                     # (B*Tq, D)


def _encoder(patches, get):
    """ViT-style encoder. patches:(B*N_TOK, CPP) -> tokens (B*N_TOK, D)."""
    x = _mm(patches, get("enc_patch_w")) + get("enc_patch_b")         # (B*T, D)
    pos = get("enc_pos")                                              # (T, D)
    x = x + jnp.concatenate([pos] * B, axis=0)
    for l in range(ENC_LAYERS):
        h = _layernorm(x, get(f"enc_ln1_g_{l}"), get(f"enc_ln1_b_{l}"))
        x = x + _attend(h, h,
                        get(f"enc_wq_{l}"), get(f"enc_bq_{l}"),
                        get(f"enc_wkv_{l}"), get(f"enc_bkv_{l}"),
                        get(f"enc_wo_{l}"), get(f"enc_bo_{l}"),
                        causal=False)
        h = _layernorm(x, get(f"enc_ln2_g_{l}"), get(f"enc_ln2_b_{l}"))
        h = jax.nn.gelu(_mm(h, get(f"enc_fc1_w_{l}")) + get(f"enc_fc1_b_{l}"),
                        approximate=True)
        x = x + _mm(h, get(f"enc_fc2_w_{l}")) + get(f"enc_fc2_b_{l}")
    return _layernorm(x, get("enc_lnf_g"), get("enc_lnf_b"))


def _decoder(mem, tgt, get):
    """GPT2-style decoder w/ cross-attention. -> logits (B*N_TOK, VOCAB)."""
    pos = get("dec_pos")
    x = tgt + jnp.concatenate([pos] * B, axis=0)
    for l in range(DEC_LAYERS):
        h = _layernorm(x, get(f"dec_ln1_g_{l}"), get(f"dec_ln1_b_{l}"))
        x = x + _attend(h, h,
                        get(f"dec_s_wq_{l}"), get(f"dec_s_bq_{l}"),
                        get(f"dec_s_wkv_{l}"), get(f"dec_s_bkv_{l}"),
                        get(f"dec_s_wo_{l}"), get(f"dec_s_bo_{l}"),
                        causal=True)
        h = _layernorm(x, get(f"dec_ln2_g_{l}"), get(f"dec_ln2_b_{l}"))
        x = x + _attend(h, mem,
                        get(f"dec_c_wq_{l}"), get(f"dec_c_bq_{l}"),
                        get(f"dec_c_wkv_{l}"), get(f"dec_c_bkv_{l}"),
                        get(f"dec_c_wo_{l}"), get(f"dec_c_bo_{l}"),
                        causal=False)
        h = _layernorm(x, get(f"dec_ln3_g_{l}"), get(f"dec_ln3_b_{l}"))
        h = jax.nn.gelu(_mm(h, get(f"dec_fc1_w_{l}")) + get(f"dec_fc1_b_{l}"),
                        approximate=True)
        x = x + _mm(h, get(f"dec_fc2_w_{l}")) + get(f"dec_fc2_b_{l}")
    x = _layernorm(x, get("dec_lnf_g"), get("dec_lnf_b"))
    # LM head: (B*T, D) @ (D, VOCAB=128) -> lane-dense.
    return _mm(x, get("dec_lm_w")) + get("dec_lm_b")


# ------------------------------ fused kernel ---------------------------------
def _waves_kernel(eeg_ref, meg_ref, w_ref, o_ref, *, layout):
    """Whole WavesTransformer forward, fully VMEM-resident, one invocation."""
    get = functools.partial(_get, w_ref, layout)
    eeg_mem = _encoder(eeg_ref[...], get)     # encoder(eeg)  (B*T, D)
    meg_emb = _encoder(meg_ref[...], get)     # encoder(meg)  (B*T, D)
    logits = _decoder(eeg_mem, meg_emb, get)  # decoder(eeg_enc, meg_enc)
    o_ref[...] = logits.astype(o_ref.dtype)   # (B*T, VOCAB) lane-dense store


# ------------------------------ wrapper ---------------------------------------
def _to_patches(x_nchw):
    """Non-overlapping patch extraction (== stride-PATCH conv patch embed), as glue."""
    nb = x_nchw.shape[0]
    hp, wp = H_IN // PATCH, W_IN // PATCH
    p = x_nchw.reshape(nb, C_IN, hp, PATCH, wp, PATCH)
    p = p.transpose(0, 2, 4, 1, 3, 5).reshape(nb * N_TOK, CPP)
    return p


def waves_transformer_forward(eeg, meg, slab, *, layout):
    """Mirrors WavesTransformer.forward: decoder(encoder(eeg), encoder(meg))."""
    eeg_p = _to_patches(eeg)   # (B*N_TOK, CPP)
    meg_p = _to_patches(meg)   # (B*N_TOK, CPP)
    kernel = functools.partial(_waves_kernel, layout=layout)
    out = pl.pallas_call(
        kernel,
        out_shape=jax.ShapeDtypeStruct((B * N_TOK, VOCAB), jnp.float32),
    )(eeg_p, meg_p, slab)
    return out.reshape(B, N_TOK, VOCAB)


# ------------------------------ parameter packing -----------------------------
def _pack_params(entries):
    """Pack (name, (r,c) f32 array) entries into one (rows,128) slab.

    Each entry is padded to 128 lanes and an 8-row-aligned slot so in-kernel
    slices are always (sublane, lane)-aligned.
    """
    layout = {}
    blocks = []
    off = 0
    for name, a in entries:
        r, c = a.shape
        rp = ((r + 7) // 8) * 8
        block = jnp.zeros((rp, 128), jnp.float32).at[:r, :c].set(a)
        layout[name] = (off, r, c)
        blocks.append(block)
        off += rp
    return jnp.concatenate(blocks, axis=0), layout


def _init_params():
    key = jax.random.PRNGKey(42)
    counter = [0]

    def nk():
        counter[0] += 1
        return jax.random.fold_in(key, counter[0])

    def rnd(shape):
        return 0.02 * jax.random.normal(nk(), shape, jnp.float32)

    zeros = lambda s: jnp.zeros(s, jnp.float32)
    ones = lambda s: jnp.ones(s, jnp.float32)

    entries = []
    add = lambda name, arr: entries.append((name, arr))

    # ---- encoder ----
    add("enc_patch_w", rnd((CPP, D)))
    add("enc_patch_b", zeros((1, D)))
    add("enc_pos", rnd((N_TOK, D)))
    for l in range(ENC_LAYERS):
        add(f"enc_ln1_g_{l}", ones((1, D))); add(f"enc_ln1_b_{l}", zeros((1, D)))
        add(f"enc_wq_{l}", rnd((D, D)));      add(f"enc_bq_{l}", zeros((1, D)))
        add(f"enc_wkv_{l}", rnd((D, 2 * D))); add(f"enc_bkv_{l}", zeros((1, 2 * D)))
        add(f"enc_wo_{l}", rnd((D, D)));      add(f"enc_bo_{l}", zeros((1, D)))
        add(f"enc_ln2_g_{l}", ones((1, D))); add(f"enc_ln2_b_{l}", zeros((1, D)))
        add(f"enc_fc1_w_{l}", rnd((D, D_MLP))); add(f"enc_fc1_b_{l}", zeros((1, D_MLP)))
        add(f"enc_fc2_w_{l}", rnd((D_MLP, D))); add(f"enc_fc2_b_{l}", zeros((1, D)))
    add("enc_lnf_g", ones((1, D))); add("enc_lnf_b", zeros((1, D)))

    # ---- decoder ----
    add("dec_pos", rnd((N_TOK, D)))
    for l in range(DEC_LAYERS):
        add(f"dec_ln1_g_{l}", ones((1, D))); add(f"dec_ln1_b_{l}", zeros((1, D)))
        add(f"dec_s_wq_{l}", rnd((D, D)));      add(f"dec_s_bq_{l}", zeros((1, D)))
        add(f"dec_s_wkv_{l}", rnd((D, 2 * D))); add(f"dec_s_bkv_{l}", zeros((1, 2 * D)))
        add(f"dec_s_wo_{l}", rnd((D, D)));      add(f"dec_s_bo_{l}", zeros((1, D)))
        add(f"dec_ln2_g_{l}", ones((1, D))); add(f"dec_ln2_b_{l}", zeros((1, D)))
        add(f"dec_c_wq_{l}", rnd((D, D)));      add(f"dec_c_bq_{l}", zeros((1, D)))
        add(f"dec_c_wkv_{l}", rnd((D, 2 * D))); add(f"dec_c_bkv_{l}", zeros((1, 2 * D)))
        add(f"dec_c_wo_{l}", rnd((D, D)));      add(f"dec_c_bo_{l}", zeros((1, D)))
        add(f"dec_ln3_g_{l}", ones((1, D))); add(f"dec_ln3_b_{l}", zeros((1, D)))
        add(f"dec_fc1_w_{l}", rnd((D, D_MLP))); add(f"dec_fc1_b_{l}", zeros((1, D_MLP)))
        add(f"dec_fc2_w_{l}", rnd((D_MLP, D))); add(f"dec_fc2_b_{l}", zeros((1, D)))
    add("dec_lnf_g", ones((1, D))); add("dec_lnf_b", zeros((1, D)))
    add("dec_lm_w", rnd((D, VOCAB))); add("dec_lm_b", zeros((1, VOCAB)))

    return _pack_params(entries)


# ---------------------------------- main --------------------------------------
if __name__ == "__main__":
    slab, layout = _init_params()

    key = jax.random.PRNGKey(0)
    k_eeg, k_meg = jax.random.split(key)
    eeg = jax.random.normal(k_eeg, (B, C_IN, H_IN, W_IN), jnp.float32)
    meg = jax.random.normal(k_meg, (B, C_IN, H_IN, W_IN), jnp.float32)

    fwd = jax.jit(functools.partial(waves_transformer_forward, layout=layout))
    out = fwd(eeg, meg, slab)
    jax.block_until_ready(out)

    assert out.shape == (B, N_TOK, VOCAB), out.shape
    assert bool(jnp.all(jnp.isfinite(out)))
    print("KERNEL_OK")
</pallas_src>

<mosaic_0001>
module attributes {stable_mosaic.version = 11 : i64} {
  func.func @_waves_kernel(%arg0: memref<32x64xf32, #tpu.memory_space<vmem>>, %arg1: memref<32x64xf32, #tpu.memory_space<vmem>>, %arg2: memref<840x128xf32, #tpu.memory_space<vmem>>, %arg3: memref<32x128xf32, #tpu.memory_space<vmem>>) attributes {dimension_semantics = [], scalar_prefetch = 0 : i64, scratch_operands = 0 : i64, tpu.core_type = #tpu.core_type<tc>} {
    %c0 = arith.constant 0 : index
    %c0_0 = arith.constant 0 : index
    %0 = vector.load %arg0[%c0, %c0_0] : memref<32x64xf32, #tpu.memory_space<vmem>>, vector<32x64xf32>
    %c0_1 = arith.constant 0 : index
    %c0_2 = arith.constant 0 : index
    %1 = vector.load %arg2[%c0_1, %c0_2] : memref<840x128xf32, #tpu.memory_space<vmem>>, vector<64x32xf32>
    %cst = arith.constant dense<0.000000e+00> : vector<32x32xf32>
    %2 = tpu.matmul %0, %1, %cst {dimension_numbers = #tpu.dot_dimension_numbers<[1], [0], [0], [1], [0, 0, 1, 1], [], []>} : vector<32x64xf32>, vector<64x32xf32>, vector<32x32xf32> -> vector<32x32xf32>
    %c64 = arith.constant 64 : index
    %c0_3 = arith.constant 0 : index
    %3 = vector.load %arg2[%c64, %c0_3] : memref<840x128xf32, #tpu.memory_space<vmem>>, vector<1x32xf32>
    %4 = vector.broadcast %3 : vector<1x32xf32> to vector<32x32xf32>
    %5 = arith.addf %2, %4 : vector<32x32xf32>
    %c72 = arith.constant 72 : index
    %c0_4 = arith.constant 0 : index
    %6 = vector.load %arg2[%c72, %c0_4] : memref<840x128xf32, #tpu.memory_space<vmem>>, vector<16x32xf32>
    %7 = tpu.concatenate %6, %6 in 0 : vector<16x32xf32>, vector<16x32xf32> -> vector<32x32xf32>
    %8 = arith.addf %5, %7 : vector<32x32xf32>
    %c88 = arith.constant 88 : index
    %c0_5 = arith.constant 0 : index
    %9 = vector.load %arg2[%c88, %c0_5] : memref<840x128xf32, #tpu.memory_space<vmem>>, vector<1x32xf32>
    %c96 = arith.constant 96 : index
    %c0_6 = arith.constant 0 : index
    %10 = vector.load %arg2[%c96, %c0_6] : memref<840x128xf32, #tpu.memory_space<vmem>>, vector<1x32xf32>
    %cst_7 = arith.constant dense<0.000000e+00> : vector<32xf32>
    %11 = vector.multi_reduction <add>, %8, %cst_7 [1] : vector<32x32xf32> to vector<32xf32>
    %12 = vector.shape_cast %11 : vector<32xf32> to vector<32x1xf32>
    %cst_8 = arith.constant 3.200000e+01 : f32
    %13 = vector.broadcast %cst_8 : f32 to vector<32x1xf32>
    %14 = arith.divf %12, %13 : vector<32x1xf32>
    %15 = vector.broadcast %14 : vector<32x1xf32> to vector<32x32xf32>
    %16 = arith.subf %8, %15 : vector<32x32xf32>
    %17 = arith.mulf %16, %16 : vector<32x32xf32>
    %cst_9 = arith.constant dense<0.000000e+00> : vector<32xf32>
    %18 = vector.multi_reduction <add>, %17, %cst_9 [1] : vector<32x32xf32> to vector<32xf32>
    %19 = vector.shape_cast %18 : vector<32xf32> to vector<32x1xf32>
    %cst_10 = arith.constant 3.200000e+01 : f32
    %20 = vector.broadcast %cst_10 : f32 to vector<32x1xf32>
    %21 = arith.divf %19, %20 : vector<32x1xf32>
    %22 = vector.broadcast %14 : vector<32x1xf32> to vector<32x32xf32>
    %23 = arith.subf %8, %22 : vector<32x32xf32>
    %cst_11 = arith.constant 9.99999974E-6 : f32
    %24 = vector.broadcast %cst_11 : f32 to vector<32x1xf32>
    %25 = arith.addf %21, %24 : vector<32x1xf32>
    %26 = math.rsqrt %25 : vector<32x1xf32>
    %27 = vector.broadcast %26 : vector<32x1xf32> to vector<32x32xf32>
    %28 = arith.mulf %23, %27 : vector<32x32xf32>
    %29 = vector.broadcast %9 : vector<1x32xf32> to vector<32x32xf32>
    %30 = arith.mulf %28, %29 : vector<32x32xf32>
    %31 = vector.broadcast %10 : vector<1x32xf32> to vector<32x32xf32>
    %32 = arith.addf %30, %31 : vector<32x32xf32>
    %c104 = arith.constant 104 : index
    %c0_12 = arith.constant 0 : index
    %33 = vector.load %arg2[%c104, %c0_12] : memref<840x128xf32, #tpu.memory_space<vmem>>, vector<32x32xf32>
    %c136 = arith.constant 136 : index
    %c0_13 = arith.constant 0 : index
    %34 = vector.load %arg2[%c136, %c0_13] : memref<840x128xf32, #tpu.memory_space<vmem>>, vector<1x32xf32>
    %c144 = arith.constant 144 : index
    %c0_14 = arith.constant 0 : index
    %35 = vector.load %arg2[%c144, %c0_14] : memref<840x128xf32, #tpu.memory_space<vmem>>, vector<32x64xf32>
    %c176 = arith.constant 176 : index
    %c0_15 = arith.constant 0 : index
    %36 = vector.load %arg2[%c176, %c0_15] : memref<840x128xf32, #tpu.memory_space<vmem>>, vector<1x64xf32>
    %c184 = arith.constant 184 : index
    %c0_16 = arith.constant 0 : index
    %37 = vector.load %arg2[%c184, %c0_16] : memref<840x128xf32, #tpu.memory_space<vmem>>, vector<32x32xf32>
    %c216 = arith.constant 216 : index
    %c0_17 = arith.constant 0 : index
    %38 = vector.load %arg2[%c216, %c0_17] : memref<840x128xf32, #tpu.memory_space<vmem>>, vector<1x32xf32>
    %cst_18 = arith.constant dense<0.000000e+00> : vector<32x32xf32>
    %39 = tpu.matmul %32, %33, %cst_18 {dimension_numbers = #tpu.dot_dimension_numbers<[1], [0], [0], [1], [0, 0, 1, 1], [], []>} : vector<32x32xf32>, vector<32x32xf32>, vector<32x32xf32> -> vector<32x32xf32>
    %40 = vector.broadcast %34 : vector<1x32xf32> to vector<32x32xf32>
    %41 = arith.addf %39, %40 : vector<32x32xf32>
    %cst_19 = arith.constant dense<0.000000e+00> : vector<32x64xf32>
    %42 = tpu.matmul %32, %35, %cst_19 {dimension_numbers = #tpu.dot_dimension_numbers<[1], [0], [0], [1], [0, 0, 1, 1], [], []>} : vector<32x32xf32>, vector<32x64xf32>, vector<32x64xf32> -> vector<32x64xf32>
    %43 = vector.broadcast %36 : vector<1x64xf32> to vector<32x64xf32>
    %44 = arith.addf %42, %43 : vector<32x64xf32>
    %45 = vector.extract_strided_slice %41 {offsets = [0, 0], sizes = [16, 32], strides = [1, 1]} : vector<32x32xf32> to vector<16x32xf32>
    %46 = vector.extract_strided_slice %44 {offsets = [0, 0], sizes = [16, 64], strides = [1, 1]} : vector<32x64xf32> to vector<16x64xf32>
    %47 = vector.extract_strided_slice %45 {offsets = [0, 0], sizes = [16, 8], strides = [1, 1]} : vector<16x32xf32> to vector<16x8xf32>
    %48 = vector.extract_strided_slice %46 {offsets = [0, 0], sizes = [16, 8], strides = [1, 1]} : vector<16x64xf32> to vector<16x8xf32>
    %49 = vector.extract_strided_slice %46 {offsets = [0, 32], sizes = [16, 8], strides = [1, 1]} : vector<16x64xf32> to vector<16x8xf32>
    %cst_20 = arith.constant dense<0.000000e+00> : vector<16x16xf32>
    %50 = tpu.matmul %47, %48, %cst_20 {dimension_numbers = #tpu.dot_dimension_numbers<[1], [1], [0], [0], [0, 0, 1, 0], [], []>} : vector<16x8xf32>, vector<16x8xf32>, vector<16x16xf32> -> vector<16x16xf32>
    %cst_21 = arith.constant 0.353553385 : f32
    %51 = vector.broadcast %cst_21 : f32 to vector<16x16xf32>
    %52 = arith.mulf %50, %51 : vector<16x16xf32>
    %cst_22 = arith.constant dense<0xFF800000> : vector<16xf32>
    %53 = vector.multi_reduction <maximumf>, %52, %cst_22 [1] : vector<16x16xf32> to vector<16xf32>
    %54 = vector.shape_cast %53 : vector<16xf32> to vector<16x1xf32>
    %55 = vector.broadcast %54 : vector<16x1xf32> to vector<16x16xf32>
    %56 = arith.subf %52, %55 : vector<16x16xf32>
    %57 = math.exp %56 : vector<16x16xf32>
    %cst_23 = arith.constant dense<0.000000e+00> : vector<16xf32>
    %58 = vector.multi_reduction <add>, %57, %cst_23 [1] : vector<16x16xf32> to vector<16xf32>
    %59 = vector.shape_cast %58 : vector<16xf32> to vector<16x1xf32>
    %cst_24 = arith.constant dense<0.000000e+00> : vector<16x8xf32>
    %60 = tpu.matmul %57, %49, %cst_24 {dimension_numbers = #tpu.dot_dimension_numbers<[1], [0], [0], [1], [0, 0, 1, 1], [], []>} : vector<16x16xf32>, vector<16x8xf32>, vector<16x8xf32> -> vector<16x8xf32>
    %61 = tpu.reciprocal %59 {approx = true} : vector<16x1xf32> -> vector<16x1xf32>
    %62 = vector.broadcast %61 : vector<16x1xf32> to vector<16x8xf32>
    %63 = arith.mulf %60, %62 : vector<16x8xf32>
    %64 = vector.extract_strided_slice %45 {offsets = [0, 8], sizes = [16, 8], strides = [1, 1]} : vector<16x32xf32> to vector<16x8xf32>
    %65 = vector.extract_strided_slice %46 {offsets = [0, 8], sizes = [16, 8], strides = [1, 1]} : vector<16x64xf32> to vector<16x8xf32>
    %66 = vector.extract_strided_slice %46 {offsets = [0, 40], sizes = [16, 8], strides = [1, 1]} : vector<16x64xf32> to vector<16x8xf32>
    %cst_25 = arith.constant dense<0.000000e+00> : vector<16x16xf32>
    %67 = tpu.matmul %64, %65, %cst_25 {dimension_numbers = #tpu.dot_dimension_numbers<[1], [1], [0], [0], [0, 0, 1, 0], [], []>} : vector<16x8xf32>, vector<16x8xf32>, vector<16x16xf32> -> vector<16x16xf32>
    %cst_26 = arith.constant 0.353553385 : f32
    %68 = vector.broadcast %cst_26 : f32 to vector<16x16xf32>
    %69 = arith.mulf %67, %68 : vector<16x16xf32>
    %cst_27 = arith.constant dense<0xFF800000> : vector<16xf32>
    %70 = vector.multi_reduction <maximumf>, %69, %cst_27 [1] : vector<16x16xf32> to vector<16xf32>
    %71 = vector.shape_cast %70 : vector<16xf32> to vector<16x1xf32>
    %72 = vector.broadcast %71 : vector<16x1xf32> to vector<16x16xf32>
    %73 = arith.subf %69, %72 : vector<16x16xf32>
    %74 = math.exp %73 : vector<16x16xf32>
    %cst_28 = arith.constant dense<0.000000e+00> : vector<16xf32>
    %75 = vector.multi_reduction <add>, %74, %cst_28 [1] : vector<16x16xf32> to vector<16xf32>
    %76 = vector.shape_cast %75 : vector<16xf32> to vector<16x1xf32>
    %cst_29 = arith.constant dense<0.000000e+00> : vector<16x8xf32>
    %77 = tpu.matmul %74, %66, %cst_29 {dimension_numbers = #tpu.dot_dimension_numbers<[1], [0], [0], [1], [0, 0, 1, 1], [], []>} : vector<16x16xf32>, vector<16x8xf32>, vector<16x8xf32> -> vector<16x8xf32>
    %78 = tpu.reciprocal %76 {approx = true} : vector<16x1xf32> -> vector<16x1xf32>
    %79 = vector.broadcast %78 : vector<16x1xf32> to vector<16x8xf32>
    %80 = arith.mulf %77, %79 : vector<16x8xf32>
    %81 = vector.extract_strided_slice %45 {offsets = [0, 16], sizes = [16, 8], strides = [1, 1]} : vector<16x32xf32> to vector<16x8xf32>
    %82 = vector.extract_strided_slice %46 {offsets = [0, 16], sizes = [16, 8], strides = [1, 1]} : vector<16x64xf32> to vector<16x8xf32>
    %83 = vector.extract_strided_slice %46 {offsets = [0, 48], sizes = [16, 8], strides = [1, 1]} : vector<16x64xf32> to vector<16x8xf32>
    %cst_30 = arith.constant dense<0.000000e+00> : vector<16x16xf32>
    %84 = tpu.matmul %81, %82, %cst_30 {dimension_numbers = #tpu.dot_dimension_numbers<[1], [1], [0], [0], [0, 0, 1, 0], [], []>} : vector<16x8xf32>, vector<16x8xf32>, vector<16x16xf32> -> vector<16x16xf32>
    %cst_31 = arith.constant 0.353553385 : f32
    %85 = vector.broadcast %cst_31 : f32 to vector<16x16xf32>
    %86 = arith.mulf %84, %85 : vector<16x16xf32>
    %cst_32 = arith.constant dense<0xFF800000> : vector<16xf32>
    %87 = vector.multi_reduction <maximumf>, %86, %cst_32 [1] : vector<16x16xf32> to vector<16xf32>
    %88 = vector.shape_cast %87 : vector<16xf32> to vector<16x1xf32>
    %89 = vector.broadcast %88 : vector<16x1xf32> to vector<16x16xf32>
    %90 = arith.subf %86, %89 : vector<16x16xf32>
    %91 = math.exp %90 : vector<16x16xf32>
    %cst_33 = arith.constant dense<0.000000e+00> : vector<16xf32>
    %92 = vector.multi_reduction <add>, %91, %cst_33 [1] : vector<16x16xf32> to vector<16xf32>
    %93 = vector.shape_cast %92 : vector<16xf32> to vector<16x1xf32>
    %cst_34 = arith.constant dense<0.000000e+00> : vector<16x8xf32>
    %94 = tpu.matmul %91, %83, %cst_34 {dimension_numbers = #tpu.dot_dimension_numbers<[1], [0], [0], [1], [0, 0, 1, 1], [], []>} : vector<16x16xf32>, vector<16x8xf32>, vector<16x8xf32> -> vector<16x8xf32>
    %95 = tpu.reciprocal %93 {approx = true} : vector<16x1xf32> -> vector<16x1xf32>
    %96 = vector.broadcast %95 : vector<16x1xf32> to vector<16x8xf32>
    %97 = arith.mulf %94, %96 : vector<16x8xf32>
    %98 = vector.extract_strided_slice %45 {offsets = [0, 24], sizes = [16, 8], strides = [1, 1]} : vector<16x32xf32> to vector<16x8xf32>
    %99 = vector.extract_strided_slice %46 {offsets = [0, 24], sizes = [16, 8], strides = [1, 1]} : vector<16x64xf32> to vector<16x8xf32>
    %100 = vector.extract_strided_slice %46 {offsets = [0, 56], sizes = [16, 8], strides = [1, 1]} : vector<16x64xf32> to vector<16x8xf32>
    %cst_35 = arith.constant dense<0.000000e+00> : vector<16x16xf32>
    %101 = tpu.matmul %98, %99, %cst_35 {dimension_numbers = #tpu.dot_dimension_numbers<[1], [1], [0], [0], [0, 0, 1, 0], [], []>} : vector<16x8xf32>, vector<16x8xf32>, vector<16x16xf32> -> vector<16x16xf32>
    %cst_36 = arith.constant 0.353553385 : f32
    %102 = vector.broadcast %cst_36 : f32 to vector<16x16xf32>
    %103 = arith.mulf %101, %102 : vector<16x16xf32>
    %cst_37 = arith.constant dense<0xFF800000> : vector<16xf32>
    %104 = vector.multi_reduction <maximumf>, %103, %cst_37 [1] : vector<16x16xf32> to vector<16xf32>
    %105 = vector.shape_cast %104 : vector<16xf32> to vector<16x1xf32>
    %106 = vector.broadcast %105 : vector<16x1xf32> to vector<16x16xf32>
    %107 = arith.subf %103, %106 : vector<16x16xf32>
    %108 = math.exp %107 : vector<16x16xf32>
    %cst_38 = arith.constant dense<0.000000e+00> : vector<16xf32>
    %109 = vector.multi_reduction <add>, %108, %cst_38 [1] : vector<16x16xf32> to vector<16xf32>
    %110 = vector.shape_cast %109 : vector<16xf32> to vector<16x1xf32>
    %cst_39 = arith.constant dense<0.000000e+00> : vector<16x8xf32>
    %111 = tpu.matmul %108, %100, %cst_39 {dimension_numbers = #tpu.dot_dimension_numbers<[1], [0], [0], [1], [0, 0, 1, 1], [], []>} : vector<16x16xf32>, vector<16x8xf32>, vector<16x8xf32> -> vector<16x8xf32>
    %112 = tpu.reciprocal %110 {approx = true} : vector<16x1xf32> -> vector<16x1xf32>
    %113 = vector.broadcast %112 : vector<16x1xf32> to vector<16x8xf32>
    %114 = arith.mulf %111, %113 : vector<16x8xf32>
    %115 = tpu.concatenate %63, %80, %97, %114 in 1 : vector<16x8xf32>, vector<16x8xf32>, vector<16x8xf32>, vector<16x8xf32> -> vector<16x32xf32>
    %116 = vector.extract_strided_slice %41 {offsets = [16, 0], sizes = [16, 32], strides = [1, 1]} : vector<32x32xf32> to vector<16x32xf32>
    %117 = vector.extract_strided_slice %44 {offsets = [16, 0], sizes = [16, 64], strides = [1, 1]} : vector<32x64xf32> to vector<16x64xf32>
    %118 = vector.extract_strided_slice %116 {offsets = [0, 0], sizes = [16, 8], strides = [1, 1]} : vector<16x32xf32> to vector<16x8xf32>
    %119 = vector.extract_strided_slice %117 {offsets = [0, 0], sizes = [16, 8], strides = [1, 1]} : vector<16x64xf32> to vector<16x8xf32>
    %120 = vector.extract_strided_slice %117 {offsets = [0, 32], sizes = [16, 8], strides = [1, 1]} : vector<16x64xf32> to vector<16x8xf32>
    %cst_40 = arith.constant dense<0.000000e+00> : vector<16x16xf32>
    %121 = tpu.matmul %118, %119, %cst_40 {dimension_numbers = #tpu.dot_dimension_numbers<[1], [1], [0], [0], [0, 0, 1, 0], [], []>} : vector<16x8xf32>, vector<16x8xf32>, vector<16x16xf32> -> vector<16x16xf32>
    %cst_41 = arith.constant 0.353553385 : f32
    %122 = vector.broadcast %cst_41 : f32 to vector<16x16xf32>
    %123 = arith.mulf %121, %122 : vector<16x16xf32>
    %cst_42 = arith.constant dense<0xFF800000> : vector<16xf32>
    %124 = vector.multi_reduction <maximumf>, %123, %cst_42 [1] : vector<16x16xf32> to vector<16xf32>
    %125 = vector.shape_cast %124 : vector<16xf32> to vector<16x1xf32>
    %126 = vector.broadcast %125 : vector<16x1xf32> to vector<16x16xf32>
    %127 = arith.subf %123, %126 : vector<16x16xf32>
    %128 = math.exp %127 : vector<16x16xf32>
    %cst_43 = arith.constant dense<0.000000e+00> : vector<16xf32>
    %129 = vector.multi_reduction <add>, %128, %cst_43 [1] : vector<16x16xf32> to vector<16xf32>
    %130 = vector.shape_cast %129 : vector<16xf32> to vector<16x1xf32>
    %cst_44 = arith.constant dense<0.000000e+00> : vector<16x8xf32>
    %131 = tpu.matmul %128, %120, %cst_44 {dimension_numbers = #tpu.dot_dimension_numbers<[1], [0], [0], [1], [0, 0, 1, 1], [], []>} : vector<16x16xf32>, vector<16x8xf32>, vector<16x8xf32> -> vector<16x8xf32>
    %132 = tpu.reciprocal %130 {approx = true} : vector<16x1xf32> -> vector<16x1xf32>
    %133 = vector.broadcast %132 : vector<16x1xf32> to vector<16x8xf32>
    %134 = arith.mulf %131, %133 : vector<16x8xf32>
    %135 = vector.extract_strided_slice %116 {offsets = [0, 8], sizes = [16, 8], strides = [1, 1]} : vector<16x32xf32> to vector<16x8xf32>
    %136 = vector.extract_strided_slice %117 {offsets = [0, 8], sizes = [16, 8], strides = [1, 1]} : vector<16x64xf32> to vector<16x8xf32>
    %137 = vector.extract_strided_slice %117 {offsets = [0, 40], sizes = [16, 8], strides = [1, 1]} : vector<16x64xf32> to vector<16x8xf32>
    %cst_45 = arith.constant dense<0.000000e+00> : vector<16x16xf32>
    %138 = tpu.matmul %135, %136, %cst_45 {dimension_numbers = #tpu.dot_dimension_numbers<[1], [1], [0], [0], [0, 0, 1, 0], [], []>} : vector<16x8xf32>, vector<16x8xf32>, vector<16x16xf32> -> vector<16x16xf32>
    %cst_46 = arith.constant 0.353553385 : f32
    %139 = vector.broadcast %cst_46 : f32 to vector<16x16xf32>
    %140 = arith.mulf %138, %139 : vector<16x16xf32>
    %cst_47 = arith.constant dense<0xFF800000> : vector<16xf32>
    %141 = vector.multi_reduction <maximumf>, %140, %cst_47 [1] : vector<16x16xf32> to vector<16xf32>
    %142 = vector.shape_cast %141 : vector<16xf32> to vector<16x1xf32>
    %143 = vector.broadcast %142 : vector<16x1xf32> to vector<16x16xf32>
    %144 = arith.subf %140, %143 : vector<16x16xf32>
    %145 = math.exp %144 : vector<16x16xf32>
    %cst_48 = arith.constant dense<0.000000e+00> : vector<16xf32>
    %146 = vector.multi_reduction <add>, %145, %cst_48 [1] : vector<16x16xf32> to vector<16xf32>
    %147 = vector.shape_cast %146 : vector<16xf32> to vector<16x1xf32>
    %cst_49 = arith.constant dense<0.000000e+00> : vector<16x8xf32>
    %148 = tpu.matmul %145, %137, %cst_49 {dimension_numbers = #tpu.dot_dimension_numbers<[1], [0], [0], [1], [0, 0, 1, 1], [], []>} : vector<16x16xf32>, vector<16x8xf32>, vector<16x8xf32> -> vector<16x8xf32>
    %149 = tpu.reciprocal %147 {approx = true} : vector<16x1xf32> -> vector<16x1xf32>
    %150 = vector.broadcast %149 : vector<16x1xf32> to vector<16x8xf32>
    %151 = arith.mulf %148, %150 : vector<16x8xf32>
    %152 = vector.extract_strided_slice %116 {offsets = [0, 16], sizes = [16, 8], strides = [1, 1]} : vector<16x32xf32> to vector<16x8xf32>
    %153 = vector.extract_strided_slice %117 {offsets = [0, 16], sizes = [16, 8], strides = [1, 1]} : vector<16x64xf32> to vector<16x8xf32>
    %154 = vector.extract_strided_slice %117 {offsets = [0, 48], sizes = [16, 8], strides = [1, 1]} : vector<16x64xf32> to vector<16x8xf32>
    %cst_50 = arith.constant dense<0.000000e+00> : vector<16x16xf32>
    %155 = tpu.matmul %152, %153, %cst_50 {dimension_numbers = #tpu.dot_dimension_numbers<[1], [1], [0], [0], [0, 0, 1, 0], [], []>} : vector<16x8xf32>, vector<16x8xf32>, vector<16x16xf32> -> vector<16x16xf32>
    %cst_51 = arith.constant 0.353553385 : f32
    %156 = vector.broadcast %cst_51 : f32 to vector<16x16xf32>
    %157 = arith.mulf %155, %156 : vector<16x16xf32>
    %cst_52 = arith.constant dense<0xFF800000> : vector<16xf32>
    %158 = vector.multi_reduction <maximumf>, %157, %cst_52 [1] : vector<16x16xf32> to vector<16xf32>
    %159 = vector.shape_cast %158 : vector<16xf32> to vector<16x1xf32>
    %160 = vector.broadcast %159 : vector<16x1xf32> to vector<16x16xf32>
    %161 = arith.subf %157, %160 : vector<16x16xf32>
    %162 = math.exp %161 : vector<16x16xf32>
    %cst_53 = arith.constant dense<0.000000e+00> : vector<16xf32>
    %163 = vector.multi_reduction <add>, %162, %cst_53 [1] : vector<16x16xf32> to vector<16xf32>
    %164 = vector.shape_cast %163 : vector<16xf32> to vector<16x1xf32>
    %cst_54 = arith.constant dense<0.000000e+00> : vector<16x8xf32>
    %165 = tpu.matmul %162, %154, %cst_54 {dimension_numbers = #tpu.dot_dimension_numbers<[1], [0], [0], [1], [0, 0, 1, 1], [], []>} : vector<16x16xf32>, vector<16x8xf32>, vector<16x8xf32> -> vector<16x8xf32>
    %166 = tpu.reciprocal %164 {approx = true} : vector<16x1xf32> -> vector<16x1xf32>
    %167 = vector.broadcast %166 : vector<16x1xf32> to vector<16x8xf32>
    %168 = arith.mulf %165, %167 : vector<16x8xf32>
    %169 = vector.extract_strided_slice %116 {offsets = [0, 24], sizes = [16, 8], strides = [1, 1]} : vector<16x32xf32> to vector<16x8xf32>
    %170 = vector.extract_strided_slice %117 {offsets = [0, 24], sizes = [16, 8], strides = [1, 1]} : vector<16x64xf32> to vector<16x8xf32>
    %171 = vector.extract_strided_slice %117 {offsets = [0, 56], sizes = [16, 8], strides = [1, 1]} : vector<16x64xf32> to vector<16x8xf32>
    %cst_55 = arith.constant dense<0.000000e+00> : vector<16x16xf32>
    %172 = tpu.matmul %169, %170, %cst_55 {dimension_numbers = #tpu.dot_dimension_numbers<[1], [1], [0], [0], [0, 0, 1, 0], [], []>} : vector<16x8xf32>, vector<16x8xf32>, vector<16x16xf32> -> vector<16x16xf32>
    %cst_56 = arith.constant 0.353553385 : f32
    %173 = vector.broadcast %cst_56 : f32 to vector<16x16xf32>
    %174 = arith.mulf %172, %173 : vector<16x16xf32>
    %cst_57 = arith.constant dense<0xFF800000> : vector<16xf32>
    %175 = vector.multi_reduction <maximumf>, %174, %cst_57 [1] : vector<16x16xf32> to vector<16xf32>
    %176 = vector.shape_cast %175 : vector<16xf32> to vector<16x1xf32>
    %177 = vector.broadcast %176 : vector<16x1xf32> to vector<16x16xf32>
    %178 = arith.subf %174, %177 : vector<16x16xf32>
    %179 = math.exp %178 : vector<16x16xf32>
    %cst_58 = arith.constant dense<0.000000e+00> : vector<16xf32>
    %180 = vector.multi_reduction <add>, %179, %cst_58 [1] : vector<16x16xf32> to vector<16xf32>
    %181 = vector.shape_cast %180 : vector<16xf32> to vector<16x1xf32>
    %cst_59 = arith.constant dense<0.000000e+00> : vector<16x8xf32>
    %182 = tpu.matmul %179, %171, %cst_59 {dimension_numbers = #tpu.dot_dimension_numbers<[1], [0], [0], [1], [0, 0, 1, 1], [], []>} : vector<16x16xf32>, vector<16x8xf32>, vector<16x8xf32> -> vector<16x8xf32>
    %183 = tpu.reciprocal %181 {approx = true} : vector<16x1xf32> -> vector<16x1xf32>
    %184 = vector.broadcast %183 : vector<16x1xf32> to vector<16x8xf32>
    %185 = arith.mulf %182, %184 : vector<16x8xf32>
    %186 = tpu.concatenate %134, %151, %168, %185 in 1 : vector<16x8xf32>, vector<16x8xf32>, vector<16x8xf32>, vector<16x8xf32> -> vector<16x32xf32>
    %187 = tpu.concatenate %115, %186 in 0 : vector<16x32xf32>, vector<16x32xf32> -> vector<32x32xf32>
    %cst_60 = arith.constant dense<0.000000e+00> : vector<32x32xf32>
    %188 = tpu.matmul %187, %37, %cst_60 {dimension_numbers = #tpu.dot_dimension_numbers<[1], [0], [0], [1], [0, 0, 1, 1], [], []>} : vector<32x32xf32>, vector<32x32xf32>, vector<32x32xf32> -> vector<32x32xf32>
    %189 = vector.broadcast %38 : vector<1x32xf32> to vector<32x32xf32>
    %190 = arith.addf %188, %189 : vector<32x32xf32>
    %191 = arith.addf %8, %190 : vector<32x32xf32>
    %c224 = arith.constant 224 : index
    %c0_61 = arith.constant 0 : index
    %192 = vector.load %arg2[%c224, %c0_61] : memref<840x128xf32, #tpu.memory_space<vmem>>, vector<1x32xf32>
    %c232 = arith.constant 232 : index
    %c0_62 = arith.constant 0 : index
    %193 = vector.load %arg2[%c232, %c0_62] : memref<840x128xf32, #tpu.memory_space<vmem>>, vector<1x32xf32>
    %cst_63 = arith.constant dense<0.000000e+00> : vector<32xf32>
    %194 = vector.multi_reduction <add>, %191, %cst_63 [1] : vector<32x32xf32> to vector<32xf32>
    %195 = vector.shape_cast %194 : vector<32xf32> to vector<32x1xf32>
    %cst_64 = arith.constant 3.200000e+01 : f32
    %196 = vector.broadcast %cst_64 : f32 to vector<32x1xf32>
    %197 = arith.divf %195, %196 : vector<32x1xf32>
    %198 = vector.broadcast %197 : vector<32x1xf32> to vector<32x32xf32>
    %199 = arith.subf %191, %198 : vector<32x32xf32>
    %200 = arith.mulf %199, %199 : vector<32x32xf32>
    %cst_65 = arith.constant dense<0.000000e+00> : vector<32xf32>
    %201 = vector.multi_reduction <add>, %200, %cst_65 [1] : vector<32x32xf32> to vector<32xf32>
    %202 = vector.shape_cast %201 : vector<32xf32> to vector<32x1xf32>
    %cst_66 = arith.constant 3.200000e+01 : f32
    %203 = vector.broadcast %cst_66 : f32 to vector<32x1xf32>
    %204 = arith.divf %202, %203 : vector<32x1xf32>
    %205 = vector.broadcast %197 : vector<32x1xf32> to vector<32x32xf32>
    %206 = arith.subf %191, %205 : vector<32x32xf32>
    %cst_67 = arith.constant 9.99999974E-6 : f32
    %207 = vector.broadcast %cst_67 : f32 to vector<32x1xf32>
    %208 = arith.addf %204, %207 : vector<32x1xf32>
    %209 = math.rsqrt %208 : vector<32x1xf32>
    %210 = vector.broadcast %209 : vector<32x1xf32> to vector<32x32xf32>
    %211 = arith.mulf %206, %210 : vector<32x32xf32>
    %212 = vector.broadcast %192 : vector<1x32xf32> to vector<32x32xf32>
    %213 = arith.mulf %211, %212 : vector<32x32xf32>
    %214 = vector.broadcast %193 : vector<1x32xf32> to vector<32x32xf32>
    %215 = arith.addf %213, %214 : vector<32x32xf32>
    %c240 = arith.constant 240 : index
    %c0_68 = arith.constant 0 : index
    %216 = vector.load %arg2[%c240, %c0_68] : memref<840x128xf32, #tpu.memory_space<vmem>>, vector<32x64xf32>
    %cst_69 = arith.constant dense<0.000000e+00> : vector<32x64xf32>
    %217 = tpu.matmul %215, %216, %cst_69 {dimension_numbers = #tpu.dot_dimension_numbers<[1], [0], [0], [1], [0, 0, 1, 1], [], []>} : vector<32x32xf32>, vector<32x64xf32>, vector<32x64xf32> -> vector<32x64xf32>
    %c272 = arith.constant 272 : index
    %c0_70 = arith.constant 0 : index
    %218 = vector.load %arg2[%c272, %c0_70] : memref<840x128xf32, #tpu.memory_space<vmem>>, vector<1x64xf32>
    %219 = vector.broadcast %218 : vector<1x64xf32> to vector<32x64xf32>
    %220 = arith.addf %217, %219 : vector<32x64xf32>
    %221 = arith.mulf %220, %220 : vector<32x64xf32>
    %222 = arith.mulf %220, %221 : vector<32x64xf32>
    %cst_71 = arith.constant 4.471500e-02 : f32
    %223 = vector.broadcast %cst_71 : f32 to vector<32x64xf32>
    %224 = arith.mulf %223, %222 : vector<32x64xf32>
    %225 = arith.addf %220, %224 : vector<32x64xf32>
    %cst_72 = arith.constant 0.797884583 : f32
    %226 = vector.broadcast %cst_72 : f32 to vector<32x64xf32>
    %227 = arith.mulf %226, %225 : vector<32x64xf32>
    %228 = math.tanh %227 : vector<32x64xf32>
    %cst_73 = arith.constant 1.000000e+00 : f32
    %229 = vector.broadcast %cst_73 : f32 to vector<32x64xf32>
    %230 = arith.addf %229, %228 : vector<32x64xf32>
    %cst_74 = arith.constant 5.000000e-01 : f32
    %231 = vector.broadcast %cst_74 : f32 to vector<32x64xf32>
    %232 = arith.mulf %231, %230 : vector<32x64xf32>
    %233 = arith.mulf %220, %232 : vector<32x64xf32>
    %c280 = arith.constant 280 : index
    %c0_75 = arith.constant 0 : index
    %234 = vector.load %arg2[%c280, %c0_75] : memref<840x128xf32, #tpu.memory_space<vmem>>, vector<64x32xf32>
    %cst_76 = arith.constant dense<0.000000e+00> : vector<32x32xf32>
    %235 = tpu.matmul %233, %234, %cst_76 {dimension_numbers = #tpu.dot_dimension_numbers<[1], [0], [0], [1], [0, 0, 1, 1], [], []>} : vector<32x64xf32>, vector<64x32xf32>, vector<32x32xf32> -> vector<32x32xf32>
    %236 = arith.addf %191, %235 : vector<32x32xf32>
    %c344 = arith.constant 344 : index
    %c0_77 = arith.constant 0 : index
    %237 = vector.load %arg2[%c344, %c0_77] : memref<840x128xf32, #tpu.memory_space<vmem>>, vector<1x32xf32>
    %238 = vector.broadcast %237 : vector<1x32xf32> to vector<32x32xf32>
    %239 = arith.addf %236, %238 : vector<32x32xf32>
    %c352 = arith.constant 352 : index
    %c0_78 = arith.constant 0 : index
    %240 = vector.load %arg2[%c352, %c0_78] : memref<840x128xf32, #tpu.memory_space<vmem>>, vector<1x32xf32>
    %c360 = arith.constant 360 : index
    %c0_79 = arith.constant 0 : index
    %241 = vector.load %arg2[%c360, %c0_79] : memref<840x128xf32, #tpu.memory_space<vmem>>, vector<1x32xf32>
    %cst_80 = arith.constant dense<0.000000e+00> : vector<32xf32>
    %242 = vector.multi_reduction <add>, %239, %cst_80 [1] : vector<32x32xf32> to vector<32xf32>
    %243 = vector.shape_cast %242 : vector<32xf32> to vector<32x1xf32>
    %cst_81 = arith.constant 3.200000e+01 : f32
    %244 = vector.broadcast %cst_81 : f32 to vector<32x1xf32>
    %245 = arith.divf %243, %244 : vector<32x1xf32>
    %246 = vector.broadcast %245 : vector<32x1xf32> to vector<32x32xf32>
    %247 = arith.subf %239, %246 : vector<32x32xf32>
    %248 = arith.mulf %247, %247 : vector<32x32xf32>
    %cst_82 = arith.constant dense<0.000000e+00> : vector<32xf32>
    %249 = vector.multi_reduction <add>, %248, %cst_82 [1] : vector<32x32xf32> to vector<32xf32>
    %250 = vector.shape_cast %249 : vector<32xf32> to vector<32x1xf32>
    %cst_83 = arith.constant 3.200000e+01 : f32
    %251 = vector.broadcast %cst_83 : f32 to vector<32x1xf32>
    %252 = arith.divf %250, %251 : vector<32x1xf32>
    %253 = vector.broadcast %245 : vector<32x1xf32> to vector<32x32xf32>
    %254 = arith.subf %239, %253 : vector<32x32xf32>
    %cst_84 = arith.constant 9.99999974E-6 : f32
    %255 = vector.broadcast %cst_84 : f32 to vector<32x1xf32>
    %256 = arith.addf %252, %255 : vector<32x1xf32>
    %257 = math.rsqrt %256 : vector<32x1xf32>
    %258 = vector.broadcast %257 : vector<32x1xf32> to vector<32x32xf32>
    %259 = arith.mulf %254, %258 : vector<32x32xf32>
    %260 = vector.broadcast %240 : vector<1x32xf32> to vector<32x32xf32>
    %261 = arith.mulf %259, %260 : vector<32x32xf32>
    %262 = vector.broadcast %241 : vector<1x32xf32> to vector<32x32xf32>
    %263 = arith.addf %261, %262 : vector<32x32xf32>
    %c0_85 = arith.constant 0 : index
    %c0_86 = arith.constant 0 : index
    %264 = vector.load %arg1[%c0_85, %c0_86] : memref<32x64xf32, #tpu.memory_space<vmem>>, vector<32x64xf32>
    %c0_87 = arith.constant 0 : index
    %c0_88 = arith.constant 0 : index
    %265 = vector.load %arg2[%c0_87, %c0_88] : memref<840x128xf32, #tpu.memory_space<vmem>>, vector<64x32xf32>
    %cst_89 = arith.constant dense<0.000000e+00> : vector<32x32xf32>
    %266 = tpu.matmul %264, %265, %cst_89 {dimension_numbers = #tpu.dot_dimension_numbers<[1], [0], [0], [1], [0, 0, 1, 1], [], []>} : vector<32x64xf32>, vector<64x32xf32>, vector<32x32xf32> -> vector<32x32xf32>
    %c64_90 = arith.constant 64 : index
    %c0_91 = arith.constant 0 : index
    %267 = vector.load %arg2[%c64_90, %c0_91] : memref<840x128xf32, #tpu.memory_space<vmem>>, vector<1x32xf32>
    %268 = vector.broadcast %267 : vector<1x32xf32> to vector<32x32xf32>
    %269 = arith.addf %266, %268 : vector<32x32xf32>
    %c72_92 = arith.constant 72 : index
    %c0_93 = arith.constant 0 : index
    %270 = vector.load %arg2[%c72_92, %c0_93] : memref<840x128xf32, #tpu.memory_space<vmem>>, vector<16x32xf32>
    %271 = tpu.concatenate %270, %270 in 0 : vector<16x32xf32>, vector<16x32xf32> -> vector<32x32xf32>
    %272 = arith.addf %269, %271 : vector<32x32xf32>
    %c88_94 = arith.constant 88 : index
    %c0_95 = arith.constant 0 : index
    %273 = vector.load %arg2[%c88_94, %c0_95] : memref<840x128xf32, #tpu.memory_space<vmem>>, vector<1x32xf32>
    %c96_96 = arith.constant 96 : index
    %c0_97 = arith.constant 0 : index
    %274 = vector.load %arg2[%c96_96, %c0_97] : memref<840x128xf32, #tpu.memory_space<vmem>>, vector<1x32xf32>
    %cst_98 = arith.constant dense<0.000000e+00> : vector<32xf32>
    %275 = vector.multi_reduction <add>, %272, %cst_98 [1] : vector<32x32xf32> to vector<32xf32>
    %276 = vector.shape_cast %275 : vector<32xf32> to vector<32x1xf32>
    %cst_99 = arith.constant 3.200000e+01 : f32
    %277 = vector.broadcast %cst_99 : f32 to vector<32x1xf32>
    %278 = arith.divf %276, %277 : vector<32x1xf32>
    %279 = vector.broadcast %278 : vector<32x1xf32> to vector<32x32xf32>
    %280 = arith.subf %272, %279 : vector<32x32xf32>
    %281 = arith.mulf %280, %280 : vector<32x32xf32>
    %cst_100 = arith.constant dense<0.000000e+00> : vector<32xf32>
    %282 = vector.multi_reduction <add>, %281, %cst_100 [1] : vector<32x32xf32> to vector<32xf32>
    %283 = vector.shape_cast %282 : vector<32xf32> to vector<32x1xf32>
    %cst_101 = arith.constant 3.200000e+01 : f32
    %284 = vector.broadcast %cst_101 : f32 to vector<32x1xf32>
    %285 = arith.divf %283, %284 : vector<32x1xf32>
    %286 = vector.broadcast %278 : vector<32x1xf32> to vector<32x32xf32>
    %287 = arith.subf %272, %286 : vector<32x32xf32>
    %cst_102 = arith.constant 9.99999974E-6 : f32
    %288 = vector.broadcast %cst_102 : f32 to vector<32x1xf32>
    %289 = arith.addf %285, %288 : vector<32x1xf32>
    %290 = math.rsqrt %289 : vector<32x1xf32>
    %291 = vector.broadcast %290 : vector<32x1xf32> to vector<32x32xf32>
    %292 = arith.mulf %287, %291 : vector<32x32xf32>
    %293 = vector.broadcast %273 : vector<1x32xf32> to vector<32x32xf32>
    %294 = arith.mulf %292, %293 : vector<32x32xf32>
    %295 = vector.broadcast %274 : vector<1x32xf32> to vector<32x32xf32>
    %296 = arith.addf %294, %295 : vector<32x32xf32>
    %c104_103 = arith.constant 104 : index
    %c0_104 = arith.constant 0 : index
    %297 = vector.load %arg2[%c104_103, %c0_104] : memref<840x128xf32, #tpu.memory_space<vmem>>, vector<32x32xf32>
    %c136_105 = arith.constant 136 : index
    %c0_106 = arith.constant 0 : index
    %298 = vector.load %arg2[%c136_105, %c0_106] : memref<840x128xf32, #tpu.memory_space<vmem>>, vector<1x32xf32>
    %c144_107 = arith.constant 144 : index
    %c0_108 = arith.constant 0 : index
    %299 = vector.load %arg2[%c144_107, %c0_108] : memref<840x128xf32, #tpu.memory_space<vmem>>, vector<32x64xf32>
    %c176_109 = arith.constant 176 : index
    %c0_110 = arith.constant 0 : index
    %300 = vector.load %arg2[%c176_109, %c0_110] : memref<840x128xf32, #tpu.memory_space<vmem>>, vector<1x64xf32>
    %c184_111 = arith.constant 184 : index
    %c0_112 = arith.constant 0 : index
    %301 = vector.load %arg2[%c184_111, %c0_112] : memref<840x128xf32, #tpu.memory_space<vmem>>, vector<32x32xf32>
    %c216_113 = arith.constant 216 : index
    %c0_114 = arith.constant 0 : index
    %302 = vector.load %arg2[%c216_113, %c0_114] : memref<840x128xf32, #tpu.memory_space<vmem>>, vector<1x32xf32>
    %cst_115 = arith.constant dense<0.000000e+00> : vector<32x32xf32>
    %303 = tpu.matmul %296, %297, %cst_115 {dimension_numbers = #tpu.dot_dimension_numbers<[1], [0], [0], [1], [0, 0, 1, 1], [], []>} : vector<32x32xf32>, vector<32x32xf32>, vector<32x32xf32> -> vector<32x32xf32>
    %304 = vector.broadcast %298 : vector<1x32xf32> to vector<32x32xf32>
    %305 = arith.addf %303, %304 : vector<32x32xf32>
    %cst_116 = arith.constant dense<0.000000e+00> : vector<32x64xf32>
    %306 = tpu.matmul %296, %299, %cst_116 {dimension_numbers = #tpu.dot_dimension_numbers<[1], [0], [0], [1], [0, 0, 1, 1], [], []>} : vector<32x32xf32>, vector<32x64xf32>, vector<32x64xf32> -> vector<32x64xf32>
    %307 = vector.broadcast %300 : vector<1x64xf32> to vector<32x64xf32>
    %308 = arith.addf %306, %307 : vector<32x64xf32>
    %309 = vector.extract_strided_slice %305 {offsets = [0, 0], sizes = [16, 32], strides = [1, 1]} : vector<32x32xf32> to vector<16x32xf32>
    %310 = vector.extract_strided_slice %308 {offsets = [0, 0], sizes = [16, 64], strides = [1, 1]} : vector<32x64xf32> to vector<16x64xf32>
    %311 = vector.extract_strided_slice %309 {offsets = [0, 0], sizes = [16, 8], strides = [1, 1]} : vector<16x32xf32> to vector<16x8xf32>
    %312 = vector.extract_strided_slice %310 {offsets = [0, 0], sizes = [16, 8], strides = [1, 1]} : vector<16x64xf32> to vector<16x8xf32>
    %313 = vector.extract_strided_slice %310 {offsets = [0, 32], sizes = [16, 8], strides = [1, 1]} : vector<16x64xf32> to vector<16x8xf32>
    %cst_117 = arith.constant dense<0.000000e+00> : vector<16x16xf32>
    %314 = tpu.matmul %311, %312, %cst_117 {dimension_numbers = #tpu.dot_dimension_numbers<[1], [1], [0], [0], [0, 0, 1, 0], [], []>} : vector<16x8xf32>, vector<16x8xf32>, vector<16x16xf32> -> vector<16x16xf32>
    %cst_118 = arith.constant 0.353553385 : f32
    %315 = vector.broadcast %cst_118 : f32 to vector<16x16xf32>
    %316 = arith.mulf %314, %315 : vector<16x16xf32>
    %cst_119 = arith.constant dense<0xFF800000> : vector<16xf32>
    %317 = vector.multi_reduction <maximumf>, %316, %cst_119 [1] : vector<16x16xf32> to vector<16xf32>
    %318 = vector.shape_cast %317 : vector<16xf32> to vector<16x1xf32>
    %319 = vector.broadcast %318 : vector<16x1xf32> to vector<16x16xf32>
    %320 = arith.subf %316, %319 : vector<16x16xf32>
    %321 = math.exp %320 : vector<16x16xf32>
    %cst_120 = arith.constant dense<0.000000e+00> : vector<16xf32>
    %322 = vector.multi_reduction <add>, %321, %cst_120 [1] : vector<16x16xf32> to vector<16xf32>
    %323 = vector.shape_cast %322 : vector<16xf32> to vector<16x1xf32>
    %cst_121 = arith.constant dense<0.000000e+00> : vector<16x8xf32>
    %324 = tpu.matmul %321, %313, %cst_121 {dimension_numbers = #tpu.dot_dimension_numbers<[1], [0], [0], [1], [0, 0, 1, 1], [], []>} : vector<16x16xf32>, vector<16x8xf32>, vector<16x8xf32> -> vector<16x8xf32>
    %325 = tpu.reciprocal %323 {approx = true} : vector<16x1xf32> -> vector<16x1xf32>
    %326 = vector.broadcast %325 : vector<16x1xf32> to vector<16x8xf32>
    %327 = arith.mulf %324, %326 : vector<16x8xf32>
    %328 = vector.extract_strided_slice %309 {offsets = [0, 8], sizes = [16, 8], strides = [1, 1]} : vector<16x32xf32> to vector<16x8xf32>
    %329 = vector.extract_strided_slice %310 {offsets = [0, 8], sizes = [16, 8], strides = [1, 1]} : vector<16x64xf32> to vector<16x8xf32>
    %330 = vector.extract_strided_slice %310 {offsets = [0, 40], sizes = [16, 8], strides = [1, 1]} : vector<16x64xf32> to vector<16x8xf32>
    %cst_122 = arith.constant dense<0.000000e+00> : vector<16x16xf32>
    %331 = tpu.matmul %328, %329, %cst_122 {dimension_numbers = #tpu.dot_dimension_numbers<[1], [1], [0], [0], [0, 0, 1, 0], [], []>} : vector<16x8xf32>, vector<16x8xf32>, vector<16x16xf32> -> vector<16x16xf32>
    %cst_123 = arith.constant 0.353553385 : f32
    %332 = vector.broadcast %cst_123 : f32 to vector<16x16xf32>
    %333 = arith.mulf %331, %332 : vector<16x16xf32>
    %cst_124 = arith.constant dense<0xFF800000> : vector<16xf32>
    %334 = vector.multi_reduction <maximumf>, %333, %cst_124 [1] : vector<16x16xf32> to vector<16xf32>
    %335 = vector.shape_cast %334 : vector<16xf32> to vector<16x1xf32>
    %336 = vector.broadcast %335 : vector<16x1xf32> to vector<16x16xf32>
    %337 = arith.subf %333, %336 : vector<16x16xf32>
    %338 = math.exp %337 : vector<16x16xf32>
    %cst_125 = arith.constant dense<0.000000e+00> : vector<16xf32>
    %339 = vector.multi_reduction <add>, %338, %cst_125 [1] : vector<16x16xf32> to vector<16xf32>
    %340 = vector.shape_cast %339 : vector<16xf32> to vector<16x1xf32>
    %cst_126 = arith.constant dense<0.000000e+00> : vector<16x8xf32>
    %341 = tpu.matmul %338, %330, %cst_126 {dimension_numbers = #tpu.dot_dimension_numbers<[1], [0], [0], [1], [0, 0, 1, 1], [], []>} : vector<16x16xf32>, vector<16x8xf32>, vector<16x8xf32> -> vector<16x8xf32>
    %342 = tpu.reciprocal %340 {approx = true} : vector<16x1xf32> -> vector<16x1xf32>
    %343 = vector.broadcast %342 : vector<16x1xf32> to vector<16x8xf32>
    %344 = arith.mulf %341, %343 : vector<16x8xf32>
    %345 = vector.extract_strided_slice %309 {offsets = [0, 16], sizes = [16, 8], strides = [1, 1]} : vector<16x32xf32> to vector<16x8xf32>
    %346 = vector.extract_strided_slice %310 {offsets = [0, 16], sizes = [16, 8], strides = [1, 1]} : vector<16x64xf32> to vector<16x8xf32>
    %347 = vector.extract_strided_slice %310 {offsets = [0, 48], sizes = [16, 8], strides = [1, 1]} : vector<16x64xf32> to vector<16x8xf32>
    %cst_127 = arith.constant dense<0.000000e+00> : vector<16x16xf32>
    %348 = tpu.matmul %345, %346, %cst_127 {dimension_numbers = #tpu.dot_dimension_numbers<[1], [1], [0], [0], [0, 0, 1, 0], [], []>} : vector<16x8xf32>, vector<16x8xf32>, vector<16x16xf32> -> vector<16x16xf32>
    %cst_128 = arith.constant 0.353553385 : f32
    %349 = vector.broadcast %cst_128 : f32 to vector<16x16xf32>
    %350 = arith.mulf %348, %349 : vector<16x16xf32>
    %cst_129 = arith.constant dense<0xFF800000> : vector<16xf32>
    %351 = vector.multi_reduction <maximumf>, %350, %cst_129 [1] : vector<16x16xf32> to vector<16xf32>
    %352 = vector.shape_cast %351 : vector<16xf32> to vector<16x1xf32>
    %353 = vector.broadcast %352 : vector<16x1xf32> to vector<16x16xf32>
    %354 = arith.subf %350, %353 : vector<16x16xf32>
    %355 = math.exp %354 : vector<16x16xf32>
    %cst_130 = arith.constant dense<0.000000e+00> : vector<16xf32>
    %356 = vector.multi_reduction <add>, %355, %cst_130 [1] : vector<16x16xf32> to vector<16xf32>
    %357 = vector.shape_cast %356 : vector<16xf32> to vector<16x1xf32>
    %cst_131 = arith.constant dense<0.000000e+00> : vector<16x8xf32>
    %358 = tpu.matmul %355, %347, %cst_131 {dimension_numbers = #tpu.dot_dimension_numbers<[1], [0], [0], [1], [0, 0, 1, 1], [], []>} : vector<16x16xf32>, vector<16x8xf32>, vector<16x8xf32> -> vector<16x8xf32>
    %359 = tpu.reciprocal %357 {approx = true} : vector<16x1xf32> -> vector<16x1xf32>
    %360 = vector.broadcast %359 : vector<16x1xf32> to vector<16x8xf32>
    %361 = arith.mulf %358, %360 : vector<16x8xf32>
    %362 = vector.extract_strided_slice %309 {offsets = [0, 24], sizes = [16, 8], strides = [1, 1]} : vector<16x32xf32> to vector<16x8xf32>
    %363 = vector.extract_strided_slice %310 {offsets = [0, 24], sizes = [16, 8], strides = [1, 1]} : vector<16x64xf32> to vector<16x8xf32>
    %364 = vector.extract_strided_slice %310 {offsets = [0, 56], sizes = [16, 8], strides = [1, 1]} : vector<16x64xf32> to vector<16x8xf32>
    %cst_132 = arith.constant dense<0.000000e+00> : vector<16x16xf32>
    %365 = tpu.matmul %362, %363, %cst_132 {dimension_numbers = #tpu.dot_dimension_numbers<[1], [1], [0], [0], [0, 0, 1, 0], [], []>} : vector<16x8xf32>, vector<16x8xf32>, vector<16x16xf32> -> vector<16x16xf32>
    %cst_133 = arith.constant 0.353553385 : f32
    %366 = vector.broadcast %cst_133 : f32 to vector<16x16xf32>
    %367 = arith.mulf %365, %366 : vector<16x16xf32>
    %cst_134 = arith.constant dense<0xFF800000> : vector<16xf32>
    %368 = vector.multi_reduction <maximumf>, %367, %cst_134 [1] : vector<16x16xf32> to vector<16xf32>
    %369 = vector.shape_cast %368 : vector<16xf32> to vector<16x1xf32>
    %370 = vector.broadcast %369 : vector<16x1xf32> to vector<16x16xf32>
    %371 = arith.subf %367, %370 : vector<16x16xf32>
    %372 = math.exp %371 : vector<16x16xf32>
    %cst_135 = arith.constant dense<0.000000e+00> : vector<16xf32>
    %373 = vector.multi_reduction <add>, %372, %cst_135 [1] : vector<16x16xf32> to vector<16xf32>
    %374 = vector.shape_cast %373 : vector<16xf32> to vector<16x1xf32>
    %cst_136 = arith.constant dense<0.000000e+00> : vector<16x8xf32>
    %375 = tpu.matmul %372, %364, %cst_136 {dimension_numbers = #tpu.dot_dimension_numbers<[1], [0], [0], [1], [0, 0, 1, 1], [], []>} : vector<16x16xf32>, vector<16x8xf32>, vector<16x8xf32> -> vector<16x8xf32>
    %376 = tpu.reciprocal %374 {approx = true} : vector<16x1xf32> -> vector<16x1xf32>
    %377 = vector.broadcast %376 : vector<16x1xf32> to vector<16x8xf32>
    %378 = arith.mulf %375, %377 : vector<16x8xf32>
    %379 = tpu.concatenate %327, %344, %361, %378 in 1 : vector<16x8xf32>, vector<16x8xf32>, vector<16x8xf32>, vector<16x8xf32> -> vector<16x32xf32>
    %380 = vector.extract_strided_slice %305 {offsets = [16, 0], sizes = [16, 32], strides = [1, 1]} : vector<32x32xf32> to vector<16x32xf32>
    %381 = vector.extract_strided_slice %308 {offsets = [16, 0], sizes = [16, 64], strides = [1, 1]} : vector<32x64xf32> to vector<16x64xf32>
    %382 = vector.extract_strided_slice %380 {offsets = [0, 0], sizes = [16, 8], strides = [1, 1]} : vector<16x32xf32> to vector<16x8xf32>
    %383 = vector.extract_strided_slice %381 {offsets = [0, 0], sizes = [16, 8], strides = [1, 1]} : vector<16x64xf32> to vector<16x8xf32>
    %384 = vector.extract_strided_slice %381 {offsets = [0, 32], sizes = [16, 8], strides = [1, 1]} : vector<16x64xf32> to vector<16x8xf32>
    %cst_137 = arith.constant dense<0.000000e+00> : vector<16x16xf32>
    %385 = tpu.matmul %382, %383, %cst_137 {dimension_numbers = #tpu.dot_dimension_numbers<[1], [1], [0], [0], [0, 0, 1, 0], [], []>} : vector<16x8xf32>, vector<16x8xf32>, vector<16x16xf32> -> vector<16x16xf32>
    %cst_138 = arith.constant 0.353553385 : f32
    %386 = vector.broadcast %cst_138 : f32 to vector<16x16xf32>
    %387 = arith.mulf %385, %386 : vector<16x16xf32>
    %cst_139 = arith.constant dense<0xFF800000> : vector<16xf32>
    %388 = vector.multi_reduction <maximumf>, %387, %cst_139 [1] : vector<16x16xf32> to vector<16xf32>
    %389 = vector.shape_cast %388 : vector<16xf32> to vector<16x1xf32>
    %390 = vector.broadcast %389 : vector<16x1xf32> to vector<16x16xf32>
    %391 = arith.subf %387, %390 : vector<16x16xf32>
    %392 = math.exp %391 : vector<16x16xf32>
    %cst_140 = arith.constant dense<0.000000e+00> : vector<16xf32>
    %393 = vector.multi_reduction <add>, %392, %cst_140 [1] : vector<16x16xf32> to vector<16xf32>
    %394 = vector.shape_cast %393 : vector<16xf32> to vector<16x1xf32>
    %cst_141 = arith.constant dense<0.000000e+00> : vector<16x8xf32>
    %395 = tpu.matmul %392, %384, %cst_141 {dimension_numbers = #tpu.dot_dimension_numbers<[1], [0], [0], [1], [0, 0, 1, 1], [], []>} : vector<16x16xf32>, vector<16x8xf32>, vector<16x8xf32> -> vector<16x8xf32>
    %396 = tpu.reciprocal %394 {approx = true} : vector<16x1xf32> -> vector<16x1xf32>
    %397 = vector.broadcast %396 : vector<16x1xf32> to vector<16x8xf32>
    %398 = arith.mulf %395, %397 : vector<16x8xf32>
    %399 = vector.extract_strided_slice %380 {offsets = [0, 8], sizes = [16, 8], strides = [1, 1]} : vector<16x32xf32> to vector<16x8xf32>
    %400 = vector.extract_strided_slice %381 {offsets = [0, 8], sizes = [16, 8], strides = [1, 1]} : vector<16x64xf32> to vector<16x8xf32>
    %401 = vector.extract_strided_slice %381 {offsets = [0, 40], sizes = [16, 8], strides = [1, 1]} : vector<16x64xf32> to vector<16x8xf32>
    %cst_142 = arith.constant dense<0.000000e+00> : vector<16x16xf32>
    %402 = tpu.matmul %399, %400, %cst_142 {dimension_numbers = #tpu.dot_dimension_numbers<[1], [1], [0], [0], [0, 0, 1, 0], [], []>} : vector<16x8xf32>, vector<16x8xf32>, vector<16x16xf32> -> vector<16x16xf32>
    %cst_143 = arith.constant 0.353553385 : f32
    %403 = vector.broadcast %cst_143 : f32 to vector<16x16xf32>
    %404 = arith.mulf %402, %403 : vector<16x16xf32>
    %cst_144 = arith.constant dense<0xFF800000> : vector<16xf32>
    %405 = vector.multi_reduction <maximumf>, %404, %cst_144 [1] : vector<16x16xf32> to vector<16xf32>
    %406 = vector.shape_cast %405 : vector<16xf32> to vector<16x1xf32>
    %407 = vector.broadcast %406 : vector<16x1xf32> to vector<16x16xf32>
    %408 = arith.subf %404, %407 : vector<16x16xf32>
    %409 = math.exp %408 : vector<16x16xf32>
    %cst_145 = arith.constant dense<0.000000e+00> : vector<16xf32>
    %410 = vector.multi_reduction <add>, %409, %cst_145 [1] : vector<16x16xf32> to vector<16xf32>
    %411 = vector.shape_cast %410 : vector<16xf32> to vector<16x1xf32>
    %cst_146 = arith.constant dense<0.000000e+00> : vector<16x8xf32>
    %412 = tpu.matmul %409, %401, %cst_146 {dimension_numbers = #tpu.dot_dimension_numbers<[1], [0], [0], [1], [0, 0, 1, 1], [], []>} : vector<16x16xf32>, vector<16x8xf32>, vector<16x8xf32> -> vector<16x8xf32>
    %413 = tpu.reciprocal %411 {approx = true} : vector<16x1xf32> -> vector<16x1xf32>
    %414 = vector.broadcast %413 : vector<16x1xf32> to vector<16x8xf32>
    %415 = arith.mulf %412, %414 : vector<16x8xf32>
    %416 = vector.extract_strided_slice %380 {offsets = [0, 16], sizes = [16, 8], strides = [1, 1]} : vector<16x32xf32> to vector<16x8xf32>
    %417 = vector.extract_strided_slice %381 {offsets = [0, 16], sizes = [16, 8], strides = [1, 1]} : vector<16x64xf32> to vector<16x8xf32>
    %418 = vector.extract_strided_slice %381 {offsets = [0, 48], sizes = [16, 8], strides = [1, 1]} : vector<16x64xf32> to vector<16x8xf32>
    %cst_147 = arith.constant dense<0.000000e+00> : vector<16x16xf32>
    %419 = tpu.matmul %416, %417, %cst_147 {dimension_numbers = #tpu.dot_dimension_numbers<[1], [1], [0], [0], [0, 0, 1, 0], [], []>} : vector<16x8xf32>, vector<16x8xf32>, vector<16x16xf32> -> vector<16x16xf32>
    %cst_148 = arith.constant 0.353553385 : f32
    %420 = vector.broadcast %cst_148 : f32 to vector<16x16xf32>
    %421 = arith.mulf %419, %420 : vector<16x16xf32>
    %cst_149 = arith.constant dense<0xFF800000> : vector<16xf32>
    %422 = vector.multi_reduction <maximumf>, %421, %cst_149 [1] : vector<16x16xf32> to vector<16xf32>
    %423 = vector.shape_cast %422 : vector<16xf32> to vector<16x1xf32>
    %424 = vector.broadcast %423 : vector<16x1xf32> to vector<16x16xf32>
    %425 = arith.subf %421, %424 : vector<16x16xf32>
    %426 = math.exp %425 : vector<16x16xf32>
    %cst_150 = arith.constant dense<0.000000e+00> : vector<16xf32>
    %427 = vector.multi_reduction <add>, %426, %cst_150 [1] : vector<16x16xf32> to vector<16xf32>
    %428 = vector.shape_cast %427 : vector<16xf32> to vector<16x1xf32>
    %cst_151 = arith.constant dense<0.000000e+00> : vector<16x8xf32>
    %429 = tpu.matmul %426, %418, %cst_151 {dimension_numbers = #tpu.dot_dimension_numbers<[1], [0], [0], [1], [0, 0, 1, 1], [], []>} : vector<16x16xf32>, vector<16x8xf32>, vector<16x8xf32> -> vector<16x8xf32>
    %430 = tpu.reciprocal %428 {approx = true} : vector<16x1xf32> -> vector<16x1xf32>
    %431 = vector.broadcast %430 : vector<16x1xf32> to vector<16x8xf32>
    %432 = arith.mulf %429, %431 : vector<16x8xf32>
    %433 = vector.extract_strided_slice %380 {offsets = [0, 24], sizes = [16, 8], strides = [1, 1]} : vector<16x32xf32> to vector<16x8xf32>
    %434 = vector.extract_strided_slice %381 {offsets = [0, 24], sizes = [16, 8], strides = [1, 1]} : vector<16x64xf32> to vector<16x8xf32>
    %435 = vector.extract_strided_slice %381 {offsets = [0, 56], sizes = [16, 8], strides = [1, 1]} : vector<16x64xf32> to vector<16x8xf32>
    %cst_152 = arith.constant dense<0.000000e+00> : vector<16x16xf32>
    %436 = tpu.matmul %433, %434, %cst_152 {dimension_numbers = #tpu.dot_dimension_numbers<[1], [1], [0], [0], [0, 0, 1, 0], [], []>} : vector<16x8xf32>, vector<16x8xf32>, vector<16x16xf32> -> vector<16x16xf32>
    %cst_153 = arith.constant 0.353553385 : f32
    %437 = vector.broadcast %cst_153 : f32 to vector<16x16xf32>
    %438 = arith.mulf %436, %437 : vector<16x16xf32>
    %cst_154 = arith.constant dense<0xFF800000> : vector<16xf32>
    %439 = vector.multi_reduction <maximumf>, %438, %cst_154 [1] : vector<16x16xf32> to vector<16xf32>
    %440 = vector.shape_cast %439 : vector<16xf32> to vector<16x1xf32>
    %441 = vector.broadcast %440 : vector<16x1xf32> to vector<16x16xf32>
    %442 = arith.subf %438, %441 : vector<16x16xf32>
    %443 = math.exp %442 : vector<16x16xf32>
    %cst_155 = arith.constant dense<0.000000e+00> : vector<16xf32>
    %444 = vector.multi_reduction <add>, %443, %cst_155 [1] : vector<16x16xf32> to vector<16xf32>
    %445 = vector.shape_cast %444 : vector<16xf32> to vector<16x1xf32>
    %cst_156 = arith.constant dense<0.000000e+00> : vector<16x8xf32>
    %446 = tpu.matmul %443, %435, %cst_156 {dimension_numbers = #tpu.dot_dimension_numbers<[1], [0], [0], [1], [0, 0, 1, 1], [], []>} : vector<16x16xf32>, vector<16x8xf32>, vector<16x8xf32> -> vector<16x8xf32>
    %447 = tpu.reciprocal %445 {approx = true} : vector<16x1xf32> -> vector<16x1xf32>
    %448 = vector.broadcast %447 : vector<16x1xf32> to vector<16x8xf32>
    %449 = arith.mulf %446, %448 : vector<16x8xf32>
    %450 = tpu.concatenate %398, %415, %432, %449 in 1 : vector<16x8xf32>, vector<16x8xf32>, vector<16x8xf32>, vector<16x8xf32> -> vector<16x32xf32>
    %451 = tpu.concatenate %379, %450 in 0 : vector<16x32xf32>, vector<16x32xf32> -> vector<32x32xf32>
    %cst_157 = arith.constant dense<0.000000e+00> : vector<32x32xf32>
    %452 = tpu.matmul %451, %301, %cst_157 {dimension_numbers = #tpu.dot_dimension_numbers<[1], [0], [0], [1], [0, 0, 1, 1], [], []>} : vector<32x32xf32>, vector<32x32xf32>, vector<32x32xf32> -> vector<32x32xf32>
    %453 = vector.broadcast %302 : vector<1x32xf32> to vector<32x32xf32>
    %454 = arith.addf %452, %453 : vector<32x32xf32>
    %455 = arith.addf %272, %454 : vector<32x32xf32>
    %c224_158 = arith.constant 224 : index
    %c0_159 = arith.constant 0 : index
    %456 = vector.load %arg2[%c224_158, %c0_159] : memref<840x128xf32, #tpu.memory_space<vmem>>, vector<1x32xf32>
    %c232_160 = arith.constant 232 : index
    %c0_161 = arith.constant 0 : index
    %457 = vector.load %arg2[%c232_160, %c0_161] : memref<840x128xf32, #tpu.memory_space<vmem>>, vector<1x32xf32>
    %cst_162 = arith.constant dense<0.000000e+00> : vector<32xf32>
    %458 = vector.multi_reduction <add>, %455, %cst_162 [1] : vector<32x32xf32> to vector<32xf32>
    %459 = vector.shape_cast %458 : vector<32xf32> to vector<32x1xf32>
    %cst_163 = arith.constant 3.200000e+01 : f32
    %460 = vector.broadcast %cst_163 : f32 to vector<32x1xf32>
    %461 = arith.divf %459, %460 : vector<32x1xf32>
    %462 = vector.broadcast %461 : vector<32x1xf32> to vector<32x32xf32>
    %463 = arith.subf %455, %462 : vector<32x32xf32>
    %464 = arith.mulf %463, %463 : vector<32x32xf32>
    %cst_164 = arith.constant dense<0.000000e+00> : vector<32xf32>
    %465 = vector.multi_reduction <add>, %464, %cst_164 [1] : vector<32x32xf32> to vector<32xf32>
    %466 = vector.shape_cast %465 : vector<32xf32> to vector<32x1xf32>
    %cst_165 = arith.constant 3.200000e+01 : f32
    %467 = vector.broadcast %cst_165 : f32 to vector<32x1xf32>
    %468 = arith.divf %466, %467 : vector<32x1xf32>
    %469 = vector.broadcast %461 : vector<32x1xf32> to vector<32x32xf32>
    %470 = arith.subf %455, %469 : vector<32x32xf32>
    %cst_166 = arith.constant 9.99999974E-6 : f32
    %471 = vector.broadcast %cst_166 : f32 to vector<32x1xf32>
    %472 = arith.addf %468, %471 : vector<32x1xf32>
    %473 = math.rsqrt %472 : vector<32x1xf32>
    %474 = vector.broadcast %473 : vector<32x1xf32> to vector<32x32xf32>
    %475 = arith.mulf %470, %474 : vector<32x32xf32>
    %476 = vector.broadcast %456 : vector<1x32xf32> to vector<32x32xf32>
    %477 = arith.mulf %475, %476 : vector<32x32xf32>
    %478 = vector.broadcast %457 : vector<1x32xf32> to vector<32x32xf32>
    %479 = arith.addf %477, %478 : vector<32x32xf32>
    %c240_167 = arith.constant 240 : index
    %c0_168 = arith.constant 0 : index
    %480 = vector.load %arg2[%c240_167, %c0_168] : memref<840x128xf32, #tpu.memory_space<vmem>>, vector<32x64xf32>
    %cst_169 = arith.constant dense<0.000000e+00> : vector<32x64xf32>
    %481 = tpu.matmul %479, %480, %cst_169 {dimension_numbers = #tpu.dot_dimension_numbers<[1], [0], [0], [1], [0, 0, 1, 1], [], []>} : vector<32x32xf32>, vector<32x64xf32>, vector<32x64xf32> -> vector<32x64xf32>
    %c272_170 = arith.constant 272 : index
    %c0_171 = arith.constant 0 : index
    %482 = vector.load %arg2[%c272_170, %c0_171] : memref<840x128xf32, #tpu.memory_space<vmem>>, vector<1x64xf32>
    %483 = vector.broadcast %482 : vector<1x64xf32> to vector<32x64xf32>
    %484 = arith.addf %481, %483 : vector<32x64xf32>
    %485 = arith.mulf %484, %484 : vector<32x64xf32>
    %486 = arith.mulf %484, %485 : vector<32x64xf32>
    %cst_172 = arith.constant 4.471500e-02 : f32
    %487 = vector.broadcast %cst_172 : f32 to vector<32x64xf32>
    %488 = arith.mulf %487, %486 : vector<32x64xf32>
    %489 = arith.addf %484, %488 : vector<32x64xf32>
    %cst_173 = arith.constant 0.797884583 : f32
    %490 = vector.broadcast %cst_173 : f32 to vector<32x64xf32>
    %491 = arith.mulf %490, %489 : vector<32x64xf32>
    %492 = math.tanh %491 : vector<32x64xf32>
    %cst_174 = arith.constant 1.000000e+00 : f32
    %493 = vector.broadcast %cst_174 : f32 to vector<32x64xf32>
    %494 = arith.addf %493, %492 : vector<32x64xf32>
    %cst_175 = arith.constant 5.000000e-01 : f32
    %495 = vector.broadcast %cst_175 : f32 to vector<32x64xf32>
    %496 = arith.mulf %495, %494 : vector<32x64xf32>
    %497 = arith.mulf %484, %496 : vector<32x64xf32>
    %c280_176 = arith.constant 280 : index
    %c0_177 = arith.constant 0 : index
    %498 = vector.load %arg2[%c280_176, %c0_177] : memref<840x128xf32, #tpu.memory_space<vmem>>, vector<64x32xf32>
    %cst_178 = arith.constant dense<0.000000e+00> : vector<32x32xf32>
    %499 = tpu.matmul %497, %498, %cst_178 {dimension_numbers = #tpu.dot_dimension_numbers<[1], [0], [0], [1], [0, 0, 1, 1], [], []>} : vector<32x64xf32>, vector<64x32xf32>, vector<32x32xf32> -> vector<32x32xf32>
    %500 = arith.addf %455, %499 : vector<32x32xf32>
    %c344_179 = arith.constant 344 : index
    %c0_180 = arith.constant 0 : index
    %501 = vector.load %arg2[%c344_179, %c0_180] : memref<840x128xf32, #tpu.memory_space<vmem>>, vector<1x32xf32>
    %502 = vector.broadcast %501 : vector<1x32xf32> to vector<32x32xf32>
    %503 = arith.addf %500, %502 : vector<32x32xf32>
    %c352_181 = arith.constant 352 : index
    %c0_182 = arith.constant 0 : index
    %504 = vector.load %arg2[%c352_181, %c0_182] : memref<840x128xf32, #tpu.memory_space<vmem>>, vector<1x32xf32>
    %c360_183 = arith.constant 360 : index
    %c0_184 = arith.constant 0 : index
    %505 = vector.load %arg2[%c360_183, %c0_184] : memref<840x128xf32, #tpu.memory_space<vmem>>, vector<1x32xf32>
    %cst_185 = arith.constant dense<0.000000e+00> : vector<32xf32>
    %506 = vector.multi_reduction <add>, %503, %cst_185 [1] : vector<32x32xf32> to vector<32xf32>
    %507 = vector.shape_cast %506 : vector<32xf32> to vector<32x1xf32>
    %cst_186 = arith.constant 3.200000e+01 : f32
    %508 = vector.broadcast %cst_186 : f32 to vector<32x1xf32>
    %509 = arith.divf %507, %508 : vector<32x1xf32>
    %510 = vector.broadcast %509 : vector<32x1xf32> to vector<32x32xf32>
    %511 = arith.subf %503, %510 : vector<32x32xf32>
    %512 = arith.mulf %511, %511 : vector<32x32xf32>
    %cst_187 = arith.constant dense<0.000000e+00> : vector<32xf32>
    %513 = vector.multi_reduction <add>, %512, %cst_187 [1] : vector<32x32xf32> to vector<32xf32>
    %514 = vector.shape_cast %513 : vector<32xf32> to vector<32x1xf32>
    %cst_188 = arith.constant 3.200000e+01 : f32
    %515 = vector.broadcast %cst_188 : f32 to vector<32x1xf32>
    %516 = arith.divf %514, %515 : vector<32x1xf32>
    %517 = vector.broadcast %509 : vector<32x1xf32> to vector<32x32xf32>
    %518 = arith.subf %503, %517 : vector<32x32xf32>
    %cst_189 = arith.constant 9.99999974E-6 : f32
    %519 = vector.broadcast %cst_189 : f32 to vector<32x1xf32>
    %520 = arith.addf %516, %519 : vector<32x1xf32>
    %521 = math.rsqrt %520 : vector<32x1xf32>
    %522 = vector.broadcast %521 : vector<32x1xf32> to vector<32x32xf32>
    %523 = arith.mulf %518, %522 : vector<32x32xf32>
    %524 = vector.broadcast %504 : vector<1x32xf32> to vector<32x32xf32>
    %525 = arith.mulf %523, %524 : vector<32x32xf32>
    %526 = vector.broadcast %505 : vector<1x32xf32> to vector<32x32xf32>
    %527 = arith.addf %525, %526 : vector<32x32xf32>
    %c368 = arith.constant 368 : index
    %c0_190 = arith.constant 0 : index
    %528 = vector.load %arg2[%c368, %c0_190] : memref<840x128xf32, #tpu.memory_space<vmem>>, vector<16x32xf32>
    %529 = tpu.concatenate %528, %528 in 0 : vector<16x32xf32>, vector<16x32xf32> -> vector<32x32xf32>
    %530 = arith.addf %527, %529 : vector<32x32xf32>
    %c384 = arith.constant 384 : index
    %c0_191 = arith.constant 0 : index
    %531 = vector.load %arg2[%c384, %c0_191] : memref<840x128xf32, #tpu.memory_space<vmem>>, vector<1x32xf32>
    %c392 = arith.constant 392 : index
    %c0_192 = arith.constant 0 : index
    %532 = vector.load %arg2[%c392, %c0_192] : memref<840x128xf32, #tpu.memory_space<vmem>>, vector<1x32xf32>
    %cst_193 = arith.constant dense<0.000000e+00> : vector<32xf32>
    %533 = vector.multi_reduction <add>, %530, %cst_193 [1] : vector<32x32xf32> to vector<32xf32>
    %534 = vector.shape_cast %533 : vector<32xf32> to vector<32x1xf32>
    %cst_194 = arith.constant 3.200000e+01 : f32
    %535 = vector.broadcast %cst_194 : f32 to vector<32x1xf32>
    %536 = arith.divf %534, %535 : vector<32x1xf32>
    %537 = vector.broadcast %536 : vector<32x1xf32> to vector<32x32xf32>
    %538 = arith.subf %530, %537 : vector<32x32xf32>
    %539 = arith.mulf %538, %538 : vector<32x32xf32>
    %cst_195 = arith.constant dense<0.000000e+00> : vector<32xf32>
    %540 = vector.multi_reduction <add>, %539, %cst_195 [1] : vector<32x32xf32> to vector<32xf32>
    %541 = vector.shape_cast %540 : vector<32xf32> to vector<32x1xf32>
    %cst_196 = arith.constant 3.200000e+01 : f32
    %542 = vector.broadcast %cst_196 : f32 to vector<32x1xf32>
    %543 = arith.divf %541, %542 : vector<32x1xf32>
    %544 = vector.broadcast %536 : vector<32x1xf32> to vector<32x32xf32>
    %545 = arith.subf %530, %544 : vector<32x32xf32>
    %cst_197 = arith.constant 9.99999974E-6 : f32
    %546 = vector.broadcast %cst_197 : f32 to vector<32x1xf32>
    %547 = arith.addf %543, %546 : vector<32x1xf32>
    %548 = math.rsqrt %547 : vector<32x1xf32>
    %549 = vector.broadcast %548 : vector<32x1xf32> to vector<32x32xf32>
    %550 = arith.mulf %545, %549 : vector<32x32xf32>
    %551 = vector.broadcast %531 : vector<1x32xf32> to vector<32x32xf32>
    %552 = arith.mulf %550, %551 : vector<32x32xf32>
    %553 = vector.broadcast %532 : vector<1x32xf32> to vector<32x32xf32>
    %554 = arith.addf %552, %553 : vector<32x32xf32>
    %c400 = arith.constant 400 : index
    %c0_198 = arith.constant 0 : index
    %555 = vector.load %arg2[%c400, %c0_198] : memref<840x128xf32, #tpu.memory_space<vmem>>, vector<32x32xf32>
    %c432 = arith.constant 432 : index
    %c0_199 = arith.constant 0 : index
    %556 = vector.load %arg2[%c432, %c0_199] : memref<840x128xf32, #tpu.memory_space<vmem>>, vector<1x32xf32>
    %c440 = arith.constant 440 : index
    %c0_200 = arith.constant 0 : index
    %557 = vector.load %arg2[%c440, %c0_200] : memref<840x128xf32, #tpu.memory_space<vmem>>, vector<32x64xf32>
    %c472 = arith.constant 472 : index
    %c0_201 = arith.constant 0 : index
    %558 = vector.load %arg2[%c472, %c0_201] : memref<840x128xf32, #tpu.memory_space<vmem>>, vector<1x64xf32>
    %c480 = arith.constant 480 : index
    %c0_202 = arith.constant 0 : index
    %559 = vector.load %arg2[%c480, %c0_202] : memref<840x128xf32, #tpu.memory_space<vmem>>, vector<32x32xf32>
    %c512 = arith.constant 512 : index
    %c0_203 = arith.constant 0 : index
    %560 = vector.load %arg2[%c512, %c0_203] : memref<840x128xf32, #tpu.memory_space<vmem>>, vector<1x32xf32>
    %cst_204 = arith.constant dense<0.000000e+00> : vector<32x32xf32>
    %561 = tpu.matmul %554, %555, %cst_204 {dimension_numbers = #tpu.dot_dimension_numbers<[1], [0], [0], [1], [0, 0, 1, 1], [], []>} : vector<32x32xf32>, vector<32x32xf32>, vector<32x32xf32> -> vector<32x32xf32>
    %562 = vector.broadcast %556 : vector<1x32xf32> to vector<32x32xf32>
    %563 = arith.addf %561, %562 : vector<32x32xf32>
    %cst_205 = arith.constant dense<0.000000e+00> : vector<32x64xf32>
    %564 = tpu.matmul %554, %557, %cst_205 {dimension_numbers = #tpu.dot_dimension_numbers<[1], [0], [0], [1], [0, 0, 1, 1], [], []>} : vector<32x32xf32>, vector<32x64xf32>, vector<32x64xf32> -> vector<32x64xf32>
    %565 = vector.broadcast %558 : vector<1x64xf32> to vector<32x64xf32>
    %566 = arith.addf %564, %565 : vector<32x64xf32>
    %567 = tpu.iota {dimensions = array<i32: 0>} : vector<16x16xi32>
    %568 = tpu.iota {dimensions = array<i32: 1>} : vector<16x16xi32>
    %569 = vector.extract_strided_slice %563 {offsets = [0, 0], sizes = [16, 32], strides = [1, 1]} : vector<32x32xf32> to vector<16x32xf32>
    %570 = vector.extract_strided_slice %566 {offsets = [0, 0], sizes = [16, 64], strides = [1, 1]} : vector<32x64xf32> to vector<16x64xf32>
    %571 = vector.extract_strided_slice %569 {offsets = [0, 0], sizes = [16, 8], strides = [1, 1]} : vector<16x32xf32> to vector<16x8xf32>
    %572 = vector.extract_strided_slice %570 {offsets = [0, 0], sizes = [16, 8], strides = [1, 1]} : vector<16x64xf32> to vector<16x8xf32>
    %573 = vector.extract_strided_slice %570 {offsets = [0, 32], sizes = [16, 8], strides = [1, 1]} : vector<16x64xf32> to vector<16x8xf32>
    %cst_206 = arith.constant dense<0.000000e+00> : vector<16x16xf32>
    %574 = tpu.matmul %571, %572, %cst_206 {dimension_numbers = #tpu.dot_dimension_numbers<[1], [1], [0], [0], [0, 0, 1, 0], [], []>} : vector<16x8xf32>, vector<16x8xf32>, vector<16x16xf32> -> vector<16x16xf32>
    %cst_207 = arith.constant 0.353553385 : f32
    %575 = vector.broadcast %cst_207 : f32 to vector<16x16xf32>
    %576 = arith.mulf %574, %575 : vector<16x16xf32>
    %577 = arith.cmpi sle, %568, %567 : vector<16x16xi32>
    %cst_208 = arith.constant -1.000000e+30 : f32
    %578 = vector.broadcast %cst_208 : f32 to vector<16x16xf32>
    %579 = arith.select %577, %576, %578 : vector<16x16xi1>, vector<16x16xf32>
    %cst_209 = arith.constant dense<0xFF800000> : vector<16xf32>
    %580 = vector.multi_reduction <maximumf>, %579, %cst_209 [1] : vector<16x16xf32> to vector<16xf32>
    %581 = vector.shape_cast %580 : vector<16xf32> to vector<16x1xf32>
    %582 = vector.broadcast %581 : vector<16x1xf32> to vector<16x16xf32>
    %583 = arith.subf %579, %582 : vector<16x16xf32>
    %584 = math.exp %583 : vector<16x16xf32>
    %cst_210 = arith.constant dense<0.000000e+00> : vector<16xf32>
    %585 = vector.multi_reduction <add>, %584, %cst_210 [1] : vector<16x16xf32> to vector<16xf32>
    %586 = vector.shape_cast %585 : vector<16xf32> to vector<16x1xf32>
    %cst_211 = arith.constant dense<0.000000e+00> : vector<16x8xf32>
    %587 = tpu.matmul %584, %573, %cst_211 {dimension_numbers = #tpu.dot_dimension_numbers<[1], [0], [0], [1], [0, 0, 1, 1], [], []>} : vector<16x16xf32>, vector<16x8xf32>, vector<16x8xf32> -> vector<16x8xf32>
    %588 = tpu.reciprocal %586 {approx = true} : vector<16x1xf32> -> vector<16x1xf32>
    %589 = vector.broadcast %588 : vector<16x1xf32> to vector<16x8xf32>
    %590 = arith.mulf %587, %589 : vector<16x8xf32>
    %591 = vector.extract_strided_slice %569 {offsets = [0, 8], sizes = [16, 8], strides = [1, 1]} : vector<16x32xf32> to vector<16x8xf32>
    %592 = vector.extract_strided_slice %570 {offsets = [0, 8], sizes = [16, 8], strides = [1, 1]} : vector<16x64xf32> to vector<16x8xf32>
    %593 = vector.extract_strided_slice %570 {offsets = [0, 40], sizes = [16, 8], strides = [1, 1]} : vector<16x64xf32> to vector<16x8xf32>
    %cst_212 = arith.constant dense<0.000000e+00> : vector<16x16xf32>
    %594 = tpu.matmul %591, %592, %cst_212 {dimension_numbers = #tpu.dot_dimension_numbers<[1], [1], [0], [0], [0, 0, 1, 0], [], []>} : vector<16x8xf32>, vector<16x8xf32>, vector<16x16xf32> -> vector<16x16xf32>
    %cst_213 = arith.constant 0.353553385 : f32
    %595 = vector.broadcast %cst_213 : f32 to vector<16x16xf32>
    %596 = arith.mulf %594, %595 : vector<16x16xf32>
    %597 = arith.cmpi sle, %568, %567 : vector<16x16xi32>
    %cst_214 = arith.constant -1.000000e+30 : f32
    %598 = vector.broadcast %cst_214 : f32 to vector<16x16xf32>
    %599 = arith.select %597, %596, %598 : vector<16x16xi1>, vector<16x16xf32>
    %cst_215 = arith.constant dense<0xFF800000> : vector<16xf32>
    %600 = vector.multi_reduction <maximumf>, %599, %cst_215 [1] : vector<16x16xf32> to vector<16xf32>
    %601 = vector.shape_cast %600 : vector<16xf32> to vector<16x1xf32>
    %602 = vector.broadcast %601 : vector<16x1xf32> to vector<16x16xf32>
    %603 = arith.subf %599, %602 : vector<16x16xf32>
    %604 = math.exp %603 : vector<16x16xf32>
    %cst_216 = arith.constant dense<0.000000e+00> : vector<16xf32>
    %605 = vector.multi_reduction <add>, %604, %cst_216 [1] : vector<16x16xf32> to vector<16xf32>
    %606 = vector.shape_cast %605 : vector<16xf32> to vector<16x1xf32>
    %cst_217 = arith.constant dense<0.000000e+00> : vector<16x8xf32>
    %607 = tpu.matmul %604, %593, %cst_217 {dimension_numbers = #tpu.dot_dimension_numbers<[1], [0], [0], [1], [0, 0, 1, 1], [], []>} : vector<16x16xf32>, vector<16x8xf32>, vector<16x8xf32> -> vector<16x8xf32>
    %608 = tpu.reciprocal %606 {approx = true} : vector<16x1xf32> -> vector<16x1xf32>
    %609 = vector.broadcast %608 : vector<16x1xf32> to vector<16x8xf32>
    %610 = arith.mulf %607, %609 : vector<16x8xf32>
    %611 = vector.extract_strided_slice %569 {offsets = [0, 16], sizes = [16, 8], strides = [1, 1]} : vector<16x32xf32> to vector<16x8xf32>
    %612 = vector.extract_strided_slice %570 {offsets = [0, 16], sizes = [16, 8], strides = [1, 1]} : vector<16x64xf32> to vector<16x8xf32>
    %613 = vector.extract_strided_slice %570 {offsets = [0, 48], sizes = [16, 8], strides = [1, 1]} : vector<16x64xf32> to vector<16x8xf32>
    %cst_218 = arith.constant dense<0.000000e+00> : vector<16x16xf32>
    %614 = tpu.matmul %611, %612, %cst_218 {dimension_numbers = #tpu.dot_dimension_numbers<[1], [1], [0], [0], [0, 0, 1, 0], [], []>} : vector<16x8xf32>, vector<16x8xf32>, vector<16x16xf32> -> vector<16x16xf32>
    %cst_219 = arith.constant 0.353553385 : f32
    %615 = vector.broadcast %cst_219 : f32 to vector<16x16xf32>
    %616 = arith.mulf %614, %615 : vector<16x16xf32>
    %617 = arith.cmpi sle, %568, %567 : vector<16x16xi32>
    %cst_220 = arith.constant -1.000000e+30 : f32
    %618 = vector.broadcast %cst_220 : f32 to vector<16x16xf32>
    %619 = arith.select %617, %616, %618 : vector<16x16xi1>, vector<16x16xf32>
    %cst_221 = arith.constant dense<0xFF800000> : vector<16xf32>
    %620 = vector.multi_reduction <maximumf>, %619, %cst_221 [1] : vector<16x16xf32> to vector<16xf32>
    %621 = vector.shape_cast %620 : vector<16xf32> to vector<16x1xf32>
    %622 = vector.broadcast %621 : vector<16x1xf32> to vector<16x16xf32>
    %623 = arith.subf %619, %622 : vector<16x16xf32>
    %624 = math.exp %623 : vector<16x16xf32>
    %cst_222 = arith.constant dense<0.000000e+00> : vector<16xf32>
    %625 = vector.multi_reduction <add>, %624, %cst_222 [1] : vector<16x16xf32> to vector<16xf32>
    %626 = vector.shape_cast %625 : vector<16xf32> to vector<16x1xf32>
    %cst_223 = arith.constant dense<0.000000e+00> : vector<16x8xf32>
    %627 = tpu.matmul %624, %613, %cst_223 {dimension_numbers = #tpu.dot_dimension_numbers<[1], [0], [0], [1], [0, 0, 1, 1], [], []>} : vector<16x16xf32>, vector<16x8xf32>, vector<16x8xf32> -> vector<16x8xf32>
    %628 = tpu.reciprocal %626 {approx = true} : vector<16x1xf32> -> vector<16x1xf32>
    %629 = vector.broadcast %628 : vector<16x1xf32> to vector<16x8xf32>
    %630 = arith.mulf %627, %629 : vector<16x8xf32>
    %631 = vector.extract_strided_slice %569 {offsets = [0, 24], sizes = [16, 8], strides = [1, 1]} : vector<16x32xf32> to vector<16x8xf32>
    %632 = vector.extract_strided_slice %570 {offsets = [0, 24], sizes = [16, 8], strides = [1, 1]} : vector<16x64xf32> to vector<16x8xf32>
    %633 = vector.extract_strided_slice %570 {offsets = [0, 56], sizes = [16, 8], strides = [1, 1]} : vector<16x64xf32> to vector<16x8xf32>
    %cst_224 = arith.constant dense<0.000000e+00> : vector<16x16xf32>
    %634 = tpu.matmul %631, %632, %cst_224 {dimension_numbers = #tpu.dot_dimension_numbers<[1], [1], [0], [0], [0, 0, 1, 0], [], []>} : vector<16x8xf32>, vector<16x8xf32>, vector<16x16xf32> -> vector<16x16xf32>
    %cst_225 = arith.constant 0.353553385 : f32
    %635 = vector.broadcast %cst_225 : f32 to vector<16x16xf32>
    %636 = arith.mulf %634, %635 : vector<16x16xf32>
    %637 = arith.cmpi sle, %568, %567 : vector<16x16xi32>
    %cst_226 = arith.constant -1.000000e+30 : f32
    %638 = vector.broadcast %cst_226 : f32 to vector<16x16xf32>
    %639 = arith.select %637, %636, %638 : vector<16x16xi1>, vector<16x16xf32>
    %cst_227 = arith.constant dense<0xFF800000> : vector<16xf32>
    %640 = vector.multi_reduction <maximumf>, %639, %cst_227 [1] : vector<16x16xf32> to vector<16xf32>
    %641 = vector.shape_cast %640 : vector<16xf32> to vector<16x1xf32>
    %642 = vector.broadcast %641 : vector<16x1xf32> to vector<16x16xf32>
    %643 = arith.subf %639, %642 : vector<16x16xf32>
    %644 = math.exp %643 : vector<16x16xf32>
    %cst_228 = arith.constant dense<0.000000e+00> : vector<16xf32>
    %645 = vector.multi_reduction <add>, %644, %cst_228 [1] : vector<16x16xf32> to vector<16xf32>
    %646 = vector.shape_cast %645 : vector<16xf32> to vector<16x1xf32>
    %cst_229 = arith.constant dense<0.000000e+00> : vector<16x8xf32>
    %647 = tpu.matmul %644, %633, %cst_229 {dimension_numbers = #tpu.dot_dimension_numbers<[1], [0], [0], [1], [0, 0, 1, 1], [], []>} : vector<16x16xf32>, vector<16x8xf32>, vector<16x8xf32> -> vector<16x8xf32>
    %648 = tpu.reciprocal %646 {approx = true} : vector<16x1xf32> -> vector<16x1xf32>
    %649 = vector.broadcast %648 : vector<16x1xf32> to vector<16x8xf32>
    %650 = arith.mulf %647, %649 : vector<16x8xf32>
    %651 = tpu.concatenate %590, %610, %630, %650 in 1 : vector<16x8xf32>, vector<16x8xf32>, vector<16x8xf32>, vector<16x8xf32> -> vector<16x32xf32>
    %652 = vector.extract_strided_slice %563 {offsets = [16, 0], sizes = [16, 32], strides = [1, 1]} : vector<32x32xf32> to vector<16x32xf32>
    %653 = vector.extract_strided_slice %566 {offsets = [16, 0], sizes = [16, 64], strides = [1, 1]} : vector<32x64xf32> to vector<16x64xf32>
    %654 = vector.extract_strided_slice %652 {offsets = [0, 0], sizes = [16, 8], strides = [1, 1]} : vector<16x32xf32> to vector<16x8xf32>
    %655 = vector.extract_strided_slice %653 {offsets = [0, 0], sizes = [16, 8], strides = [1, 1]} : vector<16x64xf32> to vector<16x8xf32>
    %656 = vector.extract_strided_slice %653 {offsets = [0, 32], sizes = [16, 8], strides = [1, 1]} : vector<16x64xf32> to vector<16x8xf32>
    %cst_230 = arith.constant dense<0.000000e+00> : vector<16x16xf32>
    %657 = tpu.matmul %654, %655, %cst_230 {dimension_numbers = #tpu.dot_dimension_numbers<[1], [1], [0], [0], [0, 0, 1, 0], [], []>} : vector<16x8xf32>, vector<16x8xf32>, vector<16x16xf32> -> vector<16x16xf32>
    %cst_231 = arith.constant 0.353553385 : f32
    %658 = vector.broadcast %cst_231 : f32 to vector<16x16xf32>
    %659 = arith.mulf %657, %658 : vector<16x16xf32>
    %660 = arith.cmpi sle, %568, %567 : vector<16x16xi32>
    %cst_232 = arith.constant -1.000000e+30 : f32
    %661 = vector.broadcast %cst_232 : f32 to vector<16x16xf32>
    %662 = arith.select %660, %659, %661 : vector<16x16xi1>, vector<16x16xf32>
    %cst_233 = arith.constant dense<0xFF800000> : vector<16xf32>
    %663 = vector.multi_reduction <maximumf>, %662, %cst_233 [1] : vector<16x16xf32> to vector<16xf32>
    %664 = vector.shape_cast %663 : vector<16xf32> to vector<16x1xf32>
    %665 = vector.broadcast %664 : vector<16x1xf32> to vector<16x16xf32>
    %666 = arith.subf %662, %665 : vector<16x16xf32>
    %667 = math.exp %666 : vector<16x16xf32>
    %cst_234 = arith.constant dense<0.000000e+00> : vector<16xf32>
    %668 = vector.multi_reduction <add>, %667, %cst_234 [1] : vector<16x16xf32> to vector<16xf32>
    %669 = vector.shape_cast %668 : vector<16xf32> to vector<16x1xf32>
    %cst_235 = arith.constant dense<0.000000e+00> : vector<16x8xf32>
    %670 = tpu.matmul %667, %656, %cst_235 {dimension_numbers = #tpu.dot_dimension_numbers<[1], [0], [0], [1], [0, 0, 1, 1], [], []>} : vector<16x16xf32>, vector<16x8xf32>, vector<16x8xf32> -> vector<16x8xf32>
    %671 = tpu.reciprocal %669 {approx = true} : vector<16x1xf32> -> vector<16x1xf32>
    %672 = vector.broadcast %671 : vector<16x1xf32> to vector<16x8xf32>
    %673 = arith.mulf %670, %672 : vector<16x8xf32>
    %674 = vector.extract_strided_slice %652 {offsets = [0, 8], sizes = [16, 8], strides = [1, 1]} : vector<16x32xf32> to vector<16x8xf32>
    %675 = vector.extract_strided_slice %653 {offsets = [0, 8], sizes = [16, 8], strides = [1, 1]} : vector<16x64xf32> to vector<16x8xf32>
    %676 = vector.extract_strided_slice %653 {offsets = [0, 40], sizes = [16, 8], strides = [1, 1]} : vector<16x64xf32> to vector<16x8xf32>
    %cst_236 = arith.constant dense<0.000000e+00> : vector<16x16xf32>
    %677 = tpu.matmul %674, %675, %cst_236 {dimension_numbers = #tpu.dot_dimension_numbers<[1], [1], [0], [0], [0, 0, 1, 0], [], []>} : vector<16x8xf32>, vector<16x8xf32>, vector<16x16xf32> -> vector<16x16xf32>
    %cst_237 = arith.constant 0.353553385 : f32
    %678 = vector.broadcast %cst_237 : f32 to vector<16x16xf32>
    %679 = arith.mulf %677, %678 : vector<16x16xf32>
    %680 = arith.cmpi sle, %568, %567 : vector<16x16xi32>
    %cst_238 = arith.constant -1.000000e+30 : f32
    %681 = vector.broadcast %cst_238 : f32 to vector<16x16xf32>
    %682 = arith.select %680, %679, %681 : vector<16x16xi1>, vector<16x16xf32>
    %cst_239 = arith.constant dense<0xFF800000> : vector<16xf32>
    %683 = vector.multi_reduction <maximumf>, %682, %cst_239 [1] : vector<16x16xf32> to vector<16xf32>
    %684 = vector.shape_cast %683 : vector<16xf32> to vector<16x1xf32>
    %685 = vector.broadcast %684 : vector<16x1xf32> to vector<16x16xf32>
    %686 = arith.subf %682, %685 : vector<16x16xf32>
    %687 = math.exp %686 : vector<16x16xf32>
    %cst_240 = arith.constant dense<0.000000e+00> : vector<16xf32>
    %688 = vector.multi_reduction <add>, %687, %cst_240 [1] : vector<16x16xf32> to vector<16xf32>
    %689 = vector.shape_cast %688 : vector<16xf32> to vector<16x1xf32>
    %cst_241 = arith.constant dense<0.000000e+00> : vector<16x8xf32>
    %690 = tpu.matmul %687, %676, %cst_241 {dimension_numbers = #tpu.dot_dimension_numbers<[1], [0], [0], [1], [0, 0, 1, 1], [], []>} : vector<16x16xf32>, vector<16x8xf32>, vector<16x8xf32> -> vector<16x8xf32>
    %691 = tpu.reciprocal %689 {approx = true} : vector<16x1xf32> -> vector<16x1xf32>
    %692 = vector.broadcast %691 : vector<16x1xf32> to vector<16x8xf32>
    %693 = arith.mulf %690, %692 : vector<16x8xf32>
    %694 = vector.extract_strided_slice %652 {offsets = [0, 16], sizes = [16, 8], strides = [1, 1]} : vector<16x32xf32> to vector<16x8xf32>
    %695 = vector.extract_strided_slice %653 {offsets = [0, 16], sizes = [16, 8], strides = [1, 1]} : vector<16x64xf32> to vector<16x8xf32>
    %696 = vector.extract_strided_slice %653 {offsets = [0, 48], sizes = [16, 8], strides = [1, 1]} : vector<16x64xf32> to vector<16x8xf32>
    %cst_242 = arith.constant dense<0.000000e+00> : vector<16x16xf32>
    %697 = tpu.matmul %694, %695, %cst_242 {dimension_numbers = #tpu.dot_dimension_numbers<[1], [1], [0], [0], [0, 0, 1, 0], [], []>} : vector<16x8xf32>, vector<16x8xf32>, vector<16x16xf32> -> vector<16x16xf32>
    %cst_243 = arith.constant 0.353553385 : f32
    %698 = vector.broadcast %cst_243 : f32 to vector<16x16xf32>
    %699 = arith.mulf %697, %698 : vector<16x16xf32>
    %700 = arith.cmpi sle, %568, %567 : vector<16x16xi32>
    %cst_244 = arith.constant -1.000000e+30 : f32
    %701 = vector.broadcast %cst_244 : f32 to vector<16x16xf32>
    %702 = arith.select %700, %699, %701 : vector<16x16xi1>, vector<16x16xf32>
    %cst_245 = arith.constant dense<0xFF800000> : vector<16xf32>
    %703 = vector.multi_reduction <maximumf>, %702, %cst_245 [1] : vector<16x16xf32> to vector<16xf32>
    %704 = vector.shape_cast %703 : vector<16xf32> to vector<16x1xf32>
    %705 = vector.broadcast %704 : vector<16x1xf32> to vector<16x16xf32>
    %706 = arith.subf %702, %705 : vector<16x16xf32>
    %707 = math.exp %706 : vector<16x16xf32>
    %cst_246 = arith.constant dense<0.000000e+00> : vector<16xf32>
    %708 = vector.multi_reduction <add>, %707, %cst_246 [1] : vector<16x16xf32> to vector<16xf32>
    %709 = vector.shape_cast %708 : vector<16xf32> to vector<16x1xf32>
    %cst_247 = arith.constant dense<0.000000e+00> : vector<16x8xf32>
    %710 = tpu.matmul %707, %696, %cst_247 {dimension_numbers = #tpu.dot_dimension_numbers<[1], [0], [0], [1], [0, 0, 1, 1], [], []>} : vector<16x16xf32>, vector<16x8xf32>, vector<16x8xf32> -> vector<16x8xf32>
    %711 = tpu.reciprocal %709 {approx = true} : vector<16x1xf32> -> vector<16x1xf32>
    %712 = vector.broadcast %711 : vector<16x1xf32> to vector<16x8xf32>
    %713 = arith.mulf %710, %712 : vector<16x8xf32>
    %714 = vector.extract_strided_slice %652 {offsets = [0, 24], sizes = [16, 8], strides = [1, 1]} : vector<16x32xf32> to vector<16x8xf32>
    %715 = vector.extract_strided_slice %653 {offsets = [0, 24], sizes = [16, 8], strides = [1, 1]} : vector<16x64xf32> to vector<16x8xf32>
    %716 = vector.extract_strided_slice %653 {offsets = [0, 56], sizes = [16, 8], strides = [1, 1]} : vector<16x64xf32> to vector<16x8xf32>
    %cst_248 = arith.constant dense<0.000000e+00> : vector<16x16xf32>
    %717 = tpu.matmul %714, %715, %cst_248 {dimension_numbers = #tpu.dot_dimension_numbers<[1], [1], [0], [0], [0, 0, 1, 0], [], []>} : vector<16x8xf32>, vector<16x8xf32>, vector<16x16xf32> -> vector<16x16xf32>
    %cst_249 = arith.constant 0.353553385 : f32
    %718 = vector.broadcast %cst_249 : f32 to vector<16x16xf32>
    %719 = arith.mulf %717, %718 : vector<16x16xf32>
    %720 = arith.cmpi sle, %568, %567 : vector<16x16xi32>
    %cst_250 = arith.constant -1.000000e+30 : f32
    %721 = vector.broadcast %cst_250 : f32 to vector<16x16xf32>
    %722 = arith.select %720, %719, %721 : vector<16x16xi1>, vector<16x16xf32>
    %cst_251 = arith.constant dense<0xFF800000> : vector<16xf32>
    %723 = vector.multi_reduction <maximumf>, %722, %cst_251 [1] : vector<16x16xf32> to vector<16xf32>
    %724 = vector.shape_cast %723 : vector<16xf32> to vector<16x1xf32>
    %725 = vector.broadcast %724 : vector<16x1xf32> to vector<16x16xf32>
    %726 = arith.subf %722, %725 : vector<16x16xf32>
    %727 = math.exp %726 : vector<16x16xf32>
    %cst_252 = arith.constant dense<0.000000e+00> : vector<16xf32>
    %728 = vector.multi_reduction <add>, %727, %cst_252 [1] : vector<16x16xf32> to vector<16xf32>
    %729 = vector.shape_cast %728 : vector<16xf32> to vector<16x1xf32>
    %cst_253 = arith.constant dense<0.000000e+00> : vector<16x8xf32>
    %730 = tpu.matmul %727, %716, %cst_253 {dimension_numbers = #tpu.dot_dimension_numbers<[1], [0], [0], [1], [0, 0, 1, 1], [], []>} : vector<16x16xf32>, vector<16x8xf32>, vector<16x8xf32> -> vector<16x8xf32>
    %731 = tpu.reciprocal %729 {approx = true} : vector<16x1xf32> -> vector<16x1xf32>
    %732 = vector.broadcast %731 : vector<16x1xf32> to vector<16x8xf32>
    %733 = arith.mulf %730, %732 : vector<16x8xf32>
    %734 = tpu.concatenate %673, %693, %713, %733 in 1 : vector<16x8xf32>, vector<16x8xf32>, vector<16x8xf32>, vector<16x8xf32> -> vector<16x32xf32>
    %735 = tpu.concatenate %651, %734 in 0 : vector<16x32xf32>, vector<16x32xf32> -> vector<32x32xf32>
    %cst_254 = arith.constant dense<0.000000e+00> : vector<32x32xf32>
    %736 = tpu.matmul %735, %559, %cst_254 {dimension_numbers = #tpu.dot_dimension_numbers<[1], [0], [0], [1], [0, 0, 1, 1], [], []>} : vector<32x32xf32>, vector<32x32xf32>, vector<32x32xf32> -> vector<32x32xf32>
    %737 = vector.broadcast %560 : vector<1x32xf32> to vector<32x32xf32>
    %738 = arith.addf %736, %737 : vector<32x32xf32>
    %739 = arith.addf %530, %738 : vector<32x32xf32>
    %c520 = arith.constant 520 : index
    %c0_255 = arith.constant 0 : index
    %740 = vector.load %arg2[%c520, %c0_255] : memref<840x128xf32, #tpu.memory_space<vmem>>, vector<1x32xf32>
    %c528 = arith.constant 528 : index
    %c0_256 = arith.constant 0 : index
    %741 = vector.load %arg2[%c528, %c0_256] : memref<840x128xf32, #tpu.memory_space<vmem>>, vector<1x32xf32>
    %cst_257 = arith.constant dense<0.000000e+00> : vector<32xf32>
    %742 = vector.multi_reduction <add>, %739, %cst_257 [1] : vector<32x32xf32> to vector<32xf32>
    %743 = vector.shape_cast %742 : vector<32xf32> to vector<32x1xf32>
    %cst_258 = arith.constant 3.200000e+01 : f32
    %744 = vector.broadcast %cst_258 : f32 to vector<32x1xf32>
    %745 = arith.divf %743, %744 : vector<32x1xf32>
    %746 = vector.broadcast %745 : vector<32x1xf32> to vector<32x32xf32>
    %747 = arith.subf %739, %746 : vector<32x32xf32>
    %748 = arith.mulf %747, %747 : vector<32x32xf32>
    %cst_259 = arith.constant dense<0.000000e+00> : vector<32xf32>
    %749 = vector.multi_reduction <add>, %748, %cst_259 [1] : vector<32x32xf32> to vector<32xf32>
    %750 = vector.shape_cast %749 : vector<32xf32> to vector<32x1xf32>
    %cst_260 = arith.constant 3.200000e+01 : f32
    %751 = vector.broadcast %cst_260 : f32 to vector<32x1xf32>
    %752 = arith.divf %750, %751 : vector<32x1xf32>
    %753 = vector.broadcast %745 : vector<32x1xf32> to vector<32x32xf32>
    %754 = arith.subf %739, %753 : vector<32x32xf32>
    %cst_261 = arith.constant 9.99999974E-6 : f32
    %755 = vector.broadcast %cst_261 : f32 to vector<32x1xf32>
    %756 = arith.addf %752, %755 : vector<32x1xf32>
    %757 = math.rsqrt %756 : vector<32x1xf32>
    %758 = vector.broadcast %757 : vector<32x1xf32> to vector<32x32xf32>
    %759 = arith.mulf %754, %758 : vector<32x32xf32>
    %760 = vector.broadcast %740 : vector<1x32xf32> to vector<32x32xf32>
    %761 = arith.mulf %759, %760 : vector<32x32xf32>
    %762 = vector.broadcast %741 : vector<1x32xf32> to vector<32x32xf32>
    %763 = arith.addf %761, %762 : vector<32x32xf32>
    %c536 = arith.constant 536 : index
    %c0_262 = arith.constant 0 : index
    %764 = vector.load %arg2[%c536, %c0_262] : memref<840x128xf32, #tpu.memory_space<vmem>>, vector<32x32xf32>
    %c568 = arith.constant 568 : index
    %c0_263 = arith.constant 0 : index
    %765 = vector.load %arg2[%c568, %c0_263] : memref<840x128xf32, #tpu.memory_space<vmem>>, vector<1x32xf32>
    %c576 = arith.constant 576 : index
    %c0_264 = arith.constant 0 : index
    %766 = vector.load %arg2[%c576, %c0_264] : memref<840x128xf32, #tpu.memory_space<vmem>>, vector<32x64xf32>
    %c608 = arith.constant 608 : index
    %c0_265 = arith.constant 0 : index
    %767 = vector.load %arg2[%c608, %c0_265] : memref<840x128xf32, #tpu.memory_space<vmem>>, vector<1x64xf32>
    %c616 = arith.constant 616 : index
    %c0_266 = arith.constant 0 : index
    %768 = vector.load %arg2[%c616, %c0_266] : memref<840x128xf32, #tpu.memory_space<vmem>>, vector<32x32xf32>
    %c648 = arith.constant 648 : index
    %c0_267 = arith.constant 0 : index
    %769 = vector.load %arg2[%c648, %c0_267] : memref<840x128xf32, #tpu.memory_space<vmem>>, vector<1x32xf32>
    %cst_268 = arith.constant dense<0.000000e+00> : vector<32x32xf32>
    %770 = tpu.matmul %763, %764, %cst_268 {dimension_numbers = #tpu.dot_dimension_numbers<[1], [0], [0], [1], [0, 0, 1, 1], [], []>} : vector<32x32xf32>, vector<32x32xf32>, vector<32x32xf32> -> vector<32x32xf32>
    %771 = vector.broadcast %765 : vector<1x32xf32> to vector<32x32xf32>
    %772 = arith.addf %770, %771 : vector<32x32xf32>
    %cst_269 = arith.constant dense<0.000000e+00> : vector<32x64xf32>
    %773 = tpu.matmul %263, %766, %cst_269 {dimension_numbers = #tpu.dot_dimension_numbers<[1], [0], [0], [1], [0, 0, 1, 1], [], []>} : vector<32x32xf32>, vector<32x64xf32>, vector<32x64xf32> -> vector<32x64xf32>
    %774 = vector.broadcast %767 : vector<1x64xf32> to vector<32x64xf32>
    %775 = arith.addf %773, %774 : vector<32x64xf32>
    %776 = vector.extract_strided_slice %772 {offsets = [0, 0], sizes = [16, 32], strides = [1, 1]} : vector<32x32xf32> to vector<16x32xf32>
    %777 = vector.extract_strided_slice %775 {offsets = [0, 0], sizes = [16, 64], strides = [1, 1]} : vector<32x64xf32> to vector<16x64xf32>
    %778 = vector.extract_strided_slice %776 {offsets = [0, 0], sizes = [16, 8], strides = [1, 1]} : vector<16x32xf32> to vector<16x8xf32>
    %779 = vector.extract_strided_slice %777 {offsets = [0, 0], sizes = [16, 8], strides = [1, 1]} : vector<16x64xf32> to vector<16x8xf32>
    %780 = vector.extract_strided_slice %777 {offsets = [0, 32], sizes = [16, 8], strides = [1, 1]} : vector<16x64xf32> to vector<16x8xf32>
    %cst_270 = arith.constant dense<0.000000e+00> : vector<16x16xf32>
    %781 = tpu.matmul %778, %779, %cst_270 {dimension_numbers = #tpu.dot_dimension_numbers<[1], [1], [0], [0], [0, 0, 1, 0], [], []>} : vector<16x8xf32>, vector<16x8xf32>, vector<16x16xf32> -> vector<16x16xf32>
    %cst_271 = arith.constant 0.353553385 : f32
    %782 = vector.broadcast %cst_271 : f32 to vector<16x16xf32>
    %783 = arith.mulf %781, %782 : vector<16x16xf32>
    %cst_272 = arith.constant dense<0xFF800000> : vector<16xf32>
    %784 = vector.multi_reduction <maximumf>, %783, %cst_272 [1] : vector<16x16xf32> to vector<16xf32>
    %785 = vector.shape_cast %784 : vector<16xf32> to vector<16x1xf32>
    %786 = vector.broadcast %785 : vector<16x1xf32> to vector<16x16xf32>
    %787 = arith.subf %783, %786 : vector<16x16xf32>
    %788 = math.exp %787 : vector<16x16xf32>
    %cst_273 = arith.constant dense<0.000000e+00> : vector<16xf32>
    %789 = vector.multi_reduction <add>, %788, %cst_273 [1] : vector<16x16xf32> to vector<16xf32>
    %790 = vector.shape_cast %789 : vector<16xf32> to vector<16x1xf32>
    %cst_274 = arith.constant dense<0.000000e+00> : vector<16x8xf32>
    %791 = tpu.matmul %788, %780, %cst_274 {dimension_numbers = #tpu.dot_dimension_numbers<[1], [0], [0], [1], [0, 0, 1, 1], [], []>} : vector<16x16xf32>, vector<16x8xf32>, vector<16x8xf32> -> vector<16x8xf32>
    %792 = tpu.reciprocal %790 {approx = true} : vector<16x1xf32> -> vector<16x1xf32>
    %793 = vector.broadcast %792 : vector<16x1xf32> to vector<16x8xf32>
    %794 = arith.mulf %791, %793 : vector<16x8xf32>
    %795 = vector.extract_strided_slice %776 {offsets = [0, 8], sizes = [16, 8], strides = [1, 1]} : vector<16x32xf32> to vector<16x8xf32>
    %796 = vector.extract_strided_slice %777 {offsets = [0, 8], sizes = [16, 8], strides = [1, 1]} : vector<16x64xf32> to vector<16x8xf32>
    %797 = vector.extract_strided_slice %777 {offsets = [0, 40], sizes = [16, 8], strides = [1, 1]} : vector<16x64xf32> to vector<16x8xf32>
    %cst_275 = arith.constant dense<0.000000e+00> : vector<16x16xf32>
    %798 = tpu.matmul %795, %796, %cst_275 {dimension_numbers = #tpu.dot_dimension_numbers<[1], [1], [0], [0], [0, 0, 1, 0], [], []>} : vector<16x8xf32>, vector<16x8xf32>, vector<16x16xf32> -> vector<16x16xf32>
    %cst_276 = arith.constant 0.353553385 : f32
    %799 = vector.broadcast %cst_276 : f32 to vector<16x16xf32>
    %800 = arith.mulf %798, %799 : vector<16x16xf32>
    %cst_277 = arith.constant dense<0xFF800000> : vector<16xf32>
    %801 = vector.multi_reduction <maximumf>, %800, %cst_277 [1] : vector<16x16xf32> to vector<16xf32>
    %802 = vector.shape_cast %801 : vector<16xf32> to vector<16x1xf32>
    %803 = vector.broadcast %802 : vector<16x1xf32> to vector<16x16xf32>
    %804 = arith.subf %800, %803 : vector<16x16xf32>
    %805 = math.exp %804 : vector<16x16xf32>
    %cst_278 = arith.constant dense<0.000000e+00> : vector<16xf32>
    %806 = vector.multi_reduction <add>, %805, %cst_278 [1] : vector<16x16xf32> to vector<16xf32>
    %807 = vector.shape_cast %806 : vector<16xf32> to vector<16x1xf32>
    %cst_279 = arith.constant dense<0.000000e+00> : vector<16x8xf32>
    %808 = tpu.matmul %805, %797, %cst_279 {dimension_numbers = #tpu.dot_dimension_numbers<[1], [0], [0], [1], [0, 0, 1, 1], [], []>} : vector<16x16xf32>, vector<16x8xf32>, vector<16x8xf32> -> vector<16x8xf32>
    %809 = tpu.reciprocal %807 {approx = true} : vector<16x1xf32> -> vector<16x1xf32>
    %810 = vector.broadcast %809 : vector<16x1xf32> to vector<16x8xf32>
    %811 = arith.mulf %808, %810 : vector<16x8xf32>
    %812 = vector.extract_strided_slice %776 {offsets = [0, 16], sizes = [16, 8], strides = [1, 1]} : vector<16x32xf32> to vector<16x8xf32>
    %813 = vector.extract_strided_slice %777 {offsets = [0, 16], sizes = [16, 8], strides = [1, 1]} : vector<16x64xf32> to vector<16x8xf32>
    %814 = vector.extract_strided_slice %777 {offsets = [0, 48], sizes = [16, 8], strides = [1, 1]} : vector<16x64xf32> to vector<16x8xf32>
    %cst_280 = arith.constant dense<0.000000e+00> : vector<16x16xf32>
    %815 = tpu.matmul %812, %813, %cst_280 {dimension_numbers = #tpu.dot_dimension_numbers<[1], [1], [0], [0], [0, 0, 1, 0], [], []>} : vector<16x8xf32>, vector<16x8xf32>, vector<16x16xf32> -> vector<16x16xf32>
    %cst_281 = arith.constant 0.353553385 : f32
    %816 = vector.broadcast %cst_281 : f32 to vector<16x16xf32>
    %817 = arith.mulf %815, %816 : vector<16x16xf32>
    %cst_282 = arith.constant dense<0xFF800000> : vector<16xf32>
    %818 = vector.multi_reduction <maximumf>, %817, %cst_282 [1] : vector<16x16xf32> to vector<16xf32>
    %819 = vector.shape_cast %818 : vector<16xf32> to vector<16x1xf32>
    %820 = vector.broadcast %819 : vector<16x1xf32> to vector<16x16xf32>
    %821 = arith.subf %817, %820 : vector<16x16xf32>
    %822 = math.exp %821 : vector<16x16xf32>
    %cst_283 = arith.constant dense<0.000000e+00> : vector<16xf32>
    %823 = vector.multi_reduction <add>, %822, %cst_283 [1] : vector<16x16xf32> to vector<16xf32>
    %824 = vector.shape_cast %823 : vector<16xf32> to vector<16x1xf32>
    %cst_284 = arith.constant dense<0.000000e+00> : vector<16x8xf32>
    %825 = tpu.matmul %822, %814, %cst_284 {dimension_numbers = #tpu.dot_dimension_numbers<[1], [0], [0], [1], [0, 0, 1, 1], [], []>} : vector<16x16xf32>, vector<16x8xf32>, vector<16x8xf32> -> vector<16x8xf32>
    %826 = tpu.reciprocal %824 {approx = true} : vector<16x1xf32> -> vector<16x1xf32>
    %827 = vector.broadcast %826 : vector<16x1xf32> to vector<16x8xf32>
    %828 = arith.mulf %825, %827 : vector<16x8xf32>
    %829 = vector.extract_strided_slice %776 {offsets = [0, 24], sizes = [16, 8], strides = [1, 1]} : vector<16x32xf32> to vector<16x8xf32>
    %830 = vector.extract_strided_slice %777 {offsets = [0, 24], sizes = [16, 8], strides = [1, 1]} : vector<16x64xf32> to vector<16x8xf32>
    %831 = vector.extract_strided_slice %777 {offsets = [0, 56], sizes = [16, 8], strides = [1, 1]} : vector<16x64xf32> to vector<16x8xf32>
    %cst_285 = arith.constant dense<0.000000e+00> : vector<16x16xf32>
    %832 = tpu.matmul %829, %830, %cst_285 {dimension_numbers = #tpu.dot_dimension_numbers<[1], [1], [0], [0], [0, 0, 1, 0], [], []>} : vector<16x8xf32>, vector<16x8xf32>, vector<16x16xf32> -> vector<16x16xf32>
    %cst_286 = arith.constant 0.353553385 : f32
    %833 = vector.broadcast %cst_286 : f32 to vector<16x16xf32>
    %834 = arith.mulf %832, %833 : vector<16x16xf32>
    %cst_287 = arith.constant dense<0xFF800000> : vector<16xf32>
    %835 = vector.multi_reduction <maximumf>, %834, %cst_287 [1] : vector<16x16xf32> to vector<16xf32>
    %836 = vector.shape_cast %835 : vector<16xf32> to vector<16x1xf32>
    %837 = vector.broadcast %836 : vector<16x1xf32> to vector<16x16xf32>
    %838 = arith.subf %834, %837 : vector<16x16xf32>
    %839 = math.exp %838 : vector<16x16xf32>
    %cst_288 = arith.constant dense<0.000000e+00> : vector<16xf32>
    %840 = vector.multi_reduction <add>, %839, %cst_288 [1] : vector<16x16xf32> to vector<16xf32>
    %841 = vector.shape_cast %840 : vector<16xf32> to vector<16x1xf32>
    %cst_289 = arith.constant dense<0.000000e+00> : vector<16x8xf32>
    %842 = tpu.matmul %839, %831, %cst_289 {dimension_numbers = #tpu.dot_dimension_numbers<[1], [0], [0], [1], [0, 0, 1, 1], [], []>} : vector<16x16xf32>, vector<16x8xf32>, vector<16x8xf32> -> vector<16x8xf32>
    %843 = tpu.reciprocal %841 {approx = true} : vector<16x1xf32> -> vector<16x1xf32>
    %844 = vector.broadcast %843 : vector<16x1xf32> to vector<16x8xf32>
    %845 = arith.mulf %842, %844 : vector<16x8xf32>
    %846 = tpu.concatenate %794, %811, %828, %845 in 1 : vector<16x8xf32>, vector<16x8xf32>, vector<16x8xf32>, vector<16x8xf32> -> vector<16x32xf32>
    %847 = vector.extract_strided_slice %772 {offsets = [16, 0], sizes = [16, 32], strides = [1, 1]} : vector<32x32xf32> to vector<16x32xf32>
    %848 = vector.extract_strided_slice %775 {offsets = [16, 0], sizes = [16, 64], strides = [1, 1]} : vector<32x64xf32> to vector<16x64xf32>
    %849 = vector.extract_strided_slice %847 {offsets = [0, 0], sizes = [16, 8], strides = [1, 1]} : vector<16x32xf32> to vector<16x8xf32>
    %850 = vector.extract_strided_slice %848 {offsets = [0, 0], sizes = [16, 8], strides = [1, 1]} : vector<16x64xf32> to vector<16x8xf32>
    %851 = vector.extract_strided_slice %848 {offsets = [0, 32], sizes = [16, 8], strides = [1, 1]} : vector<16x64xf32> to vector<16x8xf32>
    %cst_290 = arith.constant dense<0.000000e+00> : vector<16x16xf32>
    %852 = tpu.matmul %849, %850, %cst_290 {dimension_numbers = #tpu.dot_dimension_numbers<[1], [1], [0], [0], [0, 0, 1, 0], [], []>} : vector<16x8xf32>, vector<16x8xf32>, vector<16x16xf32> -> vector<16x16xf32>
    %cst_291 = arith.constant 0.353553385 : f32
    %853 = vector.broadcast %cst_291 : f32 to vector<16x16xf32>
    %854 = arith.mulf %852, %853 : vector<16x16xf32>
    %cst_292 = arith.constant dense<0xFF800000> : vector<16xf32>
    %855 = vector.multi_reduction <maximumf>, %854, %cst_292 [1] : vector<16x16xf32> to vector<16xf32>
    %856 = vector.shape_cast %855 : vector<16xf32> to vector<16x1xf32>
    %857 = vector.broadcast %856 : vector<16x1xf32> to vector<16x16xf32>
    %858 = arith.subf %854, %857 : vector<16x16xf32>
    %859 = math.exp %858 : vector<16x16xf32>
    %cst_293 = arith.constant dense<0.000000e+00> : vector<16xf32>
    %860 = vector.multi_reduction <add>, %859, %cst_293 [1] : vector<16x16xf32> to vector<16xf32>
    %861 = vector.shape_cast %860 : vector<16xf32> to vector<16x1xf32>
    %cst_294 = arith.constant dense<0.000000e+00> : vector<16x8xf32>
    %862 = tpu.matmul %859, %851, %cst_294 {dimension_numbers = #tpu.dot_dimension_numbers<[1], [0], [0], [1], [0, 0, 1, 1], [], []>} : vector<16x16xf32>, vector<16x8xf32>, vector<16x8xf32> -> vector<16x8xf32>
    %863 = tpu.reciprocal %861 {approx = true} : vector<16x1xf32> -> vector<16x1xf32>
    %864 = vector.broadcast %863 : vector<16x1xf32> to vector<16x8xf32>
    %865 = arith.mulf %862, %864 : vector<16x8xf32>
    %866 = vector.extract_strided_slice %847 {offsets = [0, 8], sizes = [16, 8], strides = [1, 1]} : vector<16x32xf32> to vector<16x8xf32>
    %867 = vector.extract_strided_slice %848 {offsets = [0, 8], sizes = [16, 8], strides = [1, 1]} : vector<16x64xf32> to vector<16x8xf32>
    %868 = vector.extract_strided_slice %848 {offsets = [0, 40], sizes = [16, 8], strides = [1, 1]} : vector<16x64xf32> to vector<16x8xf32>
    %cst_295 = arith.constant dense<0.000000e+00> : vector<16x16xf32>
    %869 = tpu.matmul %866, %867, %cst_295 {dimension_numbers = #tpu.dot_dimension_numbers<[1], [1], [0], [0], [0, 0, 1, 0], [], []>} : vector<16x8xf32>, vector<16x8xf32>, vector<16x16xf32> -> vector<16x16xf32>
    %cst_296 = arith.constant 0.353553385 : f32
    %870 = vector.broadcast %cst_296 : f32 to vector<16x16xf32>
    %871 = arith.mulf %869, %870 : vector<16x16xf32>
    %cst_297 = arith.constant dense<0xFF800000> : vector<16xf32>
    %872 = vector.multi_reduction <maximumf>, %871, %cst_297 [1] : vector<16x16xf32> to vector<16xf32>
    %873 = vector.shape_cast %872 : vector<16xf32> to vector<16x1xf32>
    %874 = vector.broadcast %873 : vector<16x1xf32> to vector<16x16xf32>
    %875 = arith.subf %871, %874 : vector<16x16xf32>
    %876 = math.exp %875 : vector<16x16xf32>
    %cst_298 = arith.constant dense<0.000000e+00> : vector<16xf32>
    %877 = vector.multi_reduction <add>, %876, %cst_298 [1] : vector<16x16xf32> to vector<16xf32>
    %878 = vector.shape_cast %877 : vector<16xf32> to vector<16x1xf32>
    %cst_299 = arith.constant dense<0.000000e+00> : vector<16x8xf32>
    %879 = tpu.matmul %876, %868, %cst_299 {dimension_numbers = #tpu.dot_dimension_numbers<[1], [0], [0], [1], [0, 0, 1, 1], [], []>} : vector<16x16xf32>, vector<16x8xf32>, vector<16x8xf32> -> vector<16x8xf32>
    %880 = tpu.reciprocal %878 {approx = true} : vector<16x1xf32> -> vector<16x1xf32>
    %881 = vector.broadcast %880 : vector<16x1xf32> to vector<16x8xf32>
    %882 = arith.mulf %879, %881 : vector<16x8xf32>
    %883 = vector.extract_strided_slice %847 {offsets = [0, 16], sizes = [16, 8], strides = [1, 1]} : vector<16x32xf32> to vector<16x8xf32>
    %884 = vector.extract_strided_slice %848 {offsets = [0, 16], sizes = [16, 8], strides = [1, 1]} : vector<16x64xf32> to vector<16x8xf32>
    %885 = vector.extract_strided_slice %848 {offsets = [0, 48], sizes = [16, 8], strides = [1, 1]} : vector<16x64xf32> to vector<16x8xf32>
    %cst_300 = arith.constant dense<0.000000e+00> : vector<16x16xf32>
    %886 = tpu.matmul %883, %884, %cst_300 {dimension_numbers = #tpu.dot_dimension_numbers<[1], [1], [0], [0], [0, 0, 1, 0], [], []>} : vector<16x8xf32>, vector<16x8xf32>, vector<16x16xf32> -> vector<16x16xf32>
    %cst_301 = arith.constant 0.353553385 : f32
    %887 = vector.broadcast %cst_301 : f32 to vector<16x16xf32>
    %888 = arith.mulf %886, %887 : vector<16x16xf32>
    %cst_302 = arith.constant dense<0xFF800000> : vector<16xf32>
    %889 = vector.multi_reduction <maximumf>, %888, %cst_302 [1] : vector<16x16xf32> to vector<16xf32>
    %890 = vector.shape_cast %889 : vector<16xf32> to vector<16x1xf32>
    %891 = vector.broadcast %890 : vector<16x1xf32> to vector<16x16xf32>
    %892 = arith.subf %888, %891 : vector<16x16xf32>
    %893 = math.exp %892 : vector<16x16xf32>
    %cst_303 = arith.constant dense<0.000000e+00> : vector<16xf32>
    %894 = vector.multi_reduction <add>, %893, %cst_303 [1] : vector<16x16xf32> to vector<16xf32>
    %895 = vector.shape_cast %894 : vector<16xf32> to vector<16x1xf32>
    %cst_304 = arith.constant dense<0.000000e+00> : vector<16x8xf32>
    %896 = tpu.matmul %893, %885, %cst_304 {dimension_numbers = #tpu.dot_dimension_numbers<[1], [0], [0], [1], [0, 0, 1, 1], [], []>} : vector<16x16xf32>, vector<16x8xf32>, vector<16x8xf32> -> vector<16x8xf32>
    %897 = tpu.reciprocal %895 {approx = true} : vector<16x1xf32> -> vector<16x1xf32>
    %898 = vector.broadcast %897 : vector<16x1xf32> to vector<16x8xf32>
    %899 = arith.mulf %896, %898 : vector<16x8xf32>
    %900 = vector.extract_strided_slice %847 {offsets = [0, 24], sizes = [16, 8], strides = [1, 1]} : vector<16x32xf32> to vector<16x8xf32>
    %901 = vector.extract_strided_slice %848 {offsets = [0, 24], sizes = [16, 8], strides = [1, 1]} : vector<16x64xf32> to vector<16x8xf32>
    %902 = vector.extract_strided_slice %848 {offsets = [0, 56], sizes = [16, 8], strides = [1, 1]} : vector<16x64xf32> to vector<16x8xf32>
    %cst_305 = arith.constant dense<0.000000e+00> : vector<16x16xf32>
    %903 = tpu.matmul %900, %901, %cst_305 {dimension_numbers = #tpu.dot_dimension_numbers<[1], [1], [0], [0], [0, 0, 1, 0], [], []>} : vector<16x8xf32>, vector<16x8xf32>, vector<16x16xf32> -> vector<16x16xf32>
    %cst_306 = arith.constant 0.353553385 : f32
    %904 = vector.broadcast %cst_306 : f32 to vector<16x16xf32>
    %905 = arith.mulf %903, %904 : vector<16x16xf32>
    %cst_307 = arith.constant dense<0xFF800000> : vector<16xf32>
    %906 = vector.multi_reduction <maximumf>, %905, %cst_307 [1] : vector<16x16xf32> to vector<16xf32>
    %907 = vector.shape_cast %906 : vector<16xf32> to vector<16x1xf32>
    %908 = vector.broadcast %907 : vector<16x1xf32> to vector<16x16xf32>
    %909 = arith.subf %905, %908 : vector<16x16xf32>
    %910 = math.exp %909 : vector<16x16xf32>
    %cst_308 = arith.constant dense<0.000000e+00> : vector<16xf32>
    %911 = vector.multi_reduction <add>, %910, %cst_308 [1] : vector<16x16xf32> to vector<16xf32>
    %912 = vector.shape_cast %911 : vector<16xf32> to vector<16x1xf32>
    %cst_309 = arith.constant dense<0.000000e+00> : vector<16x8xf32>
    %913 = tpu.matmul %910, %902, %cst_309 {dimension_numbers = #tpu.dot_dimension_numbers<[1], [0], [0], [1], [0, 0, 1, 1], [], []>} : vector<16x16xf32>, vector<16x8xf32>, vector<16x8xf32> -> vector<16x8xf32>
    %914 = tpu.reciprocal %912 {approx = true} : vector<16x1xf32> -> vector<16x1xf32>
    %915 = vector.broadcast %914 : vector<16x1xf32> to vector<16x8xf32>
    %916 = arith.mulf %913, %915 : vector<16x8xf32>
    %917 = tpu.concatenate %865, %882, %899, %916 in 1 : vector<16x8xf32>, vector<16x8xf32>, vector<16x8xf32>, vector<16x8xf32> -> vector<16x32xf32>
    %918 = tpu.concatenate %846, %917 in 0 : vector<16x32xf32>, vector<16x32xf32> -> vector<32x32xf32>
    %cst_310 = arith.constant dense<0.000000e+00> : vector<32x32xf32>
    %919 = tpu.matmul %918, %768, %cst_310 {dimension_numbers = #tpu.dot_dimension_numbers<[1], [0], [0], [1], [0, 0, 1, 1], [], []>} : vector<32x32xf32>, vector<32x32xf32>, vector<32x32xf32> -> vector<32x32xf32>
    %920 = vector.broadcast %769 : vector<1x32xf32> to vector<32x32xf32>
    %921 = arith.addf %919, %920 : vector<32x32xf32>
    %922 = arith.addf %739, %921 : vector<32x32xf32>
    %c656 = arith.constant 656 : index
    %c0_311 = arith.constant 0 : index
    %923 = vector.load %arg2[%c656, %c0_311] : memref<840x128xf32, #tpu.memory_space<vmem>>, vector<1x32xf32>
    %c664 = arith.constant 664 : index
    %c0_312 = arith.constant 0 : index
    %924 = vector.load %arg2[%c664, %c0_312] : memref<840x128xf32, #tpu.memory_space<vmem>>, vector<1x32xf32>
    %cst_313 = arith.constant dense<0.000000e+00> : vector<32xf32>
    %925 = vector.multi_reduction <add>, %922, %cst_313 [1] : vector<32x32xf32> to vector<32xf32>
    %926 = vector.shape_cast %925 : vector<32xf32> to vector<32x1xf32>
    %cst_314 = arith.constant 3.200000e+01 : f32
    %927 = vector.broadcast %cst_314 : f32 to vector<32x1xf32>
    %928 = arith.divf %926, %927 : vector<32x1xf32>
    %929 = vector.broadcast %928 : vector<32x1xf32> to vector<32x32xf32>
    %930 = arith.subf %922, %929 : vector<32x32xf32>
    %931 = arith.mulf %930, %930 : vector<32x32xf32>
    %cst_315 = arith.constant dense<0.000000e+00> : vector<32xf32>
    %932 = vector.multi_reduction <add>, %931, %cst_315 [1] : vector<32x32xf32> to vector<32xf32>
    %933 = vector.shape_cast %932 : vector<32xf32> to vector<32x1xf32>
    %cst_316 = arith.constant 3.200000e+01 : f32
    %934 = vector.broadcast %cst_316 : f32 to vector<32x1xf32>
    %935 = arith.divf %933, %934 : vector<32x1xf32>
    %936 = vector.broadcast %928 : vector<32x1xf32> to vector<32x32xf32>
    %937 = arith.subf %922, %936 : vector<32x32xf32>
    %cst_317 = arith.constant 9.99999974E-6 : f32
    %938 = vector.broadcast %cst_317 : f32 to vector<32x1xf32>
    %939 = arith.addf %935, %938 : vector<32x1xf32>
    %940 = math.rsqrt %939 : vector<32x1xf32>
    %941 = vector.broadcast %940 : vector<32x1xf32> to vector<32x32xf32>
    %942 = arith.mulf %937, %941 : vector<32x32xf32>
    %943 = vector.broadcast %923 : vector<1x32xf32> to vector<32x32xf32>
    %944 = arith.mulf %942, %943 : vector<32x32xf32>
    %945 = vector.broadcast %924 : vector<1x32xf32> to vector<32x32xf32>
    %946 = arith.addf %944, %945 : vector<32x32xf32>
    %c672 = arith.constant 672 : index
    %c0_318 = arith.constant 0 : index
    %947 = vector.load %arg2[%c672, %c0_318] : memref<840x128xf32, #tpu.memory_space<vmem>>, vector<32x64xf32>
    %cst_319 = arith.constant dense<0.000000e+00> : vector<32x64xf32>
    %948 = tpu.matmul %946, %947, %cst_319 {dimension_numbers = #tpu.dot_dimension_numbers<[1], [0], [0], [1], [0, 0, 1, 1], [], []>} : vector<32x32xf32>, vector<32x64xf32>, vector<32x64xf32> -> vector<32x64xf32>
    %c704 = arith.constant 704 : index
    %c0_320 = arith.constant 0 : index
    %949 = vector.load %arg2[%c704, %c0_320] : memref<840x128xf32, #tpu.memory_space<vmem>>, vector<1x64xf32>
    %950 = vector.broadcast %949 : vector<1x64xf32> to vector<32x64xf32>
    %951 = arith.addf %948, %950 : vector<32x64xf32>
    %952 = arith.mulf %951, %951 : vector<32x64xf32>
    %953 = arith.mulf %951, %952 : vector<32x64xf32>
    %cst_321 = arith.constant 4.471500e-02 : f32
    %954 = vector.broadcast %cst_321 : f32 to vector<32x64xf32>
    %955 = arith.mulf %954, %953 : vector<32x64xf32>
    %956 = arith.addf %951, %955 : vector<32x64xf32>
    %cst_322 = arith.constant 0.797884583 : f32
    %957 = vector.broadcast %cst_322 : f32 to vector<32x64xf32>
    %958 = arith.mulf %957, %956 : vector<32x64xf32>
    %959 = math.tanh %958 : vector<32x64xf32>
    %cst_323 = arith.constant 1.000000e+00 : f32
    %960 = vector.broadcast %cst_323 : f32 to vector<32x64xf32>
    %961 = arith.addf %960, %959 : vector<32x64xf32>
    %cst_324 = arith.constant 5.000000e-01 : f32
    %962 = vector.broadcast %cst_324 : f32 to vector<32x64xf32>
    %963 = arith.mulf %962, %961 : vector<32x64xf32>
    %964 = arith.mulf %951, %963 : vector<32x64xf32>
    %c712 = arith.constant 712 : index
    %c0_325 = arith.constant 0 : index
    %965 = vector.load %arg2[%c712, %c0_325] : memref<840x128xf32, #tpu.memory_space<vmem>>, vector<64x32xf32>
    %cst_326 = arith.constant dense<0.000000e+00> : vector<32x32xf32>
    %966 = tpu.matmul %964, %965, %cst_326 {dimension_numbers = #tpu.dot_dimension_numbers<[1], [0], [0], [1], [0, 0, 1, 1], [], []>} : vector<32x64xf32>, vector<64x32xf32>, vector<32x32xf32> -> vector<32x32xf32>
    %967 = arith.addf %922, %966 : vector<32x32xf32>
    %c776 = arith.constant 776 : index
    %c0_327 = arith.constant 0 : index
    %968 = vector.load %arg2[%c776, %c0_327] : memref<840x128xf32, #tpu.memory_space<vmem>>, vector<1x32xf32>
    %969 = vector.broadcast %968 : vector<1x32xf32> to vector<32x32xf32>
    %970 = arith.addf %967, %969 : vector<32x32xf32>
    %c784 = arith.constant 784 : index
    %c0_328 = arith.constant 0 : index
    %971 = vector.load %arg2[%c784, %c0_328] : memref<840x128xf32, #tpu.memory_space<vmem>>, vector<1x32xf32>
    %c792 = arith.constant 792 : index
    %c0_329 = arith.constant 0 : index
    %972 = vector.load %arg2[%c792, %c0_329] : memref<840x128xf32, #tpu.memory_space<vmem>>, vector<1x32xf32>
    %cst_330 = arith.constant dense<0.000000e+00> : vector<32xf32>
    %973 = vector.multi_reduction <add>, %970, %cst_330 [1] : vector<32x32xf32> to vector<32xf32>
    %974 = vector.shape_cast %973 : vector<32xf32> to vector<32x1xf32>
    %cst_331 = arith.constant 3.200000e+01 : f32
    %975 = vector.broadcast %cst_331 : f32 to vector<32x1xf32>
    %976 = arith.divf %974, %975 : vector<32x1xf32>
    %977 = vector.broadcast %976 : vector<32x1xf32> to vector<32x32xf32>
    %978 = arith.subf %970, %977 : vector<32x32xf32>
    %979 = arith.mulf %978, %978 : vector<32x32xf32>
    %cst_332 = arith.constant dense<0.000000e+00> : vector<32xf32>
    %980 = vector.multi_reduction <add>, %979, %cst_332 [1] : vector<32x32xf32> to vector<32xf32>
    %981 = vector.shape_cast %980 : vector<32xf32> to vector<32x1xf32>
    %cst_333 = arith.constant 3.200000e+01 : f32
    %982 = vector.broadcast %cst_333 : f32 to vector<32x1xf32>
    %983 = arith.divf %981, %982 : vector<32x1xf32>
    %984 = vector.broadcast %976 : vector<32x1xf32> to vector<32x32xf32>
    %985 = arith.subf %970, %984 : vector<32x32xf32>
    %cst_334 = arith.constant 9.99999974E-6 : f32
    %986 = vector.broadcast %cst_334 : f32 to vector<32x1xf32>
    %987 = arith.addf %983, %986 : vector<32x1xf32>
    %988 = math.rsqrt %987 : vector<32x1xf32>
    %989 = vector.broadcast %988 : vector<32x1xf32> to vector<32x32xf32>
    %990 = arith.mulf %985, %989 : vector<32x32xf32>
    %991 = vector.broadcast %971 : vector<1x32xf32> to vector<32x32xf32>
    %992 = arith.mulf %990, %991 : vector<32x32xf32>
    %993 = vector.broadcast %972 : vector<1x32xf32> to vector<32x32xf32>
    %994 = arith.addf %992, %993 : vector<32x32xf32>
    %c800 = arith.constant 800 : index
    %c0_335 = arith.constant 0 : index
    %995 = vector.load %arg2[%c800, %c0_335] : memref<840x128xf32, #tpu.memory_space<vmem>>, vector<32x128xf32>
    %cst_336 = arith.constant dense<0.000000e+00> : vector<32x128xf32>
    %996 = tpu.matmul %994, %995, %cst_336 {dimension_numbers = #tpu.dot_dimension_numbers<[1], [0], [0], [1], [0, 0, 1, 1], [], []>} : vector<32x32xf32>, vector<32x128xf32>, vector<32x128xf32> -> vector<32x128xf32>
    %c832 = arith.constant 832 : index
    %c0_337 = arith.constant 0 : index
    %997 = vector.load %arg2[%c832, %c0_337] : memref<840x128xf32, #tpu.memory_space<vmem>>, vector<1x128xf32>
    %998 = vector.broadcast %997 : vector<1x128xf32> to vector<32x128xf32>
    %999 = arith.addf %996, %998 : vector<32x128xf32>
    %c0_338 = arith.constant 0 : index
    %c0_339 = arith.constant 0 : index
    %1000 = vector.load %arg3[%c0_338, %c0_339] : memref<32x128xf32, #tpu.memory_space<vmem>>, vector<32x128xf32>
    tpu.vector_store %arg3[%c0_338, %c0_339], %999 {strides = array<i32>} : memref<32x128xf32, #tpu.memory_space<vmem>>, vector<32x128xf32>,
    return
  }
}

</mosaic_0001>

<bundles_post_ra>
// kernel: waves_transformer_forward.1
= control target key start
LH: loop header
LB: loop body
LE: loop exit
PB: predicated region body
PF: predicated region fallthrough
CT: control target
= control target key end

     0   :  { %vm32_vm0 = vcmask 523264   ;;  %s14607_s0 = inlined_call_operand.vmem [shape: f32[32,64], index: 0, kind: input, shape index: {}]   ;;  %s14608_s1 = inlined_call_operand.vmem [shape: f32[32,64], index: 1, kind: input, shape index: {}]   ;;  %s14609_s2 = inlined_call_operand.vmem [shape: f32[840,128], index: 2, kind: input, shape index: {}]   ;;  %s14610_s3 = inlined_call_operand.hbm [shape: f32[32,128], index: 3, kind: output, shape index: {}]  }
   0x1   :  { %v19_v0 = vld [vmem:[%s14609_s2] sm:$0xff]  ;;  %v20_v1 = vld [vmem:[%s14609_s2 + $0x8] sm:$0xff]  ;;  %v21_v2 = vld [vmem:[%s14609_s2 + $0x10] sm:$0xff] }
   0x2   :  { %v12516_v3 = vpack.c.bf16 %v20_v1, %v19_v0  ;;  %v22_v4 = vld [vmem:[%s14609_s2 + $0x18] sm:$0xff]  ;;  %v23_v6 = vld [vmem:[%s14609_s2 + $0x20] sm:$0xff]  ;;  %v24_v7 = vld [vmem:[%s14609_s2 + $0x28] sm:$0xff] }
   0x3   :  { %v12521_v5 = vpack.c.bf16 %v22_v4, %v21_v2  ;;  %v15_v8 = vld [vmem:[%s14607_s0] sm:$0xff] }
   0x4   :  { %11258 = vmatprep.subr.bf16.mxu0 %v12516_v3  ;;  %10491 = vmatprep.mubr.msk.f32.mxu0 %vm32_vm0, %v15_v8 }
   0x5   :  { %11260 = vmatpush3.bf16.msra.mxu0 %v12516_v3 }
   0x6   :  { %8 = vsyncpa [#allocation3], 0  ;;  %11262 = vmatprep.subr.bf16.mxu0 %v12521_v5  ;;  %v12536_v9 = vpack.c.bf16 %v24_v7, %v23_v6  ;;  %v25_v10 = vld [vmem:[%s14609_s2 + $0x30] sm:$0xff]  ;;  %v26_v11 = vld [vmem:[%s14609_s2 + $0x38] sm:$0xff]  ;;  %vm138_vm1 = vcmask 261120   ;;  %vm413_vm2 = vcmask 64512  }
   0x7   :  { %v12546_v12 = vpack.c.bf16 %v26_v11, %v25_v10  ;;  %v16_v13 = vld [vmem:[%s14607_s0 + $0x8] sm:$0xff]  ;;  %v17_v14 = vld [vmem:[%s14607_s0 + $0x10] sm:$0xff]  ;;  %v18_v15 = vld [vmem:[%s14607_s0 + $0x18] sm:$0xff]  ;;  %s12475_s9 = smov 120   ;;  %s12476_s12 = smov 96   ;;  %vm503_vm4 = vcmask 130048  }
   0x8   :  { %v9726_v16 = vld [vmem:[%s14609_s2 + $0x40] ss:$0 sm:$0xff]  ;;  %v130_v19 = vld [vmem:[%s14609_s2 + $0x48] sm:$0xff]  ;;  %v131_v22 = vld [vmem:[%s14609_s2 + $0x50] sm:$0xff]  ;;  %s12477_s13 = smov 112   ;;  %s12478_s14 = smov 88  }
   0x9   :  { %11264 = vmatpush3.bf16.msra.mxu0 %v12521_v5  ;;  %v208_v55 = vld [vmem:[%s14609_s2 + $0x68] sm:$0xff]  ;;  %v209_v56 = vld [vmem:[%s14609_s2 + $0x70] sm:$0xff]  ;;  %v210_v57 = vld [vmem:[%s14609_s2 + $0x78] sm:$0xff]  ;;  %s12479_s0 = smov 104   ;;  %s12480_s15 = smov 80   ;;  %vm1247_vm5 = vcmask 195584  }
   0xa   :  { %11266 = vmatprep.subr.bf16.mxu0 %v12536_v9  ;;  %v12605_v58 = vpack.c.bf16 %v209_v56, %v208_v55  ;;  %v211_v59 = vld [vmem:[%s14609_s2 + $0x80] sm:$0xff]  ;;  %v213_v61 = vld [vmem:[%s14609_s2 + $0x90] sm:$0xff]  ;;  %v214_v62 = vld [vmem:[%s14609_s2 + $0x98] sm:$0xff]  ;;  %s12481_s16 = smov 72   ;;  %s12482_s17 = smov 8  }
   0xb   :  { %v12610_v60 = vpack.c.bf16 %v211_v59, %v210_v57  ;;  %v12622_v63 = vpack.c.bf16 %v214_v62, %v213_v61  ;;  %vm12678_vm3 = vmpackc.low %vm413_vm2, %vm413_vm2  ;;  %s12483_s18 = smov 16   ;;  %s12484_s27 = smov 24  }
   0xc   :  { %11274 = vmatprep.subr.bf16.mxu1 %v12605_v58 }
   0xd   :  { %11268 = vmatpush3.bf16.msra.mxu0 %v12536_v9  ;;  %11276 = vmatpush3.bf16.msra.mxu1 %v12605_v58 }
   0xe   :  { %11270 = vmatprep.subr.bf16.mxu0 %v12546_v12  ;;  %11278 = vmatprep.subr.bf16.mxu1 %v12610_v60 }
  0x11   :  { %11272 = vmatpush3.bf16.msra.mxu0 %v12546_v12  ;;  %11280 = vmatpush3.bf16.msra.mxu1 %v12610_v60 }
  0x12   :  { %11282 = vmatprep.subr.bf16.mxu1 %v12622_v63 }
  0x14   :  { %10492 = vmatmul.mubr.msk.f32.vlgmr.msra.gmra.mrb[0].mxu0 %vm32_vm0, %v16_v13 }
  0x15   :  { %10494 = vmatprep.mubr.msk.f32.mxu0 %vm32_vm0, %v17_v14 }
  0x18   :  { %10495 = vmatmul.mubr.msk.f32.gmra.mrb[2].mxu0 %vm32_vm0, %v18_v15 }
  0xe7   :  { %v10493_v17 = vpop.f32.mrb[0].mxu0 }
  0xe8   :  { %v111_v18 = vpop.f32.mrb[1].mxu0  ;;  %v117_v20 = vadd.f32 %v10493_v17, %v9726_v16  ;;  %v9731_v17 = vld [vmem:[%s14609_s2 + $0x58] ss:$0 sm:$0xff] }
  0xe9   :  { %v112_v21 = vadd.f32 %v9726_v16, %v111_v18 }
  0xea   :  { %v12574_v26 = vadd.f32 %v131_v22, %v117_v20 }
  0xeb   :  { %v12572_v23 = vadd.f32 %v130_v19, %v112_v21  ;;  %v10496_v24 = vpop.f32.mrb[2].mxu0 }
  0xec   :  { %v121_v25 = vpop.f32.mrb[3].mxu0  ;;  %v127_v27 = vadd.f32 %v10496_v24, %v9726_v16  ;;  %v142_v33 = vsel %vm138_vm1, %v12574_v26, 0.0 }
  0xed   :  { %v122_v28 = vadd.f32 %v9726_v16, %v121_v25  ;;  %v139_v29 = vsel %vm138_vm1, %v12572_v23, 0.0 }
  0xee   :  { %140 = vadd.xlane.f32.xlu0 %v139_v29  ;;  %v12580_v31 = vadd.f32 %v131_v22, %v127_v27  ;;  %v216_v29 = vld [vmem:[%s14609_s2 + $0xa8] sm:$0xff] }
  0xef   :  { %v12578_v30 = vadd.f32 %v130_v19, %v122_v28  ;;  %v9732_v19 = vld [vmem:[%s14609_s2 + $0x60] ss:$0 sm:$0xff] }
  0xf0   :  { %v148_v34 = vsel %vm138_vm1, %v12580_v31, 0.0  ;;  %v215_v28 = vld [vmem:[%s14609_s2 + $0xa0] sm:$0xff] }
  0xf1   :  { %v145_v32 = vsel %vm138_vm1, %v12578_v30, 0.0 }
  0xf2   :  { %146 = vadd.xlane.f32.xlu1 %v145_v32  ;;  %143 = vadd.xlane.f32.xlu0 %v142_v33 }
  0xf6   :  { %149 = vadd.xlane.f32.xlu1 %v148_v34 }
 0x17b   :  { %v141_v35 = vpop.xlane.xlu0 %140 }
 0x17c   :  { %v152_v36 = vmul.f32 0.03125, %v141_v35 }
 0x17e   :  { %v156_v37 = vsub.f32 %v12572_v23, %v152_v36 }
 0x17f   :  { %v147_v38 = vpop.xlane.xlu1 %146  ;;  %v144_v39 = vpop.xlane.xlu0 %143 }
 0x180   :  { %v154_v40 = vmul.f32 0.03125, %v147_v38  ;;  %v153_v41 = vmul.f32 0.03125, %v144_v39  ;;  %v160_v42 = vmul.f32 %v156_v37, %v156_v37 }
 0x182   :  { %v158_v43 = vsub.f32 %v12578_v30, %v154_v40  ;;  %v157_v44 = vsub.f32 %v12574_v26, %v153_v41  ;;  %v164_v45 = vsel %vm138_vm1, %v160_v42, 0.0  ;;  %v12653_v41 = vld [vmem:[%s14609_s2 + $0x88] ss:$0 sm:$0xff] }
 0x183   :  { %v150_v46 = vpop.xlane.xlu1 %149  ;;  %165 = vadd.xlane.f32.xlu0 %v164_v45 }
 0x184   :  { %v155_v47 = vmul.f32 0.03125, %v150_v46  ;;  %v162_v48 = vmul.f32 %v158_v43, %v158_v43  ;;  %v161_v49 = vmul.f32 %v157_v44, %v157_v44 }
 0x186   :  { %v159_v50 = vsub.f32 %v12580_v31, %v155_v47  ;;  %v170_v51 = vsel %vm138_vm1, %v162_v48, 0.0  ;;  %v167_v52 = vsel %vm138_vm1, %v161_v49, 0.0  ;;  %v9738_v48 = vld [vmem:[%s14609_s2 + $0xb0] ss:$0 sm:$0xff] }
 0x187   :  { %171 = vadd.xlane.f32.xlu0 %v170_v51  ;;  %168 = vadd.xlane.f32.xlu1 %v167_v52 }
 0x188   :  { %v163_v53 = vmul.f32 %v159_v50, %v159_v50 }
 0x18a   :  { %v173_v54 = vsel %vm138_vm1, %v163_v53, 0.0 }
 0x18b   :  { %174 = vadd.xlane.f32.xlu1 %v173_v54 }
 0x210   :  { %v166_v0 = vpop.xlane.xlu0 %165 }
 0x211   :  { %v176_v1 = vmul.f32 0.03125, %v166_v0 }
 0x213   :  { %v180_v2 = vadd.f32 1e-05, %v176_v1 }
 0x214   :  { %v169_v4 = vpop.xlane.xlu1 %168  ;;  %v172_v6 = vpop.xlane.xlu0 %171 }
 0x215   :  { %12077 = vrsqrt.f32 %v180_v2  ;;  %v177_v7 = vmul.f32 0.03125, %v169_v4  ;;  %v178_v8 = vmul.f32 0.03125, %v172_v6 }
 0x217   :  { %v181_v10 = vadd.f32 1e-05, %v177_v7  ;;  %v182_v11 = vadd.f32 1e-05, %v178_v8 }
 0x218   :  { %v175_v13 = vpop.xlane.xlu1 %174 }
 0x219   :  { %12079 = vrsqrt.f32 %v181_v10  ;;  %v179_v14 = vmul.f32 0.03125, %v175_v13 }
 0x21a   :  { %12081 = vrsqrt.f32 %v182_v11 }
 0x21b   :  { %v183_v15 = vadd.f32 1e-05, %v179_v14 }
 0x21d   :  { %12083 = vrsqrt.f32 %v183_v15 }
 0x21f   :  { %v12078_v16 = vpop.eup %12077 }
 0x220   :  { %v188_v18 = vmul.f32 %v12078_v16, %v156_v37  ;;  %v12638_v37 = vpack.c.bf16 %v216_v29, %v215_v28 }
 0x222   :  { %v196_v20 = vmul.f32 %v9731_v17, %v188_v18 }
 0x223   :  { %v12080_v21 = vpop.eup %12079 }
 0x224   :  { %v12082_v22 = vpop.eup %12081  ;;  %v204_v24 = vadd.f32 %v9732_v19, %v196_v20  ;;  %v189_v25 = vmul.f32 %v12080_v21, %v157_v44 }
 0x225   :  { %v190_v27 = vmul.f32 %v12082_v22, %v158_v43 }
 0x226   :  { %10505 = vmatprep.mubr.msk.f32.mxu1 %vm138_vm1, %v204_v24  ;;  %v197_v32 = vmul.f32 %v9731_v17, %v189_v25 }
 0x227   :  { %v12084_v33 = vpop.eup %12083  ;;  %v198_v34 = vmul.f32 %v9731_v17, %v190_v27 }
 0x228   :  { %v205_v35 = vadd.f32 %v9732_v19, %v197_v32  ;;  %v191_v36 = vmul.f32 %v12084_v33, %v159_v50 }
 0x229   :  { %v206_v38 = vadd.f32 %v9732_v19, %v198_v34 }
 0x22a   :  { %10506 = vmatmul.mubr.msk.f32.vlgmr.msra.gmra.mrb[0].mxu1 %vm138_vm1, %v205_v35  ;;  %v199_v39 = vmul.f32 %v9731_v17, %v191_v36 }
 0x22b   :  { %10508 = vmatprep.mubr.msk.f32.mxu1 %vm138_vm1, %v206_v38  ;;  %11284 = vmatpush3.bf16.msra.mxu1 %v12622_v63 }
 0x22c   :  { %v207_v40 = vadd.f32 %v9732_v19, %v199_v39  ;;  %11286 = vmatprep.subr.bf16.mxu1 %v12638_v37 }
 0x22e   :  { %10509 = vmatmul.mubr.msk.f32.gmra.mrb[2].mxu1 %vm138_vm1, %v207_v40 }
 0x22f   :  { %11288 = vmatpush3.bf16.msra.mxu1 %v12638_v37  ;;  %10519 = vmatprep.mubr.msk.f32.mxu1 %vm138_vm1, %v204_v24 }
 0x232   :  { %10520 = vmatmul.mubr.msk.f32.vlgmr.msra.gmra.mrb[4].mxu1 %vm138_vm1, %v205_v35 }
 0x233   :  { %10522 = vmatprep.mubr.msk.f32.mxu1 %vm138_vm1, %v206_v38 }
 0x236   :  { %10523 = vmatmul.mubr.msk.f32.gmra.mrb[6].mxu1 %vm138_vm1, %v207_v40 }
 0x2fd   :  { %v10507_v42 = vpop.f32.mrb[0].mxu1 }
 0x2fe   :  { %v305_v43 = vpop.f32.mrb[1].mxu1  ;;  %v12667_v47 = vadd.f32 %v10507_v42, %v12653_v41 }
 0x2ff   :  { %v12656_v44 = vadd.f32 %v12653_v41, %v305_v43 }
 0x301   :  { %613 = vrot.lane.b32.xlu1 %v12656_v44, %s12475_s9  ;;  %v12660_v45 = vpop.f32.mrb[2].mxu1  ;;  %10529 = vmatprep.mubr.msk.f32.mxu0 %vm413_vm2, %v12656_v44 }
 0x302   :  { %v12664_v46 = vpop.f32.mrb[3].mxu1 }
 0x305   :  { %615 = vrot.lane.b32.xlu1 %v12667_v47, %s12475_s9  ;;  %v10521_v49 = vpop.f32.mrb[4].mxu1 }
 0x306   :  { %v400_v50 = vadd.f32 %v10521_v49, %v9738_v48  ;;  %v394_v51 = vpop.f32.mrb[5].mxu1 }
 0x307   :  { %v395_v52 = vadd.f32 %v9738_v48, %v394_v51 }
 0x309   :  { %v10524_v53 = vpop.f32.mrb[6].mxu1  ;;  %v12674_v54 = vpack.i.bf16 %v400_v50, %v395_v52  ;;  %v11289_v55 = vpack.c.bf16 %v400_v50, %v395_v52 }
 0x30a   :  { %v410_v57 = vadd.f32 %v10524_v53, %v9738_v48  ;;  %v404_v59 = vpop.f32.mrb[7].mxu1 }
 0x30b   :  { %v405_v61 = vadd.f32 %v9738_v48, %v404_v59  ;;  %11803 = vrot.lane.b32.xlu1 %v12674_v54, %s12476_s12  ;;  %11798 = vrot.lane.b32.xlu0 %v12674_v54, %s12475_s9 }
 0x30c   :  { %11291 = vmatprep.subr.msk.bf16.mxu0 %vm12678_vm3, %v11289_v55 }
 0x30d   :  { %11294 = vmatpush3.bf16.xpose.msk.msra.mxu0 %vm12678_vm3, %v11289_v55  ;;  %v12690_v62 = vpack.i.bf16 %v410_v57, %v405_v61  ;;  %v12692_v0 = vpack.c.bf16 %v410_v57, %v405_v61 }
 0x314   :  { %10530 = vmatmul.mubr.msk.f32.vlgmr.msra.gmra.mrb[4].mxu0 %vm413_vm2, %v12667_v47 }
 0x373   :  { %v614_v1 = vpop.permute.xlu1 %613 }
 0x374   :  { %10543 = vmatprep.mubr.msk.f32.mxu0 %vm413_vm2, %v614_v1 }
 0x377   :  { %v616_v2 = vpop.permute.xlu1 %615 }
 0x37d   :  { %v11804_v4 = vpop.permute.xlu1 %11803  ;;  %v11799_v6 = vpop.permute.xlu0 %11798 }
 0x37e   :  { %v11806_v7 = vunpack.i.h.bf16 %v11804_v4  ;;  %v11805_v8 = vunpack.i.l.bf16 %v11804_v4  ;;  %v11801_v10 = vunpack.i.h.bf16 %v11799_v6  ;;  %v11800_v11 = vunpack.i.l.bf16 %v11799_v6 }
 0x380   :  { %v11299_v13 = vpack.c.bf16 %v11801_v10, %v11800_v11  ;;  %v11295_v14 = vpack.c.bf16 %v11806_v7, %v11805_v8 }
 0x382   :  { %11296 = vmatprep.subr.bf16.mxu1 %v11295_v14  ;;  %11301 = vmatprep.subr.msk.bf16.mxu0 %vm12678_vm3, %v11299_v13 }
 0x383   :  { %11298 = vmatpush3.bf16.msra.mxu1 %v11295_v14  ;;  %11304 = vmatpush3.bf16.xpose.msk.msra.mxu0 %vm12678_vm3, %v11299_v13 }
 0x38a   :  { %10544 = vmatmul.mubr.msk.f32.vlgmr.msra.gmra.mrb[6].mxu0 %vm413_vm2, %v616_v2 }
 0x3e7   :  { %v10531_v15 = vpop.f32.mrb[4].mxu0 }
 0x3e8   :  { %v502_v16 = vmul.f32 0.35355338, %v10531_v15  ;;  %v492_v17 = vpop.f32.mrb[5].mxu0 }
 0x3e9   :  { %v501_v18 = vmul.f32 0.35355338, %v492_v17 }
 0x3ea   :  { %v507_v19 = vsel %vm503_vm4, %v502_v16, -inf }
 0x3eb   :  { %508 = vmax.xlane.f32.xlu0 %v507_v19  ;;  %v504_v20 = vsel %vm503_vm4, %v501_v18, -inf }
 0x3ec   :  { %505 = vmax.xlane.f32.xlu1 %v504_v20 }
 0x3fd   :  { %11813 = vrot.lane.b32.xlu1 %v12674_v54, %s12477_s13 }
 0x401   :  { %815 = vrot.lane.b32.xlu1 %v12656_v44, %s12477_s13 }
 0x405   :  { %817 = vrot.lane.b32.xlu1 %v12667_v47, %s12477_s13 }
 0x45d   :  { %v10545_v21 = vpop.f32.mrb[6].mxu0 }
 0x45e   :  { %v705_v22 = vmul.f32 0.35355338, %v10545_v21  ;;  %v695_v24 = vpop.f32.mrb[7].mxu0 }
 0x45f   :  { %v704_v25 = vmul.f32 0.35355338, %v695_v24 }
 0x460   :  { %v709_v27 = vsel %vm503_vm4, %v705_v22, -inf }
 0x461   :  { %710 = vmax.xlane.f32.xlu0 %v709_v27  ;;  %v706_v28 = vsel %vm503_vm4, %v704_v25, -inf }
 0x465   :  { %707 = vmax.xlane.f32.xlu0 %v706_v28 }
 0x478   :  { %v509_v29 = vpop.xlane.xlu0 %508 }
 0x479   :  { %v511_v32 = vsub.f32 %v502_v16, %v509_v29  ;;  %v506_v33 = vpop.xlane.xlu1 %505 }
 0x47a   :  { %v510_v34 = vsub.f32 %v501_v18, %v506_v33 }
 0x47b   :  { %v514_v35 = vmul.f32 1.442695, %v511_v32  ;;  %11808 = vrot.lane.b32.xlu0 %v12674_v54, %s12478_s14 }
 0x47c   :  { %v512_v36 = vmul.f32 1.442695, %v510_v34 }
 0x47d   :  { %v11814_v48 = vpop.permute.xlu1 %11813 }
 0x47e   :  { %12085 = vpow2.f32 %v512_v36  ;;  %v11816_v52 = vunpack.i.h.bf16 %v11814_v48  ;;  %v11815_v55 = vunpack.i.l.bf16 %v11814_v48 }
 0x47f   :  { %12087 = vpow2.f32 %v514_v35 }
 0x480   :  { %v11309_v1 = vpack.c.bf16 %v11816_v52, %v11815_v55 }
 0x481   :  { %v816_v6 = vpop.permute.xlu1 %815 }
 0x485   :  { %v818_v7 = vpop.permute.xlu1 %817 }
 0x488   :  { %v12714_v38 = vpop.eup %12085 }
 0x489   :  { %v12716_v39 = vpop.eup %12087  ;;  %10536 = vmatprep.mubr.msk.f32.mxu1 %vm503_vm4, %v12714_v38 }
 0x48a   :  { %10537 = vmatmul.mubr.msk.f32.vlgmr.msra.gmra.mrb[8].mxu1 %vm503_vm4, %v12716_v39 }
 0x4ee   :  { %v711_v40 = vpop.xlane.xlu0 %710 }
 0x4ef   :  { %v713_v42 = vsub.f32 %v705_v22, %v711_v40 }
 0x4f1   :  { %v716_v50 = vmul.f32 1.442695, %v713_v42 }
 0x4f2   :  { %v708_v43 = vpop.xlane.xlu0 %707 }
 0x4f3   :  { %v712_v49 = vsub.f32 %v704_v25, %v708_v43 }
 0x4f5   :  { %v714_v51 = vmul.f32 1.442695, %v712_v49 }
 0x4f6   :  { %v11809_v53 = vpop.permute.xlu0 %11808 }
 0x4f7   :  { %12089 = vpow2.f32 %v714_v51  ;;  %v11811_v57 = vunpack.i.h.bf16 %v11809_v53  ;;  %v11810_v59 = vunpack.i.l.bf16 %v11809_v53 }
 0x4f8   :  { %12091 = vpow2.f32 %v716_v50 }
 0x4f9   :  { %v11305_v61 = vpack.c.bf16 %v11811_v57, %v11810_v59  ;;  %v12780_v59 = vadd.f32 %v12653_v41, %v12664_v46 }
 0x4fb   :  { %11306 = vmatprep.subr.bf16.mxu1 %v11305_v61 }
 0x4fc   :  { %11308 = vmatpush3.bf16.msra.mxu1 %v11305_v61  ;;  %v12786_v61 = vadd.f32 %v12660_v45, %v12653_v41 }
 0x4fd   :  { %11311 = vmatprep.subr.msk.bf16.mxu1 %vm12678_vm3, %v11309_v1 }
 0x501   :  { %v12724_v2 = vpop.eup %12089 }
 0x502   :  { %v12726_v4 = vpop.eup %12091  ;;  %10550 = vmatprep.mubr.msk.f32.mxu1 %vm503_vm4, %v12724_v2 }
 0x503   :  { %10551 = vmatmul.mubr.msk.f32.vlgmr.msra.gmra.mrb[10].mxu1 %vm503_vm4, %v12726_v4 }
 0x504   :  { %10557 = vmatprep.mubr.msk.f32.mxu1 %vm413_vm2, %v816_v6 }
 0x505   :  { %11314 = vmatpush3.bf16.xpose.msk.msra.mxu1 %vm12678_vm3, %v11309_v1 }
 0x50c   :  { %10558 = vmatmul.mubr.msk.f32.vlgmr.msra.gmra.mrb[12].mxu1 %vm413_vm2, %v818_v7 }
 0x55d   :  { %v12736_v8 = vpop.f32.mrb[8].mxu1 }
 0x55e   :  { %v12738_v10 = vpop.f32.mrb[9].mxu1 }
 0x5d6   :  { %v12740_v11 = vpop.f32.mrb[10].mxu1 }
 0x5d7   :  { %v12742_v13 = vpop.f32.mrb[11].mxu1 }
 0x5df   :  { %v10559_v14 = vpop.f32.mrb[12].mxu1 }
 0x5e0   :  { %v907_v15 = vmul.f32 0.35355338, %v10559_v14  ;;  %v897_v16 = vpop.f32.mrb[13].mxu1 }
 0x5e1   :  { %v906_v17 = vmul.f32 0.35355338, %v897_v16 }
 0x5e2   :  { %v911_v18 = vsel %vm503_vm4, %v907_v15, -inf }
 0x5e3   :  { %912 = vmax.xlane.f32.xlu1 %v911_v18  ;;  %v908_v19 = vsel %vm503_vm4, %v906_v17, -inf }
 0x5e4   :  { %909 = vmax.xlane.f32.xlu0 %v908_v19 }
 0x5f4   :  { %11823 = vrot.lane.b32.xlu1 %v12674_v54, %s12479_s0 }
 0x5f8   :  { %1019 = vrot.lane.b32.xlu1 %v12667_v47, %s12479_s0 }
 0x5fa   :  { %11818 = vrot.lane.b32.xlu0 %v12674_v54, %s12480_s15 }
 0x5fe   :  { %1017 = vrot.lane.b32.xlu0 %v12656_v44, %s12479_s0 }
 0x670   :  { %v913_v20 = vpop.xlane.xlu1 %912 }
 0x671   :  { %v915_v21 = vsub.f32 %v907_v15, %v913_v20  ;;  %v910_v22 = vpop.xlane.xlu0 %909 }
 0x672   :  { %v914_v24 = vsub.f32 %v906_v17, %v910_v22 }
 0x673   :  { %v918_v25 = vmul.f32 1.442695, %v915_v21 }
 0x674   :  { %v916_v27 = vmul.f32 1.442695, %v914_v24  ;;  %v11824_v28 = vpop.permute.xlu1 %11823 }
 0x675   :  { %v11826_v29 = vunpack.i.h.bf16 %v11824_v28  ;;  %v11819_v32 = vpop.permute.xlu0 %11818  ;;  %v11825_v33 = vunpack.i.l.bf16 %v11824_v28 }
 0x676   :  { %12093 = vpow2.f32 %v916_v27  ;;  %v11821_v34 = vunpack.i.h.bf16 %v11819_v32  ;;  %v11820_v47 = vunpack.i.l.bf16 %v11819_v32 }
 0x677   :  { %12095 = vpow2.f32 %v918_v25  ;;  %v11319_v36 = vpack.c.bf16 %v11826_v29, %v11825_v33 }
 0x678   :  { %v11315_v35 = vpack.c.bf16 %v11821_v34, %v11820_v47  ;;  %v1020_v43 = vpop.permute.xlu1 %1019 }
 0x679   :  { %v1018_v42 = vpop.permute.xlu0 %1017 }
 0x67a   :  { %11316 = vmatprep.subr.bf16.mxu0 %v11315_v35 }
 0x67b   :  { %11318 = vmatpush3.bf16.msra.mxu0 %v11315_v35 }
 0x67c   :  { %11321 = vmatprep.subr.msk.bf16.mxu0 %vm12678_vm3, %v11319_v36 }
 0x680   :  { %v12756_v44 = vpop.eup %12093 }
 0x681   :  { %v12758_v40 = vpop.eup %12095  ;;  %10564 = vmatprep.mubr.msk.f32.mxu0 %vm503_vm4, %v12756_v44 }
 0x682   :  { %10565 = vmatmul.mubr.msk.f32.vlgmr.msra.gmra.mrb[8].mxu0 %vm503_vm4, %v12758_v40 }
 0x683   :  { %10571 = vmatprep.mubr.msk.f32.mxu0 %vm413_vm2, %v1018_v42 }
 0x684   :  { %11324 = vmatpush3.bf16.xpose.msk.msra.mxu0 %vm12678_vm3, %v11319_v36 }
 0x68b   :  { %10572 = vmatmul.mubr.msk.f32.vlgmr.msra.gmra.mrb[10].mxu0 %vm413_vm2, %v1020_v43 }
 0x755   :  { %v12768_v48 = vpop.f32.mrb[8].mxu0 }
 0x756   :  { %v12770_v49 = vpop.f32.mrb[9].mxu0 }
 0x75e   :  { %v10573_v50 = vpop.f32.mrb[10].mxu0 }
 0x75f   :  { %v1109_v51 = vmul.f32 0.35355338, %v10573_v50  ;;  %v1099_v52 = vpop.f32.mrb[11].mxu0 }
 0x760   :  { %v1108_v53 = vmul.f32 0.35355338, %v1099_v52 }
 0x761   :  { %v1113_v55 = vsel %vm503_vm4, %v1109_v51, -inf }
 0x762   :  { %1114 = vmax.xlane.f32.xlu1 %v1113_v55  ;;  %v1110_v57 = vsel %vm503_vm4, %v1108_v53, -inf }
 0x763   :  { %1111 = vmax.xlane.f32.xlu0 %v1110_v57 }
 0x779   :  { %11828 = vrot.lane.b32.xlu0 %v12674_v54, %s12481_s16 }
 0x77d   :  { %11838 = vrot.lane.b32.xlu0 %v12690_v62, %s12475_s9 }
 0x781   :  { %1448 = vrot.lane.b32.xlu0 %v12780_v59, %s12475_s9 }
 0x785   :  { %1450 = vrot.lane.b32.xlu0 %v12786_v61, %s12475_s9 }
 0x7ef   :  { %v1115_v1 = vpop.xlane.xlu1 %1114 }
 0x7f0   :  { %v1117_v6 = vsub.f32 %v1109_v51, %v1115_v1  ;;  %v1112_v54 = vpop.xlane.xlu0 %1111 }
 0x7f1   :  { %v1116_v7 = vsub.f32 %v1108_v53, %v1112_v54 }
 0x7f2   :  { %v1120_v14 = vmul.f32 1.442695, %v1117_v6 }
 0x7f3   :  { %v1118_v15 = vmul.f32 1.442695, %v1116_v7 }
 0x7f4   :  { %v11829_v16 = vpop.permute.xlu0 %11828 }
 0x7f5   :  { %12097 = vpow2.f32 %v1118_v15  ;;  %v11831_v46 = vunpack.i.h.bf16 %v11829_v16  ;;  %v11830_v17 = vunpack.i.l.bf16 %v11829_v16 }
 0x7f6   :  { %12099 = vpow2.f32 %v1120_v14 }
 0x7f7   :  { %v11325_v18 = vpack.c.bf16 %v11831_v46, %v11830_v17 }
 0x7f8   :  { %v11839_v33 = vpop.permute.xlu0 %11838 }
 0x7f9   :  { %11326 = vmatprep.subr.bf16.mxu1 %v11325_v18  ;;  %v11841_v36 = vunpack.i.h.bf16 %v11839_v33  ;;  %v11840_v43 = vunpack.i.l.bf16 %v11839_v33 }
 0x7fa   :  { %11328 = vmatpush3.bf16.msra.mxu1 %v11325_v18 }
 0x7fb   :  { %11331 = vmatprep.subr.msk.bf16.mxu1 %vm12678_vm3, %v12692_v0  ;;  %v11339_v53 = vpack.c.bf16 %v11841_v36, %v11840_v43 }
 0x7fc   :  { %v1449_v1 = vpop.permute.xlu0 %1448 }
 0x7ff   :  { %v12793_v41 = vpop.eup %12097 }
 0x800   :  { %v12795_v45 = vpop.eup %12099  ;;  %10578 = vmatprep.mubr.msk.f32.mxu1 %vm503_vm4, %v12793_v41  ;;  %v1451_v6 = vpop.permute.xlu0 %1450 }
 0x801   :  { %10579 = vmatmul.mubr.msk.f32.vlgmr.msra.gmra.mrb[14].mxu1 %vm503_vm4, %v12795_v45 }
 0x802   :  { %10585 = vmatprep.mubr.msk.f32.mxu1 %vm413_vm2, %v12780_v59 }
 0x803   :  { %11334 = vmatpush3.bf16.xpose.msk.msra.mxu1 %vm12678_vm3, %v12692_v0 }
 0x80a   :  { %10586 = vmatmul.mubr.msk.f32.vlgmr.msra.gmra.mrb[16].mxu1 %vm413_vm2, %v12786_v61 }
 0x8d4   :  { %v12808_v19 = vpop.f32.mrb[14].mxu1 }
 0x8d5   :  { %v12810_v20 = vpop.f32.mrb[15].mxu1 }
 0x8dd   :  { %v10587_v21 = vpop.f32.mrb[16].mxu1 }
 0x8de   :  { %v1338_v22 = vmul.f32 0.35355338, %v10587_v21  ;;  %v1328_v24 = vpop.f32.mrb[17].mxu1 }
 0x8df   :  { %v1337_v25 = vmul.f32 0.35355338, %v1328_v24 }
 0x8e0   :  { %v1342_v27 = vsel %vm503_vm4, %v1338_v22, -inf }
 0x8e1   :  { %1343 = vmax.xlane.f32.xlu1 %v1342_v27  ;;  %v1339_v28 = vsel %vm503_vm4, %v1337_v25, -inf }
 0x8e5   :  { %1340 = vmax.xlane.f32.xlu1 %v1339_v28 }
 0x8f6   :  { %11833 = vrot.lane.b32.xlu1 %v12690_v62, %s12476_s12 }
 0x8fa   :  { %11848 = vrot.lane.b32.xlu1 %v12690_v62, %s12477_s13 }
 0x96e   :  { %v1344_v0 = vpop.xlane.xlu1 %1343 }
 0x96f   :  { %v1346_v29 = vsub.f32 %v1338_v22, %v1344_v0 }
 0x971   :  { %v1349_v47 = vmul.f32 1.442695, %v1346_v29 }
 0x972   :  { %v1341_v32 = vpop.xlane.xlu1 %1340 }
 0x973   :  { %v1345_v34 = vsub.f32 %v1337_v25, %v1341_v32 }
 0x975   :  { %v1347_v35 = vmul.f32 1.442695, %v1345_v34 }
 0x976   :  { %v11834_v42 = vpop.permute.xlu1 %11833 }
 0x977   :  { %12101 = vpow2.f32 %v1347_v35  ;;  %v11836_v50 = vunpack.i.h.bf16 %v11834_v42  ;;  %v11835_v51 = vunpack.i.l.bf16 %v11834_v42 }
 0x978   :  { %12103 = vpow2.f32 %v1349_v47 }
 0x979   :  { %v11335_v52 = vpack.c.bf16 %v11836_v50, %v11835_v51 }
 0x97a   :  { %v11849_v21 = vpop.permute.xlu1 %11848 }
 0x97b   :  { %11336 = vmatprep.subr.bf16.mxu0 %v11335_v52  ;;  %v11851_v32 = vunpack.i.h.bf16 %v11849_v21  ;;  %v11850_v33 = vunpack.i.l.bf16 %v11849_v21 }
 0x97c   :  { %11338 = vmatpush3.bf16.msra.mxu0 %v11335_v52 }
 0x97d   :  { %11341 = vmatprep.subr.msk.bf16.mxu0 %vm12678_vm3, %v11339_v53  ;;  %v11349_v36 = vpack.c.bf16 %v11851_v32, %v11850_v33 }
 0x981   :  { %v12820_v55 = vpop.eup %12101 }
 0x982   :  { %v12822_v57 = vpop.eup %12103  ;;  %10592 = vmatprep.mubr.msk.f32.mxu0 %vm503_vm4, %v12820_v55 }
 0x983   :  { %10593 = vmatmul.mubr.msk.f32.vlgmr.msra.gmra.mrb[12].mxu0 %vm503_vm4, %v12822_v57 }
 0x984   :  { %10599 = vmatprep.mubr.msk.f32.mxu0 %vm413_vm2, %v1449_v1 }
 0x985   :  { %11344 = vmatpush3.bf16.xpose.msk.msra.mxu0 %vm12678_vm3, %v11339_v53 }
 0x98c   :  { %10600 = vmatmul.mubr.msk.f32.vlgmr.msra.gmra.mrb[14].mxu0 %vm413_vm2, %v1451_v6 }
 0xa56   :  { %v12832_v54 = vpop.f32.mrb[12].mxu0 }
 0xa57   :  { %v12834_v7 = vpop.f32.mrb[13].mxu0 }
 0xa5f   :  { %v10601_v14 = vpop.f32.mrb[14].mxu0 }
 0xa60   :  { %v1540_v15 = vmul.f32 0.35355338, %v10601_v14  ;;  %v1530_v16 = vpop.f32.mrb[15].mxu0 }
 0xa61   :  { %v1539_v46 = vmul.f32 0.35355338, %v1530_v16 }
 0xa62   :  { %v1544_v17 = vsel %vm503_vm4, %v1540_v15, -inf }
 0xa63   :  { %1545 = vmax.xlane.f32.xlu0 %v1544_v17  ;;  %v1541_v18 = vsel %vm503_vm4, %v1539_v46, -inf }
 0xa64   :  { %1542 = vmax.xlane.f32.xlu1 %v1541_v18 }
 0xa75   :  { %1650 = vrot.lane.b32.xlu1 %v12780_v59, %s12477_s13 }
 0xa79   :  { %11843 = vrot.lane.b32.xlu0 %v12690_v62, %s12478_s14  ;;  %11858 = vrot.lane.b32.xlu1 %v12690_v62, %s12479_s0 }
 0xa7d   :  { %1652 = vrot.lane.b32.xlu0 %v12786_v61, %s12477_s13 }
 0xaf0   :  { %v1546_v22 = vpop.xlane.xlu0 %1545 }
 0xaf1   :  { %v1548_v24 = vsub.f32 %v1540_v15, %v1546_v22  ;;  %v1543_v25 = vpop.xlane.xlu1 %1542 }
 0xaf2   :  { %v1547_v27 = vsub.f32 %v1539_v46, %v1543_v25 }
 0xaf3   :  { %v1551_v28 = vmul.f32 1.442695, %v1548_v24 }
 0xaf4   :  { %v1549_v0 = vmul.f32 1.442695, %v1547_v27  ;;  %v11844_v29 = vpop.permute.xlu0 %11843 }
 0xaf5   :  { %v11846_v34 = vunpack.i.h.bf16 %v11844_v29  ;;  %v11845_v47 = vunpack.i.l.bf16 %v11844_v29  ;;  %v1651_v50 = vpop.permute.xlu1 %1650 }
 0xaf6   :  { %12105 = vpow2.f32 %v1549_v0 }
 0xaf7   :  { %12107 = vpow2.f32 %v1551_v28  ;;  %v11345_v35 = vpack.c.bf16 %v11846_v34, %v11845_v47 }
 0xaf8   :  { %v1653_v51 = vpop.permute.xlu0 %1652 }
 0xaf9   :  { %11346 = vmatprep.subr.bf16.mxu1 %v11345_v35  ;;  %v11859_v17 = vpop.permute.xlu1 %11858 }
 0xafa   :  { %11348 = vmatpush3.bf16.msra.mxu1 %v11345_v35  ;;  %v11861_v0 = vunpack.i.h.bf16 %v11859_v17  ;;  %v11860_v29 = vunpack.i.l.bf16 %v11859_v17  ;;  %v718_v17 = vsel %vm503_vm4, %v12724_v2, 0.0 }
 0xafb   :  { %11351 = vmatprep.subr.msk.bf16.mxu1 %vm12678_vm3, %v11349_v36 }
 0xafc   :  { %v11359_v34 = vpack.c.bf16 %v11861_v0, %v11860_v29 }
 0xb00   :  { %v12848_v42 = vpop.eup %12105 }
 0xb01   :  { %v12850_v43 = vpop.eup %12107  ;;  %10606 = vmatprep.mubr.msk.f32.mxu1 %vm503_vm4, %v12848_v42  ;;  %v1553_v2 = vsel %vm503_vm4, %v12848_v42, 0.0 }
 0xb02   :  { %10607 = vmatmul.mubr.msk.f32.vlgmr.msra.gmra.mrb[18].mxu1 %vm503_vm4, %v12850_v43 }
 0xb03   :  { %11354 = vmatpush3.bf16.xpose.msk.msra.mxu1 %vm12678_vm3, %v11349_v36  ;;  %10613 = vmatprep.mubr.msk.f32.mxu1 %vm413_vm2, %v1651_v50 }
 0xb0a   :  { %10614 = vmatmul.mubr.msk.f32.vlgmr.msra.gmra.mrb[20].mxu1 %vm413_vm2, %v1653_v51 }
 0xbd5   :  { %v12860_v52 = vpop.f32.mrb[18].mxu1 }
 0xbd6   :  { %v12862_v53 = vpop.f32.mrb[19].mxu1 }
 0xbdd   :  { %v10615_v1 = vpop.f32.mrb[20].mxu1 }
 0xbde   :  { %v1742_v6 = vmul.f32 0.35355338, %v10615_v1  ;;  %v1732_v14 = vpop.f32.mrb[21].mxu1 }
 0xbdf   :  { %v1741_v15 = vmul.f32 0.35355338, %v1732_v14 }
 0xbe0   :  { %v1746_v16 = vsel %vm503_vm4, %v1742_v6, -inf }
 0xbe1   :  { %1747 = vmax.xlane.f32.xlu0 %v1746_v16  ;;  %v1743_v46 = vsel %vm503_vm4, %v1741_v15, -inf }
 0xbe2   :  { %1744 = vmax.xlane.f32.xlu1 %v1743_v46 }
 0xbf3   :  { %1852 = vrot.lane.b32.xlu1 %v12780_v59, %s12479_s0 }
 0xbf7   :  { %11853 = vrot.lane.b32.xlu0 %v12690_v62, %s12480_s15 }
 0xbfb   :  { %1854 = vrot.lane.b32.xlu0 %v12786_v61, %s12479_s0 }
 0xc6e   :  { %v1748_v18 = vpop.xlane.xlu0 %1747 }
 0xc6f   :  { %v1750_v21 = vsub.f32 %v1742_v6, %v1748_v18  ;;  %v1745_v22 = vpop.xlane.xlu1 %1744  ;;  %v721_v18 = vsel %vm503_vm4, %v12726_v4, 0.0  ;;  %v1556_v4 = vsel %vm503_vm4, %v12850_v43, 0.0 }
 0xc70   :  { %v1749_v24 = vsub.f32 %v1741_v15, %v1745_v22  ;;  %v923_v22 = vsel %vm503_vm4, %v12758_v40, 0.0 }
 0xc71   :  { %v1753_v25 = vmul.f32 1.442695, %v1750_v21  ;;  %v920_v21 = vsel %vm503_vm4, %v12756_v44, 0.0 }
 0xc72   :  { %v1751_v27 = vmul.f32 1.442695, %v1749_v24  ;;  %v11854_v28 = vpop.permute.xlu0 %11853  ;;  %v1122_v24 = vsel %vm503_vm4, %v12793_v41, 0.0  ;;  %v1125_v41 = vsel %vm503_vm4, %v12795_v45, 0.0 }
 0xc73   :  { %v11856_v32 = vunpack.i.h.bf16 %v11854_v28  ;;  %v11855_v33 = vunpack.i.l.bf16 %v11854_v28  ;;  %v1853_v35 = vpop.permute.xlu1 %1852 }
 0xc74   :  { %12109 = vpow2.f32 %v1751_v27 }
 0xc75   :  { %12111 = vpow2.f32 %v1753_v25  ;;  %v11355_v59 = vpack.c.bf16 %v11856_v32, %v11855_v33 }
 0xc76   :  { %v1855_v36 = vpop.permute.xlu0 %1854 }
 0xc77   :  { %11356 = vmatprep.subr.bf16.mxu0 %v11355_v59 }
 0xc78   :  { %11358 = vmatpush3.bf16.msra.mxu0 %v11355_v59 }
 0xc79   :  { %11361 = vmatprep.subr.msk.bf16.mxu0 %vm12678_vm3, %v11359_v34 }
 0xc7e   :  { %v12110_v61 = vpop.eup %12109 }
 0xc7f   :  { %v12112_v47 = vpop.eup %12111  ;;  %10620 = vmatprep.mubr.msk.f32.mxu0 %vm503_vm4, %v12110_v61  ;;  %v1755_v44 = vsel %vm503_vm4, %v12110_v61, 0.0 }
 0xc80   :  { %10621 = vmatmul.mubr.msk.f32.vlgmr.msra.gmra.mrb[16].mxu0 %vm503_vm4, %v12112_v47  ;;  %v1758_v40 = vsel %vm503_vm4, %v12112_v47, 0.0 }
 0xc81   :  { %11364 = vmatpush3.bf16.xpose.msk.msra.mxu0 %vm12678_vm3, %v11359_v34  ;;  %10627 = vmatprep.mubr.msk.f32.mxu0 %vm413_vm2, %v1853_v35 }
 0xc88   :  { %10628 = vmatmul.mubr.msk.f32.vlgmr.msra.gmra.mrb[18].mxu0 %vm413_vm2, %v1855_v36 }
 0xd53   :  { %v12880_v50 = vpop.f32.mrb[16].mxu0 }
 0xd54   :  { %v12882_v51 = vpop.f32.mrb[17].mxu0 }
 0xd5b   :  { %v10629_v1 = vpop.f32.mrb[18].mxu0 }
 0xd5c   :  { %v1944_v6 = vmul.f32 0.35355338, %v10629_v1  ;;  %v1934_v14 = vpop.f32.mrb[19].mxu0 }
 0xd5d   :  { %v1943_v15 = vmul.f32 0.35355338, %v1934_v14 }
 0xd5e   :  { %v1948_v16 = vsel %vm503_vm4, %v1944_v6, -inf }
 0xd5f   :  { %1949 = vmax.xlane.f32.xlu0 %v1948_v16  ;;  %v1945_v46 = vsel %vm503_vm4, %v1943_v15, -inf }
 0xd60   :  { %1946 = vmax.xlane.f32.xlu1 %v1945_v46  ;;  %v519_v46 = vsel %vm503_vm4, %v12716_v39, 0.0 }
 0xd64   :  { %719 = vadd.xlane.f32.xlu1 %v718_v17 }
 0xd68   :  { %722 = vadd.xlane.f32.xlu1 %v721_v18 }
 0xd6c   :  { %921 = vadd.xlane.f32.xlu1 %v920_v21 }
 0xd70   :  { %924 = vadd.xlane.f32.xlu1 %v923_v22 }
 0xd74   :  { %1123 = vadd.xlane.f32.xlu1 %v1122_v24 }
 0xd75   :  { %11863 = vrot.lane.b32.xlu0 %v12690_v62, %s12481_s16  ;;  %v1351_v62 = vsel %vm503_vm4, %v12820_v55, 0.0 }
 0xd78   :  { %1554 = vadd.xlane.f32.xlu1 %v1553_v2 }
 0xd7c   :  { %1557 = vadd.xlane.f32.xlu1 %v1556_v4 }
 0xd80   :  { %1756 = vadd.xlane.f32.xlu1 %v1755_v44  ;;  %v219_v44 = vld [vmem:[%s14609_s2 + $0xc0] sm:$0xff] }
 0xd84   :  { %1759 = vadd.xlane.f32.xlu1 %v1758_v40 }
 0xd94   :  { %1126 = vadd.xlane.f32.xlu0 %v1125_v41 }
 0xd98   :  { %1352 = vadd.xlane.f32.xlu0 %v1351_v62  ;;  %v220_v62 = vld [vmem:[%s14609_s2 + $0xc8] sm:$0xff] }
 0xdec   :  { %v1950_v42 = vpop.xlane.xlu0 %1949 }
 0xded   :  { %v1952_v25 = vsub.f32 %v1944_v6, %v1950_v42  ;;  %v1947_v27 = vpop.xlane.xlu1 %1946  ;;  %v221_v42 = vld [vmem:[%s14609_s2 + $0xd0] sm:$0xff] }
 0xdee   :  { %v1951_v28 = vsub.f32 %v1943_v15, %v1947_v27  ;;  %v516_v15 = vsel %vm503_vm4, %v12714_v38, 0.0  ;;  %v12943_v27 = vpack.c.bf16 %v221_v42, %v220_v62 }
 0xdef   :  { %v1955_v43 = vmul.f32 1.442695, %v1952_v25 }
 0xdf0   :  { %v1953_v0 = vmul.f32 1.442695, %v1951_v28  ;;  %v11864_v29 = vpop.permute.xlu0 %11863 }
 0xdf1   :  { %12113 = vpow2.f32 %v1955_v43  ;;  %v11866_v32 = vunpack.i.h.bf16 %v11864_v29  ;;  %v11865_v33 = vunpack.i.l.bf16 %v11864_v29  ;;  %v720_v59 = vpop.xlane.xlu1 %719 }
 0xdf2   :  { %12115 = vpow2.f32 %v1953_v0 }
 0xdf3   :  { %12117 = vrcp.f32 %v720_v59  ;;  %v11365_v34 = vpack.c.bf16 %v11866_v32, %v11865_v33 }
 0xdf5   :  { %11366 = vmatprep.subr.bf16.mxu1 %v11365_v34  ;;  %v723_v45 = vpop.xlane.xlu1 %722 }
 0xdf6   :  { %11368 = vmatpush3.bf16.msra.mxu1 %v11365_v34 }
 0xdf9   :  { %v922_v61 = vpop.xlane.xlu1 %921 }
 0xdfb   :  { %v12114_v55 = vpop.eup %12113 }
 0xdfc   :  { %v12116_v47 = vpop.eup %12115  ;;  %v1960_v14 = vsel %vm503_vm4, %v12114_v55, 0.0 }
 0xdfd   :  { %v12118_v35 = vpop.eup %12117  ;;  %10634 = vmatprep.mubr.msk.f32.mxu1 %vm503_vm4, %v12116_v47  ;;  %v925_v36 = vpop.xlane.xlu1 %924  ;;  %v1957_v1 = vsel %vm503_vm4, %v12116_v47, 0.0 }
 0xdfe   :  { %12119 = vrcp.f32 %v925_v36  ;;  %10635 = vmatmul.mubr.msk.f32.vlgmr.msra.gmra.mrb[22].mxu1 %vm503_vm4, %v12114_v55  ;;  %1958 = vadd.xlane.f32.xlu1 %v1957_v1  ;;  %v813_v6 = vmul.f32 %v12118_v35, %v12742_v13  ;;  %v1354_v13 = vsel %vm503_vm4, %v12822_v57, 0.0  ;;  %v218_v57 = vld [vmem:[%s14609_s2 + $0xb8] sm:$0xff] }
 0xdff   :  { %12121 = vrcp.f32 %v723_v45  ;;  %v12931_v41 = vpack.c.bf16 %v219_v44, %v218_v57 }
 0xe00   :  { %1221 = vrot.lane.b32.xlu0 %v813_v6, %s12482_s17  ;;  %12123 = vrcp.f32 %v922_v61 }
 0xe01   :  { %v1124_v18 = vpop.xlane.xlu1 %1123  ;;  %11370 = vmatprep.subr.bf16.mxu1 %v12931_v41 }
 0xe02   :  { %1961 = vadd.xlane.f32.xlu1 %v1960_v14  ;;  %12125 = vrcp.f32 %v1124_v18  ;;  %11372 = vmatpush3.bf16.msra.mxu1 %v12931_v41 }
 0xe03   :  { %11374 = vmatprep.subr.bf16.mxu1 %v12943_v27 }
 0xe05   :  { %v1555_v21 = vpop.xlane.xlu1 %1554 }
 0xe06   :  { %517 = vadd.xlane.f32.xlu1 %v516_v15  ;;  %12127 = vrcp.f32 %v1555_v21  ;;  %11376 = vmatpush3.bf16.msra.mxu1 %v12943_v27 }
 0xe08   :  { %v12120_v16 = vpop.eup %12119 }
 0xe09   :  { %v1016_v17 = vmul.f32 %v12120_v16, %v12768_v48  ;;  %v1558_v38 = vpop.xlane.xlu1 %1557  ;;  %v12122_v22 = vpop.eup %12121 }
 0xe0a   :  { %520 = vadd.xlane.f32.xlu1 %v519_v46  ;;  %v814_v39 = vmul.f32 %v12122_v22, %v12740_v11  ;;  %v12124_v48 = vpop.eup %12123 }
 0xe0b   :  { %1231 = vrot.lane.b32.xlu0 %v1016_v17, %s12483_s18  ;;  %v1015_v4 = vmul.f32 %v12124_v48, %v12770_v49 }
 0xe0c   :  { %v12126_v40 = vpop.eup %12125 }
 0xe0d   :  { %v1757_v24 = vpop.xlane.xlu1 %1756  ;;  %v1217_v49 = vmul.f32 %v12126_v40, %v12810_v20 }
 0xe0e   :  { %1355 = vadd.xlane.f32.xlu1 %v1354_v13  ;;  %12129 = vrcp.f32 %v1757_v24 }
 0xe10   :  { %v12128_v25 = vpop.eup %12127 }
 0xe11   :  { %v1760_v11 = vpop.xlane.xlu1 %1759  ;;  %v1648_v20 = vmul.f32 %v12128_v25, %v12862_v53 }
 0xe18   :  { %v12130_v28 = vpop.eup %12129 }
 0xe19   :  { %v1850_v29 = vmul.f32 %v12130_v28, %v12882_v51 }
 0xe1f   :  { %1223 = vrot.lane.b32.xlu1 %v814_v39, %s12482_s17 }
 0xe21   :  { %v1127_v2 = vpop.xlane.xlu0 %1126 }
 0xe22   :  { %12131 = vrcp.f32 %v1127_v2 }
 0xe23   :  { %1229 = vrot.lane.b32.xlu1 %v1015_v4, %s12483_s18  ;;  %12133 = vrcp.f32 %v1558_v38 }
 0xe24   :  { %12135 = vrcp.f32 %v1760_v11 }
 0xe25   :  { %v1353_v55 = vpop.xlane.xlu0 %1352 }
 0xe27   :  { %1237 = vrot.lane.b32.xlu1 %v1217_v49, %s12484_s27 }
 0xe2b   :  { %2056 = vrot.lane.b32.xlu1 %v1648_v20, %s12482_s17 }
 0xe2c   :  { %v12132_v43 = vpop.eup %12131 }
 0xe2d   :  { %v1218_v0 = vmul.f32 %v12132_v43, %v12808_v19  ;;  %v12134_v32 = vpop.eup %12133 }
 0xe2e   :  { %v1649_v33 = vmul.f32 %v12134_v32, %v12860_v52  ;;  %v12136_v59 = vpop.eup %12135 }
 0xe2f   :  { %1239 = vrot.lane.b32.xlu0 %v1218_v0, %s12484_s27  ;;  %2064 = vrot.lane.b32.xlu1 %v1850_v29, %s12483_s18  ;;  %v1851_v53 = vmul.f32 %v12136_v59, %v12880_v50 }
 0xe33   :  { %2058 = vrot.lane.b32.xlu0 %v1649_v33, %s12482_s17 }
 0xe37   :  { %2066 = vrot.lane.b32.xlu0 %v1851_v53, %s12483_s18 }
 0xe72   :  { %v1222_v36 = vpop.permute.xlu0 %1221 }
 0xe7d   :  { %v1232_v50 = vpop.permute.xlu0 %1231 }
 0xe8b   :  { %v1959_v34 = vpop.xlane.xlu1 %1958 }
 0xe8f   :  { %v1962_v45 = vpop.xlane.xlu1 %1961 }
 0xe93   :  { %v518_v61 = vpop.xlane.xlu1 %517 }
 0xe94   :  { %12137 = vrcp.f32 %v518_v61 }
 0xe97   :  { %v521_v19 = vpop.xlane.xlu1 %520 }
 0xe98   :  { %12139 = vrcp.f32 %v521_v19 }
 0xe99   :  { %12141 = vrcp.f32 %v1962_v45 }
 0xe9a   :  { %12143 = vrcp.f32 %v1959_v34 }
 0xe9b   :  { %v1356_v51 = vpop.xlane.xlu1 %1355 }
 0xe9c   :  { %12145 = vrcp.f32 %v1356_v51 }
 0xe9d   :  { %12147 = vrcp.f32 %v1353_v55 }
 0xe9e   :  { %v12138_v47 = vpop.eup %12137 }
 0xe9f   :  { %v1224_v35 = vpop.permute.xlu1 %1223  ;;  %v611_v52 = vmul.f32 %v12138_v47, %v12738_v10 }
 0xea1   :  { %v1243_v46 = vsel %vm413_vm2, %v611_v52, %v1222_v36  ;;  %v1240_v13 = vpop.permute.xlu0 %1239 }
 0xea2   :  { %v12140_v1 = vpop.eup %12139 }
 0xea3   :  { %v612_v6 = vmul.f32 %v12140_v1, %v12736_v8  ;;  %v1230_v14 = vpop.permute.xlu1 %1229  ;;  %v12142_v8 = vpop.eup %12141 }
 0xea4   :  { %v1245_v17 = vsel %vm503_vm4, %v1243_v46, %v1230_v14  ;;  %v12144_v22 = vpop.eup %12143 }
 0xea5   :  { %v1244_v15 = vsel %vm413_vm2, %v612_v6, %v1224_v35  ;;  %v2059_v2 = vpop.permute.xlu0 %2058 }
 0xea6   :  { %v1246_v16 = vsel %vm503_vm4, %v1244_v15, %v1232_v50  ;;  %v12146_v57 = vpop.eup %12145 }
 0xea7   :  { %v1238_v18 = vpop.permute.xlu1 %1237  ;;  %v1249_v38 = vsel %vm1247_vm5, %v1246_v16, %v1240_v13  ;;  %v12148_v44 = vpop.eup %12147  ;;  %v1447_v40 = vmul.f32 %v12146_v57, %v12832_v54  ;;  %v9791_v54 = vld [vmem:[%s14609_s2 + $0xd8] ss:$0 sm:$0xff] }
 0xea8   :  { %v1248_v21 = vsel %vm1247_vm5, %v1245_v17, %v1238_v18  ;;  %v1446_v62 = vmul.f32 %v12148_v44, %v12834_v7 }
 0xea9   :  { %10645 = vmatprep.mubr.msk.f32.mxu1 %vm138_vm1, %v1248_v21  ;;  %v2067_v11 = vpop.permute.xlu0 %2066  ;;  %v2079_v42 = vsel %vm413_vm2, %v1447_v40, %v2059_v2 }
 0xeaa   :  { %10646 = vmatmul.mubr.msk.f32.vlgmr.msra.gmra.mrb[24].mxu1 %vm138_vm1, %v1249_v38  ;;  %v2081_v0 = vsel %vm503_vm4, %v2079_v42, %v2067_v11  ;;  %v2261_v38 = vld [vmem:[%s14609_s2 + $0x100] sm:$0xff] }
 0xeab   :  { %v2057_v4 = vpop.permute.xlu1 %2056 }
 0xeac   :  { %v2078_v25 = vsel %vm413_vm2, %v1446_v62, %v2057_v4 }
 0xeaf   :  { %v2065_v49 = vpop.permute.xlu1 %2064 }
 0xeb0   :  { %v2080_v28 = vsel %vm503_vm4, %v2078_v25, %v2065_v49 }
 0xed1   :  { %v10636_v10 = vpop.f32.mrb[22].mxu1 }
 0xed2   :  { %v2053_v24 = vmul.f32 %v12142_v8, %v10636_v10  ;;  %v2041_v39 = vpop.f32.mrb[23].mxu1  ;;  %v2262_v8 = vld [vmem:[%s14609_s2 + $0x108] sm:$0xff] }
 0xed3   :  { %v2052_v48 = vmul.f32 %v12144_v22, %v2041_v39  ;;  %v13021_v10 = vpack.c.bf16 %v2262_v8, %v2261_v38 }
 0xed4   :  { %2074 = vrot.lane.b32.xlu0 %v2053_v24, %s12484_s27 }
 0xed5   :  { %2072 = vrot.lane.b32.xlu1 %v2052_v48, %s12484_s27 }
 0xf46   :  { %v2075_v20 = vpop.permute.xlu0 %2074 }
 0xf47   :  { %v2073_v43 = vpop.permute.xlu1 %2072  ;;  %v2083_v32 = vsel %vm1247_vm5, %v2081_v0, %v2075_v20  ;;  %v9796_v0 = vld [vmem:[%s14609_s2 + $0xe0] ss:$0 sm:$0xff] }
 0xf48   :  { %v2082_v29 = vsel %vm1247_vm5, %v2080_v28, %v2073_v43 }
 0xf49   :  { %10648 = vmatprep.mubr.msk.f32.mxu1 %vm138_vm1, %v2082_v29 }
 0xf4a   :  { %10649 = vmatmul.mubr.msk.f32.gmra.mrb[26].mxu1 %vm138_vm1, %v2083_v32 }
 0xf7d   :  { %v10647_v7 = vpop.f32.mrb[24].mxu1 }
 0xf7e   :  { %v2172_v33 = vadd.f32 %v10647_v7, %v9791_v54  ;;  %v2166_v59 = vpop.f32.mrb[25].mxu1  ;;  %v9797_v7 = vld [vmem:[%s14609_s2 + $0xe8] ss:$0 sm:$0xff] }
 0xf7f   :  { %v2167_v53 = vadd.f32 %v9791_v54, %v2166_v59 }
 0xf80   :  { %v12984_v34 = vadd.f32 %v2172_v33, %v12574_v26 }
 0xf81   :  { %v12987_v45 = vadd.f32 %v2167_v53, %v12572_v23 }
 0xf82   :  { %v2194_v61 = vsel %vm138_vm1, %v12984_v34, 0.0 }
 0xf83   :  { %2195 = vadd.xlane.f32.xlu0 %v2194_v61  ;;  %v2191_v19 = vsel %vm138_vm1, %v12987_v45, 0.0 }
 0xf84   :  { %2192 = vadd.xlane.f32.xlu1 %v2191_v19  ;;  %v2401_v19 = vld [vmem:[%s14609_s2 + $0x118] sm:$0xff] }
0x1010   :  { %v2196_v51 = vpop.xlane.xlu0 %2195 }
0x1011   :  { %v2193_v55 = vpop.xlane.xlu1 %2192  ;;  %v2204_v47 = vmul.f32 0.03125, %v2196_v51 }
0x1012   :  { %v2203_v35 = vmul.f32 0.03125, %v2193_v55  ;;  %v2405_v55 = vld [vmem:[%s14609_s2 + $0x138] sm:$0xff] }
0x1013   :  { %v2208_v1 = vsub.f32 %v12984_v34, %v2204_v47  ;;  %v2406_v47 = vld [vmem:[%s14609_s2 + $0x140] sm:$0xff] }
0x1014   :  { %v2207_v23 = vsub.f32 %v12987_v45, %v2203_v35  ;;  %v13082_v35 = vpack.c.bf16 %v2406_v47, %v2405_v55 }
0x1015   :  { %v2212_v16 = vmul.f32 %v2208_v1, %v2208_v1 }
0x1016   :  { %v2211_v17 = vmul.f32 %v2207_v23, %v2207_v23 }
0x1017   :  { %v2218_v18 = vsel %vm138_vm1, %v2212_v16, 0.0 }
0x1018   :  { %v2215_v13 = vsel %vm138_vm1, %v2211_v17, 0.0 }
0x101d   :  { %v10650_v36 = vpop.f32.mrb[26].mxu1 }
0x101e   :  { %v2182_v26 = vadd.f32 %v10650_v36, %v9791_v54  ;;  %v2176_v52 = vpop.f32.mrb[27].mxu1  ;;  %v2407_v36 = vld [vmem:[%s14609_s2 + $0x148] sm:$0xff] }
0x101f   :  { %v2177_v6 = vadd.f32 %v9791_v54, %v2176_v52 }
0x1020   :  { %v12996_v14 = vadd.f32 %v2182_v26, %v12580_v31  ;;  %v2260_v31 = vld [vmem:[%s14609_s2 + $0xf8] sm:$0xff] }
0x1021   :  { %v12999_v50 = vadd.f32 %v2177_v6, %v12578_v30  ;;  %v2259_v30 = vld [vmem:[%s14609_s2 + $0xf0] sm:$0xff] }
0x1022   :  { %v2200_v15 = vsel %vm138_vm1, %v12996_v14, 0.0  ;;  %v13013_v21 = vpack.c.bf16 %v2260_v31, %v2259_v30 }
0x1023   :  { %2201 = vadd.xlane.f32.xlu1 %v2200_v15  ;;  %v2197_v46 = vsel %vm138_vm1, %v12999_v50, 0.0 }
0x1024   :  { %2198 = vadd.xlane.f32.xlu0 %v2197_v46  ;;  %11378 = vmatprep.subr.bf16.mxu0 %v13013_v21 }
0x1025   :  { %11380 = vmatpush3.bf16.msra.mxu0 %v13013_v21 }
0x1026   :  { %11382 = vmatprep.subr.bf16.mxu0 %v13021_v10 }
0x1027   :  { %2219 = vadd.xlane.f32.xlu1 %v2218_v18 }
0x1028   :  { %2216 = vadd.xlane.f32.xlu0 %v2215_v13 }
0x1029   :  { %11384 = vmatpush3.bf16.msra.mxu0 %v13021_v10 }
0x102a   :  { %11402 = vmatprep.subr.bf16.mxu0 %v12516_v3 }
0x10b0   :  { %v2202_v22 = vpop.xlane.xlu1 %2201 }
0x10b1   :  { %v2206_v24 = vmul.f32 0.03125, %v2202_v22  ;;  %v2199_v39 = vpop.xlane.xlu0 %2198 }
0x10b2   :  { %v2205_v48 = vmul.f32 0.03125, %v2199_v39  ;;  %v2590_v39 = vld [vmem:[%s14608_s1 + $0x8] sm:$0xff] }
0x10b3   :  { %v13029_v2 = vsub.f32 %v12996_v14, %v2206_v24  ;;  %v2589_v24 = vld [vmem:[%s14608_s1] sm:$0xff] }
0x10b4   :  { %v13032_v4 = vsub.f32 %v12999_v50, %v2205_v48  ;;  %v2220_v57 = vpop.xlane.xlu1 %2219  ;;  %v2591_v48 = vld [vmem:[%s14608_s1 + $0x10] sm:$0xff] }
0x10b5   :  { %v2228_v44 = vmul.f32 0.03125, %v2220_v57  ;;  %v2217_v40 = vpop.xlane.xlu0 %2216  ;;  %v2214_v11 = vmul.f32 %v13029_v2, %v13029_v2 }
0x10b6   :  { %v2227_v49 = vmul.f32 0.03125, %v2217_v40  ;;  %v2213_v62 = vmul.f32 %v13032_v4, %v13032_v4 }
0x10b7   :  { %v2232_v42 = vadd.f32 1e-05, %v2228_v44  ;;  %v2224_v25 = vsel %vm138_vm1, %v2214_v11, 0.0 }
0x10b8   :  { %v2231_v20 = vadd.f32 1e-05, %v2227_v49  ;;  %2225 = vadd.xlane.f32.xlu1 %v2224_v25  ;;  %v2221_v28 = vsel %vm138_vm1, %v2213_v62, 0.0 }
0x10b9   :  { %12149 = vrsqrt.f32 %v2232_v42  ;;  %2222 = vadd.xlane.f32.xlu0 %v2221_v28 }
0x10ba   :  { %12151 = vrsqrt.f32 %v2231_v20 }
0x10c3   :  { %v12150_v43 = vpop.eup %12149 }
0x10c4   :  { %v12152_v29 = vpop.eup %12151  ;;  %v2240_v32 = vmul.f32 %v12150_v43, %v2208_v1  ;;  %v2408_v1 = vld [vmem:[%s14609_s2 + $0x150] sm:$0xff] }
0x10c5   :  { %v2239_v54 = vmul.f32 %v12152_v29, %v2207_v23  ;;  %v13092_v26 = vpack.c.bf16 %v2408_v1, %v2407_v36 }
0x10c6   :  { %v2248_v33 = vmul.f32 %v9796_v0, %v2240_v32 }
0x10c7   :  { %v2247_v59 = vmul.f32 %v9796_v0, %v2239_v54 }
0x10c8   :  { %v2256_v61 = vadd.f32 %v9797_v7, %v2248_v33 }
0x10c9   :  { %v2255_v53 = vadd.f32 %v9797_v7, %v2247_v59 }
0x10cb   :  { %10659 = vmatprep.mubr.msk.f32.mxu0 %vm138_vm1, %v2255_v53 }
0x10cc   :  { %10660 = vmatmul.mubr.msk.f32.vlgmr.msra.gmra.mrb[20].mxu0 %vm138_vm1, %v2256_v61 }
0x10cd   :  { %11404 = vmatpush3.bf16.msra.mxu0 %v12516_v3  ;;  %v2402_v3 = vld [vmem:[%s14609_s2 + $0x120] sm:$0xff] }
0x10ce   :  { %11406 = vmatprep.subr.bf16.mxu0 %v12521_v5  ;;  %v13062_v51 = vpack.c.bf16 %v2402_v3, %v2401_v19 }
0x10d0   :  { %11386 = vmatprep.subr.bf16.mxu1 %v13062_v51 }
0x10d1   :  { %11408 = vmatpush3.bf16.msra.mxu0 %v12521_v5  ;;  %11388 = vmatpush3.bf16.msra.mxu1 %v13062_v51  ;;  %v2403_v5 = vld [vmem:[%s14609_s2 + $0x128] sm:$0xff] }
0x10d2   :  { %11410 = vmatprep.subr.bf16.mxu0 %v12536_v9 }
0x10d5   :  { %11412 = vmatpush3.bf16.msra.mxu0 %v12536_v9  ;;  %v2404_v9 = vld [vmem:[%s14609_s2 + $0x130] sm:$0xff] }
0x10d6   :  { %11414 = vmatprep.subr.bf16.mxu0 %v12546_v12 }
0x10d9   :  { %11416 = vmatpush3.bf16.msra.mxu0 %v12546_v12  ;;  %v13072_v12 = vpack.c.bf16 %v2404_v9, %v2403_v5 }
0x10da   :  { %11426 = vmatprep.subr.bf16.mxu0 %v12622_v63 }
0x10db   :  { %11390 = vmatprep.subr.bf16.mxu1 %v13072_v12 }
0x10dc   :  { %11392 = vmatpush3.bf16.msra.mxu1 %v13072_v12 }
0x10dd   :  { %11394 = vmatprep.subr.bf16.mxu1 %v13082_v35 }
0x10e0   :  { %11396 = vmatpush3.bf16.msra.mxu1 %v13082_v35 }
0x10e1   :  { %11398 = vmatprep.subr.bf16.mxu1 %v13092_v26 }
0x10e4   :  { %11400 = vmatpush3.bf16.msra.mxu1 %v13092_v26 }
0x10e5   :  { %11418 = vmatprep.subr.bf16.mxu1 %v12605_v58 }
0x1145   :  { %v2226_v52 = vpop.xlane.xlu1 %2225 }
0x1146   :  { %v2230_v23 = vmul.f32 0.03125, %v2226_v52  ;;  %v2223_v6 = vpop.xlane.xlu0 %2222  ;;  %v12437_v52 = vld [vmem:[%s14609_s2 + $0x40] ss:$0 sm:$0xff] }
0x1147   :  { %v2229_v15 = vmul.f32 0.03125, %v2223_v6 }
0x1148   :  { %v2234_v16 = vadd.f32 1e-05, %v2230_v23 }
0x1149   :  { %v2233_v46 = vadd.f32 1e-05, %v2229_v15 }
0x114a   :  { %12153 = vrsqrt.f32 %v2234_v16 }
0x114b   :  { %12155 = vrsqrt.f32 %v2233_v46 }
0x1154   :  { %v12154_v17 = vpop.eup %12153 }
0x1155   :  { %v12156_v18 = vpop.eup %12155  ;;  %v2242_v13 = vmul.f32 %v12154_v17, %v13029_v2  ;;  %v2592_v2 = vld [vmem:[%s14608_s1 + $0x18] sm:$0xff] }
0x1156   :  { %v2241_v30 = vmul.f32 %v12156_v18, %v13032_v4  ;;  %v9798_v4 = vld [vmem:[%s14609_s2 + $0x110] ss:$0 sm:$0xff]  ;;  %v12439_v18 = vld [vmem:[%s14609_s2 + $0x48] sm:$0xff] }
0x1157   :  { %v2250_v31 = vmul.f32 %v9796_v0, %v2242_v13 }
0x1158   :  { %v2249_v38 = vmul.f32 %v9796_v0, %v2241_v30 }
0x1159   :  { %v2258_v22 = vadd.f32 %v9797_v7, %v2250_v31 }
0x115a   :  { %v2257_v8 = vadd.f32 %v9797_v7, %v2249_v38 }
0x115c   :  { %10662 = vmatprep.mubr.msk.f32.mxu0 %vm138_vm1, %v2257_v8 }
0x115d   :  { %10663 = vmatmul.mubr.msk.f32.gmra.mrb[22].mxu0 %vm138_vm1, %v2258_v22 }
0x115e   :  { %10703 = vmatprep.mubr.msk.f32.mxu0 %vm32_vm0, %v2589_v24 }
0x1161   :  { %10704 = vmatmul.mubr.msk.f32.vlgmr.msra.gmra.mrb[24].mxu0 %vm32_vm0, %v2590_v39 }
0x1162   :  { %10706 = vmatprep.mubr.msk.f32.mxu0 %vm32_vm0, %v2591_v48  ;;  %11428 = vmatpush3.bf16.msra.mxu0 %v12622_v63 }
0x1163   :  { %11430 = vmatprep.subr.bf16.mxu0 %v12638_v37 }
0x1165   :  { %10707 = vmatmul.mubr.msk.f32.gmra.mrb[26].mxu0 %vm32_vm0, %v2592_v2 }
0x1166   :  { %11432 = vmatpush3.bf16.msra.mxu0 %v12638_v37 }
0x119f   :  { %v10661_v57 = vpop.f32.mrb[20].mxu0 }
0x11a0   :  { %v2352_v44 = vadd.f32 %v10661_v57, %v9798_v4  ;;  %v2346_v40 = vpop.f32.mrb[21].mxu0 }
0x11a1   :  { %v2347_v11 = vadd.f32 %v9798_v4, %v2346_v40 }
0x11a2   :  { %v2366_v49 = vmul.f32 %v2352_v44, %v2352_v44 }
0x11a3   :  { %v2365_v62 = vmul.f32 %v2347_v11, %v2347_v11 }
0x11a4   :  { %v2370_v42 = vmul.f32 %v2366_v49, %v2352_v44 }
0x11a5   :  { %v2369_v25 = vmul.f32 %v2365_v62, %v2347_v11 }
0x11a6   :  { %v2374_v20 = vmul.f32 0.044715, %v2370_v42 }
0x11a7   :  { %v2373_v63 = vmul.f32 0.044715, %v2369_v25 }
0x11a8   :  { %v2378_v28 = vadd.f32 %v2374_v20, %v2352_v44 }
0x11a9   :  { %v2377_v43 = vadd.f32 %v2373_v63, %v2347_v11 }
0x11aa   :  { %v2382_v0 = vmul.f32 0.7978846, %v2378_v28 }
0x11ab   :  { %v2381_v29 = vmul.f32 0.7978846, %v2377_v43 }
0x11ac   :  { %12157 = vtanh.f32 %v2382_v0 }
0x11ad   :  { %12159 = vtanh.f32 %v2381_v29 }
0x11b6   :  { %v12158_v37 = vpop.eup %12157 }
0x11b7   :  { %v12160_v32 = vpop.eup %12159  ;;  %v2390_v54 = vadd.f32 1.0, %v12158_v37 }
0x11b8   :  { %v2389_v7 = vadd.f32 1.0, %v12160_v32 }
0x11b9   :  { %v2394_v33 = vmul.f32 0.5, %v2390_v54 }
0x11ba   :  { %v2393_v59 = vmul.f32 0.5, %v2389_v7 }
0x11bb   :  { %v2398_v61 = vmul.f32 %v2394_v33, %v2352_v44 }
0x11bc   :  { %v2397_v53 = vmul.f32 %v2393_v59, %v2347_v11 }
0x11be   :  { %10681 = vmatprep.mubr.msk.f32.mxu1 %vm32_vm0, %v2397_v53 }
0x11bf   :  { %10682 = vmatmul.mubr.msk.f32.vlgmr.msra.gmra.mrb[28].mxu1 %vm32_vm0, %v2398_v61 }
0x11c0   :  { %11420 = vmatpush3.bf16.msra.mxu1 %v12605_v58 }
0x11c1   :  { %11422 = vmatprep.subr.bf16.mxu1 %v12610_v60 }
0x11c4   :  { %11424 = vmatpush3.bf16.msra.mxu1 %v12610_v60  ;;  %v12438_v60 = vld [vmem:[%s14609_s2 + $0x50] sm:$0xff] }
0x1230   :  { %v10664_v19 = vpop.f32.mrb[22].mxu0 }
0x1231   :  { %v2362_v3 = vadd.f32 %v10664_v19, %v9798_v4  ;;  %v2356_v5 = vpop.f32.mrb[23].mxu0 }
0x1232   :  { %v2357_v9 = vadd.f32 %v9798_v4, %v2356_v5 }
0x1233   :  { %v2368_v55 = vmul.f32 %v2362_v3, %v2362_v3 }
0x1234   :  { %v2367_v47 = vmul.f32 %v2357_v9, %v2357_v9  ;;  %v10705_v36 = vpop.f32.mrb[24].mxu0 }
0x1235   :  { %v2372_v1 = vmul.f32 %v2368_v55, %v2362_v3  ;;  %v2677_v23 = vadd.f32 %v12437_v52, %v10705_v36  ;;  %v2671_v6 = vpop.f32.mrb[25].mxu0 }
0x1236   :  { %v2371_v15 = vmul.f32 %v2367_v47, %v2357_v9  ;;  %v2672_v58 = vadd.f32 %v12437_v52, %v2671_v6 }
0x1237   :  { %v2376_v16 = vmul.f32 0.044715, %v2372_v1  ;;  %v13134_v46 = vadd.f32 %v12438_v60, %v2677_v23 }
0x1238   :  { %v2375_v17 = vmul.f32 0.044715, %v2371_v15  ;;  %v13139_v13 = vadd.f32 %v12439_v18, %v2672_v58  ;;  %v10708_v40 = vpop.f32.mrb[26].mxu0 }
0x1239   :  { %v2380_v30 = vadd.f32 %v2376_v16, %v2362_v3  ;;  %v2697_v31 = vsel %vm138_vm1, %v13134_v46, 0.0  ;;  %v2681_v11 = vpop.f32.mrb[27].mxu0  ;;  %v2687_v43 = vadd.f32 %v12437_v52, %v10708_v40 }
0x123a   :  { %v2379_v38 = vadd.f32 %v2375_v17, %v2357_v9  ;;  %2698 = vadd.xlane.f32.xlu1 %v2697_v31  ;;  %v2694_v8 = vsel %vm138_vm1, %v13139_v13, 0.0  ;;  %v2682_v29 = vadd.f32 %v12437_v52, %v2681_v11 }
0x123b   :  { %v2384_v22 = vmul.f32 0.7978846, %v2380_v30  ;;  %2695 = vadd.xlane.f32.xlu0 %v2694_v8  ;;  %v13153_v54 = vadd.f32 %v12438_v60, %v2687_v43 }
0x123c   :  { %v2383_v24 = vmul.f32 0.7978846, %v2379_v38  ;;  %v13155_v33 = vadd.f32 %v12439_v18, %v2682_v29 }
0x123d   :  { %12161 = vtanh.f32 %v2384_v22  ;;  %v2703_v19 = vsel %vm138_vm1, %v13153_v54, 0.0 }
0x123e   :  { %12163 = vtanh.f32 %v2383_v24 }
0x1247   :  { %v12162_v39 = vpop.eup %12161 }
0x1248   :  { %v12164_v48 = vpop.eup %12163  ;;  %v2392_v2 = vadd.f32 1.0, %v12162_v39 }
0x1249   :  { %v2391_v4 = vadd.f32 1.0, %v12164_v48  ;;  %v12440_v48 = vld [vmem:[%s14609_s2 + $0x58] ss:$0 sm:$0xff] }
0x124a   :  { %v2396_v57 = vmul.f32 0.5, %v2392_v2 }
0x124b   :  { %v2395_v44 = vmul.f32 0.5, %v2391_v4 }
0x124c   :  { %v2400_v62 = vmul.f32 %v2396_v57, %v2362_v3  ;;  %v2700_v3 = vsel %vm138_vm1, %v13155_v33, 0.0  ;;  %v12441_v57 = vld [vmem:[%s14609_s2 + $0x60] ss:$0 sm:$0xff] }
0x124d   :  { %v2399_v49 = vmul.f32 %v2395_v44, %v2357_v9 }
0x124f   :  { %10684 = vmatprep.mubr.msk.f32.mxu1 %vm32_vm0, %v2399_v49 }
0x1250   :  { %10685 = vmatmul.mubr.msk.f32.gmra.mrb[30].mxu1 %vm32_vm0, %v2400_v62 }
0x1292   :  { %v13147_v42 = vpop.f32.mrb[28].mxu1 }
0x1293   :  { %v13149_v25 = vpop.f32.mrb[29].mxu1 }
0x12c7   :  { %v2699_v20 = vpop.xlane.xlu1 %2698 }
0x12c8   :  { %v2707_v63 = vmul.f32 0.03125, %v2699_v20  ;;  %v2696_v28 = vpop.xlane.xlu0 %2695 }
0x12c9   :  { %v2706_v0 = vmul.f32 0.03125, %v2696_v28 }
0x12ca   :  { %v2711_v37 = vsub.f32 %v13134_v46, %v2707_v63 }
0x12cb   :  { %v2710_v32 = vsub.f32 %v13139_v13, %v2706_v0 }
0x12cc   :  { %v2715_v7 = vmul.f32 %v2711_v37, %v2711_v37 }
0x12cd   :  { %v2714_v59 = vmul.f32 %v2710_v32, %v2710_v32 }
0x12ce   :  { %v2721_v53 = vsel %vm138_vm1, %v2715_v7, 0.0 }
0x12cf   :  { %2722 = vadd.xlane.f32.xlu1 %v2721_v53  ;;  %v2718_v61 = vsel %vm138_vm1, %v2714_v59, 0.0 }
0x12d0   :  { %2719 = vadd.xlane.f32.xlu0 %v2718_v61 }
0x12d3   :  { %2704 = vadd.xlane.f32.xlu1 %v2703_v19 }
0x12d4   :  { %2701 = vadd.xlane.f32.xlu0 %v2700_v3  ;;  %v12442_v3 = vld [vmem:[%s14609_s2 + $0xb0] ss:$0 sm:$0xff] }
0x1323   :  { %v13163_v5 = vpop.f32.mrb[30].mxu1 }
0x1324   :  { %v13165_v9 = vpop.f32.mrb[31].mxu1 }
0x135c   :  { %v2723_v55 = vpop.xlane.xlu1 %2722 }
0x135d   :  { %v2731_v47 = vmul.f32 0.03125, %v2723_v55  ;;  %v2720_v36 = vpop.xlane.xlu0 %2719 }
0x135e   :  { %v2730_v1 = vmul.f32 0.03125, %v2720_v36 }
0x135f   :  { %v2735_v52 = vadd.f32 1e-05, %v2731_v47 }
0x1360   :  { %v2734_v23 = vadd.f32 1e-05, %v2730_v1  ;;  %v2705_v6 = vpop.xlane.xlu1 %2704  ;;  %v13191_v1 = vld [vmem:[%s14609_s2 + $0x88] ss:$0 sm:$0xff] }
0x1361   :  { %12165 = vrsqrt.f32 %v2735_v52  ;;  %v2709_v15 = vmul.f32 0.03125, %v2705_v6  ;;  %v2702_v58 = vpop.xlane.xlu0 %2701 }
0x1362   :  { %12167 = vrsqrt.f32 %v2734_v23  ;;  %v2708_v16 = vmul.f32 0.03125, %v2702_v58 }
0x1363   :  { %v2713_v60 = vsub.f32 %v13153_v54, %v2709_v15 }
0x1364   :  { %v2712_v17 = vsub.f32 %v13155_v33, %v2708_v16 }
0x1365   :  { %v2717_v18 = vmul.f32 %v2713_v60, %v2713_v60 }
0x1366   :  { %v2716_v30 = vmul.f32 %v2712_v17, %v2712_v17 }
0x1367   :  { %v2727_v31 = vsel %vm138_vm1, %v2717_v18, 0.0 }
0x1368   :  { %2728 = vadd.xlane.f32.xlu1 %v2727_v31  ;;  %v2724_v38 = vsel %vm138_vm1, %v2716_v30, 0.0 }
0x1369   :  { %2725 = vadd.xlane.f32.xlu0 %v2724_v38 }
0x136b   :  { %v12166_v8 = vpop.eup %12165 }
0x136c   :  { %v12168_v22 = vpop.eup %12167  ;;  %v2743_v24 = vmul.f32 %v12166_v8, %v2711_v37 }
0x136d   :  { %v2742_v39 = vmul.f32 %v12168_v22, %v2710_v32 }
0x136e   :  { %v2747_v2 = vmul.f32 %v12440_v48, %v2743_v24 }
0x136f   :  { %v2746_v4 = vmul.f32 %v12440_v48, %v2742_v39 }
0x1370   :  { %v2751_v40 = vadd.f32 %v12441_v57, %v2747_v2 }
0x1371   :  { %v2750_v44 = vadd.f32 %v12441_v57, %v2746_v4 }
0x1373   :  { %10717 = vmatprep.mubr.msk.f32.mxu1 %vm138_vm1, %v2750_v44  ;;  %10731 = vmatprep.mubr.msk.f32.mxu0 %vm138_vm1, %v2750_v44 }
0x1374   :  { %10718 = vmatmul.mubr.msk.f32.vlgmr.msra.gmra.mrb[32].mxu1 %vm138_vm1, %v2751_v40  ;;  %10732 = vmatmul.mubr.msk.f32.vlgmr.msra.gmra.mrb[28].mxu0 %vm138_vm1, %v2751_v40 }
0x13f5   :  { %v2729_v11 = vpop.xlane.xlu1 %2728 }
0x13f6   :  { %v2733_v49 = vmul.f32 0.03125, %v2729_v11  ;;  %v2726_v62 = vpop.xlane.xlu0 %2725 }
0x13f7   :  { %v2732_v20 = vmul.f32 0.03125, %v2726_v62 }
0x13f8   :  { %v2737_v63 = vadd.f32 1e-05, %v2733_v49 }
0x13f9   :  { %v2736_v28 = vadd.f32 1e-05, %v2732_v20 }
0x13fa   :  { %12169 = vrsqrt.f32 %v2737_v63 }
0x13fb   :  { %12171 = vrsqrt.f32 %v2736_v28 }
0x1404   :  { %v12170_v43 = vpop.eup %12169 }
0x1405   :  { %v12172_v0 = vpop.eup %12171  ;;  %v2745_v29 = vmul.f32 %v12170_v43, %v2713_v60 }
0x1406   :  { %v2744_v37 = vmul.f32 %v12172_v0, %v2712_v17 }
0x1407   :  { %v2749_v32 = vmul.f32 %v12440_v48, %v2745_v29 }
0x1408   :  { %v2748_v7 = vmul.f32 %v12440_v48, %v2744_v37 }
0x1409   :  { %v2753_v53 = vadd.f32 %v12441_v57, %v2749_v32 }
0x140a   :  { %v2752_v59 = vadd.f32 %v12441_v57, %v2748_v7 }
0x140c   :  { %10720 = vmatprep.mubr.msk.f32.mxu1 %vm138_vm1, %v2752_v59  ;;  %10734 = vmatprep.mubr.msk.f32.mxu0 %vm138_vm1, %v2752_v59 }
0x140d   :  { %10721 = vmatmul.mubr.msk.f32.gmra.mrb[34].mxu1 %vm138_vm1, %v2753_v53  ;;  %10735 = vmatmul.mubr.msk.f32.gmra.mrb[30].mxu0 %vm138_vm1, %v2753_v53 }
0x1447   :  { %v10719_v61 = vpop.f32.mrb[32].mxu1  ;;  %v10733_v19 = vpop.f32.mrb[28].mxu0 }
0x1448   :  { %v2923_v55 = vadd.f32 %v12442_v3, %v10733_v19  ;;  %v2832_v47 = vpop.f32.mrb[33].mxu1  ;;  %v2917_v36 = vpop.f32.mrb[29].mxu0  ;;  %v13203_v58 = vadd.f32 %v13191_v1, %v10719_v61 }
0x1449   :  { %v13194_v52 = vadd.f32 %v13191_v1, %v2832_v47  ;;  %v2918_v23 = vadd.f32 %v12442_v3, %v2917_v36 }
0x144b   :  { %3134 = vrot.lane.b32.xlu1 %v13194_v52, %s12475_s9  ;;  %10741 = vmatprep.mubr.msk.f32.mxu1 %vm413_vm2, %v13194_v52  ;;  %v11433_v6 = vpack.c.bf16 %v2923_v55, %v2918_v23  ;;  %v13200_v15 = vpack.i.bf16 %v2923_v55, %v2918_v23 }
0x144d   :  { %11435 = vmatprep.subr.msk.bf16.mxu1 %vm12678_vm3, %v11433_v6  ;;  %11868 = vrot.lane.b32.xlu0 %v13200_v15, %s12475_s9 }
0x144e   :  { %11438 = vmatpush3.bf16.xpose.msk.msra.mxu1 %vm12678_vm3, %v11433_v6 }
0x144f   :  { %3136 = vrot.lane.b32.xlu1 %v13203_v58, %s12475_s9 }
0x1453   :  { %11873 = vrot.lane.b32.xlu1 %v13200_v15, %s12476_s12 }
0x1455   :  { %10742 = vmatmul.mubr.msk.f32.vlgmr.msra.gmra.mrb[36].mxu1 %vm413_vm2, %v13203_v58 }
0x14bd   :  { %v3135_v16 = vpop.permute.xlu1 %3134 }
0x14be   :  { %10755 = vmatprep.mubr.msk.f32.mxu1 %vm413_vm2, %v3135_v16 }
0x14bf   :  { %v11869_v60 = vpop.permute.xlu0 %11868 }
0x14c0   :  { %v11871_v17 = vunpack.i.h.bf16 %v11869_v60  ;;  %v11870_v18 = vunpack.i.l.bf16 %v11869_v60 }
0x14c1   :  { %v3137_v30 = vpop.permute.xlu1 %3136 }
0x14c2   :  { %v11443_v31 = vpack.c.bf16 %v11871_v17, %v11870_v18 }
0x14c4   :  { %11445 = vmatprep.subr.msk.bf16.mxu1 %vm12678_vm3, %v11443_v31 }
0x14c5   :  { %v11874_v38 = vpop.permute.xlu1 %11873  ;;  %11448 = vmatpush3.bf16.xpose.msk.msra.mxu1 %vm12678_vm3, %v11443_v31 }
0x14c6   :  { %v11876_v8 = vunpack.i.h.bf16 %v11874_v38  ;;  %v11875_v22 = vunpack.i.l.bf16 %v11874_v38 }
0x14c8   :  { %v11439_v24 = vpack.c.bf16 %v11876_v8, %v11875_v22 }
0x14ca   :  { %11440 = vmatprep.subr.bf16.mxu0 %v11439_v24 }
0x14cb   :  { %11442 = vmatpush3.bf16.msra.mxu0 %v11439_v24 }
0x14cc   :  { %10756 = vmatmul.mubr.msk.f32.vlgmr.msra.gmra.mrb[38].mxu1 %vm413_vm2, %v3137_v30 }
0x14e0   :  { %v13223_v39 = vpop.f32.mrb[34].mxu1  ;;  %v10736_v48 = vpop.f32.mrb[30].mxu0 }
0x14e1   :  { %v2933_v2 = vadd.f32 %v12442_v3, %v10736_v48  ;;  %v13225_v4 = vpop.f32.mrb[35].mxu1  ;;  %v2927_v57 = vpop.f32.mrb[31].mxu0 }
0x14e2   :  { %v2928_v44 = vadd.f32 %v12442_v3, %v2927_v57 }
0x14e4   :  { %v13227_v40 = vpack.i.bf16 %v2933_v2, %v2928_v44  ;;  %v13229_v11 = vpack.c.bf16 %v2933_v2, %v2928_v44 }
0x1528   :  { %v10743_v49 = vpop.f32.mrb[36].mxu1 }
0x1529   :  { %v3024_v62 = vmul.f32 0.35355338, %v10743_v49  ;;  %v3014_v20 = vpop.f32.mrb[37].mxu1 }
0x152a   :  { %v3023_v63 = vmul.f32 0.35355338, %v3014_v20 }
0x152b   :  { %v3028_v28 = vsel %vm503_vm4, %v3024_v62, -inf }
0x152c   :  { %3029 = vmax.xlane.f32.xlu1 %v3028_v28  ;;  %v3025_v43 = vsel %vm503_vm4, %v3023_v63, -inf }
0x152d   :  { %3026 = vmax.xlane.f32.xlu0 %v3025_v43 }
0x153d   :  { %11883 = vrot.lane.b32.xlu1 %v13200_v15, %s12477_s13 }
0x1541   :  { %3336 = vrot.lane.b32.xlu1 %v13194_v52, %s12477_s13 }
0x1545   :  { %11893 = vrot.lane.b32.xlu1 %v13200_v15, %s12479_s0 }
0x159f   :  { %v10757_v0 = vpop.f32.mrb[38].mxu1 }
0x15a0   :  { %v3226_v29 = vmul.f32 0.35355338, %v10757_v0  ;;  %v3216_v37 = vpop.f32.mrb[39].mxu1 }
0x15a1   :  { %v3225_v32 = vmul.f32 0.35355338, %v3216_v37 }
0x15a2   :  { %v3230_v7 = vsel %vm503_vm4, %v3226_v29, -inf }
0x15a3   :  { %3231 = vmax.xlane.f32.xlu0 %v3230_v7  ;;  %v3227_v59 = vsel %vm503_vm4, %v3225_v32, -inf }
0x15a7   :  { %3228 = vmax.xlane.f32.xlu0 %v3227_v59 }
0x15b9   :  { %v3030_v53 = vpop.xlane.xlu1 %3029 }
0x15ba   :  { %v3032_v61 = vsub.f32 %v3024_v62, %v3030_v53  ;;  %v3027_v19 = vpop.xlane.xlu0 %3026 }
0x15bb   :  { %v3031_v3 = vsub.f32 %v3023_v63, %v3027_v19 }
0x15bc   :  { %v3035_v55 = vmul.f32 1.442695, %v3032_v61 }
0x15bd   :  { %v3033_v47 = vmul.f32 1.442695, %v3031_v3  ;;  %11878 = vrot.lane.b32.xlu0 %v13200_v15, %s12478_s14  ;;  %v11884_v17 = vpop.permute.xlu1 %11883 }
0x15be   :  { %v11886_v38 = vunpack.i.h.bf16 %v11884_v17  ;;  %v11885_v22 = vunpack.i.l.bf16 %v11884_v17 }
0x15bf   :  { %12173 = vpow2.f32 %v3033_v47 }
0x15c0   :  { %12175 = vpow2.f32 %v3035_v55  ;;  %v11453_v57 = vpack.c.bf16 %v11886_v38, %v11885_v22 }
0x15c1   :  { %3338 = vrot.lane.b32.xlu0 %v13203_v58, %s12477_s13  ;;  %v3337_v62 = vpop.permute.xlu1 %3336 }
0x15c5   :  { %v11894_v61 = vpop.permute.xlu1 %11893 }
0x15c6   :  { %v11896_v17 = vunpack.i.h.bf16 %v11894_v61 }
0x15c9   :  { %v13245_v36 = vpop.eup %12173 }
0x15ca   :  { %v13247_v23 = vpop.eup %12175  ;;  %10748 = vmatprep.mubr.msk.f32.mxu0 %vm503_vm4, %v13245_v36 }
0x15cb   :  { %10749 = vmatmul.mubr.msk.f32.vlgmr.msra.gmra.mrb[32].mxu0 %vm503_vm4, %v13247_v23 }
0x1630   :  { %v3232_v6 = vpop.xlane.xlu0 %3231 }
0x1631   :  { %v3234_v16 = vsub.f32 %v3226_v29, %v3232_v6 }
0x1633   :  { %v3237_v30 = vmul.f32 1.442695, %v3234_v16 }
0x1634   :  { %v3229_v60 = vpop.xlane.xlu0 %3228 }
0x1635   :  { %v3233_v18 = vsub.f32 %v3225_v32, %v3229_v60 }
0x1637   :  { %v3235_v31 = vmul.f32 1.442695, %v3233_v18  ;;  %v11895_v18 = vunpack.i.l.bf16 %v11894_v61 }
0x1638   :  { %v11879_v8 = vpop.permute.xlu0 %11878 }
0x1639   :  { %12177 = vpow2.f32 %v3235_v31  ;;  %v11881_v24 = vunpack.i.h.bf16 %v11879_v8  ;;  %v11880_v48 = vunpack.i.l.bf16 %v11879_v8  ;;  %v11463_v38 = vpack.c.bf16 %v11896_v17, %v11895_v18 }
0x163a   :  { %12179 = vpow2.f32 %v3237_v30  ;;  %v13331_v17 = vadd.f32 %v13191_v1, %v13223_v39 }
0x163b   :  { %v11449_v2 = vpack.c.bf16 %v11881_v24, %v11880_v48 }
0x163c   :  { %v3339_v20 = vpop.permute.xlu0 %3338 }
0x163d   :  { %11450 = vmatprep.subr.bf16.mxu0 %v11449_v2 }
0x163e   :  { %11452 = vmatpush3.bf16.msra.mxu0 %v11449_v2 }
0x163f   :  { %11455 = vmatprep.subr.msk.bf16.mxu0 %vm12678_vm3, %v11453_v57 }
0x1643   :  { %v13255_v44 = vpop.eup %12177 }
0x1644   :  { %v13257_v49 = vpop.eup %12179  ;;  %10762 = vmatprep.mubr.msk.f32.mxu0 %vm503_vm4, %v13255_v44 }
0x1645   :  { %10763 = vmatmul.mubr.msk.f32.vlgmr.msra.gmra.mrb[34].mxu0 %vm503_vm4, %v13257_v49 }
0x1646   :  { %10769 = vmatprep.mubr.msk.f32.mxu0 %vm413_vm2, %v3337_v62 }
0x1647   :  { %11458 = vmatpush3.bf16.xpose.msk.msra.mxu0 %vm12678_vm3, %v11453_v57 }
0x164e   :  { %10770 = vmatmul.mubr.msk.f32.vlgmr.msra.gmra.mrb[36].mxu0 %vm413_vm2, %v3339_v20 }
0x169e   :  { %v13267_v63 = vpop.f32.mrb[32].mxu0 }
0x169f   :  { %v13269_v28 = vpop.f32.mrb[33].mxu0 }
0x1718   :  { %v13271_v43 = vpop.f32.mrb[34].mxu0 }
0x1719   :  { %v13273_v0 = vpop.f32.mrb[35].mxu0 }
0x1721   :  { %v10771_v29 = vpop.f32.mrb[36].mxu0 }
0x1722   :  { %v3428_v37 = vmul.f32 0.35355338, %v10771_v29  ;;  %v3418_v32 = vpop.f32.mrb[37].mxu0 }
0x1723   :  { %v3427_v7 = vmul.f32 0.35355338, %v3418_v32 }
0x1724   :  { %v3432_v59 = vsel %vm503_vm4, %v3428_v37, -inf }
0x1725   :  { %3433 = vmax.xlane.f32.xlu0 %v3432_v59  ;;  %v3429_v53 = vsel %vm503_vm4, %v3427_v7, -inf }
0x1726   :  { %3430 = vmax.xlane.f32.xlu1 %v3429_v53 }
0x1737   :  { %3538 = vrot.lane.b32.xlu1 %v13194_v52, %s12479_s0 }
0x173b   :  { %11888 = vrot.lane.b32.xlu0 %v13200_v15, %s12480_s15 }
0x173f   :  { %3540 = vrot.lane.b32.xlu0 %v13203_v58, %s12479_s0 }
0x17b2   :  { %v3434_v19 = vpop.xlane.xlu0 %3433 }
0x17b3   :  { %v3436_v3 = vsub.f32 %v3428_v37, %v3434_v19  ;;  %v3431_v55 = vpop.xlane.xlu1 %3430 }
0x17b4   :  { %v3435_v47 = vsub.f32 %v3427_v7, %v3431_v55  ;;  %v13309_v7 = vadd.f32 %v13191_v1, %v13225_v4 }
0x17b5   :  { %v3439_v6 = vmul.f32 1.442695, %v3436_v3 }
0x17b6   :  { %v3437_v16 = vmul.f32 1.442695, %v3435_v47  ;;  %v11889_v60 = vpop.permute.xlu0 %11888 }
0x17b7   :  { %v11891_v30 = vunpack.i.h.bf16 %v11889_v60  ;;  %v11890_v31 = vunpack.i.l.bf16 %v11889_v60  ;;  %v3539_v22 = vpop.permute.xlu1 %3538 }
0x17b8   :  { %12181 = vpow2.f32 %v3437_v16 }
0x17b9   :  { %12183 = vpow2.f32 %v3439_v6  ;;  %v11459_v52 = vpack.c.bf16 %v11891_v30, %v11890_v31 }
0x17ba   :  { %v3541_v24 = vpop.permute.xlu0 %3540 }
0x17bb   :  { %11460 = vmatprep.subr.bf16.mxu1 %v11459_v52 }
0x17bc   :  { %11462 = vmatpush3.bf16.msra.mxu1 %v11459_v52 }
0x17bd   :  { %11465 = vmatprep.subr.msk.bf16.mxu1 %vm12678_vm3, %v11463_v38 }
0x17c2   :  { %v13285_v58 = vpop.eup %12181 }
0x17c3   :  { %v13287_v8 = vpop.eup %12183  ;;  %10776 = vmatprep.mubr.msk.f32.mxu1 %vm503_vm4, %v13285_v58 }
0x17c4   :  { %10777 = vmatmul.mubr.msk.f32.vlgmr.msra.gmra.mrb[40].mxu1 %vm503_vm4, %v13287_v8 }
0x17c5   :  { %11468 = vmatpush3.bf16.xpose.msk.msra.mxu1 %vm12678_vm3, %v11463_v38  ;;  %10783 = vmatprep.mubr.msk.f32.mxu1 %vm413_vm2, %v3539_v22 }
0x17cc   :  { %10784 = vmatmul.mubr.msk.f32.vlgmr.msra.gmra.mrb[42].mxu1 %vm413_vm2, %v3541_v24 }
0x1897   :  { %v13297_v48 = vpop.f32.mrb[40].mxu1 }
0x1898   :  { %v13299_v2 = vpop.f32.mrb[41].mxu1 }
0x189f   :  { %v10785_v57 = vpop.f32.mrb[42].mxu1 }
0x18a0   :  { %v3630_v62 = vmul.f32 0.35355338, %v10785_v57  ;;  %v3620_v20 = vpop.f32.mrb[43].mxu1 }
0x18a1   :  { %v3629_v29 = vmul.f32 0.35355338, %v3620_v20 }
0x18a2   :  { %v3634_v37 = vsel %vm503_vm4, %v3630_v62, -inf }
0x18a3   :  { %3635 = vmax.xlane.f32.xlu0 %v3634_v37  ;;  %v3631_v32 = vsel %vm503_vm4, %v3629_v29, -inf }
0x18a4   :  { %3632 = vmax.xlane.f32.xlu1 %v3631_v32 }
0x18b9   :  { %11898 = vrot.lane.b32.xlu0 %v13200_v15, %s12481_s16 }
0x18bd   :  { %11908 = vrot.lane.b32.xlu0 %v13227_v40, %s12475_s9 }
0x18c1   :  { %3968 = vrot.lane.b32.xlu0 %v13309_v7, %s12475_s9 }
0x1930   :  { %v3636_v59 = vpop.xlane.xlu0 %3635 }
0x1931   :  { %v3638_v53 = vsub.f32 %v3630_v62, %v3636_v59  ;;  %v3633_v61 = vpop.xlane.xlu1 %3632 }
0x1932   :  { %v3637_v19 = vsub.f32 %v3629_v29, %v3633_v61 }
0x1933   :  { %v3641_v3 = vmul.f32 1.442695, %v3638_v53 }
0x1934   :  { %v3639_v55 = vmul.f32 1.442695, %v3637_v19  ;;  %v11899_v47 = vpop.permute.xlu0 %11898 }
0x1935   :  { %v11901_v6 = vunpack.i.h.bf16 %v11899_v47  ;;  %v11900_v16 = vunpack.i.l.bf16 %v11899_v47 }
0x1936   :  { %12185 = vpow2.f32 %v3639_v55 }
0x1937   :  { %12187 = vpow2.f32 %v3641_v3  ;;  %v11469_v15 = vpack.c.bf16 %v11901_v6, %v11900_v16 }
0x1938   :  { %v11909_v62 = vpop.permute.xlu0 %11908 }
0x1939   :  { %11470 = vmatprep.subr.bf16.mxu0 %v11469_v15  ;;  %v11911_v32 = vunpack.i.h.bf16 %v11909_v62  ;;  %v11910_v53 = vunpack.i.l.bf16 %v11909_v62 }
0x193a   :  { %11472 = vmatpush3.bf16.msra.mxu0 %v11469_v15 }
0x193b   :  { %11475 = vmatprep.subr.msk.bf16.mxu0 %vm12678_vm3, %v13229_v11  ;;  %v11483_v55 = vpack.c.bf16 %v11911_v32, %v11910_v53 }
0x193c   :  { %v3969_v16 = vpop.permute.xlu0 %3968 }
0x1940   :  { %v13316_v4 = vpop.eup %12185 }
0x1941   :  { %v13318_v60 = vpop.eup %12187  ;;  %10790 = vmatprep.mubr.msk.f32.mxu0 %vm503_vm4, %v13316_v4 }
0x1942   :  { %10791 = vmatmul.mubr.msk.f32.vlgmr.msra.gmra.mrb[38].mxu0 %vm503_vm4, %v13318_v60 }
0x1943   :  { %11478 = vmatpush3.bf16.xpose.msk.msra.mxu0 %vm12678_vm3, %v13229_v11  ;;  %10797 = vmatprep.mubr.msk.f32.mxu0 %vm413_vm2, %v13309_v7 }
0x194a   :  { %10798 = vmatmul.mubr.msk.f32.vlgmr.msra.gmra.mrb[40].mxu0 %vm413_vm2, %v13331_v17 }
0x1a15   :  { %v13335_v18 = vpop.f32.mrb[38].mxu0 }
0x1a16   :  { %v13337_v30 = vpop.f32.mrb[39].mxu0 }
0x1a1d   :  { %v10799_v31 = vpop.f32.mrb[40].mxu0 }
0x1a1e   :  { %v3858_v52 = vmul.f32 0.35355338, %v10799_v31  ;;  %v3848_v38 = vpop.f32.mrb[41].mxu0 }
0x1a1f   :  { %v3857_v22 = vmul.f32 0.35355338, %v3848_v38 }
0x1a20   :  { %v3862_v11 = vsel %vm503_vm4, %v3858_v52, -inf }
0x1a21   :  { %3863 = vmax.xlane.f32.xlu1 %v3862_v11  ;;  %v3859_v24 = vsel %vm503_vm4, %v3857_v22, -inf }
0x1a25   :  { %3860 = vmax.xlane.f32.xlu1 %v3859_v24 }
0x1a36   :  { %11903 = vrot.lane.b32.xlu1 %v13227_v40, %s12476_s12 }
0x1a3a   :  { %3970 = vrot.lane.b32.xlu1 %v13331_v17, %s12475_s9 }
0x1aae   :  { %v3864_v1 = vpop.xlane.xlu1 %3863 }
0x1aaf   :  { %v3866_v39 = vsub.f32 %v3858_v52, %v3864_v1 }
0x1ab1   :  { %v3869_v29 = vmul.f32 1.442695, %v3866_v39 }
0x1ab2   :  { %v3861_v57 = vpop.xlane.xlu1 %3860 }
0x1ab3   :  { %v3865_v20 = vsub.f32 %v3857_v22, %v3861_v57 }
0x1ab5   :  { %v3867_v37 = vmul.f32 1.442695, %v3865_v20 }
0x1ab6   :  { %v11904_v59 = vpop.permute.xlu1 %11903 }
0x1ab7   :  { %12189 = vpow2.f32 %v3867_v37  ;;  %v11906_v61 = vunpack.i.h.bf16 %v11904_v59  ;;  %v11905_v19 = vunpack.i.l.bf16 %v11904_v59 }
0x1ab8   :  { %12191 = vpow2.f32 %v3869_v29 }
0x1ab9   :  { %v11479_v3 = vpack.c.bf16 %v11906_v61, %v11905_v19 }
0x1aba   :  { %v3971_v15 = vpop.permute.xlu1 %3970 }
0x1abb   :  { %11480 = vmatprep.subr.bf16.mxu1 %v11479_v3 }
0x1abc   :  { %11482 = vmatpush3.bf16.msra.mxu1 %v11479_v3 }
0x1abd   :  { %11485 = vmatprep.subr.msk.bf16.mxu1 %vm12678_vm3, %v11483_v55 }
0x1ac1   :  { %v13347_v47 = vpop.eup %12189 }
0x1ac2   :  { %v13349_v6 = vpop.eup %12191  ;;  %10804 = vmatprep.mubr.msk.f32.mxu1 %vm503_vm4, %v13347_v47 }
0x1ac3   :  { %10805 = vmatmul.mubr.msk.f32.vlgmr.msra.gmra.mrb[44].mxu1 %vm503_vm4, %v13349_v6 }
0x1ac4   :  { %10811 = vmatprep.mubr.msk.f32.mxu1 %vm413_vm2, %v3969_v16 }
0x1ac5   :  { %11488 = vmatpush3.bf16.xpose.msk.msra.mxu1 %vm12678_vm3, %v11483_v55 }
0x1acc   :  { %10812 = vmatmul.mubr.msk.f32.vlgmr.msra.gmra.mrb[46].mxu1 %vm413_vm2, %v3971_v15 }
0x1b96   :  { %v13359_v31 = vpop.f32.mrb[44].mxu1 }
0x1b97   :  { %v13361_v52 = vpop.f32.mrb[45].mxu1 }
0x1b9f   :  { %v10813_v38 = vpop.f32.mrb[46].mxu1 }
0x1ba0   :  { %v4060_v22 = vmul.f32 0.35355338, %v10813_v38  ;;  %v4050_v11 = vpop.f32.mrb[47].mxu1 }
0x1ba1   :  { %v4059_v24 = vmul.f32 0.35355338, %v4050_v11 }
0x1ba2   :  { %v4064_v1 = vsel %vm503_vm4, %v4060_v22, -inf }
0x1ba3   :  { %4065 = vmax.xlane.f32.xlu1 %v4064_v1  ;;  %v4061_v39 = vsel %vm503_vm4, %v4059_v24, -inf }
0x1ba4   :  { %4062 = vmax.xlane.f32.xlu0 %v4061_v39 }
0x1bb4   :  { %11918 = vrot.lane.b32.xlu1 %v13227_v40, %s12477_s13 }
0x1bb8   :  { %4172 = vrot.lane.b32.xlu1 %v13331_v17, %s12477_s13 }
0x1bba   :  { %11913 = vrot.lane.b32.xlu0 %v13227_v40, %s12478_s14 }
0x1bbe   :  { %4170 = vrot.lane.b32.xlu0 %v13309_v7, %s12477_s13 }
0x1c30   :  { %v4066_v57 = vpop.xlane.xlu1 %4065 }
0x1c31   :  { %v4068_v62 = vsub.f32 %v4060_v22, %v4066_v57  ;;  %v4063_v20 = vpop.xlane.xlu0 %4062 }
0x1c32   :  { %v4067_v29 = vsub.f32 %v4059_v24, %v4063_v20 }
0x1c33   :  { %v4071_v37 = vmul.f32 1.442695, %v4068_v62 }
0x1c34   :  { %v4069_v32 = vmul.f32 1.442695, %v4067_v29  ;;  %v11919_v59 = vpop.permute.xlu1 %11918 }
0x1c35   :  { %v11921_v53 = vunpack.i.h.bf16 %v11919_v59  ;;  %v11914_v61 = vpop.permute.xlu0 %11913  ;;  %v11920_v19 = vunpack.i.l.bf16 %v11919_v59 }
0x1c36   :  { %12193 = vpow2.f32 %v4069_v32  ;;  %v11916_v3 = vunpack.i.h.bf16 %v11914_v61  ;;  %v11915_v55 = vunpack.i.l.bf16 %v11914_v61 }
0x1c37   :  { %12195 = vpow2.f32 %v4071_v37  ;;  %v11493_v15 = vpack.c.bf16 %v11921_v53, %v11920_v19 }
0x1c38   :  { %v11489_v16 = vpack.c.bf16 %v11916_v3, %v11915_v55  ;;  %v4173_v24 = vpop.permute.xlu1 %4172 }
0x1c39   :  { %v4171_v11 = vpop.permute.xlu0 %4170 }
0x1c3a   :  { %11490 = vmatprep.subr.bf16.mxu0 %v11489_v16 }
0x1c3b   :  { %11492 = vmatpush3.bf16.msra.mxu0 %v11489_v16 }
0x1c3c   :  { %11495 = vmatprep.subr.msk.bf16.mxu0 %vm12678_vm3, %v11493_v15 }
0x1c40   :  { %v13375_v38 = vpop.eup %12193 }
0x1c41   :  { %v13377_v22 = vpop.eup %12195  ;;  %10818 = vmatprep.mubr.msk.f32.mxu0 %vm503_vm4, %v13375_v38 }
0x1c42   :  { %10819 = vmatmul.mubr.msk.f32.vlgmr.msra.gmra.mrb[42].mxu0 %vm503_vm4, %v13377_v22 }
0x1c43   :  { %10825 = vmatprep.mubr.msk.f32.mxu0 %vm413_vm2, %v4171_v11 }
0x1c44   :  { %11498 = vmatpush3.bf16.xpose.msk.msra.mxu0 %vm12678_vm3, %v11493_v15 }
0x1c4b   :  { %10826 = vmatmul.mubr.msk.f32.vlgmr.msra.gmra.mrb[44].mxu0 %vm413_vm2, %v4173_v24 }
0x1d15   :  { %v13387_v1 = vpop.f32.mrb[42].mxu0 }
0x1d16   :  { %v13389_v39 = vpop.f32.mrb[43].mxu0 }
0x1d1e   :  { %v10827_v57 = vpop.f32.mrb[44].mxu0 }
0x1d1f   :  { %v4262_v62 = vmul.f32 0.35355338, %v10827_v57  ;;  %v4252_v20 = vpop.f32.mrb[45].mxu0 }
0x1d20   :  { %v4261_v29 = vmul.f32 0.35355338, %v4252_v20 }
0x1d21   :  { %v4266_v37 = vsel %vm503_vm4, %v4262_v62, -inf }
0x1d22   :  { %4267 = vmax.xlane.f32.xlu1 %v4266_v37  ;;  %v4263_v32 = vsel %vm503_vm4, %v4261_v29, -inf }
0x1d23   :  { %4264 = vmax.xlane.f32.xlu0 %v4263_v32 }
0x1d33   :  { %11928 = vrot.lane.b32.xlu1 %v13227_v40, %s12479_s0 }
0x1d37   :  { %4374 = vrot.lane.b32.xlu1 %v13331_v17, %s12479_s0 }
0x1d39   :  { %11923 = vrot.lane.b32.xlu0 %v13227_v40, %s12480_s15 }
0x1d3d   :  { %4372 = vrot.lane.b32.xlu0 %v13309_v7, %s12479_s0 }
0x1daf   :  { %v4268_v59 = vpop.xlane.xlu1 %4267 }
0x1db0   :  { %v4270_v53 = vsub.f32 %v4262_v62, %v4268_v59  ;;  %v4265_v61 = vpop.xlane.xlu0 %4264 }
0x1db1   :  { %v4269_v19 = vsub.f32 %v4261_v29, %v4265_v61 }
0x1db2   :  { %v4273_v3 = vmul.f32 1.442695, %v4270_v53 }
0x1db3   :  { %v4271_v55 = vmul.f32 1.442695, %v4269_v19  ;;  %v11929_v16 = vpop.permute.xlu1 %11928 }
0x1db4   :  { %v11931_v15 = vunpack.i.h.bf16 %v11929_v16  ;;  %v11924_v11 = vpop.permute.xlu0 %11923  ;;  %v11930_v24 = vunpack.i.l.bf16 %v11929_v16 }
0x1db5   :  { %12197 = vpow2.f32 %v4271_v55  ;;  %v11926_v57 = vunpack.i.h.bf16 %v11924_v11  ;;  %v11925_v20 = vunpack.i.l.bf16 %v11924_v11  ;;  %v3441_v11 = vsel %vm503_vm4, %v13285_v58, 0.0 }
0x1db6   :  { %12199 = vpow2.f32 %v4273_v3  ;;  %v11503_v37 = vpack.c.bf16 %v11931_v15, %v11930_v24  ;;  %v3444_v24 = vsel %vm503_vm4, %v13287_v8, 0.0 }
0x1db7   :  { %v11499_v17 = vpack.c.bf16 %v11926_v57, %v11925_v20  ;;  %v4375_v32 = vpop.permute.xlu1 %4374  ;;  %v3646_v57 = vsel %vm503_vm4, %v13318_v60, 0.0  ;;  %v3643_v60 = vsel %vm503_vm4, %v13316_v4, 0.0 }
0x1db8   :  { %v4373_v29 = vpop.permute.xlu0 %4372 }
0x1db9   :  { %11500 = vmatprep.subr.bf16.mxu1 %v11499_v17 }
0x1dba   :  { %11502 = vmatpush3.bf16.msra.mxu1 %v11499_v17 }
0x1dbb   :  { %11505 = vmatprep.subr.msk.bf16.mxu1 %vm12678_vm3, %v11503_v37 }
0x1dbf   :  { %v12198_v7 = vpop.eup %12197 }
0x1dc0   :  { %v12200_v62 = vpop.eup %12199  ;;  %10832 = vmatprep.mubr.msk.f32.mxu1 %vm503_vm4, %v12198_v7  ;;  %v4275_v58 = vsel %vm503_vm4, %v12198_v7, 0.0 }
0x1dc1   :  { %10833 = vmatmul.mubr.msk.f32.vlgmr.msra.gmra.mrb[48].mxu1 %vm503_vm4, %v12200_v62  ;;  %v4278_v8 = vsel %vm503_vm4, %v12200_v62, 0.0 }
0x1dc2   :  { %10839 = vmatprep.mubr.msk.f32.mxu1 %vm413_vm2, %v4373_v29 }
0x1dc3   :  { %11508 = vmatpush3.bf16.xpose.msk.msra.mxu1 %vm12678_vm3, %v11503_v37 }
0x1dc4   :  { %11522 = vmatprep.subr.bf16.mxu1 %v13013_v21 }
0x1dca   :  { %10840 = vmatmul.mubr.msk.f32.vlgmr.msra.gmra.mrb[50].mxu1 %vm413_vm2, %v4375_v32 }
0x1dcb   :  { %11524 = vmatpush3.bf16.msra.mxu1 %v13013_v21  ;;  %v3239_v21 = vsel %vm503_vm4, %v13255_v44, 0.0  ;;  %v4073_v44 = vsel %vm503_vm4, %v13375_v38, 0.0  ;;  %v3874_v38 = vsel %vm503_vm4, %v13349_v6, 0.0 }
0x1dcc   :  { %11526 = vmatprep.subr.bf16.mxu1 %v13021_v10 }
0x1dcf   :  { %11528 = vmatpush3.bf16.msra.mxu1 %v13021_v10  ;;  %v3242_v10 = vsel %vm503_vm4, %v13257_v49, 0.0  ;;  %v4076_v49 = vsel %vm503_vm4, %v13377_v22, 0.0 }
0x1e94   :  { %v13413_v59 = vpop.f32.mrb[48].mxu1 }
0x1e95   :  { %v13415_v53 = vpop.f32.mrb[49].mxu1 }
0x1e9d   :  { %v10841_v61 = vpop.f32.mrb[50].mxu1 }
0x1e9e   :  { %v4464_v19 = vmul.f32 0.35355338, %v10841_v61  ;;  %v4454_v3 = vpop.f32.mrb[51].mxu1 }
0x1e9f   :  { %v4463_v55 = vmul.f32 0.35355338, %v4454_v3 }
0x1ea0   :  { %v4468_v16 = vsel %vm503_vm4, %v4464_v19, -inf }
0x1ea1   :  { %4469 = vmax.xlane.f32.xlu1 %v4468_v16  ;;  %v4465_v15 = vsel %vm503_vm4, %v4463_v55, -inf }
0x1ea2   :  { %4466 = vmax.xlane.f32.xlu0 %v4465_v15 }
0x1ea5   :  { %3240 = vadd.xlane.f32.xlu1 %v3239_v21 }
0x1ea9   :  { %3243 = vadd.xlane.f32.xlu1 %v3242_v10 }
0x1ead   :  { %3442 = vadd.xlane.f32.xlu1 %v3441_v11 }
0x1eb1   :  { %3445 = vadd.xlane.f32.xlu1 %v3444_v24 }
0x1eb5   :  { %3647 = vadd.xlane.f32.xlu1 %v3646_v57  ;;  %v3037_v57 = vsel %vm503_vm4, %v13245_v36, 0.0 }
0x1eb8   :  { %11933 = vrot.lane.b32.xlu0 %v13227_v40, %s12481_s16  ;;  %v3040_v40 = vsel %vm503_vm4, %v13247_v23, 0.0 }
0x1eb9   :  { %4074 = vadd.xlane.f32.xlu1 %v4073_v44 }
0x1ebd   :  { %4077 = vadd.xlane.f32.xlu1 %v4076_v49 }
0x1ec1   :  { %4276 = vadd.xlane.f32.xlu1 %v4275_v58 }
0x1ec5   :  { %4279 = vadd.xlane.f32.xlu1 %v4278_v8 }
0x1ed7   :  { %3644 = vadd.xlane.f32.xlu0 %v3643_v60 }
0x1edb   :  { %3041 = vadd.xlane.f32.xlu0 %v3040_v40 }
0x1edf   :  { %3875 = vadd.xlane.f32.xlu0 %v3874_v38 }
0x1f2e   :  { %v4470_v22 = vpop.xlane.xlu1 %4469 }
0x1f2f   :  { %v4472_v20 = vsub.f32 %v4464_v19, %v4470_v22  ;;  %v4467_v17 = vpop.xlane.xlu0 %4466 }
0x1f30   :  { %v4471_v37 = vsub.f32 %v4463_v55, %v4467_v17 }
0x1f31   :  { %v4475_v7 = vmul.f32 1.442695, %v4472_v20 }
0x1f32   :  { %v4473_v29 = vmul.f32 1.442695, %v4471_v37  ;;  %v3241_v62 = vpop.xlane.xlu1 %3240 }
0x1f33   :  { %v11934_v32 = vpop.permute.xlu0 %11933 }
0x1f34   :  { %12201 = vpow2.f32 %v4473_v29  ;;  %v11936_v61 = vunpack.i.h.bf16 %v11934_v32  ;;  %v11935_v4 = vunpack.i.l.bf16 %v11934_v32 }
0x1f35   :  { %12203 = vpow2.f32 %v4475_v7 }
0x1f36   :  { %v3244_v3 = vpop.xlane.xlu1 %3243  ;;  %v11509_v16 = vpack.c.bf16 %v11936_v61, %v11935_v4 }
0x1f37   :  { %12205 = vrcp.f32 %v3244_v3 }
0x1f38   :  { %11510 = vmatprep.subr.bf16.mxu0 %v11509_v16  ;;  %12207 = vrcp.f32 %v3241_v62 }
0x1f39   :  { %11512 = vmatpush3.bf16.msra.mxu0 %v11509_v16 }
0x1f3a   :  { %11514 = vmatprep.subr.bf16.mxu0 %v12931_v41  ;;  %v3443_v23 = vpop.xlane.xlu1 %3442 }
0x1f3b   :  { %12209 = vrcp.f32 %v3443_v23 }
0x1f3e   :  { %v12202_v6 = vpop.eup %12201  ;;  %v3446_v21 = vpop.xlane.xlu1 %3445 }
0x1f3f   :  { %v12204_v19 = vpop.eup %12203  ;;  %10846 = vmatprep.mubr.msk.f32.mxu0 %vm503_vm4, %v12202_v6  ;;  %v4477_v55 = vsel %vm503_vm4, %v12202_v6, 0.0  ;;  %12211 = vrcp.f32 %v3446_v21 }
0x1f40   :  { %4478 = vadd.xlane.f32.xlu1 %v4477_v55  ;;  %10847 = vmatmul.mubr.msk.f32.vlgmr.msra.gmra.mrb[46].mxu0 %vm503_vm4, %v12204_v19  ;;  %v4480_v11 = vsel %vm503_vm4, %v12204_v19, 0.0 }
0x1f41   :  { %v12206_v15 = vpop.eup %12205  ;;  %11516 = vmatpush3.bf16.msra.mxu0 %v12931_v41  ;;  %v3871_v41 = vsel %vm503_vm4, %v13347_v47, 0.0 }
0x1f42   :  { %v3335_v10 = vmul.f32 %v12206_v15, %v13271_v43  ;;  %11518 = vmatprep.subr.bf16.mxu0 %v12943_v27  ;;  %v3648_v24 = vpop.xlane.xlu1 %3647  ;;  %v12208_v49 = vpop.eup %12207 }
0x1f43   :  { %12213 = vrcp.f32 %v3648_v24 }
0x1f44   :  { %4481 = vadd.xlane.f32.xlu1 %v4480_v11  ;;  %3744 = vrot.lane.b32.xlu0 %v3335_v10, %s12482_s17 }
0x1f45   :  { %11520 = vmatpush3.bf16.msra.mxu0 %v12943_v27  ;;  %v3334_v27 = vmul.f32 %v12208_v49, %v13273_v0  ;;  %v12210_v8 = vpop.eup %12209 }
0x1f46   :  { %11530 = vmatprep.subr.bf16.mxu0 %v13062_v51  ;;  %v4075_v43 = vpop.xlane.xlu1 %4074  ;;  %v3536_v60 = vmul.f32 %v12210_v8, %v13299_v2 }
0x1f48   :  { %3038 = vadd.xlane.f32.xlu1 %v3037_v57 }
0x1f49   :  { %v12212_v40 = vpop.eup %12211 }
0x1f4a   :  { %v4078_v44 = vpop.xlane.xlu1 %4077  ;;  %v3537_v47 = vmul.f32 %v12212_v40, %v13297_v48 }
0x1f4b   :  { %12215 = vrcp.f32 %v4078_v44 }
0x1f4c   :  { %3872 = vadd.xlane.f32.xlu1 %v3871_v41 }
0x1f4d   :  { %v12214_v38 = vpop.eup %12213 }
0x1f4e   :  { %v4277_v58 = vpop.xlane.xlu1 %4276  ;;  %v3739_v0 = vmul.f32 %v12214_v38, %v13335_v18 }
0x1f52   :  { %v4280_v36 = vpop.xlane.xlu1 %4279 }
0x1f53   :  { %12217 = vrcp.f32 %v4280_v36 }
0x1f55   :  { %v12216_v20 = vpop.eup %12215 }
0x1f56   :  { %v4169_v2 = vmul.f32 %v12216_v20, %v13387_v1 }
0x1f5d   :  { %3742 = vrot.lane.b32.xlu1 %v3334_v27, %s12482_s17  ;;  %v12218_v17 = vpop.eup %12217 }
0x1f5e   :  { %v4371_v48 = vmul.f32 %v12218_v17, %v13413_v59 }
0x1f61   :  { %3750 = vrot.lane.b32.xlu1 %v3536_v60, %s12483_s18 }
0x1f64   :  { %v3645_v22 = vpop.xlane.xlu0 %3644 }
0x1f65   :  { %12219 = vrcp.f32 %v3645_v22  ;;  %3752 = vrot.lane.b32.xlu1 %v3537_v47, %s12483_s18 }
0x1f66   :  { %12221 = vrcp.f32 %v4075_v43 }
0x1f67   :  { %12223 = vrcp.f32 %v4277_v58 }
0x1f68   :  { %v3042_v59 = vpop.xlane.xlu0 %3041 }
0x1f69   :  { %3760 = vrot.lane.b32.xlu1 %v3739_v0, %s12484_s27 }
0x1f6c   :  { %v3876_v3 = vpop.xlane.xlu0 %3875 }
0x1f6d   :  { %4578 = vrot.lane.b32.xlu1 %v4169_v2, %s12482_s17 }
0x1f6f   :  { %v12220_v37 = vpop.eup %12219 }
0x1f70   :  { %v3738_v7 = vmul.f32 %v12220_v37, %v13337_v30  ;;  %v12222_v29 = vpop.eup %12221 }
0x1f71   :  { %4586 = vrot.lane.b32.xlu1 %v4371_v48, %s12483_s18  ;;  %v4168_v18 = vmul.f32 %v12222_v29, %v13389_v39  ;;  %v12224_v62 = vpop.eup %12223 }
0x1f72   :  { %3758 = vrot.lane.b32.xlu0 %v3738_v7, %s12484_s27  ;;  %v4370_v1 = vmul.f32 %v12224_v62, %v13415_v53 }
0x1f76   :  { %4576 = vrot.lane.b32.xlu0 %v4168_v18, %s12482_s17 }
0x1f7a   :  { %4584 = vrot.lane.b32.xlu0 %v4370_v1, %s12483_s18 }
0x1fb6   :  { %v3745_v6 = vpop.permute.xlu0 %3744 }
0x1fcd   :  { %v4479_v32 = vpop.xlane.xlu1 %4478 }
0x1fd1   :  { %v4482_v61 = vpop.xlane.xlu1 %4481 }
0x1fd5   :  { %v3039_v4 = vpop.xlane.xlu1 %3038 }
0x1fd6   :  { %12225 = vrcp.f32 %v3039_v4 }
0x1fd7   :  { %12227 = vrcp.f32 %v3042_v59 }
0x1fd8   :  { %12229 = vrcp.f32 %v4482_v61 }
0x1fd9   :  { %v3873_v30 = vpop.xlane.xlu1 %3872  ;;  %12231 = vrcp.f32 %v4479_v32 }
0x1fda   :  { %12233 = vrcp.f32 %v3873_v30 }
0x1fdb   :  { %12235 = vrcp.f32 %v3876_v3 }
0x1fdd   :  { %v3743_v16 = vpop.permute.xlu1 %3742 }
0x1fe0   :  { %v12226_v23 = vpop.eup %12225 }
0x1fe1   :  { %v3132_v39 = vmul.f32 %v12226_v23, %v13269_v28  ;;  %v3751_v19 = vpop.permute.xlu1 %3750  ;;  %v12228_v55 = vpop.eup %12227 }
0x1fe2   :  { %v3133_v24 = vmul.f32 %v12228_v55, %v13267_v63  ;;  %v12230_v63 = vpop.eup %12229 }
0x1fe3   :  { %v3764_v15 = vsel %vm413_vm2, %v3132_v39, %v3743_v16  ;;  %v12232_v49 = vpop.eup %12231 }
0x1fe4   :  { %v3766_v53 = vsel %vm503_vm4, %v3764_v15, %v3751_v19  ;;  %v3759_v21 = vpop.permute.xlu0 %3758  ;;  %v3765_v57 = vsel %vm413_vm2, %v3133_v24, %v3745_v6  ;;  %v12234_v8 = vpop.eup %12233 }
0x1fe5   :  { %v3768_v10 = vsel %vm1247_vm5, %v3766_v53, %v3759_v21  ;;  %v3753_v11 = vpop.permute.xlu1 %3752  ;;  %v12236_v36 = vpop.eup %12235  ;;  %v3966_v40 = vmul.f32 %v12234_v8, %v13361_v52 }
0x1fe6   :  { %10857 = vmatprep.mubr.msk.f32.mxu0 %vm138_vm1, %v3768_v10  ;;  %v3767_v41 = vsel %vm503_vm4, %v3765_v57, %v3753_v11  ;;  %v3967_v47 = vmul.f32 %v12236_v36, %v13359_v31  ;;  %v12444_v31 = vld [vmem:[%s14609_s2 + $0xd8] ss:$0 sm:$0xff] }
0x1fe9   :  { %v3761_v43 = vpop.permute.xlu1 %3760 }
0x1fea   :  { %v3769_v28 = vsel %vm1247_vm5, %v3767_v41, %v3761_v43 }
0x1feb   :  { %10858 = vmatmul.mubr.msk.f32.vlgmr.msra.gmra.mrb[48].mxu0 %vm138_vm1, %v3769_v28 }
0x1fec   :  { %11532 = vmatpush3.bf16.msra.mxu0 %v13062_v51 }
0x1fed   :  { %11534 = vmatprep.subr.bf16.mxu0 %v13072_v12 }
0x1ff0   :  { %11536 = vmatpush3.bf16.msra.mxu0 %v13072_v12  ;;  %v4579_v12 = vpop.permute.xlu1 %4578 }
0x1ff1   :  { %11538 = vmatprep.subr.bf16.mxu0 %v13082_v35  ;;  %v4599_v20 = vsel %vm413_vm2, %v3967_v47, %v4579_v12 }
0x1ff4   :  { %11540 = vmatpush3.bf16.msra.mxu0 %v13082_v35  ;;  %v4577_v35 = vpop.permute.xlu0 %4576  ;;  %v4587_v60 = vpop.permute.xlu1 %4586 }
0x1ff5   :  { %11542 = vmatprep.subr.bf16.mxu0 %v13092_v26  ;;  %v4598_v38 = vsel %vm413_vm2, %v3966_v40, %v4577_v35  ;;  %v4601_v17 = vsel %vm503_vm4, %v4599_v20, %v4587_v60  ;;  %v12446_v60 = vld [vmem:[%s14609_s2 + $0xe8] ss:$0 sm:$0xff] }
0x1ff8   :  { %11544 = vmatpush3.bf16.msra.mxu0 %v13092_v26  ;;  %v4585_v26 = vpop.permute.xlu0 %4584 }
0x1ff9   :  { %v4600_v0 = vsel %vm503_vm4, %v4598_v38, %v4585_v26 }
0x2013   :  { %v10848_v44 = vpop.f32.mrb[46].mxu0 }
0x2014   :  { %v4573_v58 = vmul.f32 %v12230_v63, %v10848_v44  ;;  %v4561_v27 = vpop.f32.mrb[47].mxu0 }
0x2015   :  { %v4572_v51 = vmul.f32 %v12232_v49, %v4561_v27 }
0x2016   :  { %4594 = vrot.lane.b32.xlu1 %v4573_v58, %s12484_s27 }
0x2017   :  { %4592 = vrot.lane.b32.xlu0 %v4572_v51, %s12484_s27  ;;  %v12445_v51 = vld [vmem:[%s14609_s2 + $0xe0] ss:$0 sm:$0xff] }
0x2088   :  { %v4595_v22 = vpop.permute.xlu1 %4594 }
0x2089   :  { %v4593_v2 = vpop.permute.xlu0 %4592  ;;  %v4603_v48 = vsel %vm1247_vm5, %v4601_v17, %v4595_v22 }
0x208a   :  { %v4602_v37 = vsel %vm1247_vm5, %v4600_v0, %v4593_v2 }
0x208b   :  { %10860 = vmatprep.mubr.msk.f32.mxu0 %vm138_vm1, %v4602_v37 }
0x208c   :  { %10861 = vmatmul.mubr.msk.f32.gmra.mrb[50].mxu0 %vm138_vm1, %v4603_v48 }
0x20be   :  { %v10859_v52 = vpop.f32.mrb[48].mxu0 }
0x20bf   :  { %v4688_v7 = vadd.f32 %v12444_v31, %v10859_v52  ;;  %v4682_v29 = vpop.f32.mrb[49].mxu0 }
0x20c0   :  { %v4683_v18 = vadd.f32 %v12444_v31, %v4682_v29 }
0x20c1   :  { %v13509_v62 = vadd.f32 %v4688_v7, %v13134_v46 }
0x20c2   :  { %v13512_v1 = vadd.f32 %v4683_v18, %v13139_v13 }
0x20c3   :  { %v4708_v32 = vsel %vm138_vm1, %v13509_v62, 0.0 }
0x20c4   :  { %4709 = vadd.xlane.f32.xlu1 %v4708_v32  ;;  %v4705_v61 = vsel %vm138_vm1, %v13512_v1, 0.0 }
0x20c5   :  { %4706 = vadd.xlane.f32.xlu0 %v4705_v61 }
0x2151   :  { %v4710_v46 = vpop.xlane.xlu1 %4709 }
0x2152   :  { %v4707_v4 = vpop.xlane.xlu0 %4706  ;;  %v4718_v6 = vmul.f32 0.03125, %v4710_v46 }
0x2153   :  { %v4717_v59 = vmul.f32 0.03125, %v4707_v4 }
0x2154   :  { %v4722_v15 = vsub.f32 %v13509_v62, %v4718_v6 }
0x2155   :  { %v4721_v30 = vsub.f32 %v13512_v1, %v4717_v59 }
0x2156   :  { %v4726_v11 = vmul.f32 %v4722_v15, %v4722_v15 }
0x2157   :  { %v4725_v3 = vmul.f32 %v4721_v30, %v4721_v30 }
0x2158   :  { %v4732_v24 = vsel %vm138_vm1, %v4726_v11, 0.0 }
0x2159   :  { %v4729_v16 = vsel %vm138_vm1, %v4725_v3, 0.0 }
0x215a   :  { %4730 = vadd.xlane.f32.xlu1 %v4729_v16 }
0x215f   :  { %v10862_v23 = vpop.f32.mrb[50].mxu0 }
0x2160   :  { %v4692_v13 = vpop.f32.mrb[51].mxu0  ;;  %v4698_v39 = vadd.f32 %v12444_v31, %v10862_v23  ;;  %v12447_v23 = vld [vmem:[%s14609_s2 + $0x110] ss:$0 sm:$0xff] }
0x2161   :  { %v4693_v19 = vadd.f32 %v12444_v31, %v4692_v13 }
0x2162   :  { %v13525_v53 = vadd.f32 %v4698_v39, %v13153_v54 }
0x2163   :  { %v13521_v55 = vadd.f32 %v4693_v19, %v13155_v33 }
0x2164   :  { %v4714_v10 = vsel %vm138_vm1, %v13525_v53, 0.0 }
0x2165   :  { %v4711_v21 = vsel %vm138_vm1, %v13521_v55, 0.0 }
0x2166   :  { %4712 = vadd.xlane.f32.xlu0 %v4711_v21 }
0x216a   :  { %4715 = vadd.xlane.f32.xlu0 %v4714_v10 }
0x216e   :  { %4733 = vadd.xlane.f32.xlu0 %v4732_v24 }
0x21e7   :  { %v4731_v57 = vpop.xlane.xlu1 %4730 }
0x21e8   :  { %v4741_v33 = vmul.f32 0.03125, %v4731_v57 }
0x21ea   :  { %v4745_v41 = vadd.f32 1e-05, %v4741_v33 }
0x21ec   :  { %12237 = vrsqrt.f32 %v4745_v41 }
0x21f3   :  { %v4713_v43 = vpop.xlane.xlu0 %4712 }
0x21f4   :  { %v4719_v28 = vmul.f32 0.03125, %v4713_v43 }
0x21f6   :  { %v12238_v54 = vpop.eup %12237  ;;  %v4723_v63 = vsub.f32 %v13521_v55, %v4719_v28 }
0x21f7   :  { %v4716_v44 = vpop.xlane.xlu0 %4715  ;;  %v4753_v49 = vmul.f32 %v12238_v54, %v4721_v30 }
0x21f8   :  { %v4720_v58 = vmul.f32 0.03125, %v4716_v44  ;;  %v4727_v27 = vmul.f32 %v4723_v63, %v4723_v63 }
0x21f9   :  { %v4757_v12 = vmul.f32 %v12445_v51, %v4753_v49 }
0x21fa   :  { %v4724_v35 = vsub.f32 %v13525_v53, %v4720_v58  ;;  %v4735_v8 = vsel %vm138_vm1, %v4727_v27, 0.0 }
0x21fb   :  { %4736 = vadd.xlane.f32.xlu1 %v4735_v8  ;;  %v4734_v36 = vpop.xlane.xlu0 %4733  ;;  %v4761_v26 = vadd.f32 %v12446_v60, %v4757_v12 }
0x21fc   :  { %v4742_v40 = vmul.f32 0.03125, %v4734_v36  ;;  %v4728_v47 = vmul.f32 %v4724_v35, %v4724_v35 }
0x21fd   :  { %10871 = vmatprep.mubr.msk.f32.mxu1 %vm138_vm1, %v4761_v26 }
0x21fe   :  { %v4746_v38 = vadd.f32 1e-05, %v4742_v40  ;;  %v4738_v22 = vsel %vm138_vm1, %v4728_v47, 0.0 }
0x21ff   :  { %4739 = vadd.xlane.f32.xlu0 %v4738_v22 }
0x2200   :  { %12239 = vrsqrt.f32 %v4746_v38 }
0x220a   :  { %v12240_v0 = vpop.eup %12239 }
0x220b   :  { %v4754_v20 = vmul.f32 %v12240_v0, %v4722_v15 }
0x220d   :  { %v4758_v2 = vmul.f32 %v12445_v51, %v4754_v20 }
0x220f   :  { %v4762_v17 = vadd.f32 %v12446_v60, %v4758_v2 }
0x2211   :  { %10872 = vmatmul.mubr.msk.f32.vlgmr.msra.gmra.mrb[52].mxu1 %vm138_vm1, %v4762_v17 }
0x2288   :  { %v4737_v37 = vpop.xlane.xlu1 %4736 }
0x2289   :  { %v4743_v48 = vmul.f32 0.03125, %v4737_v37 }
0x228b   :  { %v4747_v52 = vadd.f32 1e-05, %v4743_v48 }
0x228c   :  { %v4740_v31 = vpop.xlane.xlu0 %4739 }
0x228d   :  { %12241 = vrsqrt.f32 %v4747_v52  ;;  %v4744_v7 = vmul.f32 0.03125, %v4740_v31 }
0x228f   :  { %v4748_v29 = vadd.f32 1e-05, %v4744_v7 }
0x2291   :  { %12243 = vrsqrt.f32 %v4748_v29 }
0x2297   :  { %v12242_v18 = vpop.eup %12241 }
0x2298   :  { %v4755_v32 = vmul.f32 %v12242_v18, %v4723_v63 }
0x229a   :  { %v4759_v61 = vmul.f32 %v12445_v51, %v4755_v32 }
0x229b   :  { %v12244_v4 = vpop.eup %12243 }
0x229c   :  { %v4763_v59 = vadd.f32 %v12446_v60, %v4759_v61  ;;  %v4756_v30 = vmul.f32 %v12244_v4, %v4724_v35 }
0x229e   :  { %10874 = vmatprep.mubr.msk.f32.mxu1 %vm138_vm1, %v4763_v59  ;;  %v4760_v3 = vmul.f32 %v12445_v51, %v4756_v30  ;;  %v9807_v30 = vld [vmem:[%s14609_s2 + $0x158] ss:$0 sm:$0xff] }
0x22a0   :  { %v4764_v16 = vadd.f32 %v12446_v60, %v4760_v3 }
0x22a2   :  { %10875 = vmatmul.mubr.msk.f32.gmra.mrb[54].mxu1 %vm138_vm1, %v4764_v16 }
0x22e4   :  { %v10873_v46 = vpop.f32.mrb[52].mxu1 }
0x22e5   :  { %v4849_v13 = vadd.f32 %v12447_v23, %v10873_v46  ;;  %v4843_v6 = vpop.f32.mrb[53].mxu1 }
0x22e6   :  { %v4844_v39 = vadd.f32 %v12447_v23, %v4843_v6 }
0x22e7   :  { %v4863_v19 = vmul.f32 %v4849_v13, %v4849_v13 }
0x22e8   :  { %v4862_v15 = vmul.f32 %v4844_v39, %v4844_v39 }
0x22e9   :  { %v4867_v21 = vmul.f32 %v4863_v19, %v4849_v13 }
0x22ea   :  { %v4866_v10 = vmul.f32 %v4862_v15, %v4844_v39 }
0x22eb   :  { %v4871_v11 = vmul.f32 0.044715, %v4867_v21 }
0x22ec   :  { %v4870_v24 = vmul.f32 0.044715, %v4866_v10 }
0x22ed   :  { %v4875_v57 = vadd.f32 %v4871_v11, %v4849_v13 }
0x22ee   :  { %v4874_v33 = vadd.f32 %v4870_v24, %v4844_v39 }
0x22ef   :  { %v4879_v41 = vmul.f32 0.7978846, %v4875_v57 }
0x22f0   :  { %v4878_v43 = vmul.f32 0.7978846, %v4874_v33 }
0x22f1   :  { %12245 = vtanh.f32 %v4879_v41 }
0x22f2   :  { %12247 = vtanh.f32 %v4878_v43 }
0x22fb   :  { %v12246_v28 = vpop.eup %12245 }
0x22fc   :  { %v12248_v54 = vpop.eup %12247  ;;  %v4887_v63 = vadd.f32 1.0, %v12246_v28 }
0x22fd   :  { %v4886_v44 = vadd.f32 1.0, %v12248_v54 }
0x22fe   :  { %v4891_v49 = vmul.f32 0.5, %v4887_v63 }
0x22ff   :  { %v4890_v58 = vmul.f32 0.5, %v4886_v44 }
0x2300   :  { %v4895_v51 = vmul.f32 %v4891_v49, %v4849_v13 }
0x2301   :  { %v4894_v27 = vmul.f32 %v4890_v58, %v4844_v39 }
0x2303   :  { %10893 = vmatprep.mubr.msk.f32.mxu0 %vm32_vm0, %v4894_v27 }
0x2304   :  { %10894 = vmatmul.mubr.msk.f32.vlgmr.msra.gmra.mrb[52].mxu0 %vm32_vm0, %v4895_v51 }
0x2375   :  { %v10876_v12 = vpop.f32.mrb[54].mxu1 }
0x2376   :  { %v4859_v35 = vadd.f32 %v12447_v23, %v10876_v12  ;;  %v4853_v8 = vpop.f32.mrb[55].mxu1 }
0x2377   :  { %v4854_v36 = vadd.f32 %v12447_v23, %v4853_v8 }
0x2378   :  { %v4865_v60 = vmul.f32 %v4859_v35, %v4859_v35 }
0x2379   :  { %v4864_v26 = vmul.f32 %v4854_v36, %v4854_v36 }
0x237a   :  { %v4869_v40 = vmul.f32 %v4865_v60, %v4859_v35 }
0x237b   :  { %v4868_v47 = vmul.f32 %v4864_v26, %v4854_v36 }
0x237c   :  { %v4873_v38 = vmul.f32 0.044715, %v4869_v40 }
0x237d   :  { %v4872_v22 = vmul.f32 0.044715, %v4868_v47 }
0x237e   :  { %v4877_v0 = vadd.f32 %v4873_v38, %v4859_v35 }
0x237f   :  { %v4876_v20 = vadd.f32 %v4872_v22, %v4854_v36 }
0x2380   :  { %v4881_v2 = vmul.f32 0.7978846, %v4877_v0 }
0x2381   :  { %v4880_v17 = vmul.f32 0.7978846, %v4876_v20  ;;  %v9808_v20 = vld [vmem:[%s14609_s2 + $0x160] ss:$0 sm:$0xff] }
0x2382   :  { %12249 = vtanh.f32 %v4881_v2 }
0x2383   :  { %12251 = vtanh.f32 %v4880_v17 }
0x238c   :  { %v12250_v37 = vpop.eup %12249 }
0x238d   :  { %v12252_v48 = vpop.eup %12251  ;;  %v4889_v52 = vadd.f32 1.0, %v12250_v37  ;;  %v9809_v37 = vld [vmem:[%s14609_s2 + $0x168] ss:$0 sm:$0xff] }
0x238e   :  { %v4888_v31 = vadd.f32 1.0, %v12252_v48 }
0x238f   :  { %v4893_v7 = vmul.f32 0.5, %v4889_v52 }
0x2390   :  { %v4892_v29 = vmul.f32 0.5, %v4888_v31  ;;  %v5064_v31 = vld [vmem:[%s14609_s2 + $0x178] sm:$0xff] }
0x2391   :  { %v4897_v32 = vmul.f32 %v4893_v7, %v4859_v35 }
0x2392   :  { %v4896_v18 = vmul.f32 %v4892_v29, %v4854_v36 }
0x2394   :  { %10896 = vmatprep.mubr.msk.f32.mxu0 %vm32_vm0, %v4896_v18  ;;  %v5063_v18 = vld [vmem:[%s14609_s2 + $0x170] sm:$0xff] }
0x2395   :  { %10897 = vmatmul.mubr.msk.f32.gmra.mrb[54].mxu0 %vm32_vm0, %v4897_v32 }
0x23d7   :  { %v10895_v61 = vpop.f32.mrb[52].mxu0 }
0x23d8   :  { %v4996_v4 = vadd.f32 %v10895_v61, %v13509_v62  ;;  %v4976_v59 = vpop.f32.mrb[53].mxu0 }
0x23d9   :  { %v4995_v3 = vadd.f32 %v4976_v59, %v13512_v1 }
0x23da   :  { %v5000_v16 = vadd.f32 %v9807_v30, %v4996_v4 }
0x23db   :  { %v4999_v46 = vadd.f32 %v9807_v30, %v4995_v3 }
0x23dc   :  { %v5006_v23 = vsel %vm138_vm1, %v5000_v16, 0.0 }
0x23dd   :  { %5007 = vadd.xlane.f32.xlu0 %v5006_v23  ;;  %v5003_v13 = vsel %vm138_vm1, %v4999_v46, 0.0 }
0x23de   :  { %5004 = vadd.xlane.f32.xlu1 %v5003_v13 }
0x2468   :  { %v10898_v6 = vpop.f32.mrb[54].mxu0 }
0x2469   :  { %v4998_v39 = vadd.f32 %v10898_v6, %v13525_v53  ;;  %v4986_v19 = vpop.f32.mrb[55].mxu0 }
0x246a   :  { %v4997_v62 = vadd.f32 %v4986_v19, %v13521_v55  ;;  %v5008_v15 = vpop.xlane.xlu0 %5007 }
0x246b   :  { %v5002_v21 = vadd.f32 %v9807_v30, %v4998_v39  ;;  %v5016_v10 = vmul.f32 0.03125, %v5008_v15  ;;  %v5005_v11 = vpop.xlane.xlu1 %5004 }
0x246c   :  { %v5001_v24 = vadd.f32 %v9807_v30, %v4997_v62  ;;  %v5015_v1 = vmul.f32 0.03125, %v5005_v11 }
0x246d   :  { %v5020_v57 = vsub.f32 %v5000_v16, %v5016_v10  ;;  %v5012_v33 = vsel %vm138_vm1, %v5002_v21, 0.0 }
0x246e   :  { %v5019_v41 = vsub.f32 %v4999_v46, %v5015_v1  ;;  %5013 = vadd.xlane.f32.xlu0 %v5012_v33  ;;  %v5009_v43 = vsel %vm138_vm1, %v5001_v24, 0.0 }
0x246f   :  { %5010 = vadd.xlane.f32.xlu1 %v5009_v43  ;;  %v5024_v28 = vmul.f32 %v5020_v57, %v5020_v57 }
0x2470   :  { %v5023_v54 = vmul.f32 %v5019_v41, %v5019_v41 }
0x2471   :  { %v5030_v53 = vsel %vm138_vm1, %v5024_v28, 0.0 }
0x2472   :  { %5031 = vadd.xlane.f32.xlu0 %v5030_v53  ;;  %v5027_v55 = vsel %vm138_vm1, %v5023_v54, 0.0 }
0x2473   :  { %5028 = vadd.xlane.f32.xlu1 %v5027_v55 }
0x24fb   :  { %v5014_v63 = vpop.xlane.xlu0 %5013 }
0x24fc   :  { %v5018_v44 = vmul.f32 0.03125, %v5014_v63  ;;  %v5011_v49 = vpop.xlane.xlu1 %5010 }
0x24fd   :  { %v5017_v58 = vmul.f32 0.03125, %v5011_v49 }
0x24fe   :  { %v5022_v27 = vsub.f32 %v5002_v21, %v5018_v44 }
0x24ff   :  { %v5021_v51 = vsub.f32 %v5001_v24, %v5017_v58  ;;  %v5032_v12 = vpop.xlane.xlu0 %5031 }
0x2500   :  { %v5040_v35 = vmul.f32 0.03125, %v5032_v12  ;;  %v5029_v8 = vpop.xlane.xlu1 %5028  ;;  %v5026_v36 = vmul.f32 %v5022_v27, %v5022_v27  ;;  %v5140_v12 = vld [vmem:[%s14609_s2 + $0x198] sm:$0xff] }
0x2501   :  { %v5039_v60 = vmul.f32 0.03125, %v5029_v8  ;;  %v5025_v26 = vmul.f32 %v5021_v51, %v5021_v51  ;;  %v5141_v8 = vld [vmem:[%s14609_s2 + $0x1a0] sm:$0xff] }
0x2502   :  { %v5044_v40 = vadd.f32 1e-05, %v5040_v35  ;;  %v5036_v47 = vsel %vm138_vm1, %v5026_v36, 0.0  ;;  %v5142_v36 = vld [vmem:[%s14609_s2 + $0x1a8] sm:$0xff] }
0x2503   :  { %v5043_v38 = vadd.f32 1e-05, %v5039_v60  ;;  %5037 = vadd.xlane.f32.xlu0 %v5036_v47  ;;  %v5033_v22 = vsel %vm138_vm1, %v5025_v26, 0.0  ;;  %v11549_v60 = vpack.c.bf16 %v5142_v36, %v5141_v8 }
0x2504   :  { %12253 = vrsqrt.f32 %v5044_v40  ;;  %5034 = vadd.xlane.f32.xlu1 %v5033_v22 }
0x2505   :  { %12255 = vrsqrt.f32 %v5043_v38 }
0x250e   :  { %v12254_v0 = vpop.eup %12253 }
0x250f   :  { %v12256_v2 = vpop.eup %12255  ;;  %v5052_v17 = vmul.f32 %v12254_v0, %v5020_v57 }
0x2510   :  { %v5051_v48 = vmul.f32 %v12256_v2, %v5019_v41 }
0x2511   :  { %v5056_v52 = vmul.f32 %v9808_v20, %v5052_v17 }
0x2512   :  { %v5055_v7 = vmul.f32 %v9808_v20, %v5051_v48 }
0x2513   :  { %v5060_v29 = vadd.f32 %v9809_v37, %v5056_v52 }
0x2514   :  { %v5059_v32 = vadd.f32 %v9809_v37, %v5055_v7 }
0x2515   :  { %v13580_v61 = vadd.f32 %v5064_v31, %v5060_v29 }
0x2516   :  { %v13582_v4 = vadd.f32 %v5063_v18, %v5059_v32 }
0x2517   :  { %v5074_v59 = vsel %vm138_vm1, %v13580_v61, 0.0 }
0x2518   :  { %5075 = vadd.xlane.f32.xlu0 %v5074_v59  ;;  %v5071_v30 = vsel %vm138_vm1, %v13582_v4, 0.0  ;;  %v9882_v59 = vld [vmem:[%s14609_s2 + $0x180] ss:$0 sm:$0xff] }
0x2519   :  { %5072 = vadd.xlane.f32.xlu1 %v5071_v30 }
0x2590   :  { %v5038_v3 = vpop.xlane.xlu0 %5037 }
0x2591   :  { %v5042_v16 = vmul.f32 0.03125, %v5038_v3  ;;  %v5035_v46 = vpop.xlane.xlu1 %5034 }
0x2592   :  { %v5041_v23 = vmul.f32 0.03125, %v5035_v46  ;;  %v9883_v46 = vld [vmem:[%s14609_s2 + $0x188] ss:$0 sm:$0xff] }
0x2593   :  { %v5046_v13 = vadd.f32 1e-05, %v5042_v16 }
0x2594   :  { %v5045_v6 = vadd.f32 1e-05, %v5041_v23 }
0x2595   :  { %12257 = vrsqrt.f32 %v5046_v13 }
0x2596   :  { %12259 = vrsqrt.f32 %v5045_v6 }
0x259f   :  { %v12258_v39 = vpop.eup %12257 }
0x25a0   :  { %v12260_v19 = vpop.eup %12259  ;;  %v5054_v62 = vmul.f32 %v12258_v39, %v5022_v27 }
0x25a1   :  { %v5053_v15 = vmul.f32 %v12260_v19, %v5021_v51  ;;  %v5139_v51 = vld [vmem:[%s14609_s2 + $0x190] sm:$0xff]  ;;  %v5144_v19 = vld [vmem:[%s14609_s2 + $0x1b8] sm:$0xff] }
0x25a2   :  { %v5058_v21 = vmul.f32 %v9808_v20, %v5054_v62  ;;  %v11545_v35 = vpack.c.bf16 %v5140_v12, %v5139_v51  ;;  %v5145_v62 = vld [vmem:[%s14609_s2 + $0x1c0] sm:$0xff]  ;;  %v13645_v12 = vld [vmem:[%s14609_s2 + $0x1b0] ss:$0 sm:$0xff] }
0x25a3   :  { %v5057_v10 = vmul.f32 %v9808_v20, %v5053_v15  ;;  %v11553_v15 = vpack.c.bf16 %v5145_v62, %v5144_v19 }
0x25a4   :  { %v5062_v11 = vadd.f32 %v9809_v37, %v5058_v21  ;;  %11546 = vmatprep.subr.bf16.mxu1 %v11545_v35  ;;  %v5146_v21 = vld [vmem:[%s14609_s2 + $0x1c8] sm:$0xff] }
0x25a5   :  { %v5076_v24 = vpop.xlane.xlu0 %5075  ;;  %v5061_v1 = vadd.f32 %v9809_v37, %v5057_v10  ;;  %11548 = vmatpush3.bf16.msra.mxu1 %v11545_v35  ;;  %v5147_v10 = vld [vmem:[%s14609_s2 + $0x1d0] sm:$0xff] }
0x25a6   :  { %v5084_v57 = vmul.f32 0.03125, %v5076_v24  ;;  %v5073_v33 = vpop.xlane.xlu1 %5072  ;;  %v13588_v41 = vadd.f32 %v5064_v31, %v5062_v11  ;;  %11550 = vmatprep.subr.bf16.mxu1 %v11549_v60  ;;  %v11557_v11 = vpack.c.bf16 %v5147_v10, %v5146_v21 }
0x25a7   :  { %v5083_v43 = vmul.f32 0.03125, %v5073_v33  ;;  %v13590_v28 = vadd.f32 %v5063_v18, %v5061_v1 }
0x25a8   :  { %v5088_v54 = vsub.f32 %v13580_v61, %v5084_v57  ;;  %v5080_v53 = vsel %vm138_vm1, %v13588_v41, 0.0 }
0x25a9   :  { %v5087_v55 = vsub.f32 %v13582_v4, %v5083_v43  ;;  %5081 = vadd.xlane.f32.xlu0 %v5080_v53  ;;  %v5077_v63 = vsel %vm138_vm1, %v13590_v28, 0.0  ;;  %11552 = vmatpush3.bf16.msra.mxu1 %v11549_v60 }
0x25aa   :  { %5078 = vadd.xlane.f32.xlu1 %v5077_v63  ;;  %v5092_v44 = vmul.f32 %v5088_v54, %v5088_v54  ;;  %11554 = vmatprep.subr.bf16.mxu1 %v11553_v15 }
0x25ab   :  { %v5091_v49 = vmul.f32 %v5087_v55, %v5087_v55 }
0x25ac   :  { %v5098_v58 = vsel %vm138_vm1, %v5092_v44, 0.0 }
0x25ad   :  { %5099 = vadd.xlane.f32.xlu0 %v5098_v58  ;;  %v5095_v27 = vsel %vm138_vm1, %v5091_v49, 0.0 }
0x25ae   :  { %5096 = vadd.xlane.f32.xlu1 %v5095_v27 }
0x2636   :  { %v5082_v26 = vpop.xlane.xlu0 %5081 }
0x2637   :  { %v5086_v40 = vmul.f32 0.03125, %v5082_v26  ;;  %v5079_v47 = vpop.xlane.xlu1 %5078 }
0x2638   :  { %v5085_v38 = vmul.f32 0.03125, %v5079_v47 }
0x2639   :  { %v5090_v22 = vsub.f32 %v13588_v41, %v5086_v40  ;;  %v9889_v40 = vld [vmem:[%s14609_s2 + $0x1d8] ss:$0 sm:$0xff] }
0x263a   :  { %v5089_v0 = vsub.f32 %v13590_v28, %v5085_v38  ;;  %v5100_v20 = vpop.xlane.xlu0 %5099 }
0x263b   :  { %v5108_v2 = vmul.f32 0.03125, %v5100_v20  ;;  %v5097_v17 = vpop.xlane.xlu1 %5096  ;;  %v5094_v37 = vmul.f32 %v5090_v22, %v5090_v22 }
0x263c   :  { %v5107_v48 = vmul.f32 0.03125, %v5097_v17  ;;  %v5093_v52 = vmul.f32 %v5089_v0, %v5089_v0 }
0x263d   :  { %v5112_v31 = vadd.f32 1e-05, %v5108_v2  ;;  %v5104_v7 = vsel %vm138_vm1, %v5094_v37, 0.0 }
0x263e   :  { %v5111_v29 = vadd.f32 1e-05, %v5107_v48  ;;  %5105 = vadd.xlane.f32.xlu0 %v5104_v7  ;;  %v5101_v18 = vsel %vm138_vm1, %v5093_v52, 0.0 }
0x263f   :  { %12261 = vrsqrt.f32 %v5112_v31  ;;  %5102 = vadd.xlane.f32.xlu1 %v5101_v18 }
0x2640   :  { %12263 = vrsqrt.f32 %v5111_v29 }
0x2649   :  { %v12262_v32 = vpop.eup %12261 }
0x264a   :  { %v12264_v30 = vpop.eup %12263  ;;  %v5120_v3 = vmul.f32 %v12262_v32, %v5088_v54 }
0x264b   :  { %v5119_v16 = vmul.f32 %v12264_v30, %v5087_v55 }
0x264c   :  { %v5128_v23 = vmul.f32 %v9882_v59, %v5120_v3 }
0x264d   :  { %v5127_v13 = vmul.f32 %v9882_v59, %v5119_v16 }
0x264e   :  { %v5136_v39 = vadd.f32 %v9883_v46, %v5128_v23 }
0x264f   :  { %v5135_v6 = vadd.f32 %v9883_v46, %v5127_v13 }
0x2651   :  { %10907 = vmatprep.mubr.msk.f32.mxu1 %vm138_vm1, %v5135_v6 }
0x2652   :  { %10908 = vmatmul.mubr.msk.f32.vlgmr.msra.gmra.mrb[56].mxu1 %vm138_vm1, %v5136_v39 }
0x2653   :  { %11556 = vmatpush3.bf16.msra.mxu1 %v11553_v15 }
0x2654   :  { %11558 = vmatprep.subr.bf16.mxu1 %v11557_v11 }
0x2657   :  { %11560 = vmatpush3.bf16.msra.mxu1 %v11557_v11 }
0x26cb   :  { %v5106_v24 = vpop.xlane.xlu0 %5105 }
0x26cc   :  { %v5110_v1 = vmul.f32 0.03125, %v5106_v24  ;;  %v5103_v57 = vpop.xlane.xlu1 %5102 }
0x26cd   :  { %v5109_v33 = vmul.f32 0.03125, %v5103_v57 }
0x26ce   :  { %v5114_v43 = vadd.f32 1e-05, %v5110_v1 }
0x26cf   :  { %v5113_v54 = vadd.f32 1e-05, %v5109_v33 }
0x26d0   :  { %12265 = vrsqrt.f32 %v5114_v43 }
0x26d1   :  { %12267 = vrsqrt.f32 %v5113_v54 }
0x26da   :  { %v12266_v53 = vpop.eup %12265 }
0x26db   :  { %v12268_v55 = vpop.eup %12267  ;;  %v5122_v63 = vmul.f32 %v12266_v53, %v5090_v22 }
0x26dc   :  { %v5121_v44 = vmul.f32 %v12268_v55, %v5089_v0 }
0x26dd   :  { %v5130_v49 = vmul.f32 %v9882_v59, %v5122_v63 }
0x26de   :  { %v5129_v58 = vmul.f32 %v9882_v59, %v5121_v44 }
0x26df   :  { %v5138_v51 = vadd.f32 %v9883_v46, %v5130_v49 }
0x26e0   :  { %v5137_v27 = vadd.f32 %v9883_v46, %v5129_v58  ;;  %v5344_v46 = vlaneseq }
0x26e2   :  { %10910 = vmatprep.mubr.msk.f32.mxu1 %vm138_vm1, %v5137_v27  ;;  %v5345_v23 = vshrl.u32 %v5344_v46, 7 }
0x26e3   :  { %10911 = vmatmul.mubr.msk.f32.gmra.mrb[58].mxu1 %vm138_vm1, %v5138_v51 }
0x26e4   :  { %10921 = vmatprep.mubr.msk.f32.mxu1 %vm138_vm1, %v5135_v6  ;;  %v5346_v13 = vadd.s32 8, %v5345_v23  ;;  %v5348_v6 = vand.u32 127, %v5344_v46 }
0x26e6   :  { %vm13686_vm6 = vcmp.le.s32.totalorder %v5348_v6, %v5346_v13  ;;  %vm13690_vm7 = vcmp.le.s32.totalorder %v5348_v6, %v5345_v23 }
0x26e7   :  { %10922 = vmatmul.mubr.msk.f32.vlgmr.msra.gmra.mrb[60].mxu1 %vm138_vm1, %v5136_v39 }
0x26e8   :  { %10924 = vmatprep.mubr.msk.f32.mxu1 %vm138_vm1, %v5137_v27 }
0x26eb   :  { %10925 = vmatmul.mubr.msk.f32.gmra.mrb[62].mxu1 %vm138_vm1, %v5138_v51 }
0x2725   :  { %v10909_v35 = vpop.f32.mrb[56].mxu1 }
0x2726   :  { %v5236_v8 = vpop.f32.mrb[57].mxu1  ;;  %v13668_v31 = vadd.f32 %v10909_v35, %v13645_v12 }
0x2727   :  { %v13648_v36 = vadd.f32 %v13645_v12, %v5236_v8 }
0x2729   :  { %5551 = vrot.lane.b32.xlu0 %v13648_v36, %s12475_s9  ;;  %10931 = vmatprep.mubr.msk.f32.mxu0 %vm413_vm2, %v13648_v36 }
0x279b   :  { %v5552_v18 = vpop.permute.xlu0 %5551 }
0x27b6   :  { %v13654_v60 = vpop.f32.mrb[58].mxu1 }
0x27b7   :  { %v13656_v26 = vpop.f32.mrb[59].mxu1 }
0x27ba   :  { %v10923_v47 = vpop.f32.mrb[60].mxu1 }
0x27bb   :  { %v5331_v38 = vadd.f32 %v10923_v47, %v9889_v40  ;;  %v5325_v22 = vpop.f32.mrb[61].mxu1 }
0x27bc   :  { %v5326_v0 = vadd.f32 %v9889_v40, %v5325_v22 }
0x27be   :  { %v10926_v20 = vpop.f32.mrb[62].mxu1  ;;  %v13661_v2 = vpack.i.bf16 %v5331_v38, %v5326_v0  ;;  %v11561_v17 = vpack.c.bf16 %v5331_v38, %v5326_v0 }
0x27bf   :  { %v5341_v37 = vadd.f32 %v10926_v20, %v9889_v40  ;;  %v5335_v48 = vpop.f32.mrb[63].mxu1 }
0x27c0   :  { %v5336_v52 = vadd.f32 %v9889_v40, %v5335_v48  ;;  %11938 = vrot.lane.b32.xlu1 %v13661_v2, %s12475_s9  ;;  %11563 = vmatprep.subr.msk.bf16.mxu0 %vm12678_vm3, %v11561_v17 }
0x27c1   :  { %11566 = vmatpush3.bf16.xpose.msk.msra.mxu0 %vm12678_vm3, %v11561_v17 }
0x27c2   :  { %v13672_v7 = vpack.i.bf16 %v5341_v37, %v5336_v52  ;;  %v13674_v29 = vpack.c.bf16 %v5341_v37, %v5336_v52 }
0x27c4   :  { %5553 = vrot.lane.b32.xlu1 %v13668_v31, %s12475_s9 }
0x27c8   :  { %10932 = vmatmul.mubr.msk.f32.vlgmr.msra.gmra.mrb[56].mxu0 %vm413_vm2, %v13668_v31 }
0x27c9   :  { %10945 = vmatprep.mubr.msk.f32.mxu0 %vm413_vm2, %v5552_v18 }
0x2832   :  { %v11939_v32 = vpop.permute.xlu1 %11938 }
0x2833   :  { %v11941_v59 = vunpack.i.h.bf16 %v11939_v32  ;;  %v11940_v30 = vunpack.i.l.bf16 %v11939_v32 }
0x2835   :  { %v11571_v3 = vpack.c.bf16 %v11941_v59, %v11940_v30 }
0x2836   :  { %v5554_v16 = vpop.permute.xlu1 %5553 }
0x2837   :  { %11573 = vmatprep.subr.msk.bf16.mxu0 %vm12678_vm3, %v11571_v3 }
0x2838   :  { %11576 = vmatpush3.bf16.xpose.msk.msra.mxu0 %vm12678_vm3, %v11571_v3 }
0x283f   :  { %10946 = vmatmul.mubr.msk.f32.vlgmr.msra.gmra.mrb[58].mxu0 %vm413_vm2, %v5554_v16 }
0x289b   :  { %v10933_v39 = vpop.f32.mrb[56].mxu0 }
0x289c   :  { %v5437_v62 = vmul.f32 0.35355338, %v10933_v39  ;;  %v5427_v15 = vpop.f32.mrb[57].mxu0 }
0x289d   :  { %v5436_v10 = vmul.f32 0.35355338, %v5427_v15 }
0x289e   :  { %v5441_v11 = vsel %vm13686_vm6, %v5437_v62, -1e+30 }
0x289f   :  { %v5440_v24 = vsel %vm13690_vm7, %v5436_v10, -1e+30  ;;  %v5445_v1 = vsel %vm503_vm4, %v5441_v11, -inf }
0x28a0   :  { %5446 = vmax.xlane.f32.xlu0 %v5445_v1  ;;  %v5442_v57 = vsel %vm503_vm4, %v5440_v24, -inf }
0x28a1   :  { %5443 = vmax.xlane.f32.xlu1 %v5442_v57 }
0x2912   :  { %v10947_v33 = vpop.f32.mrb[58].mxu0 }
0x2913   :  { %v5643_v43 = vmul.f32 0.35355338, %v10947_v33  ;;  %v5633_v54 = vpop.f32.mrb[59].mxu0 }
0x2914   :  { %v5642_v53 = vmul.f32 0.35355338, %v5633_v54 }
0x2915   :  { %v5645_v55 = vsel %vm13686_vm6, %v5643_v43, -1e+30 }
0x2916   :  { %v5644_v63 = vsel %vm13690_vm7, %v5642_v53, -1e+30  ;;  %v5649_v44 = vsel %vm503_vm4, %v5645_v55, -inf }
0x2917   :  { %5650 = vmax.xlane.f32.xlu1 %v5649_v44  ;;  %v5646_v49 = vsel %vm503_vm4, %v5644_v63, -inf }
0x2918   :  { %5647 = vmax.xlane.f32.xlu0 %v5646_v49 }
0x2928   :  { %11948 = vrot.lane.b32.xlu1 %v13661_v2, %s12478_s14 }
0x292c   :  { %11953 = vrot.lane.b32.xlu1 %v13661_v2, %s12477_s13 }
0x292d   :  { %v5447_v8 = vpop.xlane.xlu0 %5446 }
0x292e   :  { %v5444_v58 = vpop.xlane.xlu1 %5443  ;;  %11943 = vrot.lane.b32.xlu0 %v13661_v2, %s12476_s12  ;;  %v5449_v40 = vsub.f32 %v5441_v11, %v5447_v8 }
0x292f   :  { %v5448_v27 = vsub.f32 %v5440_v24, %v5444_v58 }
0x2930   :  { %5757 = vrot.lane.b32.xlu1 %v13668_v31, %s12477_s13  ;;  %v5452_v47 = vmul.f32 1.442695, %v5449_v40 }
0x2931   :  { %v5450_v51 = vmul.f32 1.442695, %v5448_v27 }
0x2932   :  { %5755 = vrot.lane.b32.xlu0 %v13648_v36, %s12477_s13 }
0x2933   :  { %12269 = vpow2.f32 %v5450_v51 }
0x2934   :  { %12271 = vpow2.f32 %v5452_v47 }
0x293d   :  { %v13716_v35 = vpop.eup %12269 }
0x293e   :  { %10938 = vmatprep.mubr.msk.f32.mxu1 %vm503_vm4, %v13716_v35  ;;  %v13720_v6 = vpop.eup %12271 }
0x29a4   :  { %v5651_v38 = vpop.xlane.xlu1 %5650 }
0x29a5   :  { %v5653_v22 = vsub.f32 %v5645_v55, %v5651_v38  ;;  %v5648_v0 = vpop.xlane.xlu0 %5647 }
0x29a6   :  { %v5652_v20 = vsub.f32 %v5644_v63, %v5648_v0 }
0x29a7   :  { %v5656_v17 = vmul.f32 1.442695, %v5653_v22 }
0x29a8   :  { %v5654_v37 = vmul.f32 1.442695, %v5652_v20  ;;  %v11949_v48 = vpop.permute.xlu1 %11948 }
0x29a9   :  { %v11951_v52 = vunpack.i.h.bf16 %v11949_v48  ;;  %v11944_v18 = vpop.permute.xlu0 %11943  ;;  %v11950_v32 = vunpack.i.l.bf16 %v11949_v48 }
0x29aa   :  { %12273 = vpow2.f32 %v5654_v37  ;;  %v11946_v59 = vunpack.i.h.bf16 %v11944_v18  ;;  %v11945_v30 = vunpack.i.l.bf16 %v11944_v18 }
0x29ab   :  { %12275 = vpow2.f32 %v5656_v17  ;;  %v11577_v13 = vpack.c.bf16 %v11951_v52, %v11950_v32 }
0x29ac   :  { %v11954_v3 = vpop.permute.xlu1 %11953  ;;  %v11567_v16 = vpack.c.bf16 %v11946_v59, %v11945_v30 }
0x29ad   :  { %v11956_v46 = vunpack.i.h.bf16 %v11954_v3  ;;  %v11955_v23 = vunpack.i.l.bf16 %v11954_v3  ;;  %v5756_v10 = vpop.permute.xlu0 %5755 }
0x29ae   :  { %11568 = vmatprep.subr.bf16.mxu1 %v11567_v16 }
0x29af   :  { %11570 = vmatpush3.bf16.msra.mxu1 %v11567_v16  ;;  %v11581_v39 = vpack.c.bf16 %v11956_v46, %v11955_v23 }
0x29b0   :  { %11578 = vmatprep.subr.bf16.mxu1 %v11577_v13  ;;  %v5758_v11 = vpop.permute.xlu1 %5757 }
0x29b2   :  { %10939 = vmatmul.mubr.msk.f32.vlgmr.msra.gmra.mrb[64].mxu1 %vm503_vm4, %v13720_v6 }
0x29b3   :  { %11580 = vmatpush3.bf16.msra.mxu1 %v11577_v13 }
0x29b4   :  { %v13724_v62 = vpop.eup %12273  ;;  %11583 = vmatprep.subr.msk.bf16.mxu1 %vm12678_vm3, %v11581_v39 }
0x29b5   :  { %v13728_v15 = vpop.eup %12275  ;;  %10952 = vmatprep.mubr.msk.f32.mxu1 %vm503_vm4, %v13724_v62 }
0x29b6   :  { %10953 = vmatmul.mubr.msk.f32.vlgmr.msra.gmra.mrb[66].mxu1 %vm503_vm4, %v13728_v15 }
0x29b7   :  { %10959 = vmatprep.mubr.msk.f32.mxu1 %vm413_vm2, %v5756_v10 }
0x29bc   :  { %11586 = vmatpush3.bf16.xpose.msk.msra.mxu1 %vm12678_vm3, %v11581_v39 }
0x29c3   :  { %10960 = vmatmul.mubr.msk.f32.vlgmr.msra.gmra.mrb[68].mxu1 %vm413_vm2, %v5758_v11 }
0x2a85   :  { %v13738_v24 = vpop.f32.mrb[64].mxu1 }
0x2a86   :  { %v13740_v1 = vpop.f32.mrb[65].mxu1 }
0x2a89   :  { %v13742_v57 = vpop.f32.mrb[66].mxu1 }
0x2a8a   :  { %v13744_v33 = vpop.f32.mrb[67].mxu1 }
0x2a96   :  { %v10961_v43 = vpop.f32.mrb[68].mxu1 }
0x2a97   :  { %v5847_v54 = vmul.f32 0.35355338, %v10961_v43  ;;  %v5837_v53 = vpop.f32.mrb[69].mxu1 }
0x2a98   :  { %v5846_v55 = vmul.f32 0.35355338, %v5837_v53  ;;  %v13796_v53 = vadd.f32 %v13654_v60, %v13645_v12 }
0x2a99   :  { %v5849_v63 = vsel %vm13686_vm6, %v5847_v54, -1e+30  ;;  %v13790_v54 = vadd.f32 %v13645_v12, %v13656_v26 }
0x2a9a   :  { %v5848_v44 = vsel %vm13690_vm7, %v5846_v55, -1e+30  ;;  %v5853_v49 = vsel %vm503_vm4, %v5849_v63, -inf }
0x2a9b   :  { %5854 = vmax.xlane.f32.xlu1 %v5853_v49  ;;  %v5850_v58 = vsel %vm503_vm4, %v5848_v44, -inf }
0x2a9c   :  { %5851 = vmax.xlane.f32.xlu0 %v5850_v58 }
0x2aac   :  { %11963 = vrot.lane.b32.xlu1 %v13661_v2, %s12479_s0 }
0x2ab0   :  { %5961 = vrot.lane.b32.xlu1 %v13668_v31, %s12479_s0 }
0x2ab2   :  { %11958 = vrot.lane.b32.xlu0 %v13661_v2, %s12480_s15 }
0x2ab6   :  { %5959 = vrot.lane.b32.xlu0 %v13648_v36, %s12479_s0 }
0x2b28   :  { %v5855_v27 = vpop.xlane.xlu1 %5854 }
0x2b29   :  { %v5857_v51 = vsub.f32 %v5849_v63, %v5855_v27  ;;  %v5852_v8 = vpop.xlane.xlu0 %5851 }
0x2b2a   :  { %v5856_v40 = vsub.f32 %v5848_v44, %v5852_v8 }
0x2b2b   :  { %v5860_v47 = vmul.f32 1.442695, %v5857_v51 }
0x2b2c   :  { %v5858_v38 = vmul.f32 1.442695, %v5856_v40  ;;  %v11964_v22 = vpop.permute.xlu1 %11963 }
0x2b2d   :  { %v11966_v0 = vunpack.i.h.bf16 %v11964_v22  ;;  %v11959_v20 = vpop.permute.xlu0 %11958  ;;  %v11965_v17 = vunpack.i.l.bf16 %v11964_v22 }
0x2b2e   :  { %12277 = vpow2.f32 %v5858_v38  ;;  %v11961_v37 = vunpack.i.h.bf16 %v11959_v20  ;;  %v11960_v48 = vunpack.i.l.bf16 %v11959_v20 }
0x2b2f   :  { %12279 = vpow2.f32 %v5860_v47  ;;  %v11591_v52 = vpack.c.bf16 %v11966_v0, %v11965_v17 }
0x2b30   :  { %v11587_v31 = vpack.c.bf16 %v11961_v37, %v11960_v48  ;;  %v5962_v59 = vpop.permute.xlu1 %5961 }
0x2b31   :  { %v5960_v32 = vpop.permute.xlu0 %5959 }
0x2b32   :  { %11588 = vmatprep.subr.bf16.mxu0 %v11587_v31 }
0x2b33   :  { %11590 = vmatpush3.bf16.msra.mxu0 %v11587_v31 }
0x2b34   :  { %11593 = vmatprep.subr.msk.bf16.mxu0 %vm12678_vm3, %v11591_v52 }
0x2b38   :  { %v13762_v36 = vpop.eup %12277 }
0x2b39   :  { %v13764_v18 = vpop.eup %12279  ;;  %10966 = vmatprep.mubr.msk.f32.mxu0 %vm503_vm4, %v13762_v36 }
0x2b3a   :  { %10967 = vmatmul.mubr.msk.f32.vlgmr.msra.gmra.mrb[60].mxu0 %vm503_vm4, %v13764_v18 }
0x2b3b   :  { %10973 = vmatprep.mubr.msk.f32.mxu0 %vm413_vm2, %v5960_v32 }
0x2b3c   :  { %11596 = vmatpush3.bf16.xpose.msk.msra.mxu0 %vm12678_vm3, %v11591_v52 }
0x2b43   :  { %10974 = vmatmul.mubr.msk.f32.vlgmr.msra.gmra.mrb[62].mxu0 %vm413_vm2, %v5962_v59 }
0x2c0d   :  { %v13774_v30 = vpop.f32.mrb[60].mxu0 }
0x2c0e   :  { %v13776_v3 = vpop.f32.mrb[61].mxu0 }
0x2c16   :  { %v10975_v16 = vpop.f32.mrb[62].mxu0 }
0x2c17   :  { %v6051_v46 = vmul.f32 0.35355338, %v10975_v16  ;;  %v6041_v23 = vpop.f32.mrb[63].mxu0 }
0x2c18   :  { %v6050_v13 = vmul.f32 0.35355338, %v6041_v23 }
0x2c19   :  { %v6053_v39 = vsel %vm13686_vm6, %v6051_v46, -1e+30 }
0x2c1a   :  { %v6052_v10 = vsel %vm13690_vm7, %v6050_v13, -1e+30  ;;  %v6057_v11 = vsel %vm503_vm4, %v6053_v39, -inf }
0x2c1b   :  { %6058 = vmax.xlane.f32.xlu1 %v6057_v11  ;;  %v6054_v43 = vsel %vm503_vm4, %v6052_v10, -inf }
0x2c1c   :  { %6055 = vmax.xlane.f32.xlu0 %v6054_v43 }
0x2c32   :  { %11968 = vrot.lane.b32.xlu0 %v13661_v2, %s12481_s16 }
0x2c36   :  { %11978 = vrot.lane.b32.xlu0 %v13672_v7, %s12475_s9 }
0x2c3a   :  { %6393 = vrot.lane.b32.xlu0 %v13790_v54, %s12475_s9 }
0x2c3e   :  { %6395 = vrot.lane.b32.xlu0 %v13796_v53, %s12475_s9 }
0x2ca8   :  { %v6059_v55 = vpop.xlane.xlu1 %6058 }
0x2ca9   :  { %v6061_v63 = vsub.f32 %v6053_v39, %v6059_v55  ;;  %v6056_v2 = vpop.xlane.xlu0 %6055 }
0x2caa   :  { %v6060_v44 = vsub.f32 %v6052_v10, %v6056_v2 }
0x2cab   :  { %v6064_v49 = vmul.f32 1.442695, %v6061_v63 }
0x2cac   :  { %v6062_v58 = vmul.f32 1.442695, %v6060_v44 }
0x2cad   :  { %v11969_v27 = vpop.permute.xlu0 %11968 }
0x2cae   :  { %12281 = vpow2.f32 %v6062_v58  ;;  %v11971_v26 = vunpack.i.h.bf16 %v11969_v27  ;;  %v11970_v51 = vunpack.i.l.bf16 %v11969_v27 }
0x2caf   :  { %12283 = vpow2.f32 %v6064_v49 }
0x2cb0   :  { %v11597_v8 = vpack.c.bf16 %v11971_v26, %v11970_v51 }
0x2cb1   :  { %v11979_v59 = vpop.permute.xlu0 %11978 }
0x2cb2   :  { %11598 = vmatprep.subr.bf16.mxu1 %v11597_v8  ;;  %v11981_v13 = vunpack.i.h.bf16 %v11979_v59  ;;  %v11980_v10 = vunpack.i.l.bf16 %v11979_v59 }
0x2cb3   :  { %11600 = vmatpush3.bf16.msra.mxu1 %v11597_v8 }
0x2cb4   :  { %11603 = vmatprep.subr.msk.bf16.mxu1 %vm12678_vm3, %v13674_v29  ;;  %v11611_v63 = vpack.c.bf16 %v11981_v13, %v11980_v10 }
0x2cb5   :  { %v6394_v49 = vpop.permute.xlu0 %6393 }
0x2cb8   :  { %v13803_v12 = vpop.eup %12281 }
0x2cb9   :  { %v13805_v60 = vpop.eup %12283  ;;  %10980 = vmatprep.mubr.msk.f32.mxu1 %vm503_vm4, %v13803_v12  ;;  %v6396_v58 = vpop.permute.xlu0 %6395 }
0x2cba   :  { %10981 = vmatmul.mubr.msk.f32.vlgmr.msra.gmra.mrb[70].mxu1 %vm503_vm4, %v13805_v60 }
0x2cbb   :  { %10987 = vmatprep.mubr.msk.f32.mxu1 %vm413_vm2, %v13790_v54 }
0x2cbc   :  { %11606 = vmatpush3.bf16.xpose.msk.msra.mxu1 %vm12678_vm3, %v13674_v29 }
0x2cc3   :  { %10988 = vmatmul.mubr.msk.f32.vlgmr.msra.gmra.mrb[72].mxu1 %vm413_vm2, %v13796_v53 }
0x2d8d   :  { %v13818_v40 = vpop.f32.mrb[70].mxu1 }
0x2d8e   :  { %v13820_v47 = vpop.f32.mrb[71].mxu1 }
0x2d96   :  { %v10989_v38 = vpop.f32.mrb[72].mxu1 }
0x2d97   :  { %v6281_v22 = vmul.f32 0.35355338, %v10989_v38  ;;  %v6271_v0 = vpop.f32.mrb[73].mxu1 }
0x2d98   :  { %v6280_v20 = vmul.f32 0.35355338, %v6271_v0 }
0x2d99   :  { %v6283_v17 = vsel %vm13686_vm6, %v6281_v22, -1e+30 }
0x2d9a   :  { %v6287_v37 = vsel %vm503_vm4, %v6283_v17, -inf  ;;  %v6282_v48 = vsel %vm13690_vm7, %v6280_v20, -1e+30 }
0x2d9b   :  { %6288 = vmax.xlane.f32.xlu1 %v6287_v37  ;;  %v6284_v29 = vsel %vm503_vm4, %v6282_v48, -inf }
0x2d9f   :  { %6285 = vmax.xlane.f32.xlu1 %v6284_v29 }
0x2db0   :  { %11973 = vrot.lane.b32.xlu1 %v13672_v7, %s12476_s12 }
0x2db4   :  { %11988 = vrot.lane.b32.xlu1 %v13672_v7, %s12477_s13 }
0x2e28   :  { %v6289_v31 = vpop.xlane.xlu1 %6288 }
0x2e29   :  { %v6291_v52 = vsub.f32 %v6283_v17, %v6289_v31 }
0x2e2b   :  { %v6294_v46 = vmul.f32 1.442695, %v6291_v52 }
0x2e2c   :  { %v6286_v32 = vpop.xlane.xlu1 %6285 }
0x2e2d   :  { %v6290_v16 = vsub.f32 %v6282_v48, %v6286_v32 }
0x2e2f   :  { %v6292_v23 = vmul.f32 1.442695, %v6290_v16 }
0x2e30   :  { %v11974_v39 = vpop.permute.xlu1 %11973 }
0x2e31   :  { %12285 = vpow2.f32 %v6292_v23  ;;  %v11976_v11 = vunpack.i.h.bf16 %v11974_v39  ;;  %v11975_v43 = vunpack.i.l.bf16 %v11974_v39 }
0x2e32   :  { %12287 = vpow2.f32 %v6294_v46 }
0x2e33   :  { %v11607_v55 = vpack.c.bf16 %v11976_v11, %v11975_v43 }
0x2e34   :  { %v11989_v48 = vpop.permute.xlu1 %11988 }
0x2e35   :  { %11608 = vmatprep.subr.bf16.mxu0 %v11607_v55  ;;  %v11991_v23 = vunpack.i.h.bf16 %v11989_v48  ;;  %v11990_v13 = vunpack.i.l.bf16 %v11989_v48 }
0x2e36   :  { %11610 = vmatpush3.bf16.msra.mxu0 %v11607_v55 }
0x2e37   :  { %11613 = vmatprep.subr.msk.bf16.mxu0 %vm12678_vm3, %v11611_v63  ;;  %v11621_v43 = vpack.c.bf16 %v11991_v23, %v11990_v13 }
0x2e3b   :  { %v13834_v2 = vpop.eup %12285 }
0x2e3c   :  { %v13836_v44 = vpop.eup %12287  ;;  %10994 = vmatprep.mubr.msk.f32.mxu0 %vm503_vm4, %v13834_v2 }
0x2e3d   :  { %10995 = vmatmul.mubr.msk.f32.vlgmr.msra.gmra.mrb[64].mxu0 %vm503_vm4, %v13836_v44 }
0x2e3e   :  { %11001 = vmatprep.mubr.msk.f32.mxu0 %vm413_vm2, %v6394_v49 }
0x2e3f   :  { %11616 = vmatpush3.bf16.xpose.msk.msra.mxu0 %vm12678_vm3, %v11611_v63 }
0x2e46   :  { %11002 = vmatmul.mubr.msk.f32.vlgmr.msra.gmra.mrb[66].mxu0 %vm413_vm2, %v6396_v58 }
0x2f10   :  { %v13846_v27 = vpop.f32.mrb[64].mxu0 }
0x2f11   :  { %v13848_v26 = vpop.f32.mrb[65].mxu0 }
0x2f19   :  { %v11003_v51 = vpop.f32.mrb[66].mxu0 }
0x2f1a   :  { %v6485_v8 = vmul.f32 0.35355338, %v11003_v51  ;;  %v6475_v38 = vpop.f32.mrb[67].mxu0 }
0x2f1b   :  { %v6484_v22 = vmul.f32 0.35355338, %v6475_v38 }
0x2f1c   :  { %v6487_v0 = vsel %vm13686_vm6, %v6485_v8, -1e+30 }
0x2f1d   :  { %v6486_v20 = vsel %vm13690_vm7, %v6484_v22, -1e+30  ;;  %v6491_v17 = vsel %vm503_vm4, %v6487_v0, -inf }
0x2f1e   :  { %6492 = vmax.xlane.f32.xlu0 %v6491_v17  ;;  %v6488_v37 = vsel %vm503_vm4, %v6486_v20, -inf }
0x2f1f   :  { %6489 = vmax.xlane.f32.xlu1 %v6488_v37 }
0x2f30   :  { %6597 = vrot.lane.b32.xlu1 %v13790_v54, %s12477_s13 }
0x2f34   :  { %11983 = vrot.lane.b32.xlu0 %v13672_v7, %s12478_s14  ;;  %11998 = vrot.lane.b32.xlu1 %v13672_v7, %s12479_s0 }
0x2f38   :  { %6599 = vrot.lane.b32.xlu0 %v13796_v53, %s12477_s13 }
0x2fab   :  { %v6493_v29 = vpop.xlane.xlu0 %6492 }
0x2fac   :  { %v6495_v31 = vsub.f32 %v6487_v0, %v6493_v29  ;;  %v6490_v52 = vpop.xlane.xlu1 %6489 }
0x2fad   :  { %v6494_v32 = vsub.f32 %v6486_v20, %v6490_v52  ;;  %v5661_v52 = vsel %vm503_vm4, %v13728_v15, 0.0  ;;  %v5457_v15 = vsel %vm503_vm4, %v13720_v6, 0.0 }
0x2fae   :  { %v6498_v59 = vmul.f32 1.442695, %v6495_v31  ;;  %v5658_v31 = vsel %vm503_vm4, %v13724_v62, 0.0  ;;  %v6066_v62 = vsel %vm503_vm4, %v13803_v12, 0.0 }
0x2faf   :  { %v6496_v16 = vmul.f32 1.442695, %v6494_v32  ;;  %v11984_v46 = vpop.permute.xlu0 %11983  ;;  %v5865_v32 = vsel %vm503_vm4, %v13764_v18, 0.0  ;;  %v5454_v18 = vsel %vm503_vm4, %v13716_v35, 0.0 }
0x2fb0   :  { %v11986_v39 = vunpack.i.h.bf16 %v11984_v46  ;;  %v11985_v10 = vunpack.i.l.bf16 %v11984_v46  ;;  %v6598_v49 = vpop.permute.xlu1 %6597 }
0x2fb1   :  { %12289 = vpow2.f32 %v6496_v16 }
0x2fb2   :  { %12291 = vpow2.f32 %v6498_v59  ;;  %v11617_v11 = vpack.c.bf16 %v11986_v39, %v11985_v10  ;;  %v6069_v59 = vsel %vm503_vm4, %v13805_v60, 0.0 }
0x2fb3   :  { %v6600_v58 = vpop.permute.xlu0 %6599 }
0x2fb4   :  { %11618 = vmatprep.subr.bf16.mxu1 %v11617_v11 }
0x2fb5   :  { %11620 = vmatpush3.bf16.msra.mxu1 %v11617_v11 }
0x2fb6   :  { %11623 = vmatprep.subr.msk.bf16.mxu1 %vm12678_vm3, %v11621_v43 }
0x2fbb   :  { %v13866_v55 = vpop.eup %12289 }
0x2fbc   :  { %v13868_v63 = vpop.eup %12291  ;;  %11008 = vmatprep.mubr.msk.f32.mxu1 %vm503_vm4, %v13866_v55 }
0x2fbd   :  { %11009 = vmatmul.mubr.msk.f32.vlgmr.msra.gmra.mrb[74].mxu1 %vm503_vm4, %v13868_v63 }
0x2fbe   :  { %11626 = vmatpush3.bf16.xpose.msk.msra.mxu1 %vm12678_vm3, %v11621_v43  ;;  %11015 = vmatprep.mubr.msk.f32.mxu1 %vm413_vm2, %v6598_v49 }
0x2fc5   :  { %11016 = vmatmul.mubr.msk.f32.vlgmr.msra.gmra.mrb[76].mxu1 %vm413_vm2, %v6600_v58 }
0x3090   :  { %v13878_v51 = vpop.f32.mrb[74].mxu1 }
0x3091   :  { %v13880_v8 = vpop.f32.mrb[75].mxu1 }
0x3098   :  { %v11017_v38 = vpop.f32.mrb[76].mxu1 }
0x3099   :  { %v6689_v22 = vmul.f32 0.35355338, %v11017_v38  ;;  %v6679_v0 = vpop.f32.mrb[77].mxu1 }
0x309a   :  { %v6688_v20 = vmul.f32 0.35355338, %v6679_v0 }
0x309b   :  { %v6691_v17 = vsel %vm13686_vm6, %v6689_v22, -1e+30 }
0x309c   :  { %v6690_v37 = vsel %vm13690_vm7, %v6688_v20, -1e+30  ;;  %v6695_v48 = vsel %vm503_vm4, %v6691_v17, -inf }
0x309d   :  { %6696 = vmax.xlane.f32.xlu0 %v6695_v48  ;;  %v6692_v29 = vsel %vm503_vm4, %v6690_v37, -inf }
0x309e   :  { %6693 = vmax.xlane.f32.xlu1 %v6692_v29 }
0x30af   :  { %6801 = vrot.lane.b32.xlu1 %v13790_v54, %s12479_s0  ;;  %v5862_v54 = vsel %vm503_vm4, %v13762_v36, 0.0 }
0x30b3   :  { %11993 = vrot.lane.b32.xlu0 %v13672_v7, %s12480_s15 }
0x30b7   :  { %6803 = vrot.lane.b32.xlu0 %v13796_v53, %s12479_s0  ;;  %v11999_v53 = vpop.permute.xlu1 %11998 }
0x30b8   :  { %v12001_v10 = vunpack.i.h.bf16 %v11999_v53  ;;  %v12000_v11 = vunpack.i.l.bf16 %v11999_v53 }
0x30ba   :  { %v11631_v49 = vpack.c.bf16 %v12001_v10, %v12000_v11 }
0x30d3   :  { %5659 = vadd.xlane.f32.xlu1 %v5658_v31 }
0x30d6   :  { %5662 = vadd.xlane.f32.xlu0 %v5661_v52 }
0x30d7   :  { %5866 = vadd.xlane.f32.xlu1 %v5865_v32 }
0x30da   :  { %5863 = vadd.xlane.f32.xlu0 %v5862_v54 }
0x30db   :  { %6070 = vadd.xlane.f32.xlu1 %v6069_v59 }
0x30de   :  { %6067 = vadd.xlane.f32.xlu0 %v6066_v62 }
0x30df   :  { %5458 = vadd.xlane.f32.xlu1 %v5457_v15 }
0x30e2   :  { %5455 = vadd.xlane.f32.xlu0 %v5454_v18 }
0x312a   :  { %v6697_v16 = vpop.xlane.xlu0 %6696 }
0x312b   :  { %v6699_v36 = vsub.f32 %v6691_v17, %v6697_v16  ;;  %v6694_v46 = vpop.xlane.xlu1 %6693 }
0x312c   :  { %v6698_v23 = vsub.f32 %v6690_v37, %v6694_v46 }
0x312d   :  { %v6702_v13 = vmul.f32 1.442695, %v6699_v36 }
0x312e   :  { %v6700_v60 = vmul.f32 1.442695, %v6698_v23  ;;  %v11994_v39 = vpop.permute.xlu0 %11993 }
0x312f   :  { %v11996_v12 = vunpack.i.h.bf16 %v11994_v39  ;;  %v11995_v43 = vunpack.i.l.bf16 %v11994_v39  ;;  %v6802_v38 = vpop.permute.xlu1 %6801 }
0x3130   :  { %12293 = vpow2.f32 %v6700_v60 }
0x3131   :  { %12295 = vpow2.f32 %v6702_v13  ;;  %v11627_v6 = vpack.c.bf16 %v11996_v12, %v11995_v43 }
0x3132   :  { %v6804_v22 = vpop.permute.xlu0 %6803 }
0x3133   :  { %11628 = vmatprep.subr.bf16.mxu0 %v11627_v6 }
0x3134   :  { %11630 = vmatpush3.bf16.msra.mxu0 %v11627_v6 }
0x3135   :  { %11633 = vmatprep.subr.msk.bf16.mxu0 %vm12678_vm3, %v11631_v49 }
0x313a   :  { %v12294_v35 = vpop.eup %12293 }
0x313b   :  { %v12296_v58 = vpop.eup %12295  ;;  %11022 = vmatprep.mubr.msk.f32.mxu0 %vm503_vm4, %v12294_v35 }
0x313c   :  { %11023 = vmatmul.mubr.msk.f32.vlgmr.msra.gmra.mrb[68].mxu0 %vm503_vm4, %v12296_v58  ;;  %v6707_v12 = vsel %vm503_vm4, %v12296_v58, 0.0 }
0x313d   :  { %11636 = vmatpush3.bf16.xpose.msk.msra.mxu0 %vm12678_vm3, %v11631_v49  ;;  %11029 = vmatprep.mubr.msk.f32.mxu0 %vm413_vm2, %v6802_v38 }
0x3144   :  { %11030 = vmatmul.mubr.msk.f32.vlgmr.msra.gmra.mrb[70].mxu0 %vm413_vm2, %v6804_v22 }
0x3160   :  { %v5660_v52 = vpop.xlane.xlu1 %5659 }
0x3161   :  { %12297 = vrcp.f32 %v5660_v52 }
0x3163   :  { %v5663_v62 = vpop.xlane.xlu0 %5662 }
0x3164   :  { %v5867_v15 = vpop.xlane.xlu1 %5866  ;;  %12299 = vrcp.f32 %v5663_v62  ;;  %v5152_v62 = vld [vmem:[%s14609_s2 + $0x1f8] sm:$0xff] }
0x3165   :  { %12301 = vrcp.f32 %v5867_v15 }
0x3167   :  { %v5864_v18 = vpop.xlane.xlu0 %5863 }
0x3168   :  { %v6071_v53 = vpop.xlane.xlu1 %6070  ;;  %12303 = vrcp.f32 %v5864_v18 }
0x3169   :  { %12305 = vrcp.f32 %v6071_v53 }
0x316b   :  { %v12298_v16 = vpop.eup %12297  ;;  %v6068_v19 = vpop.xlane.xlu0 %6067 }
0x316c   :  { %v5753_v21 = vmul.f32 %v12298_v16, %v13744_v33  ;;  %12307 = vrcp.f32 %v6068_v19 }
0x316e   :  { %v12300_v36 = vpop.eup %12299 }
0x316f   :  { %v5754_v46 = vmul.f32 %v12300_v36, %v13742_v57  ;;  %v12302_v23 = vpop.eup %12301  ;;  %v5456_v43 = vpop.xlane.xlu0 %5455 }
0x3170   :  { %v5958_v60 = vmul.f32 %v12302_v23, %v13774_v30  ;;  %v6503_v30 = vsel %vm503_vm4, %v13868_v63, 0.0  ;;  %12309 = vrcp.f32 %v5456_v43  ;;  %v5149_v63 = vld [vmem:[%s14609_s2 + $0x1e0] sm:$0xff] }
0x3172   :  { %v12304_v13 = vpop.eup %12303 }
0x3173   :  { %v12306_v39 = vpop.eup %12305  ;;  %v5957_v33 = vmul.f32 %v12304_v13, %v13776_v3  ;;  %v6704_v3 = vsel %vm503_vm4, %v12294_v35, 0.0  ;;  %v5150_v35 = vld [vmem:[%s14609_s2 + $0x1e8] sm:$0xff] }
0x3174   :  { %v6162_v11 = vmul.f32 %v12306_v39, %v13818_v40  ;;  %v5459_v40 = vpop.xlane.xlu1 %5458 }
0x3176   :  { %v12308_v10 = vpop.eup %12307 }
0x3177   :  { %v6161_v57 = vmul.f32 %v12308_v10, %v13820_v47  ;;  %v6296_v10 = vsel %vm503_vm4, %v13834_v2, 0.0 }
0x320f   :  { %v13918_v0 = vpop.f32.mrb[68].mxu0 }
0x3210   :  { %v13920_v20 = vpop.f32.mrb[69].mxu0 }
0x3217   :  { %v11031_v17 = vpop.f32.mrb[70].mxu0 }
0x3218   :  { %v6893_v37 = vmul.f32 0.35355338, %v11031_v17  ;;  %v6883_v48 = vpop.f32.mrb[71].mxu0 }
0x3219   :  { %v6892_v29 = vmul.f32 0.35355338, %v6883_v48 }
0x321a   :  { %v6895_v31 = vsel %vm13686_vm6, %v6893_v37, -1e+30 }
0x321b   :  { %v6894_v32 = vsel %vm13690_vm7, %v6892_v29, -1e+30  ;;  %v6899_v54 = vsel %vm503_vm4, %v6895_v31, -inf }
0x321c   :  { %6900 = vmax.xlane.f32.xlu1 %v6899_v54  ;;  %v6896_v59 = vsel %vm503_vm4, %v6894_v32, -inf  ;;  %v12310_v54 = vpop.eup %12309 }
0x321d   :  { %6897 = vmax.xlane.f32.xlu0 %v6896_v59  ;;  %v5151_v59 = vld [vmem:[%s14609_s2 + $0x1f0] sm:$0xff]  ;;  %v5549_v15 = vmul.f32 %v12310_v54, %v13740_v1  ;;  %v6299_v1 = vsel %vm503_vm4, %v13836_v44, 0.0 }
0x322d   :  { %6165 = vrot.lane.b32.xlu1 %v5753_v21, %s12482_s17 }
0x3231   :  { %6167 = vrot.lane.b32.xlu1 %v5754_v46, %s12482_s17  ;;  %v11645_v46 = vpack.c.bf16 %v5152_v62, %v5151_v59 }
0x3233   :  { %12003 = vrot.lane.b32.xlu0 %v13672_v7, %s12481_s16  ;;  %v6500_v7 = vsel %vm503_vm4, %v13866_v55, 0.0 }
0x3235   :  { %6175 = vrot.lane.b32.xlu1 %v5958_v60, %s12483_s18 }
0x3237   :  { %6173 = vrot.lane.b32.xlu0 %v5957_v33, %s12483_s18 }
0x3239   :  { %6183 = vrot.lane.b32.xlu1 %v6162_v11, %s12484_s27 }
0x323b   :  { %6181 = vrot.lane.b32.xlu0 %v6161_v57, %s12484_s27 }
0x325a   :  { %6501 = vadd.xlane.f32.xlu0 %v6500_v7 }
0x325d   :  { %6504 = vadd.xlane.f32.xlu1 %v6503_v30 }
0x325e   :  { %6705 = vadd.xlane.f32.xlu0 %v6704_v3 }
0x3262   :  { %6708 = vadd.xlane.f32.xlu0 %v6707_v12 }
0x32a9   :  { %v6901_v6 = vpop.xlane.xlu1 %6900 }
0x32aa   :  { %v6903_v47 = vsub.f32 %v6895_v31, %v6901_v6  ;;  %v6898_v49 = vpop.xlane.xlu0 %6897  ;;  %v11641_v31 = vpack.c.bf16 %v5150_v35, %v5149_v63 }
0x32ab   :  { %v6902_v38 = vsub.f32 %v6894_v32, %v6898_v49 }
0x32ac   :  { %v6906_v22 = vmul.f32 1.442695, %v6903_v47 }
0x32ad   :  { %v6904_v55 = vmul.f32 1.442695, %v6902_v38  ;;  %v6166_v17 = vpop.permute.xlu1 %6165 }
0x32ae   :  { %12311 = vpow2.f32 %v6906_v22  ;;  %v12004_v37 = vpop.permute.xlu0 %12003  ;;  %v6187_v19 = vsel %vm413_vm2, %v5549_v15, %v6166_v17 }
0x32af   :  { %12313 = vpow2.f32 %v6904_v55  ;;  %v12006_v58 = vunpack.i.h.bf16 %v12004_v37  ;;  %v12005_v48 = vunpack.i.l.bf16 %v12004_v37  ;;  %v13991_v55 = vld [vmem:[%s14609_s2 + $0x158] ss:$0 sm:$0xff] }
0x32b0   :  { %12315 = vrcp.f32 %v5459_v40 }
0x32b1   :  { %v11637_v29 = vpack.c.bf16 %v12006_v58, %v12005_v48  ;;  %v6168_v32 = vpop.permute.xlu1 %6167 }
0x32b2   :  { %v6174_v52 = vpop.permute.xlu0 %6173 }
0x32b3   :  { %11638 = vmatprep.subr.bf16.mxu1 %v11637_v29  ;;  %v6189_v23 = vsel %vm503_vm4, %v6187_v19, %v6174_v52 }
0x32b4   :  { %11640 = vmatpush3.bf16.msra.mxu1 %v11637_v29 }
0x32b5   :  { %11642 = vmatprep.subr.bf16.mxu1 %v11641_v31  ;;  %v6176_v21 = vpop.permute.xlu1 %6175 }
0x32b6   :  { %v6182_v53 = vpop.permute.xlu0 %6181 }
0x32b7   :  { %v6191_v39 = vsel %vm1247_vm5, %v6189_v23, %v6182_v53 }
0x32b8   :  { %v12312_v18 = vpop.eup %12311 }
0x32b9   :  { %v12314_v16 = vpop.eup %12313  ;;  %v6911_v36 = vsel %vm503_vm4, %v12312_v18, 0.0  ;;  %v6184_v11 = vpop.permute.xlu1 %6183 }
0x32ba   :  { %6912 = vadd.xlane.f32.xlu0 %v6911_v36  ;;  %11036 = vmatprep.mubr.msk.f32.mxu1 %vm503_vm4, %v12314_v16  ;;  %v6908_v13 = vsel %vm503_vm4, %v12314_v16, 0.0  ;;  %v12316_v60 = vpop.eup %12315 }
0x32bb   :  { %6909 = vadd.xlane.f32.xlu1 %v6908_v13  ;;  %11037 = vmatmul.mubr.msk.f32.vlgmr.msra.gmra.mrb[78].mxu1 %vm503_vm4, %v12312_v18  ;;  %v5550_v33 = vmul.f32 %v12316_v60, %v13738_v24  ;;  %v2507_v18 = vadd.f32 %v13147_v42, %v12984_v34 }
0x32bc   :  { %11644 = vmatpush3.bf16.msra.mxu1 %v11641_v31  ;;  %11047 = vmatprep.mubr.msk.f32.mxu1 %vm138_vm1, %v6191_v39 }
0x32bd   :  { %11646 = vmatprep.subr.bf16.mxu1 %v11645_v46  ;;  %v6188_v57 = vsel %vm413_vm2, %v5550_v33, %v6168_v32 }
0x32be   :  { %6300 = vadd.xlane.f32.xlu0 %v6299_v1  ;;  %v6190_v7 = vsel %vm503_vm4, %v6188_v57, %v6176_v21  ;;  %v2516_v21 = vadd.f32 %v13991_v55, %v2507_v18  ;;  %v7217_v18 = vld [vmem:[%s14609_s2 + $0x250] sm:$0xff] }
0x32bf   :  { %6297 = vadd.xlane.f32.xlu1 %v6296_v10  ;;  %v6192_v30 = vsel %vm1247_vm5, %v6190_v7, %v6184_v11 }
0x32c0   :  { %11648 = vmatpush3.bf16.msra.mxu1 %v11645_v46  ;;  %v2524_v13 = vsel %vm138_vm1, %v2516_v21, 0.0 }
0x32c3   :  { %11048 = vmatmul.mubr.msk.f32.vlgmr.msra.gmra.mrb[80].mxu1 %vm138_vm1, %v6192_v30 }
0x32e7   :  { %v6502_v3 = vpop.xlane.xlu0 %6501 }
0x32e8   :  { %12317 = vrcp.f32 %v6502_v3 }
0x32ea   :  { %v6505_v44 = vpop.xlane.xlu1 %6504 }
0x32eb   :  { %12319 = vrcp.f32 %v6505_v44  ;;  %v6706_v24 = vpop.xlane.xlu0 %6705 }
0x32ec   :  { %12321 = vrcp.f32 %v6706_v24 }
0x32ef   :  { %v6709_v12 = vpop.xlane.xlu0 %6708 }
0x32f0   :  { %12323 = vrcp.f32 %v6709_v12 }
0x32f2   :  { %v12318_v2 = vpop.eup %12317 }
0x32f3   :  { %v6595_v40 = vmul.f32 %v12318_v2, %v13880_v8  ;;  %v2506_v8 = vadd.f32 %v13149_v25, %v12987_v45 }
0x32f5   :  { %v12320_v43 = vpop.eup %12319  ;;  %7007 = vrot.lane.b32.xlu1 %v6595_v40, %s12482_s17 }
0x32f6   :  { %v12322_v6 = vpop.eup %12321  ;;  %v6596_v47 = vmul.f32 %v12320_v43, %v13878_v51  ;;  %v2515_v51 = vadd.f32 %v13991_v55, %v2506_v8 }
0x32f7   :  { %v6799_v49 = vmul.f32 %v12322_v6, %v13920_v20 }
0x32f8   :  { %7009 = vrot.lane.b32.xlu0 %v6596_v47, %s12482_s17  ;;  %v2521_v20 = vsel %vm138_vm1, %v2515_v51, 0.0 }
0x32f9   :  { %7015 = vrot.lane.b32.xlu1 %v6799_v49, %s12483_s18 }
0x32fa   :  { %v12324_v38 = vpop.eup %12323 }
0x32fb   :  { %v6800_v22 = vmul.f32 %v12324_v38, %v13918_v0 }
0x32fd   :  { %7017 = vrot.lane.b32.xlu1 %v6800_v22, %s12483_s18 }
0x3317   :  { %2522 = vadd.xlane.f32.xlu0 %v2521_v20 }
0x3347   :  { %v6913_v17 = vpop.xlane.xlu0 %6912 }
0x3348   :  { %v6910_v45 = vpop.xlane.xlu1 %6909 }
0x334b   :  { %v6301_v37 = vpop.xlane.xlu0 %6300 }
0x334c   :  { %12325 = vrcp.f32 %v6301_v37  ;;  %v6298_v60 = vpop.xlane.xlu1 %6297 }
0x334d   :  { %12327 = vrcp.f32 %v6913_v17 }
0x334e   :  { %12329 = vrcp.f32 %v6910_v45 }
0x334f   :  { %12331 = vrcp.f32 %v6298_v60 }
0x3356   :  { %v12326_v63 = vpop.eup %12325 }
0x3357   :  { %v6392_v0 = vmul.f32 %v12326_v63, %v13846_v27  ;;  %v12328_v25 = vpop.eup %12327  ;;  %v14002_v27 = vld [vmem:[%s14609_s2 + $0x200] ss:$0 sm:$0xff] }
0x3358   :  { %v12330_v29 = vpop.eup %12329 }
0x3359   :  { %v12332_v1 = vpop.eup %12331 }
0x335a   :  { %v6391_v10 = vmul.f32 %v12332_v1, %v13848_v26  ;;  %v2509_v1 = vadd.f32 %v13163_v5, %v12996_v14 }
0x335c   :  { %v2518_v14 = vadd.f32 %v13991_v55, %v2509_v1 }
0x3367   :  { %v7008_v39 = vpop.permute.xlu1 %7007 }
0x3368   :  { %v7029_v11 = vsel %vm413_vm2, %v6391_v10, %v7008_v39 }
0x336a   :  { %v7010_v35 = vpop.permute.xlu0 %7009 }
0x336b   :  { %v7030_v58 = vsel %vm413_vm2, %v6392_v0, %v7010_v35 }
0x338e   :  { %v11038_v48 = vpop.f32.mrb[78].mxu1 }
0x338f   :  { %v7004_v31 = vmul.f32 %v12328_v25, %v11038_v48  ;;  %v6992_v52 = vpop.f32.mrb[79].mxu1  ;;  %v14049_v25 = vld [vmem:[%s14609_s2 + $0x160] ss:$0 sm:$0xff] }
0x3390   :  { %v7003_v32 = vmul.f32 %v12330_v29, %v6992_v52  ;;  %v14055_v29 = vld [vmem:[%s14609_s2 + $0x168] ss:$0 sm:$0xff]  ;;  %v7215_v52 = vld [vmem:[%s14609_s2 + $0x240] sm:$0xff] }
0x3391   :  { %7025 = vrot.lane.b32.xlu1 %v7004_v31, %s12484_s27 }
0x3392   :  { %7023 = vrot.lane.b32.xlu0 %v7003_v32, %s12484_s27  ;;  %v7216_v32 = vld [vmem:[%s14609_s2 + $0x248] sm:$0xff] }
0x3396   :  { %v11049_v54 = vpop.f32.mrb[80].mxu1 }
0x3397   :  { %v7117_v59 = vpop.f32.mrb[81].mxu1  ;;  %v7123_v53 = vadd.f32 %v11049_v54, %v14002_v27  ;;  %v11657_v54 = vpack.c.bf16 %v7216_v32, %v7215_v52 }
0x3398   :  { %v7118_v62 = vadd.f32 %v14002_v27, %v7117_v59  ;;  %v7210_v59 = vld [vmem:[%s14609_s2 + $0x218] sm:$0xff] }
0x3399   :  { %v14013_v36 = vadd.f32 %v7123_v53, %v13580_v61  ;;  %v7016_v61 = vpop.permute.xlu1 %7015  ;;  %11658 = vmatprep.subr.bf16.mxu1 %v11657_v54  ;;  %v7218_v53 = vld [vmem:[%s14609_s2 + $0x258] sm:$0xff] }
0x339a   :  { %v14009_v16 = vadd.f32 %v7118_v62, %v13582_v4  ;;  %v7031_v7 = vsel %vm503_vm4, %v7029_v11, %v7016_v61  ;;  %11660 = vmatpush3.bf16.msra.mxu1 %v11657_v54  ;;  %v7211_v62 = vld [vmem:[%s14609_s2 + $0x220] sm:$0xff] }
0x339b   :  { %v7145_v34 = vsel %vm138_vm1, %v14013_v36, 0.0 }
0x339c   :  { %v7142_v23 = vsel %vm138_vm1, %v14009_v16, 0.0 }
0x339d   :  { %v7018_v33 = vpop.permute.xlu1 %7017 }
0x339e   :  { %v7032_v3 = vsel %vm503_vm4, %v7030_v58, %v7018_v33 }
0x33a4   :  { %v2523_v15 = vpop.xlane.xlu0 %2522 }
0x33a5   :  { %v2533_v19 = vmul.f32 0.03125, %v2523_v15  ;;  %v11649_v15 = vpack.c.bf16 %v7211_v62, %v7210_v59 }
0x33a7   :  { %v2537_v46 = vsub.f32 %v2515_v51, %v2533_v19  ;;  %v11661_v19 = vpack.c.bf16 %v7218_v53, %v7217_v18  ;;  %11650 = vmatprep.subr.bf16.mxu0 %v11649_v15 }
0x33a8   :  { %11652 = vmatpush3.bf16.msra.mxu0 %v11649_v15 }
0x33a9   :  { %v2541_v42 = vmul.f32 %v2537_v46, %v2537_v46  ;;  %11662 = vmatprep.subr.bf16.mxu1 %v11661_v19 }
0x33aa   :  { %11664 = vmatpush3.bf16.msra.mxu1 %v11661_v19 }
0x33ab   :  { %v2545_v4 = vsel %vm138_vm1, %v2541_v42, 0.0 }
0x33b1   :  { %7143 = vadd.xlane.f32.xlu0 %v7142_v23 }
0x33b5   :  { %2525 = vadd.xlane.f32.xlu1 %v2524_v13  ;;  %7146 = vadd.xlane.f32.xlu0 %v7145_v34 }
0x33b9   :  { %2546 = vadd.xlane.f32.xlu1 %v2545_v4 }
0x3403   :  { %v7026_v57 = vpop.permute.xlu1 %7025 }
0x3404   :  { %v7024_v30 = vpop.permute.xlu0 %7023  ;;  %v7034_v24 = vsel %vm1247_vm5, %v7032_v3, %v7026_v57  ;;  %v2508_v57 = vadd.f32 %v13165_v9, %v12999_v50 }
0x3405   :  { %v7033_v44 = vsel %vm1247_vm5, %v7031_v7, %v7024_v30 }
0x3406   :  { %11050 = vmatprep.mubr.msk.f32.mxu1 %vm138_vm1, %v7033_v44 }
0x3407   :  { %11051 = vmatmul.mubr.msk.f32.gmra.mrb[82].mxu1 %vm138_vm1, %v7034_v24 }
0x343e   :  { %v7144_v12 = vpop.xlane.xlu0 %7143 }
0x343f   :  { %v7154_v2 = vmul.f32 0.03125, %v7144_v12  ;;  %v2517_v12 = vadd.f32 %v13991_v55, %v2508_v57  ;;  %v14112_v55 = vld [vmem:[%s14609_s2 + $0x210] ss:$0 sm:$0xff] }
0x3441   :  { %v14030_v26 = vsub.f32 %v14009_v16, %v7154_v2  ;;  %v2527_v2 = vsel %vm138_vm1, %v2517_v12, 0.0 }
0x3442   :  { %v2526_v40 = vpop.xlane.xlu1 %2525  ;;  %v7147_v43 = vpop.xlane.xlu0 %7146 }
0x3443   :  { %v2534_v6 = vmul.f32 0.03125, %v2526_v40  ;;  %v7155_v47 = vmul.f32 0.03125, %v7147_v43  ;;  %v7162_v49 = vmul.f32 %v14030_v26, %v14030_v26 }
0x3445   :  { %v14034_v38 = vsub.f32 %v2516_v21, %v2534_v6  ;;  %v14037_v22 = vsub.f32 %v14013_v36, %v7155_v47  ;;  %v7166_v8 = vsel %vm138_vm1, %v7162_v49, 0.0  ;;  %v7212_v21 = vld [vmem:[%s14609_s2 + $0x228] sm:$0xff] }
0x3446   :  { %v2547_v51 = vpop.xlane.xlu1 %2546  ;;  %7167 = vadd.xlane.f32.xlu1 %v7166_v8 }
0x3447   :  { %v2557_v20 = vmul.f32 0.03125, %v2547_v51  ;;  %v2542_v17 = vmul.f32 %v14034_v38, %v14034_v38  ;;  %v7163_v0 = vmul.f32 %v14037_v22, %v14037_v22 }
0x3449   :  { %v2561_v37 = vadd.f32 1e-05, %v2557_v20  ;;  %v2548_v63 = vsel %vm138_vm1, %v2542_v17, 0.0  ;;  %v7169_v35 = vsel %vm138_vm1, %v7163_v0, 0.0 }
0x344a   :  { %2549 = vadd.xlane.f32.xlu0 %v2548_v63 }
0x344b   :  { %12333 = vrsqrt.f32 %v2561_v37 }
0x344e   :  { %7170 = vadd.xlane.f32.xlu0 %v7169_v35 }
0x3455   :  { %v12334_v58 = vpop.eup %12333 }
0x3456   :  { %v2569_v45 = vmul.f32 %v12334_v58, %v2537_v46  ;;  %v7213_v46 = vld [vmem:[%s14609_s2 + $0x230] sm:$0xff] }
0x3457   :  { %v11653_v23 = vpack.c.bf16 %v7213_v46, %v7212_v21  ;;  %v14138_v46 = vld [vmem:[%s14609_s2 + $0x260] ss:$0 sm:$0xff] }
0x3458   :  { %v2577_v48 = vmul.f32 %v14049_v25, %v2569_v45 }
0x3459   :  { %11654 = vmatprep.subr.bf16.mxu0 %v11653_v23 }
0x345a   :  { %v2585_v31 = vadd.f32 %v14055_v29, %v2577_v48  ;;  %11656 = vmatpush3.bf16.msra.mxu0 %v11653_v23 }
0x345c   :  { %11075 = vmatprep.mubr.msk.f32.mxu1 %vm138_vm1, %v2585_v31 }
0x34d3   :  { %v7168_v13 = vpop.xlane.xlu1 %7167 }
0x34d4   :  { %v7178_v34 = vmul.f32 0.03125, %v7168_v13 }
0x34d6   :  { %v7182_v42 = vadd.f32 1e-05, %v7178_v34 }
0x34d7   :  { %v2550_v4 = vpop.xlane.xlu0 %2549 }
0x34d8   :  { %12335 = vrsqrt.f32 %v7182_v42  ;;  %v2558_v60 = vmul.f32 0.03125, %v2550_v4  ;;  %v14145_v4 = vld [vmem:[%s14609_s2 + $0x238] ss:$0 sm:$0xff] }
0x34da   :  { %v2562_v39 = vadd.f32 1e-05, %v2558_v60  ;;  %v11052_v61 = vpop.f32.mrb[82].mxu1 }
0x34db   :  { %v7133_v33 = vadd.f32 %v11052_v61, %v14002_v27  ;;  %v7127_v10 = vpop.f32.mrb[83].mxu1  ;;  %v7171_v11 = vpop.xlane.xlu0 %7170 }
0x34dc   :  { %12337 = vrsqrt.f32 %v2562_v39  ;;  %v7128_v7 = vadd.f32 %v14002_v27, %v7127_v10  ;;  %v7179_v30 = vmul.f32 0.03125, %v7171_v11 }
0x34dd   :  { %v14090_v3 = vadd.f32 %v7133_v33, %v13588_v41  ;;  %v14104_v41 = vld [vmem:[%s14609_s2 + $0x208] ss:$0 sm:$0xff] }
0x34de   :  { %v14093_v44 = vadd.f32 %v7128_v7, %v13590_v28  ;;  %v7183_v24 = vadd.f32 1e-05, %v7179_v30  ;;  %v2530_v28 = vsel %vm138_vm1, %v2518_v14, 0.0 }
0x34df   :  { %v7151_v5 = vsel %vm138_vm1, %v14090_v3, 0.0 }
0x34e0   :  { %12339 = vrsqrt.f32 %v7183_v24  ;;  %7152 = vadd.xlane.f32.xlu0 %v7151_v5  ;;  %v7148_v50 = vsel %vm138_vm1, %v14093_v44, 0.0 }
0x34e1   :  { %7149 = vadd.xlane.f32.xlu1 %v7148_v50 }
0x34e2   :  { %v12336_v9 = vpop.eup %12335 }
0x34e3   :  { %v7190_v27 = vmul.f32 %v12336_v9, %v14030_v26 }
0x34e4   :  { %2531 = vadd.xlane.f32.xlu0 %v2530_v28 }
0x34e5   :  { %2528 = vadd.xlane.f32.xlu1 %v2527_v2  ;;  %v7198_v40 = vmul.f32 %v14104_v41, %v7190_v27 }
0x34e6   :  { %v12338_v43 = vpop.eup %12337 }
0x34e7   :  { %v2570_v6 = vmul.f32 %v12338_v43, %v14034_v38  ;;  %v7206_v47 = vadd.f32 %v14112_v55, %v7198_v40 }
0x34e9   :  { %v2578_v49 = vmul.f32 %v14049_v25, %v2570_v6  ;;  %11061 = vmatprep.mubr.msk.f32.mxu0 %vm138_vm1, %v7206_v47 }
0x34ea   :  { %v12340_v26 = vpop.eup %12339 }
0x34eb   :  { %v2586_v8 = vadd.f32 %v14055_v29, %v2578_v49  ;;  %v7191_v51 = vmul.f32 %v12340_v26, %v14037_v22 }
0x34ed   :  { %11076 = vmatmul.mubr.msk.f32.vlgmr.msra.gmra.mrb[84].mxu1 %vm138_vm1, %v2586_v8  ;;  %v7199_v20 = vmul.f32 %v14104_v41, %v7191_v51 }
0x34ef   :  { %v7207_v17 = vadd.f32 %v14112_v55, %v7199_v20 }
0x34f1   :  { %11062 = vmatmul.mubr.msk.f32.vlgmr.msra.gmra.mrb[72].mxu0 %vm138_vm1, %v7207_v17 }
0x356d   :  { %v7153_v38 = vpop.xlane.xlu0 %7152 }
0x356e   :  { %v7157_v37 = vmul.f32 0.03125, %v7153_v38  ;;  %v7150_v63 = vpop.xlane.xlu1 %7149 }
0x356f   :  { %v7156_v35 = vmul.f32 0.03125, %v7150_v63 }
0x3570   :  { %v14126_v0 = vsub.f32 %v14090_v3, %v7157_v37 }
0x3571   :  { %v2532_v58 = vpop.xlane.xlu0 %2531  ;;  %v7160_v54 = vsub.f32 %v14093_v44, %v7156_v35 }
0x3572   :  { %v2536_v45 = vmul.f32 0.03125, %v2532_v58  ;;  %v2529_v48 = vpop.xlane.xlu1 %2528  ;;  %v7165_v22 = vmul.f32 %v14126_v0, %v14126_v0 }
0x3573   :  { %v2535_v31 = vmul.f32 0.03125, %v2529_v48  ;;  %v7164_v19 = vmul.f32 %v7160_v54, %v7160_v54 }
0x3574   :  { %v2540_v52 = vsub.f32 %v2518_v14, %v2536_v45  ;;  %v7175_v32 = vsel %vm138_vm1, %v7165_v22, 0.0 }
0x3575   :  { %v2539_v59 = vsub.f32 %v2517_v12, %v2535_v31  ;;  %7176 = vadd.xlane.f32.xlu0 %v7175_v32  ;;  %v7172_v21 = vsel %vm138_vm1, %v7164_v19, 0.0 }
0x3576   :  { %v2544_v62 = vmul.f32 %v2540_v52, %v2540_v52 }
0x3577   :  { %v2543_v15 = vmul.f32 %v2539_v59, %v2539_v59 }
0x3578   :  { %v2554_v18 = vsel %vm138_vm1, %v2544_v62, 0.0 }
0x3579   :  { %2555 = vadd.xlane.f32.xlu0 %v2554_v18  ;;  %v2551_v53 = vsel %vm138_vm1, %v2543_v15, 0.0 }
0x357a   :  { %2552 = vadd.xlane.f32.xlu1 %v2551_v53 }
0x357e   :  { %7173 = vadd.xlane.f32.xlu1 %v7172_v21 }
0x35c0   :  { %v11077_v23 = vpop.f32.mrb[84].mxu1 }
0x35c1   :  { %v7414_v13 = vadd.f32 %v11077_v23, %v14138_v46  ;;  %v7408_v34 = vpop.f32.mrb[85].mxu1 }
0x35c2   :  { %v7409_v42 = vadd.f32 %v14138_v46, %v7408_v34 }
0x35c4   :  { %v11063_v60 = vpop.f32.mrb[72].mxu0  ;;  %v11665_v39 = vpack.c.bf16 %v7414_v13, %v7409_v42  ;;  %v14147_v61 = vpack.i.bf16 %v7414_v13, %v7409_v42 }
0x35c5   :  { %v7307_v1 = vpop.f32.mrb[73].mxu0  ;;  %v14163_v10 = vadd.f32 %v11063_v60, %v14145_v4 }
0x35c6   :  { %v14150_v33 = vadd.f32 %v14145_v4, %v7307_v1  ;;  %11667 = vmatprep.subr.msk.bf16.mxu0 %vm12678_vm3, %v11665_v39  ;;  %12008 = vrot.lane.b32.xlu1 %v14147_v61, %s12475_s9 }
0x35c7   :  { %11670 = vmatpush3.bf16.xpose.msk.msra.mxu0 %vm12678_vm3, %v11665_v39 }
0x35c8   :  { %7625 = vrot.lane.b32.xlu0 %v14150_v33, %s12475_s9 }
0x35ca   :  { %12013 = vrot.lane.b32.xlu1 %v14147_v61, %s12477_s13 }
0x35cc   :  { %7827 = vrot.lane.b32.xlu0 %v14150_v33, %s12477_s13 }
0x35ce   :  { %7627 = vrot.lane.b32.xlu1 %v14163_v10, %s12475_s9 }
0x35d2   :  { %7829 = vrot.lane.b32.xlu1 %v14163_v10, %s12477_s13 }
0x35d6   :  { %12018 = vrot.lane.b32.xlu1 %v14147_v61, %s12476_s12 }
0x3602   :  { %v7177_v11 = vpop.xlane.xlu0 %7176 }
0x3603   :  { %v7181_v57 = vmul.f32 0.03125, %v7177_v11 }
0x3605   :  { %v7185_v7 = vadd.f32 1e-05, %v7181_v57 }
0x3606   :  { %v2556_v30 = vpop.xlane.xlu0 %2555 }
0x3607   :  { %v2560_v24 = vmul.f32 0.03125, %v2556_v30  ;;  %v2553_v14 = vpop.xlane.xlu1 %2552  ;;  %12341 = vrsqrt.f32 %v7185_v7 }
0x3608   :  { %v2559_v5 = vmul.f32 0.03125, %v2553_v14 }
0x3609   :  { %v2564_v12 = vadd.f32 1e-05, %v2560_v24 }
0x360a   :  { %v2563_v50 = vadd.f32 1e-05, %v2559_v5 }
0x360b   :  { %12343 = vrsqrt.f32 %v2564_v12  ;;  %v7174_v9 = vpop.xlane.xlu1 %7173 }
0x360c   :  { %12345 = vrsqrt.f32 %v2563_v50  ;;  %v7180_v28 = vmul.f32 0.03125, %v7174_v9 }
0x360e   :  { %v7184_v27 = vadd.f32 1e-05, %v7180_v28 }
0x3610   :  { %12347 = vrsqrt.f32 %v7184_v27 }
0x3611   :  { %v12342_v2 = vpop.eup %12341 }
0x3612   :  { %v7193_v26 = vmul.f32 %v12342_v2, %v14126_v0 }
0x3614   :  { %v7201_v37 = vmul.f32 %v14104_v41, %v7193_v26 }
0x3615   :  { %v12344_v40 = vpop.eup %12343 }
0x3616   :  { %v12346_v43 = vpop.eup %12345  ;;  %v2572_v6 = vmul.f32 %v12344_v40, %v2540_v52  ;;  %v7209_v0 = vadd.f32 %v14112_v55, %v7201_v37 }
0x3617   :  { %v2571_v47 = vmul.f32 %v12346_v43, %v2539_v59 }
0x3618   :  { %v2580_v49 = vmul.f32 %v14049_v25, %v2572_v6 }
0x3619   :  { %v2579_v8 = vmul.f32 %v14049_v25, %v2571_v47 }
0x361a   :  { %v12348_v51 = vpop.eup %12347  ;;  %v2588_v38 = vadd.f32 %v14055_v29, %v2580_v49 }
0x361b   :  { %v2587_v20 = vadd.f32 %v14055_v29, %v2579_v8  ;;  %v7192_v17 = vmul.f32 %v12348_v51, %v7160_v54 }
0x361d   :  { %11078 = vmatprep.mubr.msk.f32.mxu1 %vm138_vm1, %v2587_v20  ;;  %v7200_v63 = vmul.f32 %v14104_v41, %v7192_v17 }
0x361e   :  { %11079 = vmatmul.mubr.msk.f32.gmra.mrb[86].mxu1 %vm138_vm1, %v2588_v38 }
0x361f   :  { %v7208_v35 = vadd.f32 %v14112_v55, %v7200_v63 }
0x3621   :  { %11064 = vmatprep.mubr.msk.f32.mxu0 %vm138_vm1, %v7208_v35 }
0x3622   :  { %11065 = vmatmul.mubr.msk.f32.gmra.mrb[74].mxu0 %vm138_vm1, %v7209_v0 }
0x3623   :  { %11085 = vmatprep.mubr.msk.f32.mxu0 %vm413_vm2, %v14150_v33 }
0x3626   :  { %11086 = vmatmul.mubr.msk.f32.vlgmr.msra.gmra.mrb[76].mxu0 %vm413_vm2, %v14163_v10 }
0x3638   :  { %v12009_v25 = vpop.permute.xlu1 %12008 }
0x3639   :  { %v12011_v29 = vunpack.i.h.bf16 %v12009_v25  ;;  %v12010_v58 = vunpack.i.l.bf16 %v12009_v25 }
0x363a   :  { %v7626_v41 = vpop.permute.xlu0 %7625 }
0x363b   :  { %v11675_v45 = vpack.c.bf16 %v12011_v29, %v12010_v58  ;;  %11099 = vmatprep.mubr.msk.f32.mxu1 %vm413_vm2, %v7626_v41 }
0x363c   :  { %v12014_v48 = vpop.permute.xlu1 %12013 }
0x363d   :  { %v12016_v22 = vunpack.i.h.bf16 %v12014_v48  ;;  %v12015_v55 = vunpack.i.l.bf16 %v12014_v48  ;;  %11677 = vmatprep.subr.msk.bf16.mxu1 %vm12678_vm3, %v11675_v45 }
0x363e   :  { %11680 = vmatpush3.bf16.xpose.msk.msra.mxu1 %vm12678_vm3, %v11675_v45  ;;  %v7828_v54 = vpop.permute.xlu0 %7827 }
0x363f   :  { %v11685_v31 = vpack.c.bf16 %v12016_v22, %v12015_v55 }
0x3640   :  { %v7628_v52 = vpop.permute.xlu1 %7627 }
0x3641   :  { %11687 = vmatprep.subr.msk.bf16.mxu1 %vm12678_vm3, %v11685_v31 }
0x3644   :  { %v7830_v32 = vpop.permute.xlu1 %7829 }
0x3645   :  { %11100 = vmatmul.mubr.msk.f32.vlgmr.msra.gmra.mrb[88].mxu1 %vm413_vm2, %v7628_v52 }
0x3646   :  { %11690 = vmatpush3.bf16.xpose.msk.msra.mxu1 %vm12678_vm3, %v11685_v31  ;;  %11113 = vmatprep.mubr.msk.f32.mxu1 %vm413_vm2, %v7828_v54 }
0x3648   :  { %v12019_v59 = vpop.permute.xlu1 %12018 }
0x3649   :  { %v12021_v62 = vunpack.i.h.bf16 %v12019_v59  ;;  %v12020_v15 = vunpack.i.l.bf16 %v12019_v59 }
0x364b   :  { %v11671_v18 = vpack.c.bf16 %v12021_v62, %v12020_v15 }
0x364d   :  { %11672 = vmatprep.subr.bf16.mxu0 %v11671_v18  ;;  %11114 = vmatmul.mubr.msk.f32.vlgmr.msra.gmra.mrb[90].mxu1 %vm413_vm2, %v7830_v32 }
0x364e   :  { %11674 = vmatpush3.bf16.msra.mxu0 %v11671_v18 }
0x36f1   :  { %v11080_v53 = vpop.f32.mrb[86].mxu1 }
0x36f2   :  { %v7424_v19 = vadd.f32 %v11080_v53, %v14138_v46  ;;  %v7418_v21 = vpop.f32.mrb[87].mxu1 }
0x36f3   :  { %v7419_v23 = vadd.f32 %v14138_v46, %v7418_v21 }
0x36f5   :  { %v14204_v13 = vpop.f32.mrb[74].mxu0  ;;  %v14206_v34 = vpack.i.bf16 %v7424_v19, %v7419_v23  ;;  %v14208_v42 = vpack.c.bf16 %v7424_v19, %v7419_v23 }
0x36f6   :  { %v14210_v60 = vpop.f32.mrb[75].mxu0 }
0x36f9   :  { %v11087_v39 = vpop.f32.mrb[76].mxu0 }
0x36fa   :  { %v7515_v1 = vmul.f32 0.35355338, %v11087_v39  ;;  %v7505_v11 = vpop.f32.mrb[77].mxu0 }
0x36fb   :  { %v7514_v57 = vmul.f32 0.35355338, %v7505_v11 }
0x36fc   :  { %v7519_v7 = vsel %vm503_vm4, %v7515_v1, -inf }
0x36fd   :  { %7520 = vmax.xlane.f32.xlu1 %v7519_v7  ;;  %v7516_v30 = vsel %vm503_vm4, %v7514_v57, -inf }
0x36fe   :  { %7517 = vmax.xlane.f32.xlu0 %v7516_v30 }
0x370e   :  { %12028 = vrot.lane.b32.xlu1 %v14147_v61, %s12480_s15 }
0x3718   :  { %v11101_v46 = vpop.f32.mrb[88].mxu1 }
0x3719   :  { %v7717_v24 = vmul.f32 0.35355338, %v11101_v46  ;;  %v7707_v14 = vpop.f32.mrb[89].mxu1 }
0x371a   :  { %v7716_v5 = vmul.f32 0.35355338, %v7707_v14 }
0x371b   :  { %v7721_v12 = vsel %vm503_vm4, %v7717_v24, -inf }
0x371c   :  { %7722 = vmax.xlane.f32.xlu0 %v7721_v12  ;;  %v7718_v50 = vsel %vm503_vm4, %v7716_v5, -inf }
0x3720   :  { %v11115_v9 = vpop.f32.mrb[90].mxu1  ;;  %7719 = vmax.xlane.f32.xlu0 %v7718_v50 }
0x3721   :  { %v7919_v28 = vmul.f32 0.35355338, %v11115_v9  ;;  %v7909_v27 = vpop.f32.mrb[91].mxu1 }
0x3722   :  { %v7918_v40 = vmul.f32 0.35355338, %v7909_v27 }
0x3723   :  { %v7923_v2 = vsel %vm503_vm4, %v7919_v28, -inf }
0x3724   :  { %7924 = vmax.xlane.f32.xlu0 %v7923_v2  ;;  %v7920_v43 = vsel %vm503_vm4, %v7918_v40, -inf  ;;  %v14278_v2 = vadd.f32 %v14145_v4, %v14210_v60 }
0x3732   :  { %7921 = vmax.xlane.f32.xlu1 %v7920_v43 }
0x373a   :  { %12023 = vrot.lane.b32.xlu0 %v14147_v61, %s12478_s14 }
0x373e   :  { %8029 = vrot.lane.b32.xlu0 %v14150_v33, %s12479_s0 }
0x3743   :  { %12033 = vrot.lane.b32.xlu1 %v14147_v61, %s12479_s0 }
0x3747   :  { %8031 = vrot.lane.b32.xlu1 %v14163_v10, %s12479_s0 }
0x378a   :  { %v7521_v6 = vpop.xlane.xlu1 %7520 }
0x378b   :  { %v7523_v47 = vsub.f32 %v7515_v1, %v7521_v6  ;;  %v7518_v49 = vpop.xlane.xlu0 %7517 }
0x378c   :  { %v7522_v26 = vsub.f32 %v7514_v57, %v7518_v49 }
0x378d   :  { %v7526_v8 = vmul.f32 1.442695, %v7523_v47 }
0x378e   :  { %v7524_v51 = vmul.f32 1.442695, %v7522_v26  ;;  %v12029_v25 = vpop.permute.xlu1 %12028 }
0x378f   :  { %v12031_v58 = vunpack.i.h.bf16 %v12029_v25  ;;  %v12030_v41 = vunpack.i.l.bf16 %v12029_v25 }
0x3790   :  { %12349 = vpow2.f32 %v7524_v51 }
0x3791   :  { %12351 = vpow2.f32 %v7526_v8  ;;  %v11691_v55 = vpack.c.bf16 %v12031_v58, %v12030_v41 }
0x379a   :  { %v14228_v20 = vpop.eup %12349 }
0x379b   :  { %v14230_v17 = vpop.eup %12351  ;;  %11092 = vmatprep.mubr.msk.f32.mxu0 %vm503_vm4, %v14228_v20 }
0x379c   :  { %11093 = vmatmul.mubr.msk.f32.vlgmr.msra.gmra.mrb[78].mxu0 %vm503_vm4, %v14230_v17 }
0x37a9   :  { %v7723_v33 = vpop.xlane.xlu0 %7722 }
0x37aa   :  { %v7725_v10 = vsub.f32 %v7717_v24, %v7723_v33 }
0x37ac   :  { %v7728_v63 = vmul.f32 1.442695, %v7725_v10 }
0x37ad   :  { %v7720_v38 = vpop.xlane.xlu0 %7719 }
0x37ae   :  { %v7724_v37 = vsub.f32 %v7716_v5, %v7720_v38 }
0x37b0   :  { %v7726_v35 = vmul.f32 1.442695, %v7724_v37 }
0x37b1   :  { %v7925_v0 = vpop.xlane.xlu0 %7924 }
0x37b2   :  { %12353 = vpow2.f32 %v7726_v35  ;;  %v7927_v32 = vsub.f32 %v7919_v28, %v7925_v0 }
0x37b3   :  { %12355 = vpow2.f32 %v7728_v63 }
0x37b4   :  { %v7930_v62 = vmul.f32 1.442695, %v7927_v32 }
0x37b5   :  { %v12024_v29 = vpop.permute.xlu0 %12023 }
0x37b6   :  { %v12026_v45 = vunpack.i.h.bf16 %v12024_v29  ;;  %v12025_v48 = vunpack.i.l.bf16 %v12024_v29 }
0x37b8   :  { %v11681_v22 = vpack.c.bf16 %v12026_v45, %v12025_v48 }
0x37b9   :  { %v8030_v1 = vpop.permute.xlu0 %8029 }
0x37ba   :  { %11682 = vmatprep.subr.bf16.mxu0 %v11681_v22 }
0x37bb   :  { %11684 = vmatpush3.bf16.msra.mxu0 %v11681_v22 }
0x37bc   :  { %v14236_v31 = vpop.eup %12353  ;;  %11692 = vmatprep.subr.bf16.mxu0 %v11691_v55 }
0x37bd   :  { %v14238_v52 = vpop.eup %12355  ;;  %11106 = vmatprep.mubr.msk.f32.mxu0 %vm503_vm4, %v14236_v31  ;;  %v7730_v56 = vsel %vm503_vm4, %v14236_v31, 0.0 }
0x37be   :  { %11107 = vmatmul.mubr.msk.f32.vlgmr.msra.gmra.mrb[80].mxu0 %vm503_vm4, %v14238_v52 }
0x37bf   :  { %v7922_v54 = vpop.xlane.xlu1 %7921  ;;  %11694 = vmatpush3.bf16.msra.mxu0 %v11691_v55 }
0x37c0   :  { %v7926_v59 = vsub.f32 %v7918_v40, %v7922_v54  ;;  %v14284_v40 = vadd.f32 %v14204_v13, %v14145_v4 }
0x37c2   :  { %v7928_v15 = vmul.f32 1.442695, %v7926_v59 }
0x37c3   :  { %v12034_v18 = vpop.permute.xlu1 %12033 }
0x37c4   :  { %12357 = vpow2.f32 %v7928_v15  ;;  %v12036_v53 = vunpack.i.h.bf16 %v12034_v18  ;;  %v12035_v19 = vunpack.i.l.bf16 %v12034_v18 }
0x37c5   :  { %12359 = vpow2.f32 %v7930_v62 }
0x37c6   :  { %v11695_v21 = vpack.c.bf16 %v12036_v53, %v12035_v19 }
0x37c7   :  { %v8032_v11 = vpop.permute.xlu1 %8031 }
0x37c8   :  { %11697 = vmatprep.subr.msk.bf16.mxu0 %vm12678_vm3, %v11695_v21 }
0x37ce   :  { %v14246_v23 = vpop.eup %12357 }
0x37cf   :  { %v14248_v39 = vpop.eup %12359  ;;  %11120 = vmatprep.mubr.msk.f32.mxu0 %vm503_vm4, %v14246_v23 }
0x37d0   :  { %11121 = vmatmul.mubr.msk.f32.vlgmr.msra.gmra.mrb[82].mxu0 %vm503_vm4, %v14248_v39 }
0x37d1   :  { %11700 = vmatpush3.bf16.xpose.msk.msra.mxu0 %vm12678_vm3, %v11695_v21  ;;  %11127 = vmatprep.mubr.msk.f32.mxu0 %vm413_vm2, %v8030_v1 }
0x37d8   :  { %11128 = vmatmul.mubr.msk.f32.vlgmr.msra.gmra.mrb[84].mxu0 %vm413_vm2, %v8032_v11 }
0x386f   :  { %v14258_v57 = vpop.f32.mrb[78].mxu0 }
0x3870   :  { %v14260_v7 = vpop.f32.mrb[79].mxu0 }
0x3891   :  { %v14262_v30 = vpop.f32.mrb[80].mxu0 }
0x3892   :  { %v14264_v46 = vpop.f32.mrb[81].mxu0 }
0x38a3   :  { %v14266_v24 = vpop.f32.mrb[82].mxu0 }
0x38a4   :  { %v14268_v14 = vpop.f32.mrb[83].mxu0 }
0x38ab   :  { %v11129_v5 = vpop.f32.mrb[84].mxu0 }
0x38ac   :  { %v8121_v12 = vmul.f32 0.35355338, %v11129_v5  ;;  %v8111_v50 = vpop.f32.mrb[85].mxu0 }
0x38ad   :  { %v8120_v9 = vmul.f32 0.35355338, %v8111_v50 }
0x38ae   :  { %v8125_v28 = vsel %vm503_vm4, %v8121_v12, -inf }
0x38af   :  { %8126 = vmax.xlane.f32.xlu1 %v8125_v28  ;;  %v8122_v27 = vsel %vm503_vm4, %v8120_v9, -inf }
0x38b0   :  { %8123 = vmax.xlane.f32.xlu0 %v8122_v27 }
0x38c6   :  { %12038 = vrot.lane.b32.xlu0 %v14147_v61, %s12481_s16 }
0x38ca   :  { %12048 = vrot.lane.b32.xlu0 %v14206_v34, %s12475_s9 }
0x38ce   :  { %8459 = vrot.lane.b32.xlu0 %v14278_v2, %s12475_s9 }
0x38d2   :  { %8461 = vrot.lane.b32.xlu0 %v14284_v40, %s12475_s9  ;;  %s12485_s9 = smov [#allocation2]  }
0x393c   :  { %v8127_v43 = vpop.xlane.xlu1 %8126 }
0x393d   :  { %v8129_v6 = vsub.f32 %v8121_v12, %v8127_v43  ;;  %v8124_v61 = vpop.xlane.xlu0 %8123 }
0x393e   :  { %v8128_v47 = vsub.f32 %v8120_v9, %v8124_v61 }
0x393f   :  { %v8132_v49 = vmul.f32 1.442695, %v8129_v6 }
0x3940   :  { %v8130_v26 = vmul.f32 1.442695, %v8128_v47 }
0x3941   :  { %v12039_v8 = vpop.permute.xlu0 %12038 }
0x3942   :  { %12361 = vpow2.f32 %v8130_v26  ;;  %v12041_v60 = vunpack.i.h.bf16 %v12039_v8  ;;  %v12040_v51 = vunpack.i.l.bf16 %v12039_v8 }
0x3943   :  { %12363 = vpow2.f32 %v8132_v49 }
0x3944   :  { %v11701_v33 = vpack.c.bf16 %v12041_v60, %v12040_v51 }
0x3945   :  { %v12049_v45 = vpop.permute.xlu0 %12048 }
0x3946   :  { %11702 = vmatprep.subr.bf16.mxu1 %v11701_v33  ;;  %v12051_v32 = vunpack.i.h.bf16 %v12049_v45  ;;  %v12050_v59 = vunpack.i.l.bf16 %v12049_v45 }
0x3947   :  { %11704 = vmatpush3.bf16.msra.mxu1 %v11701_v33 }
0x3948   :  { %11707 = vmatprep.subr.msk.bf16.mxu1 %vm12678_vm3, %v14208_v42  ;;  %v11715_v53 = vpack.c.bf16 %v12051_v32, %v12050_v59 }
0x3949   :  { %v8460_v1 = vpop.permute.xlu0 %8459 }
0x394c   :  { %v14291_v4 = vpop.eup %12361 }
0x394d   :  { %v14293_v13 = vpop.eup %12363  ;;  %11134 = vmatprep.mubr.msk.f32.mxu1 %vm503_vm4, %v14291_v4  ;;  %v8462_v11 = vpop.permute.xlu0 %8461 }
0x394e   :  { %11135 = vmatmul.mubr.msk.f32.vlgmr.msra.gmra.mrb[92].mxu1 %vm503_vm4, %v14293_v13 }
0x394f   :  { %11141 = vmatprep.mubr.msk.f32.mxu1 %vm413_vm2, %v14278_v2 }
0x3950   :  { %11710 = vmatpush3.bf16.xpose.msk.msra.mxu1 %vm12678_vm3, %v14208_v42 }
0x3957   :  { %11142 = vmatmul.mubr.msk.f32.vlgmr.msra.gmra.mrb[94].mxu1 %vm413_vm2, %v14284_v40 }
0x3a21   :  { %v14306_v10 = vpop.f32.mrb[92].mxu1 }
0x3a22   :  { %v14308_v38 = vpop.f32.mrb[93].mxu1 }
0x3a2a   :  { %v11143_v37 = vpop.f32.mrb[94].mxu1 }
0x3a2b   :  { %v8349_v63 = vmul.f32 0.35355338, %v11143_v37  ;;  %v8339_v35 = vpop.f32.mrb[95].mxu1 }
0x3a2c   :  { %v8348_v0 = vmul.f32 0.35355338, %v8339_v35 }
0x3a2d   :  { %v8353_v25 = vsel %vm503_vm4, %v8349_v63, -inf }
0x3a2e   :  { %8354 = vmax.xlane.f32.xlu1 %v8353_v25  ;;  %v8350_v29 = vsel %vm503_vm4, %v8348_v0, -inf }
0x3a32   :  { %8351 = vmax.xlane.f32.xlu1 %v8350_v29 }
0x3a43   :  { %12043 = vrot.lane.b32.xlu1 %v14206_v34, %s12476_s12  ;;  %s9715_s12 = sshll.u32 %s12485_s9, 4  ;;  %s9716_s12 = int_to_ptr.vmem [resolvable:$true] %s9715_s12 }
0x3a44   :  { %p12456_p1 = scmp.lt.s32.totalorder %s9716_s12, %s9716_s12 }
0x3a47   :  { %12058 = vrot.lane.b32.xlu1 %v14206_v34, %s12477_s13 }
0x3abb   :  { %v8355_v42 = vpop.xlane.xlu1 %8354 }
0x3abc   :  { %v8357_v58 = vsub.f32 %v8349_v63, %v8355_v42 }
0x3abe   :  { %v8360_v22 = vmul.f32 1.442695, %v8357_v58 }
0x3abf   :  { %v8352_v41 = vpop.xlane.xlu1 %8351 }
0x3ac0   :  { %v8356_v48 = vsub.f32 %v8348_v0, %v8352_v41 }
0x3ac2   :  { %v8358_v55 = vmul.f32 1.442695, %v8356_v48 }
0x3ac3   :  { %v12044_v54 = vpop.permute.xlu1 %12043 }
0x3ac4   :  { %12365 = vpow2.f32 %v8358_v55  ;;  %v12046_v62 = vunpack.i.h.bf16 %v12044_v54  ;;  %v12045_v15 = vunpack.i.l.bf16 %v12044_v54 }
0x3ac5   :  { %12367 = vpow2.f32 %v8360_v22 }
0x3ac6   :  { %v11711_v18 = vpack.c.bf16 %v12046_v62, %v12045_v15 }
0x3ac7   :  { %v12059_v61 = vpop.permute.xlu1 %12058 }
0x3ac8   :  { %11712 = vmatprep.subr.bf16.mxu0 %v11711_v18  ;;  %v12061_v37 = vunpack.i.h.bf16 %v12059_v61  ;;  %v12060_v63 = vunpack.i.l.bf16 %v12059_v61 }
0x3ac9   :  { %11714 = vmatpush3.bf16.msra.mxu0 %v11711_v18 }
0x3aca   :  { %11717 = vmatprep.subr.msk.bf16.mxu0 %vm12678_vm3, %v11715_v53  ;;  %v11725_v29 = vpack.c.bf16 %v12061_v37, %v12060_v63 }
0x3ace   :  { %v14318_v19 = vpop.eup %12365 }
0x3acf   :  { %v14320_v21 = vpop.eup %12367  ;;  %11148 = vmatprep.mubr.msk.f32.mxu0 %vm503_vm4, %v14318_v19 }
0x3ad0   :  { %11149 = vmatmul.mubr.msk.f32.vlgmr.msra.gmra.mrb[86].mxu0 %vm503_vm4, %v14320_v21 }
0x3ad1   :  { %11155 = vmatprep.mubr.msk.f32.mxu0 %vm413_vm2, %v8460_v1 }
0x3ad2   :  { %11720 = vmatpush3.bf16.xpose.msk.msra.mxu0 %vm12678_vm3, %v11715_v53 }
0x3ad9   :  { %11156 = vmatmul.mubr.msk.f32.vlgmr.msra.gmra.mrb[88].mxu0 %vm413_vm2, %v8462_v11 }
0x3ba3   :  { %v14330_v5 = vpop.f32.mrb[86].mxu0 }
0x3ba4   :  { %v14332_v12 = vpop.f32.mrb[87].mxu0 }
0x3bac   :  { %v11157_v50 = vpop.f32.mrb[88].mxu0 }
0x3bad   :  { %v8551_v9 = vmul.f32 0.35355338, %v11157_v50  ;;  %v8541_v28 = vpop.f32.mrb[89].mxu0 }
0x3bae   :  { %v8550_v27 = vmul.f32 0.35355338, %v8541_v28 }
0x3baf   :  { %v8555_v43 = vsel %vm503_vm4, %v8551_v9, -inf }
0x3bb0   :  { %8556 = vmax.xlane.f32.xlu0 %v8555_v43  ;;  %v8552_v6 = vsel %vm503_vm4, %v8550_v27, -inf }
0x3bb1   :  { %8553 = vmax.xlane.f32.xlu1 %v8552_v6 }
0x3bc2   :  { %8661 = vrot.lane.b32.xlu1 %v14278_v2, %s12477_s13 }
0x3bc6   :  { %12053 = vrot.lane.b32.xlu0 %v14206_v34, %s12478_s14  ;;  %12068 = vrot.lane.b32.xlu1 %v14206_v34, %s12479_s0 }
0x3bca   :  { %8663 = vrot.lane.b32.xlu0 %v14284_v40, %s12477_s13  ;;  %s12451_s13 = scalar_lea.vmem %s9716_s12, 512 }
0x3bcb   :  { %p12452_p0 = scmp.ne.s32.totalorder %s9716_s12, %s12451_s13  ;;  %p12457_p2 = scmp.lt.s32.totalorder %s12451_s13, %s12451_s13 }
0x3bcd   :  { %p12458_p3 = por %p12457_p2, %p12456_p1 }
0x3bcf   :  { %p12459_p4 = pnand %p12458_p3, %p12452_p0 }
0x3c3d   :  { %v8557_v47 = vpop.xlane.xlu0 %8556 }
0x3c3e   :  { %v8559_v49 = vsub.f32 %v8551_v9, %v8557_v47  ;;  %v8554_v26 = vpop.xlane.xlu1 %8553 }
0x3c3f   :  { %v8558_v8 = vsub.f32 %v8550_v27, %v8554_v26 }
0x3c40   :  { %v8562_v60 = vmul.f32 1.442695, %v8559_v49 }
0x3c41   :  { %v8560_v51 = vmul.f32 1.442695, %v8558_v8  ;;  %v12054_v33 = vpop.permute.xlu0 %12053 }
0x3c42   :  { %v12056_v35 = vunpack.i.h.bf16 %v12054_v33  ;;  %v12055_v0 = vunpack.i.l.bf16 %v12054_v33  ;;  %v8662_v41 = vpop.permute.xlu1 %8661 }
0x3c43   :  { %12369 = vpow2.f32 %v8560_v51 }
0x3c44   :  { %12371 = vpow2.f32 %v8562_v60  ;;  %v11721_v25 = vpack.c.bf16 %v12056_v35, %v12055_v0 }
0x3c45   :  { %v8664_v45 = vpop.permute.xlu0 %8663 }
0x3c46   :  { %11722 = vmatprep.subr.bf16.mxu1 %v11721_v25  ;;  %v12069_v18 = vpop.permute.xlu1 %12068 }
0x3c47   :  { %11724 = vmatpush3.bf16.msra.mxu1 %v11721_v25  ;;  %v12071_v43 = vunpack.i.h.bf16 %v12069_v18  ;;  %v12070_v6 = vunpack.i.l.bf16 %v12069_v18 }
0x3c48   :  { %11727 = vmatprep.subr.msk.bf16.mxu1 %vm12678_vm3, %v11725_v29 }
0x3c49   :  { %v11735_v49 = vpack.c.bf16 %v12071_v43, %v12070_v6 }
0x3c4d   :  { %v14346_v42 = vpop.eup %12369 }
0x3c4e   :  { %v14348_v58 = vpop.eup %12371  ;;  %11162 = vmatprep.mubr.msk.f32.mxu1 %vm503_vm4, %v14346_v42  ;;  %v8564_v31 = vsel %vm503_vm4, %v14346_v42, 0.0 }
0x3c4f   :  { %11163 = vmatmul.mubr.msk.f32.vlgmr.msra.gmra.mrb[96].mxu1 %vm503_vm4, %v14348_v58 }
0x3c50   :  { %11730 = vmatpush3.bf16.xpose.msk.msra.mxu1 %vm12678_vm3, %v11725_v29  ;;  %11169 = vmatprep.mubr.msk.f32.mxu1 %vm413_vm2, %v8662_v41  ;;  %v7733_v41 = vsel %vm503_vm4, %v14238_v52, 0.0  ;;  %v8567_v52 = vsel %vm503_vm4, %v14348_v58, 0.0 }
0x3c57   :  { %11170 = vmatmul.mubr.msk.f32.vlgmr.msra.gmra.mrb[98].mxu1 %vm413_vm2, %v8664_v45  ;;  %v7932_v45 = vsel %vm503_vm4, %v14246_v23, 0.0 }
0x3d22   :  { %v14358_v48 = vpop.f32.mrb[96].mxu1 }
0x3d23   :  { %v14360_v22 = vpop.f32.mrb[97].mxu1 }
0x3d2a   :  { %v11171_v55 = vpop.f32.mrb[98].mxu1 }
0x3d2b   :  { %v8753_v32 = vmul.f32 0.35355338, %v11171_v55  ;;  %v8743_v54 = vpop.f32.mrb[99].mxu1  ;;  %v7935_v55 = vsel %vm503_vm4, %v14248_v39, 0.0 }
0x3d2c   :  { %v8752_v59 = vmul.f32 0.35355338, %v8743_v54 }
0x3d2d   :  { %v8757_v62 = vsel %vm503_vm4, %v8753_v32, -inf }
0x3d2e   :  { %8758 = vmax.xlane.f32.xlu0 %v8757_v62  ;;  %v8754_v15 = vsel %vm503_vm4, %v8752_v59, -inf }
0x3d2f   :  { %8755 = vmax.xlane.f32.xlu1 %v8754_v15 }
0x3d40   :  { %8863 = vrot.lane.b32.xlu1 %v14278_v2, %s12479_s0 }
0x3d44   :  { %12063 = vrot.lane.b32.xlu0 %v14206_v34, %s12480_s15 }
0x3d48   :  { %8865 = vrot.lane.b32.xlu0 %v14284_v40, %s12479_s0 }
0x3dbb   :  { %v8759_v53 = vpop.xlane.xlu0 %8758 }
0x3dbc   :  { %v8761_v1 = vsub.f32 %v8753_v32, %v8759_v53  ;;  %v8756_v11 = vpop.xlane.xlu1 %8755  ;;  %v8134_v32 = vsel %vm503_vm4, %v14291_v4, 0.0  ;;  %v8137_v4 = vsel %vm503_vm4, %v14293_v13, 0.0 }
0x3dbd   :  { %v8760_v50 = vsub.f32 %v8752_v59, %v8756_v11 }
0x3dbe   :  { %v8764_v9 = vmul.f32 1.442695, %v8761_v1 }
0x3dbf   :  { %v8762_v28 = vmul.f32 1.442695, %v8760_v50  ;;  %v12064_v27 = vpop.permute.xlu0 %12063 }
0x3dc0   :  { %v12066_v61 = vunpack.i.h.bf16 %v12064_v27  ;;  %v12065_v47 = vunpack.i.l.bf16 %v12064_v27  ;;  %v8864_v8 = vpop.permute.xlu1 %8863 }
0x3dc1   :  { %12373 = vpow2.f32 %v8762_v28 }
0x3dc2   :  { %12375 = vpow2.f32 %v8764_v9  ;;  %v11731_v2 = vpack.c.bf16 %v12066_v61, %v12065_v47 }
0x3dc3   :  { %v8866_v60 = vpop.permute.xlu0 %8865 }
0x3dc4   :  { %11732 = vmatprep.subr.bf16.mxu0 %v11731_v2 }
0x3dc5   :  { %11734 = vmatpush3.bf16.msra.mxu0 %v11731_v2  ;;  %v7528_v2 = vsel %vm503_vm4, %v14228_v20, 0.0 }
0x3dc6   :  { %11737 = vmatprep.subr.msk.bf16.mxu0 %vm12678_vm3, %v11735_v49 }
0x3dcb   :  { %v12374_v40 = vpop.eup %12373 }
0x3dcc   :  { %v12376_v26 = vpop.eup %12375  ;;  %11176 = vmatprep.mubr.msk.f32.mxu0 %vm503_vm4, %v12374_v40  ;;  %v8766_v23 = vsel %vm503_vm4, %v12374_v40, 0.0  ;;  %v7531_v40 = vsel %vm503_vm4, %v14230_v17, 0.0 }
0x3dcd   :  { %11177 = vmatmul.mubr.msk.f32.vlgmr.msra.gmra.mrb[90].mxu0 %vm503_vm4, %v12376_v26  ;;  %v8769_v39 = vsel %vm503_vm4, %v12376_v26, 0.0 }
0x3dce   :  { %11740 = vmatpush3.bf16.xpose.msk.msra.mxu0 %vm12678_vm3, %v11735_v49  ;;  %11183 = vmatprep.mubr.msk.f32.mxu0 %vm413_vm2, %v8864_v8 }
0x3dd5   :  { %11184 = vmatmul.mubr.msk.f32.vlgmr.msra.gmra.mrb[92].mxu0 %vm413_vm2, %v8866_v60 }
0x3ea0   :  { %v14378_v51 = vpop.f32.mrb[90].mxu0 }
0x3ea1   :  { %v14380_v33 = vpop.f32.mrb[91].mxu0 }
0x3ea8   :  { %v11185_v37 = vpop.f32.mrb[92].mxu0 }
0x3ea9   :  { %v8955_v63 = vmul.f32 0.35355338, %v11185_v37  ;;  %v8945_v35 = vpop.f32.mrb[93].mxu0 }
0x3eaa   :  { %v8954_v0 = vmul.f32 0.35355338, %v8945_v35 }
0x3eab   :  { %v8959_v25 = vsel %vm503_vm4, %v8955_v63, -inf }
0x3eac   :  { %8960 = vmax.xlane.f32.xlu0 %v8959_v25  ;;  %v8956_v29 = vsel %vm503_vm4, %v8954_v0, -inf }
0x3ead   :  { %8957 = vmax.xlane.f32.xlu1 %v8956_v29 }
0x3eb1   :  { %7731 = vadd.xlane.f32.xlu1 %v7730_v56 }
0x3eb5   :  { %7734 = vadd.xlane.f32.xlu1 %v7733_v41  ;;  %v7223_v41 = vld [vmem:[%s14609_s2 + $0x280] sm:$0xff] }
0x3eb9   :  { %7933 = vadd.xlane.f32.xlu1 %v7932_v45 }
0x3ebd   :  { %7936 = vadd.xlane.f32.xlu1 %v7935_v55 }
0x3ec1   :  { %8135 = vadd.xlane.f32.xlu1 %v8134_v32 }
0x3ec2   :  { %12073 = vrot.lane.b32.xlu0 %v14206_v34, %s12481_s16  ;;  %v8362_v34 = vsel %vm503_vm4, %v14318_v19, 0.0 }
0x3ec5   :  { %8565 = vadd.xlane.f32.xlu1 %v8564_v31 }
0x3ec9   :  { %8568 = vadd.xlane.f32.xlu1 %v8567_v52 }
0x3ecd   :  { %8767 = vadd.xlane.f32.xlu1 %v8766_v23 }
0x3ed1   :  { %8770 = vadd.xlane.f32.xlu1 %v8769_v39 }
0x3ee1   :  { %8138 = vadd.xlane.f32.xlu0 %v8137_v4 }
0x3ee5   :  { %8363 = vadd.xlane.f32.xlu0 %v8362_v34 }
0x3f39   :  { %v8961_v42 = vpop.xlane.xlu0 %8960 }
0x3f3a   :  { %v8963_v54 = vsub.f32 %v8955_v63, %v8961_v42  ;;  %v8958_v59 = vpop.xlane.xlu1 %8957 }
0x3f3b   :  { %v8962_v62 = vsub.f32 %v8954_v0, %v8958_v59 }
0x3f3c   :  { %v8966_v58 = vmul.f32 1.442695, %v8963_v54 }
0x3f3d   :  { %v8964_v15 = vmul.f32 1.442695, %v8962_v62  ;;  %v12074_v18 = vpop.permute.xlu0 %12073 }
0x3f3e   :  { %12377 = vpow2.f32 %v8966_v58  ;;  %v12076_v53 = vunpack.i.h.bf16 %v12074_v18  ;;  %v12075_v1 = vunpack.i.l.bf16 %v12074_v18  ;;  %v7732_v11 = vpop.xlane.xlu1 %7731 }
0x3f3f   :  { %12379 = vpow2.f32 %v8964_v15 }
0x3f40   :  { %v11741_v50 = vpack.c.bf16 %v12076_v53, %v12075_v1  ;;  %12381 = vrcp.f32 %v7732_v11 }
0x3f42   :  { %11742 = vmatprep.subr.bf16.mxu1 %v11741_v50  ;;  %v7735_v13 = vpop.xlane.xlu1 %7734 }
0x3f43   :  { %11744 = vmatpush3.bf16.msra.mxu1 %v11741_v50 }
0x3f46   :  { %v7934_v9 = vpop.xlane.xlu1 %7933 }
0x3f48   :  { %v12378_v19 = vpop.eup %12377 }
0x3f49   :  { %v12380_v28 = vpop.eup %12379  ;;  %v8971_v47 = vsel %vm503_vm4, %v12378_v19, 0.0 }
0x3f4a   :  { %v12382_v27 = vpop.eup %12381  ;;  %11190 = vmatprep.mubr.msk.f32.mxu1 %vm503_vm4, %v12380_v28  ;;  %v7937_v43 = vpop.xlane.xlu1 %7936  ;;  %v8968_v6 = vsel %vm503_vm4, %v12380_v28, 0.0 }
0x3f4b   :  { %12383 = vrcp.f32 %v7937_v43  ;;  %11191 = vmatmul.mubr.msk.f32.vlgmr.msra.gmra.mrb[100].mxu1 %vm503_vm4, %v12378_v19  ;;  %8969 = vadd.xlane.f32.xlu1 %v8968_v6  ;;  %v7825_v61 = vmul.f32 %v12382_v27, %v14264_v46  ;;  %v8365_v46 = vsel %vm503_vm4, %v14320_v21, 0.0  ;;  %v7221_v21 = vld [vmem:[%s14609_s2 + $0x270] sm:$0xff] }
0x3f4c   :  { %12385 = vrcp.f32 %v7735_v13 }
0x3f4d   :  { %8233 = vrot.lane.b32.xlu0 %v7825_v61, %s12482_s17  ;;  %12387 = vrcp.f32 %v7934_v9 }
0x3f4e   :  { %v8136_v8 = vpop.xlane.xlu1 %8135 }
0x3f4f   :  { %8972 = vadd.xlane.f32.xlu1 %v8971_v47  ;;  %12389 = vrcp.f32 %v8136_v8 }
0x3f52   :  { %v8566_v60 = vpop.xlane.xlu1 %8565 }
0x3f53   :  { %7529 = vadd.xlane.f32.xlu1 %v7528_v2  ;;  %12391 = vrcp.f32 %v8566_v60 }
0x3f55   :  { %v12384_v49 = vpop.eup %12383 }
0x3f56   :  { %v8028_v26 = vmul.f32 %v12384_v49, %v14266_v24  ;;  %v8569_v37 = vpop.xlane.xlu1 %8568  ;;  %v12386_v20 = vpop.eup %12385  ;;  %v7220_v24 = vld [vmem:[%s14609_s2 + $0x268] sm:$0xff] }
0x3f57   :  { %7532 = vadd.xlane.f32.xlu1 %v7531_v40  ;;  %v7826_v17 = vmul.f32 %v12386_v20, %v14262_v30  ;;  %v12388_v35 = vpop.eup %12387  ;;  %v11745_v29 = vpack.c.bf16 %v7221_v21, %v7220_v24  ;;  %v7222_v30 = vld [vmem:[%s14609_s2 + $0x278] sm:$0xff] }
0x3f58   :  { %8243 = vrot.lane.b32.xlu0 %v8028_v26, %s12483_s18  ;;  %v8027_v25 = vmul.f32 %v12388_v35, %v14268_v14  ;;  %v11749_v14 = vpack.c.bf16 %v7223_v41, %v7222_v30 }
0x3f59   :  { %v12390_v56 = vpop.eup %12389  ;;  %11746 = vmatprep.subr.bf16.mxu1 %v11745_v29 }
0x3f5a   :  { %v8768_v63 = vpop.xlane.xlu1 %8767  ;;  %11748 = vmatpush3.bf16.msra.mxu1 %v11745_v29  ;;  %v8229_v55 = vmul.f32 %v12390_v56, %v14308_v38 }
0x3f5b   :  { %8366 = vadd.xlane.f32.xlu1 %v8365_v46  ;;  %12393 = vrcp.f32 %v8768_v63  ;;  %11750 = vmatprep.subr.bf16.mxu1 %v11749_v14 }
0x3f5d   :  { %v12392_v32 = vpop.eup %12391 }
0x3f5e   :  { %v8771_v45 = vpop.xlane.xlu1 %8770  ;;  %11752 = vmatpush3.bf16.msra.mxu1 %v11749_v14  ;;  %v8659_v31 = vmul.f32 %v12392_v32, %v14360_v22 }
0x3f65   :  { %v12394_v52 = vpop.eup %12393 }
0x3f66   :  { %v8861_v4 = vmul.f32 %v12394_v52, %v14380_v33 }
0x3f6c   :  { %8235 = vrot.lane.b32.xlu1 %v7826_v17, %s12482_s17 }
0x3f6e   :  { %v8139_v0 = vpop.xlane.xlu0 %8138 }
0x3f6f   :  { %12395 = vrcp.f32 %v8139_v0 }
0x3f70   :  { %8241 = vrot.lane.b32.xlu1 %v8027_v25, %s12483_s18  ;;  %12397 = vrcp.f32 %v8569_v37 }
0x3f71   :  { %12399 = vrcp.f32 %v8771_v45 }
0x3f72   :  { %v8364_v58 = vpop.xlane.xlu0 %8363 }
0x3f74   :  { %8249 = vrot.lane.b32.xlu1 %v8229_v55, %s12484_s27 }
0x3f78   :  { %9067 = vrot.lane.b32.xlu1 %v8659_v31, %s12482_s17 }
0x3f79   :  { %v12396_v23 = vpop.eup %12395 }
0x3f7a   :  { %v8230_v39 = vmul.f32 %v12396_v23, %v14306_v10  ;;  %v12398_v34 = vpop.eup %12397 }
0x3f7b   :  { %v8660_v38 = vmul.f32 %v12398_v34, %v14358_v48  ;;  %v12400_v42 = vpop.eup %12399 }
0x3f7c   :  { %8251 = vrot.lane.b32.xlu0 %v8230_v39, %s12484_s27  ;;  %9075 = vrot.lane.b32.xlu1 %v8861_v4, %s12483_s18  ;;  %v8862_v22 = vmul.f32 %v12400_v42, %v14378_v51 }
0x3f80   :  { %9069 = vrot.lane.b32.xlu0 %v8660_v38, %s12482_s17 }
0x3f84   :  { %9077 = vrot.lane.b32.xlu0 %v8862_v22, %s12483_s18 }
0x3fbf   :  { %v8234_v53 = vpop.permute.xlu0 %8233 }
0x3fca   :  { %v8244_v50 = vpop.permute.xlu0 %8243 }
0x3fd8   :  { %v8970_v54 = vpop.xlane.xlu1 %8969 }
0x3fdc   :  { %v8973_v59 = vpop.xlane.xlu1 %8972 }
0x3fe0   :  { %v7530_v62 = vpop.xlane.xlu1 %7529 }
0x3fe1   :  { %12401 = vrcp.f32 %v7530_v62 }
0x3fe4   :  { %v7533_v10 = vpop.xlane.xlu1 %7532 }
0x3fe5   :  { %12403 = vrcp.f32 %v7533_v10 }
0x3fe8   :  { %v8367_v33 = vpop.xlane.xlu1 %8366 }
0x3fe9   :  { %12405 = vrcp.f32 %v8367_v33 }
0x3fea   :  { %12407 = vrcp.f32 %v8973_v59 }
0x3feb   :  { %v12402_v15 = vpop.eup %12401  ;;  %12409 = vrcp.f32 %v8970_v54 }
0x3fec   :  { %v8236_v18 = vpop.permute.xlu1 %8235  ;;  %v7623_v1 = vmul.f32 %v12402_v15, %v14260_v7  ;;  %12411 = vrcp.f32 %v8364_v58 }
0x3fee   :  { %v8255_v28 = vsel %vm413_vm2, %v7623_v1, %v8234_v53  ;;  %v8252_v61 = vpop.permute.xlu0 %8251  ;;  %v9272_v1 = vld [vmem:[%s14609_s2 + $0x2b0] sm:$0xff] }
0x3fef   :  { %v12404_v48 = vpop.eup %12403 }
0x3ff0   :  { %v7624_v11 = vmul.f32 %v12404_v48, %v14258_v57  ;;  %v8242_v51 = vpop.permute.xlu1 %8241 }
0x3ff1   :  { %v8257_v27 = vsel %vm503_vm4, %v8255_v28, %v8242_v51 }
0x3ff2   :  { %v8256_v13 = vsel %vm413_vm2, %v7624_v11, %v8236_v18  ;;  %v9273_v11 = vld [vmem:[%s14609_s2 + $0x2b8] sm:$0xff] }
0x3ff3   :  { %v12406_v9 = vpop.eup %12405  ;;  %v8258_v19 = vsel %vm503_vm4, %v8256_v13, %v8244_v50  ;;  %v11757_v51 = vpack.c.bf16 %v9273_v11, %v9272_v1 }
0x3ff4   :  { %v8458_v43 = vmul.f32 %v12406_v9, %v14330_v5  ;;  %v8250_v6 = vpop.permute.xlu1 %8249  ;;  %v8260_v7 = vsel %vm1247_vm5, %v8258_v19, %v8252_v61  ;;  %v12408_v57 = vpop.eup %12407 }
0x3ff5   :  { %v8259_v47 = vsel %vm1247_vm5, %v8257_v27, %v8250_v6  ;;  %v12410_v49 = vpop.eup %12409  ;;  %v9070_v5 = vpop.permute.xlu0 %9069 }
0x3ff6   :  { %11201 = vmatprep.mubr.msk.f32.mxu1 %vm138_vm1, %v8259_v47  ;;  %v12412_v60 = vpop.eup %12411  ;;  %v9090_v17 = vsel %vm413_vm2, %v8458_v43, %v9070_v5  ;;  %v10012_v5 = vld [vmem:[%s14609_s2 + $0x290] ss:$0 sm:$0xff] }
0x3ff7   :  { %11202 = vmatmul.mubr.msk.f32.vlgmr.msra.gmra.mrb[102].mxu1 %vm138_vm1, %v8260_v7  ;;  %v8457_v63 = vmul.f32 %v12412_v60, %v14332_v12  ;;  %v10007_v12 = vld [vmem:[%s14609_s2 + $0x288] ss:$0 sm:$0xff] }
0x3ff8   :  { %v9068_v46 = vpop.permute.xlu1 %9067 }
0x3ff9   :  { %v9078_v37 = vpop.permute.xlu0 %9077  ;;  %v9089_v35 = vsel %vm413_vm2, %v8457_v63, %v9068_v46 }
0x3ffa   :  { %v9092_v25 = vsel %vm503_vm4, %v9090_v17, %v9078_v37 }
0x3ffc   :  { %v9076_v20 = vpop.permute.xlu1 %9075 }
0x3ffd   :  { %v9091_v21 = vsel %vm503_vm4, %v9089_v35, %v9076_v20  ;;  %v10013_v20 = vld [vmem:[%s14609_s2 + $0x298] ss:$0 sm:$0xff] }
0x401e   :  { %v11192_v2 = vpop.f32.mrb[100].mxu1 }
0x401f   :  { %v9064_v40 = vmul.f32 %v12408_v57, %v11192_v2  ;;  %v9052_v26 = vpop.f32.mrb[101].mxu1 }
0x4020   :  { %v9063_v8 = vmul.f32 %v12410_v49, %v9052_v26 }
0x4021   :  { %9085 = vrot.lane.b32.xlu0 %v9064_v40, %s12484_s27 }
0x4022   :  { %9083 = vrot.lane.b32.xlu1 %v9063_v8, %s12484_s27 }
0x4093   :  { %v9086_v24 = vpop.permute.xlu0 %9085 }
0x4094   :  { %v9084_v0 = vpop.permute.xlu1 %9083  ;;  %v9094_v56 = vsel %vm1247_vm5, %v9092_v25, %v9086_v24 }
0x4095   :  { %v9093_v29 = vsel %vm1247_vm5, %v9091_v21, %v9084_v0  ;;  %v9412_v21 = vld [vmem:[%s14609_s2 + $0x2c8] sm:$0xff]  ;;  %v9413_v0 = vld [vmem:[%s14609_s2 + $0x2d0] sm:$0xff] }
0x4096   :  { %11204 = vmatprep.mubr.msk.f32.mxu1 %vm138_vm1, %v9093_v29  ;;  %v11761_v25 = vpack.c.bf16 %v9413_v0, %v9412_v21  ;;  %v9414_v29 = vld [vmem:[%s14609_s2 + $0x2d8] sm:$0xff] }
0x4097   :  { %11205 = vmatmul.mubr.msk.f32.gmra.mrb[104].mxu1 %vm138_vm1, %v9094_v56  ;;  %v9415_v56 = vld [vmem:[%s14609_s2 + $0x2e0] sm:$0xff] }
0x4098   :  { %11762 = vmatprep.subr.bf16.mxu1 %v11761_v25 }
0x4099   :  { %11764 = vmatpush3.bf16.msra.mxu1 %v11761_v25 }
0x40ca   :  { %v11203_v30 = vpop.f32.mrb[102].mxu1 }
0x40cb   :  { %v9183_v41 = vadd.f32 %v11203_v30, %v10007_v12  ;;  %v9177_v45 = vpop.f32.mrb[103].mxu1  ;;  %v9416_v30 = vld [vmem:[%s14609_s2 + $0x2e8] sm:$0xff] }
0x40cc   :  { %v9178_v55 = vadd.f32 %v10007_v12, %v9177_v45 }
0x40cd   :  { %v14474_v14 = vadd.f32 %v9183_v41, %v14013_v36  ;;  %v9417_v41 = vld [vmem:[%s14609_s2 + $0x2f0] sm:$0xff] }
0x40ce   :  { %v14477_v32 = vadd.f32 %v9178_v55, %v14009_v16  ;;  %v11769_v45 = vpack.c.bf16 %v9417_v41, %v9416_v30  ;;  %v9418_v55 = vld [vmem:[%s14609_s2 + $0x2f8] sm:$0xff] }
0x40cf   :  { %v9205_v31 = vsel %vm138_vm1, %v14474_v14, 0.0 }
0x40d0   :  { %9206 = vadd.xlane.f32.xlu0 %v9205_v31  ;;  %v9202_v52 = vsel %vm138_vm1, %v14477_v32, 0.0  ;;  %v9419_v31 = vld [vmem:[%s14609_s2 + $0x300] sm:$0xff] }
0x40d1   :  { %9203 = vadd.xlane.f32.xlu1 %v9202_v52  ;;  %v11773_v52 = vpack.c.bf16 %v9419_v31, %v9418_v55 }
0x415d   :  { %v9207_v23 = vpop.xlane.xlu0 %9206 }
0x415e   :  { %v9204_v39 = vpop.xlane.xlu1 %9203  ;;  %v9215_v4 = vmul.f32 0.03125, %v9207_v23 }
0x415f   :  { %v9214_v34 = vmul.f32 0.03125, %v9204_v39 }
0x4160   :  { %v9219_v42 = vsub.f32 %v14474_v14, %v9215_v4 }
0x4161   :  { %v9218_v16 = vsub.f32 %v14477_v32, %v9214_v34 }
0x4162   :  { %v9223_v33 = vmul.f32 %v9219_v42, %v9219_v42 }
0x4163   :  { %v9222_v15 = vmul.f32 %v9218_v16, %v9218_v16 }
0x4164   :  { %v9229_v18 = vsel %vm138_vm1, %v9223_v33, 0.0 }
0x4165   :  { %v9226_v53 = vsel %vm138_vm1, %v9222_v15, 0.0 }
0x416a   :  { %v11206_v38 = vpop.f32.mrb[104].mxu1 }
0x416b   :  { %v9193_v36 = vadd.f32 %v11206_v38, %v10007_v12  ;;  %v9187_v22 = vpop.f32.mrb[105].mxu1 }
0x416c   :  { %v9188_v54 = vadd.f32 %v10007_v12, %v9187_v22  ;;  %v11765_v12 = vpack.c.bf16 %v9415_v56, %v9414_v29 }
0x416d   :  { %v14486_v59 = vadd.f32 %v9193_v36, %v14090_v3  ;;  %v9270_v3 = vld [vmem:[%s14609_s2 + $0x2a0] sm:$0xff] }
0x416e   :  { %v14489_v62 = vadd.f32 %v9188_v54, %v14093_v44  ;;  %v9271_v44 = vld [vmem:[%s14609_s2 + $0x2a8] sm:$0xff]  ;;  %11766 = vmatprep.subr.bf16.mxu1 %v11765_v12 }
0x416f   :  { %v9211_v10 = vsel %vm138_vm1, %v14486_v59, 0.0  ;;  %v11753_v48 = vpack.c.bf16 %v9271_v44, %v9270_v3  ;;  %11768 = vmatpush3.bf16.msra.mxu1 %v11765_v12 }
0x4170   :  { %9212 = vadd.xlane.f32.xlu1 %v9211_v10  ;;  %v9208_v58 = vsel %vm138_vm1, %v14489_v62, 0.0  ;;  %11770 = vmatprep.subr.bf16.mxu1 %v11769_v45 }
0x4171   :  { %9209 = vadd.xlane.f32.xlu0 %v9208_v58  ;;  %11754 = vmatprep.subr.bf16.mxu0 %v11753_v48 }
0x4172   :  { %11756 = vmatpush3.bf16.msra.mxu0 %v11753_v48 }
0x4173   :  { %11758 = vmatprep.subr.bf16.mxu0 %v11757_v51  ;;  %11772 = vmatpush3.bf16.msra.mxu1 %v11769_v45 }
0x4174   :  { %9230 = vadd.xlane.f32.xlu1 %v9229_v18  ;;  %11774 = vmatprep.subr.bf16.mxu1 %v11773_v52  ;;  %v10014_v18 = vld [vmem:[%s14609_s2 + $0x2c0] ss:$0 sm:$0xff] }
0x4175   :  { %9227 = vadd.xlane.f32.xlu0 %v9226_v53 }
0x4176   :  { %11760 = vmatpush3.bf16.msra.mxu0 %v11757_v51 }
0x4177   :  { %11776 = vmatpush3.bf16.msra.mxu1 %v11773_v52 }
0x41fd   :  { %v9213_v50 = vpop.xlane.xlu1 %9212 }
0x41fe   :  { %v9217_v13 = vmul.f32 0.03125, %v9213_v50  ;;  %v9210_v9 = vpop.xlane.xlu0 %9209 }
0x41ff   :  { %v9216_v19 = vmul.f32 0.03125, %v9210_v9 }
0x4200   :  { %v9221_v28 = vsub.f32 %v14486_v59, %v9217_v13 }
0x4201   :  { %v9220_v27 = vsub.f32 %v14489_v62, %v9216_v19  ;;  %v9231_v43 = vpop.xlane.xlu1 %9230 }
0x4202   :  { %v9239_v6 = vmul.f32 0.03125, %v9231_v43  ;;  %v9228_v61 = vpop.xlane.xlu0 %9227  ;;  %v9225_v47 = vmul.f32 %v9221_v28, %v9221_v28 }
0x4203   :  { %v9238_v7 = vmul.f32 0.03125, %v9228_v61  ;;  %v9224_v57 = vmul.f32 %v9220_v27, %v9220_v27 }
0x4204   :  { %v9243_v2 = vadd.f32 1e-05, %v9239_v6  ;;  %v9235_v49 = vsel %vm138_vm1, %v9225_v47, 0.0 }
0x4205   :  { %v9242_v40 = vadd.f32 1e-05, %v9238_v7  ;;  %9236 = vadd.xlane.f32.xlu1 %v9235_v49  ;;  %v9232_v26 = vsel %vm138_vm1, %v9224_v57, 0.0 }
0x4206   :  { %12413 = vrsqrt.f32 %v9243_v2  ;;  %9233 = vadd.xlane.f32.xlu0 %v9232_v26 }
0x4207   :  { %12415 = vrsqrt.f32 %v9242_v40 }
0x4210   :  { %v12414_v8 = vpop.eup %12413 }
0x4211   :  { %v12416_v46 = vpop.eup %12415  ;;  %v9251_v60 = vmul.f32 %v12414_v8, %v9219_v42 }
0x4212   :  { %v9250_v37 = vmul.f32 %v12416_v46, %v9218_v16 }
0x4213   :  { %v9259_v63 = vmul.f32 %v10012_v5, %v9251_v60 }
0x4214   :  { %v9258_v17 = vmul.f32 %v10012_v5, %v9250_v37 }
0x4215   :  { %v9267_v24 = vadd.f32 %v10013_v20, %v9259_v63 }
0x4216   :  { %v9266_v35 = vadd.f32 %v10013_v20, %v9258_v17 }
0x4218   :  { %11215 = vmatprep.mubr.msk.f32.mxu0 %vm138_vm1, %v9266_v35 }
0x4219   :  { %11216 = vmatmul.mubr.msk.f32.vlgmr.msra.gmra.mrb[94].mxu0 %vm138_vm1, %v9267_v24 }
0x4292   :  { %v9237_v23 = vpop.xlane.xlu1 %9236 }
0x4293   :  { %v9241_v39 = vmul.f32 0.03125, %v9237_v23  ;;  %v9234_v4 = vpop.xlane.xlu0 %9233  ;;  %v10023_v23 = vld [vmem:[%s14609_s2 + $0x308] ss:$0 sm:$0xff] }
0x4294   :  { %v9240_v34 = vmul.f32 0.03125, %v9234_v4 }
0x4295   :  { %v9245_v38 = vadd.f32 1e-05, %v9241_v39 }
0x4296   :  { %v9244_v42 = vadd.f32 1e-05, %v9240_v34 }
0x4297   :  { %12417 = vrsqrt.f32 %v9245_v38 }
0x4298   :  { %12419 = vrsqrt.f32 %v9244_v42 }
0x42a1   :  { %v12418_v36 = vpop.eup %12417 }
0x42a2   :  { %v12420_v22 = vpop.eup %12419  ;;  %v9253_v16 = vmul.f32 %v12418_v36, %v9221_v28 }
0x42a3   :  { %v9252_v54 = vmul.f32 %v12420_v22, %v9220_v27 }
0x42a4   :  { %v9261_v10 = vmul.f32 %v10012_v5, %v9253_v16 }
0x42a5   :  { %v9260_v33 = vmul.f32 %v10012_v5, %v9252_v54 }
0x42a6   :  { %v9269_v15 = vadd.f32 %v10013_v20, %v9261_v10 }
0x42a7   :  { %v9268_v58 = vadd.f32 %v10013_v20, %v9260_v33 }
0x42a9   :  { %11218 = vmatprep.mubr.msk.f32.mxu0 %vm138_vm1, %v9268_v58 }
0x42aa   :  { %11219 = vmatmul.mubr.msk.f32.gmra.mrb[96].mxu0 %vm138_vm1, %v9269_v15 }
0x42ec   :  { %v11217_v53 = vpop.f32.mrb[94].mxu0 }
0x42ed   :  { %v9363_v3 = vadd.f32 %v11217_v53, %v10014_v18  ;;  %v9357_v44 = vpop.f32.mrb[95].mxu0 }
0x42ee   :  { %v9358_v48 = vadd.f32 %v10014_v18, %v9357_v44 }
0x42ef   :  { %v9377_v1 = vmul.f32 %v9363_v3, %v9363_v3 }
0x42f0   :  { %v9376_v11 = vmul.f32 %v9358_v48, %v9358_v48 }
0x42f1   :  { %v9381_v51 = vmul.f32 %v9377_v1, %v9363_v3 }
0x42f2   :  { %v9380_v50 = vmul.f32 %v9376_v11, %v9358_v48 }
0x42f3   :  { %v9385_v13 = vmul.f32 0.044715, %v9381_v51 }
0x42f4   :  { %v9384_v9 = vmul.f32 0.044715, %v9380_v50  ;;  %v9600_v50 = vld [vmem:[%s14609_s2 + $0x320] sm:$0xff] }
0x42f5   :  { %v9389_v19 = vadd.f32 %v9385_v13, %v9363_v3  ;;  %v9601_v13 = vld [vmem:[%s14609_s2 + $0x328] sm:$0xff] }
0x42f6   :  { %v9388_v28 = vadd.f32 %v9384_v9, %v9358_v48  ;;  %v11777_v9 = vpack.c.bf16 %v9601_v13, %v9600_v50 }
0x42f7   :  { %v9393_v27 = vmul.f32 0.7978846, %v9389_v19  ;;  %v9602_v19 = vld [vmem:[%s14609_s2 + $0x330] sm:$0xff] }
0x42f8   :  { %v9392_v43 = vmul.f32 0.7978846, %v9388_v28  ;;  %v9603_v28 = vld [vmem:[%s14609_s2 + $0x338] sm:$0xff]  ;;  %11778 = vmatprep.subr.bf16.mxu0 %v11777_v9 }
0x42f9   :  { %12421 = vtanh.f32 %v9393_v27  ;;  %v11781_v27 = vpack.c.bf16 %v9603_v28, %v9602_v19  ;;  %11780 = vmatpush3.bf16.msra.mxu0 %v11777_v9 }
0x42fa   :  { %12423 = vtanh.f32 %v9392_v43 }
0x42fb   :  { %11782 = vmatprep.subr.bf16.mxu0 %v11781_v27 }
0x42fd   :  { %11784 = vmatpush3.bf16.msra.mxu0 %v11781_v27 }
0x4303   :  { %v12422_v6 = vpop.eup %12421 }
0x4304   :  { %v12424_v61 = vpop.eup %12423  ;;  %v9401_v47 = vadd.f32 1.0, %v12422_v6 }
0x4305   :  { %v9400_v7 = vadd.f32 1.0, %v12424_v61 }
0x4306   :  { %v9405_v57 = vmul.f32 0.5, %v9401_v47 }
0x4307   :  { %v9404_v2 = vmul.f32 0.5, %v9400_v7 }
0x4308   :  { %v9409_v40 = vmul.f32 %v9405_v57, %v9363_v3 }
0x4309   :  { %v9408_v49 = vmul.f32 %v9404_v2, %v9358_v48 }
0x430b   :  { %11237 = vmatprep.mubr.msk.f32.mxu1 %vm32_vm0, %v9408_v49 }
0x430c   :  { %11238 = vmatmul.mubr.msk.f32.vlgmr.msra.gmra.mrb[106].mxu1 %vm32_vm0, %v9409_v40 }
0x437d   :  { %v11220_v26 = vpop.f32.mrb[96].mxu0 }
0x437e   :  { %v9373_v8 = vadd.f32 %v11220_v26, %v10014_v18  ;;  %v9367_v5 = vpop.f32.mrb[97].mxu0 }
0x437f   :  { %v9368_v46 = vadd.f32 %v10014_v18, %v9367_v5 }
0x4380   :  { %v9379_v60 = vmul.f32 %v9373_v8, %v9373_v8 }
0x4381   :  { %v9378_v37 = vmul.f32 %v9368_v46, %v9368_v46 }
0x4382   :  { %v9383_v20 = vmul.f32 %v9379_v60, %v9373_v8 }
0x4383   :  { %v9382_v63 = vmul.f32 %v9378_v37, %v9368_v46 }
0x4384   :  { %v9387_v17 = vmul.f32 0.044715, %v9383_v20 }
0x4385   :  { %v9386_v35 = vmul.f32 0.044715, %v9382_v63 }
0x4386   :  { %v9391_v24 = vadd.f32 %v9387_v17, %v9373_v8  ;;  %v10024_v17 = vld [vmem:[%s14609_s2 + $0x310] ss:$0 sm:$0xff] }
0x4387   :  { %v9390_v21 = vadd.f32 %v9386_v35, %v9368_v46 }
0x4388   :  { %v9395_v0 = vmul.f32 0.7978846, %v9391_v24 }
0x4389   :  { %v9394_v25 = vmul.f32 0.7978846, %v9390_v21 }
0x438a   :  { %12425 = vtanh.f32 %v9395_v0  ;;  %v10025_v0 = vld [vmem:[%s14609_s2 + $0x318] ss:$0 sm:$0xff] }
0x438b   :  { %12427 = vtanh.f32 %v9394_v25 }
0x4394   :  { %v12426_v29 = vpop.eup %12425 }
0x4395   :  { %v12428_v56 = vpop.eup %12427  ;;  %v9403_v12 = vadd.f32 1.0, %v12426_v29 }
0x4396   :  { %v9402_v30 = vadd.f32 1.0, %v12428_v56 }
0x4397   :  { %v9407_v41 = vmul.f32 0.5, %v9403_v12 }
0x4398   :  { %v9406_v45 = vmul.f32 0.5, %v9402_v30 }
0x4399   :  { %v9411_v31 = vmul.f32 %v9407_v41, %v9373_v8 }
0x439a   :  { %v9410_v55 = vmul.f32 %v9406_v45, %v9368_v46 }
0x439c   :  { %11240 = vmatprep.mubr.msk.f32.mxu1 %vm32_vm0, %v9410_v55 }
0x439d   :  { %11241 = vmatmul.mubr.msk.f32.gmra.mrb[108].mxu1 %vm32_vm0, %v9411_v31 }
0x43df   :  { %v11239_v52 = vpop.f32.mrb[106].mxu1 }
0x43e0   :  { %v9518_v39 = vadd.f32 %v11239_v52, %v14474_v14  ;;  %v9498_v4 = vpop.f32.mrb[107].mxu1 }
0x43e1   :  { %v9517_v34 = vadd.f32 %v9498_v4, %v14477_v32 }
0x43e2   :  { %v9527_v38 = vadd.f32 %v10023_v23, %v9518_v39 }
0x43e3   :  { %v9526_v42 = vadd.f32 %v10023_v23, %v9517_v34 }
0x43e4   :  { %v9535_v36 = vsel %vm138_vm1, %v9527_v38, 0.0 }
0x43e5   :  { %9536 = vadd.xlane.f32.xlu1 %v9535_v36  ;;  %v9532_v22 = vsel %vm138_vm1, %v9526_v42, 0.0 }
0x43e6   :  { %9533 = vadd.xlane.f32.xlu0 %v9532_v22 }
0x4470   :  { %v11242_v16 = vpop.f32.mrb[108].mxu1 }
0x4471   :  { %v9520_v54 = vadd.f32 %v11242_v16, %v14486_v59  ;;  %v9508_v10 = vpop.f32.mrb[109].mxu1  ;;  %v10026_v16 = vld [vmem:[%s14609_s2 + $0x340] ss:$0 sm:$0xff] }
0x4472   :  { %v9519_v33 = vadd.f32 %v9508_v10, %v14489_v62  ;;  %v9537_v58 = vpop.xlane.xlu1 %9536 }
0x4473   :  { %v9529_v15 = vadd.f32 %v10023_v23, %v9520_v54  ;;  %v9545_v14 = vmul.f32 0.03125, %v9537_v58  ;;  %v9534_v18 = vpop.xlane.xlu0 %9533 }
0x4474   :  { %v9528_v53 = vadd.f32 %v10023_v23, %v9519_v33  ;;  %v9544_v32 = vmul.f32 0.03125, %v9534_v18 }
0x4475   :  { %v9549_v3 = vsub.f32 %v9527_v38, %v9545_v14  ;;  %v9541_v44 = vsel %vm138_vm1, %v9529_v15, 0.0 }
0x4476   :  { %v9548_v48 = vsub.f32 %v9526_v42, %v9544_v32  ;;  %9542 = vadd.xlane.f32.xlu1 %v9541_v44  ;;  %v9538_v1 = vsel %vm138_vm1, %v9528_v53, 0.0 }
0x4477   :  { %9539 = vadd.xlane.f32.xlu0 %v9538_v1  ;;  %v9553_v11 = vmul.f32 %v9549_v3, %v9549_v3 }
0x4478   :  { %v9552_v51 = vmul.f32 %v9548_v48, %v9548_v48 }
0x4479   :  { %v9559_v59 = vsel %vm138_vm1, %v9553_v11, 0.0 }
0x447a   :  { %9560 = vadd.xlane.f32.xlu1 %v9559_v59  ;;  %v9556_v62 = vsel %vm138_vm1, %v9552_v51, 0.0 }
0x447b   :  { %9557 = vadd.xlane.f32.xlu0 %v9556_v62 }
0x4503   :  { %v9543_v43 = vpop.xlane.xlu1 %9542 }
0x4504   :  { %v9547_v6 = vmul.f32 0.03125, %v9543_v43  ;;  %v9540_v61 = vpop.xlane.xlu0 %9539 }
0x4505   :  { %v9546_v47 = vmul.f32 0.03125, %v9540_v61 }
0x4506   :  { %v9551_v7 = vsub.f32 %v9529_v15, %v9547_v6 }
0x4507   :  { %v9550_v57 = vsub.f32 %v9528_v53, %v9546_v47  ;;  %v9561_v2 = vpop.xlane.xlu1 %9560 }
0x4508   :  { %v9569_v49 = vmul.f32 0.03125, %v9561_v2  ;;  %v9558_v40 = vpop.xlane.xlu0 %9557  ;;  %v9555_v26 = vmul.f32 %v9551_v7, %v9551_v7 }
0x4509   :  { %v9568_v8 = vmul.f32 0.03125, %v9558_v40  ;;  %v9554_v5 = vmul.f32 %v9550_v57, %v9550_v57 }
0x450a   :  { %v9573_v46 = vadd.f32 1e-05, %v9569_v49  ;;  %v9565_v60 = vsel %vm138_vm1, %v9555_v26, 0.0 }
0x450b   :  { %v9572_v37 = vadd.f32 1e-05, %v9568_v8  ;;  %9566 = vadd.xlane.f32.xlu1 %v9565_v60  ;;  %v9562_v20 = vsel %vm138_vm1, %v9554_v5, 0.0 }
0x450c   :  { %12429 = vrsqrt.f32 %v9573_v46  ;;  %9563 = vadd.xlane.f32.xlu0 %v9562_v20 }
0x450d   :  { %12431 = vrsqrt.f32 %v9572_v37 }
0x4516   :  { %v12430_v63 = vpop.eup %12429 }
0x4517   :  { %v12432_v35 = vpop.eup %12431  ;;  %v9581_v24 = vmul.f32 %v12430_v63, %v9549_v3 }
0x4518   :  { %v9580_v21 = vmul.f32 %v12432_v35, %v9548_v48 }
0x4519   :  { %v9589_v25 = vmul.f32 %v10024_v17, %v9581_v24 }
0x451a   :  { %v9588_v29 = vmul.f32 %v10024_v17, %v9580_v21 }
0x451b   :  { %v9597_v12 = vadd.f32 %v10025_v0, %v9589_v25 }
0x451c   :  { %v9596_v56 = vadd.f32 %v10025_v0, %v9588_v29 }
0x451e   :  { %11251 = vmatprep.mubr.msk.f32.mxu0 %vm138_vm1, %v9596_v56 }
0x451f   :  { %11252 = vmatmul.mubr.msk.f32.vlgmr.msra.gmra.mrb[98].mxu0 %vm138_vm1, %v9597_v12 }
0x4598   :  { %v9567_v30 = vpop.xlane.xlu1 %9566 }
0x4599   :  { %v9571_v41 = vmul.f32 0.03125, %v9567_v30  ;;  %v9564_v45 = vpop.xlane.xlu0 %9563 }
0x459a   :  { %v9570_v55 = vmul.f32 0.03125, %v9564_v45 }
0x459b   :  { %v9575_v31 = vadd.f32 1e-05, %v9571_v41 }
0x459c   :  { %v9574_v52 = vadd.f32 1e-05, %v9570_v55 }
0x459d   :  { %12433 = vrsqrt.f32 %v9575_v31 }
0x459e   :  { %12435 = vrsqrt.f32 %v9574_v52 }
0x45a7   :  { %v12434_v23 = vpop.eup %12433 }
0x45a8   :  { %v12436_v39 = vpop.eup %12435  ;;  %v9583_v4 = vmul.f32 %v12434_v23, %v9551_v7 }
0x45a9   :  { %v9582_v34 = vmul.f32 %v12436_v39, %v9550_v57 }
0x45aa   :  { %v9591_v38 = vmul.f32 %v10024_v17, %v9583_v4 }
0x45ab   :  { %v9590_v42 = vmul.f32 %v10024_v17, %v9582_v34 }
0x45ac   :  { %v9599_v22 = vadd.f32 %v10025_v0, %v9591_v38 }
0x45ad   :  { %v9598_v36 = vadd.f32 %v10025_v0, %v9590_v42 }
0x45af   :  { %11254 = vmatprep.mubr.msk.f32.mxu0 %vm138_vm1, %v9598_v36 }
0x45b0   :  { %11255 = vmatmul.mubr.msk.f32.gmra.mrb[100].mxu0 %vm138_vm1, %v9599_v22 }
0x45f2   :  { %v11253_v54 = vpop.f32.mrb[98].mxu0 }
0x45f3   :  { %v9693_v10 = vadd.f32 %v11253_v54, %v10026_v16  ;;  %v9687_v33 = vpop.f32.mrb[99].mxu0 }
0x45f4   :  { %v9688_v58 = vadd.f32 %v10026_v16, %v9687_v33 }
0x45f5   :  { %9707 = vst [vmem:[#allocation2 + $0x8] sm:$0xff] %v9693_v10 }
0x45f6   :  { %9706 = vst [vmem:[#allocation2] sm:$0xff] %v9688_v58 }
0x4683   :  { %v11256_v15 = vpop.f32.mrb[100].mxu0 }
0x4684   :  { %v9703_v14 = vadd.f32 %v11256_v15, %v10026_v16  ;;  %v9697_v18 = vpop.f32.mrb[101].mxu0 }
0x4685   :  { %v9698_v53 = vadd.f32 %v10026_v16, %v9697_v18 }
0x4686   :  { %9709 = vst [vmem:[#allocation2 + $0x18] sm:$0xff] %v9703_v14 }
0x4687   :  { %9708 = vst [vmem:[#allocation2 + $0x10] sm:$0xff] %v9698_v53 }
0x4688   :  { %12462 = shalt.err (!%p12459_p4)
}
0x4689   :  { %s12463_s0 = scalar_lea.hbm %s14610_s3, 512 }
0x468a   :  { %p12464_p5 = scmp.ne.s32.totalorder %s14610_s3, %s12463_s0  ;;  %p12467_p6 = scmp.lt.u32.totalorder %s12463_s0, %s14610_s3 }
0x468c   :  { %p12469_p7 = pnand %p12467_p6, %p12464_p5 }
0x468e   :  { %12472 = shalt.err (!%p12469_p7)
}
0x468f   :  { %s12486_s27 = smov 128  }
0x4690   :  { %9721 = dma.vmem_to_hbm [thread:$0]  %s9716_s12, 512, %s14610_s3, [#allocation3], %s12486_s27, %s12486_s27, %s12482_s17  }
0x4691   :  { %12473 = dma.done.wait [#allocation3], 512  }
0x4692   :  { %12474 = vsyncadd [#allocation3], 4294966784 }
0x4693   :  { %9725 = vsyncpa [#allocation3], 1 }

</bundles_post_ra>
